<compile_context>
chip_gen: v5e
topology: v5e:2x2
jax: 0.10.0
libtpu: 0.0.40
codegen_flags: <defaults>
</compile_context>

<pallas_src>
import jax
import jax.numpy as jnp
import numpy as np
from jax.experimental import pallas as pl
from jax.experimental.pallas import tpu as pltpu

LANE = 128          # TPU lane width: pad channel dims to multiples of this
BN_EPS = 1e-5       # nn.BatchNorm1d default
NEG_SLOPE = 0.1     # LeakyReLU(negative_slope=0.1)
VMEM_LIMIT = 48 * 1024 * 1024


def _round_up(x, m):
    return ((x + m - 1) // m) * m


# ----------------------------------------------------------------------------
# Feature layer kernel: (prev-layer BN + LeakyReLU) -> conv-as-matmul -> stats
# ----------------------------------------------------------------------------
def _make_conv_bn_kernel(tile_m, m_valid, apply_act):
    def kernel(xp_ref, scsh_ref, w_ref, y_ref, stats_ref):
        i = pl.program_id(0)

        x = xp_ref[...]                                   # (tile_m, K) f32
        if apply_act:
            # Fused normalize + LeakyReLU of the previous layer's raw conv out.
            pre = x * scsh_ref[0:1, :] + scsh_ref[1:2, :]
            x = jnp.where(pre >= 0, pre, NEG_SLOPE * pre)

        # Mask rows padded beyond the real M = N*T so they contribute nothing
        # to the conv output nor to the batch statistics.
        row = jax.lax.broadcasted_iota(jnp.int32, (tile_m, 1), 0) + i * tile_m
        x = jnp.where(row < m_valid, x, 0.0)

        acc = jnp.dot(x, w_ref[...], preferred_element_type=jnp.float32)
        y_ref[...] = acc

        @pl.when(i == 0)
        def _init():
            stats_ref[...] = jnp.zeros_like(stats_ref)

        stats_ref[...] += jnp.concatenate(
            [jnp.sum(acc, axis=0, keepdims=True),
             jnp.sum(acc * acc, axis=0, keepdims=True)],
            axis=0,
        )

    return kernel


def _conv_bn_layer_call(xp, scsh, w, *, m_valid, apply_act, tile_m):
    m_pad, k_dim = xp.shape
    co_pad = w.shape[1]
    grid = (m_pad // tile_m,)

    y, stats = pl.pallas_call(
        _make_conv_bn_kernel(tile_m, m_valid, apply_act),
        out_shape=(
            jax.ShapeDtypeStruct((m_pad, co_pad), jnp.float32),
            jax.ShapeDtypeStruct((2, co_pad), jnp.float32),
        ),
        grid_spec=pltpu.PrefetchScalarGridSpec(
            num_scalar_prefetch=0,
            grid=grid,
            in_specs=[
                pl.BlockSpec((tile_m, k_dim), lambda i: (i, 0)),   # activation tile
                pl.BlockSpec((2, k_dim), lambda i: (0, 0)),        # resident scale/shift
                pl.BlockSpec((k_dim, co_pad), lambda i: (0, 0)),   # resident conv weight
            ],
            out_specs=(
                pl.BlockSpec((tile_m, co_pad), lambda i: (i, 0)),  # raw conv output
                pl.BlockSpec((2, co_pad), lambda i: (0, 0)),       # resident stats acc
            ),
        ),
        compiler_params=pltpu.CompilerParams(
            dimension_semantics=("arbitrary",),   # stats accumulate across M tiles
            vmem_limit_bytes=VMEM_LIMIT,
        ),
    )(xp, scsh, w)
    return y, stats


# ----------------------------------------------------------------------------
# Classifier kernel: (layer-4 BN + LeakyReLU) -> Linear -> ReLU -> Linear
# ----------------------------------------------------------------------------
def _mlp_kernel(x_ref, scsh_ref, w1_ref, b1_ref, w2_ref, b2_ref, o_ref):
    x = x_ref[...]                                        # (tile_n, K1)
    pre = x * scsh_ref[0:1, :] + scsh_ref[1:2, :]
    z = jnp.where(pre >= 0, pre, NEG_SLOPE * pre)

    h = jnp.dot(z, w1_ref[...], preferred_element_type=jnp.float32) + b1_ref[...]
    h = jnp.maximum(h, 0.0)
    o_ref[...] = (
        jnp.dot(h, w2_ref[...], preferred_element_type=jnp.float32) + b2_ref[...]
    )


def _mlp_call(xflat, scsh, w1, b1, w2, b2, *, tile_n):
    n_pad, k1 = xflat.shape
    hp = w1.shape[1]
    op = w2.shape[1]
    grid = (n_pad // tile_n,)

    return pl.pallas_call(
        _mlp_kernel,
        out_shape=jax.ShapeDtypeStruct((n_pad, op), jnp.float32),
        grid_spec=pltpu.PrefetchScalarGridSpec(
            num_scalar_prefetch=0,
            grid=grid,
            in_specs=[
                pl.BlockSpec((tile_n, k1), lambda i: (i, 0)),   # batch-row tile
                pl.BlockSpec((2, k1), lambda i: (0, 0)),        # resident scale/shift
                pl.BlockSpec((k1, hp), lambda i: (0, 0)),       # resident W1
                pl.BlockSpec((1, hp), lambda i: (0, 0)),        # resident b1
                pl.BlockSpec((hp, op), lambda i: (0, 0)),       # resident W2
                pl.BlockSpec((1, op), lambda i: (0, 0)),        # resident b2
            ],
            out_specs=pl.BlockSpec((tile_n, op), lambda i: (i, 0)),
        ),
        compiler_params=pltpu.CompilerParams(
            dimension_semantics=("parallel",),
            vmem_limit_bytes=VMEM_LIMIT,
        ),
    )(xflat, scsh, w1, b1, w2, b2)


# ----------------------------------------------------------------------------
# Host-side forward (mirrors DeepSVDD.forward, training-mode BatchNorm)
# ----------------------------------------------------------------------------
def deep_svdd_forward(x, kp, *, tile_m=512, tile_n=256):
    """x: (N, C_in, L_in) float32, PyTorch NCL layout."""
    n, c_in, _ = x.shape
    c_in_p = kp["wm"][0].shape[0] // 2

    # Channels-last, lane-padded. This single input transpose is the only
    # activation relayout in the whole pipeline.
    x_cl = jnp.transpose(x, (0, 2, 1))
    x_cl = jnp.pad(x_cl, ((0, 0), (0, 0), (0, c_in_p - c_in)))

    sc_sh = jnp.concatenate(
        [jnp.ones((1, c_in_p), jnp.float32), jnp.zeros((1, c_in_p), jnp.float32)],
        axis=0,
    )  # identity (unused for layer 1)

    for li in range(4):
        _, l_cur, cp_in = x_cl.shape
        t = l_cur // 2
        m = n * t
        # Non-overlapping k=2 pairing is a pure reshape in channels-last layout.
        xp = x_cl[:, : 2 * t, :].reshape(n, t, 2 * cp_in).reshape(m, 2 * cp_in)

        tile = min(tile_m, _round_up(m, 8))
        m_pad = _round_up(m, tile)
        if m_pad != m:
            xp = jnp.pad(xp, ((0, m_pad - m), (0, 0)))

        scsh_k = jnp.tile(sc_sh, (1, 2))  # scale/shift repeated for both taps

        y, stats = _conv_bn_layer_call(
            xp, scsh_k, kp["wm"][li], m_valid=m, apply_act=(li > 0), tile_m=tile
        )

        # Finalize exact training-mode BN (biased variance over N*T samples).
        mean = stats[0] / m
        var = stats[1] / m - mean * mean
        inv = jax.lax.rsqrt(jnp.maximum(var, 0.0) + BN_EPS)
        scale = kp["gamma"][li] * inv
        shift = kp["beta"][li] - mean * scale
        sc_sh = jnp.stack([scale, shift], axis=0)

        x_cl = y[:m].reshape(n, t, y.shape[1])

    # Classifier: channels-last flatten; the channel-major PyTorch view order
    # is baked into the (permuted) W1 rows.
    _, t4, c4p = x_cl.shape
    xflat = x_cl.reshape(n, t4 * c4p)
    scsh_flat = jnp.tile(sc_sh, (1, t4))

    tile_b = min(tile_n, _round_up(n, 8))
    n_pad = _round_up(n, tile_b)
    if n_pad != n:
        xflat = jnp.pad(xflat, ((0, n_pad - n), (0, 0)))

    out = _mlp_call(
        xflat, scsh_flat, kp["w1"], kp["b1"], kp["w2"], kp["b2"], tile_n=tile_b
    )
    return out[:n, : kp["out_dim"]]


# ----------------------------------------------------------------------------
# Parameter construction / packing
# ----------------------------------------------------------------------------
def make_params(key, in_channel, in_dim, base_channel, out_dim, hidden=2048):
    """PyTorch-layout params (DeepSVDD.weights_init-style initialization).
    Conv biases are omitted: training-mode BN cancels them exactly."""
    channels = [in_channel, base_channel, 2 * base_channel,
                4 * base_channel, 8 * base_channel]
    keys = jax.random.split(key, 16)
    ki = 0
    feat = []
    length = in_dim
    for i in range(4):
        ci, co = channels[i], channels[i + 1]
        w = 0.02 * jax.random.normal(keys[ki], (co, ci, 2), jnp.float32); ki += 1
        g = 1.0 + 0.02 * jax.random.normal(keys[ki], (co,), jnp.float32); ki += 1
        b = 0.02 * jax.random.normal(keys[ki], (co,), jnp.float32); ki += 1
        feat.append((w, g, b))
        length = length // 2
    k1 = channels[-1] * length
    w1 = 0.02 * jax.random.normal(keys[ki], (hidden, k1), jnp.float32); ki += 1
    b1 = 0.02 * jax.random.normal(keys[ki], (hidden,), jnp.float32); ki += 1
    w2 = 0.02 * jax.random.normal(keys[ki], (out_dim, hidden), jnp.float32); ki += 1
    b2 = 0.02 * jax.random.normal(keys[ki], (out_dim,), jnp.float32); ki += 1
    return {"feat": feat, "fc1": (w1, b1), "fc2": (w2, b2)}


def pack_params(tp):
    """Convert PyTorch-layout params to padded, matmul-ready kernel params."""
    kp = {"wm": [], "gamma": [], "beta": []}
    for (w, g, b) in tp["feat"]:                   # w: (Co, Ci, 2)
        co, ci, _ = w.shape
        cip, cop = _round_up(ci, LANE), _round_up(co, LANE)
        wk = jnp.transpose(w, (2, 1, 0))           # (2, Ci, Co)
        wk = jnp.pad(wk, ((0, 0), (0, cip - ci), (0, cop - co)))
        kp["wm"].append(wk.reshape(2 * cip, cop))
        kp["gamma"].append(jnp.pad(g, (0, cop - co)))   # padded gamma = 0 -> dead lanes
        kp["beta"].append(jnp.pad(b, (0, cop - co)))

    w1, b1 = tp["fc1"]                              # (H, C4*T4), (H,)
    w2, b2 = tp["fc2"]                              # (out, H), (out,)
    h, k1 = w1.shape
    out_dim = w2.shape[0]
    c4 = tp["feat"][-1][0].shape[0]
    t4 = k1 // c4
    c4p = _round_up(c4, LANE)
    hp = _round_up(h, LANE)
    outp = _round_up(out_dim, LANE)

    # Permute W1 rows so the kernel consumes the channels-last (N, T4*C4p)
    # flatten directly (bit-matches x.view(N, C*L) channel-major semantics).
    w1_cl = jnp.transpose(w1.reshape(h, c4, t4), (2, 1, 0))   # (T4, C4, H)
    w1_cl = jnp.pad(w1_cl, ((0, 0), (0, c4p - c4), (0, hp - h)))
    kp["w1"] = w1_cl.reshape(t4 * c4p, hp)
    kp["b1"] = jnp.pad(b1, (0, hp - h)).reshape(1, hp)
    kp["w2"] = jnp.pad(w2.T, ((0, hp - h), (0, outp - out_dim)))
    kp["b2"] = jnp.pad(b2, (0, outp - out_dim)).reshape(1, outp)
    kp["out_dim"] = out_dim
    return kp


# ----------------------------------------------------------------------------
# Pure-JAX reference (exact PyTorch training-mode semantics)
# ----------------------------------------------------------------------------
def reference_forward(x, tp):
    h = x
    for (w, g, b) in tp["feat"]:
        n, ci, l_cur = h.shape
        t = l_cur // 2
        hp = h[:, :, : 2 * t].reshape(n, ci, t, 2)
        y = jnp.einsum("nctk,ock->not", hp, w)
        mean = y.mean(axis=(0, 2), keepdims=True)
        var = y.var(axis=(0, 2), keepdims=True)            # biased
        yn = (y - mean) * jax.lax.rsqrt(var + BN_EPS)
        yn = yn * g[None, :, None] + b[None, :, None]
        h = jnp.where(yn >= 0, yn, NEG_SLOPE * yn)
    flat = h.reshape(h.shape[0], -1)
    w1, b1 = tp["fc1"]
    w2, b2 = tp["fc2"]
    hid = jnp.maximum(flat @ w1.T + b1, 0.0)
    return hid @ w2.T + b2


# ----------------------------------------------------------------------------
if __name__ == "__main__":
    key = jax.random.PRNGKey(0)
    N, C_IN, L_IN = 4, 4, 64
    BASE_CH, OUT_DIM = 8, 8

    k_x, k_p = jax.random.split(key)
    x = jax.random.normal(k_x, (N, C_IN, L_IN), jnp.float32)
    tp = make_params(k_p, C_IN, L_IN, BASE_CH, OUT_DIM)
    kp = pack_params(tp)

    @jax.jit
    def fwd(inp):
        return deep_svdd_forward(inp, kp)

    out = jax.block_until_ready(fwd(x))
    ref = jax.block_until_ready(reference_forward(x, tp))

    assert out.shape == (N, OUT_DIM), out.shape
    np.testing.assert_allclose(np.asarray(out), np.asarray(ref), rtol=3e-2, atol=3e-2)
    print("KERNEL_OK")
</pallas_src>

<mosaic_0001>
module attributes {stable_mosaic.version = 11 : i64} {
  func.func @kernel(%arg0: i32, %arg1: memref<128x256xf32, #tpu.memory_space<vmem>>, %arg2: memref<2x256xf32, #tpu.memory_space<vmem>>, %arg3: memref<256x128xf32, #tpu.memory_space<vmem>>, %arg4: memref<128x128xf32, #tpu.memory_space<vmem>>, %arg5: memref<2x128xf32, #tpu.memory_space<vmem>>) attributes {dimension_semantics = [#tpu.dimension_semantics<arbitrary>], iteration_bounds = array<i64: 1>, scalar_prefetch = 0 : i64, scratch_operands = 0 : i64, tpu.core_type = #tpu.core_type<tc>, window_params = [{transform_indices = @transform_0, window_bounds = array<i64: 128, 256>}, {pipeline_mode = #tpu.pipeline_mode<synchronous>, transform_indices = @transform_1, window_bounds = array<i64: 2, 256>}, {pipeline_mode = #tpu.pipeline_mode<synchronous>, transform_indices = @transform_2, window_bounds = array<i64: 256, 128>}, {transform_indices = @transform_3, window_bounds = array<i64: 128, 128>}, {pipeline_mode = #tpu.pipeline_mode<synchronous>, transform_indices = @transform_4, window_bounds = array<i64: 2, 128>}]} {
    %c0 = arith.constant 0 : index
    %c0_0 = arith.constant 0 : index
    %0 = vector.load %arg1[%c0, %c0_0] : memref<128x256xf32, #tpu.memory_space<vmem>>, vector<128x256xf32>
    %1 = tpu.iota {dimensions = array<i32: 0>} : vector<128x1xi32>
    %c128_i32 = arith.constant 128 : i32
    %2 = arith.muli %arg0, %c128_i32 : i32
    %3 = vector.broadcast %2 : i32 to vector<128x1xi32>
    %4 = arith.addi %1, %3 : vector<128x1xi32>
    %c128_i32_1 = arith.constant 128 : i32
    %5 = vector.broadcast %c128_i32_1 : i32 to vector<128x1xi32>
    %6 = arith.cmpi slt, %4, %5 : vector<128x1xi32>
    %cst = arith.constant 0.000000e+00 : f32
    %7 = vector.shape_cast %6 : vector<128x1xi1> to vector<128x1xi1>
    %8 = vector.broadcast %7 : vector<128x1xi1> to vector<128x256xi1>
    %9 = vector.broadcast %cst : f32 to vector<128x256xf32>
    %10 = arith.select %8, %0, %9 : vector<128x256xi1>, vector<128x256xf32>
    %c0_2 = arith.constant 0 : index
    %c0_3 = arith.constant 0 : index
    %11 = vector.load %arg3[%c0_2, %c0_3] : memref<256x128xf32, #tpu.memory_space<vmem>>, vector<256x128xf32>
    %cst_4 = arith.constant dense<0.000000e+00> : vector<128x128xf32>
    %12 = tpu.matmul %10, %11, %cst_4 {dimension_numbers = #tpu.dot_dimension_numbers<[1], [0], [0], [1], [0, 0, 1, 1], [], []>} : vector<128x256xf32>, vector<256x128xf32>, vector<128x128xf32> -> vector<128x128xf32>
    %c0_5 = arith.constant 0 : index
    %c0_6 = arith.constant 0 : index
    %13 = vector.load %arg4[%c0_5, %c0_6] : memref<128x128xf32, #tpu.memory_space<vmem>>, vector<128x128xf32>
    tpu.vector_store %arg4[%c0_5, %c0_6], %12 {strides = array<i32>} : memref<128x128xf32, #tpu.memory_space<vmem>>, vector<128x128xf32>,
    %c0_i32 = arith.constant 0 : i32
    %14 = arith.cmpi eq, %arg0, %c0_i32 : i32
    %15 = arith.extui %14 : i1 to i32
    %c0_i32_7 = arith.constant 0 : i32
    %16 = arith.cmpi ne, %15, %c0_i32_7 : i32
    scf.if %16 {
      %cst_14 = arith.constant 0.000000e+00 : f32
      %26 = vector.broadcast %cst_14 : f32 to vector<2x128xf32>
      %c0_15 = arith.constant 0 : index
      %c0_16 = arith.constant 0 : index
      %27 = vector.load %arg5[%c0_15, %c0_16] : memref<2x128xf32, #tpu.memory_space<vmem>>, vector<2x128xf32>
      tpu.vector_store %arg5[%c0_15, %c0_16], %26 {strides = array<i32>} : memref<2x128xf32, #tpu.memory_space<vmem>>, vector<2x128xf32>,
    } else {
    }
    %c0_8 = arith.constant 0 : index
    %c0_9 = arith.constant 0 : index
    %17 = vector.load %arg5[%c0_8, %c0_9] : memref<2x128xf32, #tpu.memory_space<vmem>>, vector<2x128xf32>
    %cst_10 = arith.constant dense<0.000000e+00> : vector<128xf32>
    %18 = vector.multi_reduction <add>, %12, %cst_10 [0] : vector<128x128xf32> to vector<128xf32>
    %19 = vector.shape_cast %18 : vector<128xf32> to vector<1x128xf32>
    %20 = arith.mulf %12, %12 : vector<128x128xf32>
    %cst_11 = arith.constant dense<0.000000e+00> : vector<128xf32>
    %21 = vector.multi_reduction <add>, %20, %cst_11 [0] : vector<128x128xf32> to vector<128xf32>
    %22 = vector.shape_cast %21 : vector<128xf32> to vector<1x128xf32>
    %23 = tpu.concatenate %19, %22 in 0 : vector<1x128xf32>, vector<1x128xf32> -> vector<2x128xf32>
    %24 = arith.addf %17, %23 : vector<2x128xf32>
    %c0_12 = arith.constant 0 : index
    %c0_13 = arith.constant 0 : index
    %25 = vector.load %arg5[%c0_12, %c0_13] : memref<2x128xf32, #tpu.memory_space<vmem>>, vector<2x128xf32>
    tpu.vector_store %arg5[%c0_12, %c0_13], %24 {strides = array<i32>} : memref<2x128xf32, #tpu.memory_space<vmem>>, vector<2x128xf32>,
    return
  }
  func.func @transform_0(%arg0: i32) -> (i32, i32) {
    %c0_i32 = arith.constant 0 : i32
    %c0_i32_0 = arith.constant 0 : i32
    return %arg0, %c0_i32 : i32, i32
  }
  func.func @transform_1(%arg0: i32) -> (i32, i32) {
    %c0_i32 = arith.constant 0 : i32
    %c0_i32_0 = arith.constant 0 : i32
    %c0_i32_1 = arith.constant 0 : i32
    return %c0_i32, %c0_i32_0 : i32, i32
  }
  func.func @transform_2(%arg0: i32) -> (i32, i32) {
    %c0_i32 = arith.constant 0 : i32
    %c0_i32_0 = arith.constant 0 : i32
    %c0_i32_1 = arith.constant 0 : i32
    return %c0_i32, %c0_i32_0 : i32, i32
  }
  func.func @transform_3(%arg0: i32) -> (i32, i32) {
    %c0_i32 = arith.constant 0 : i32
    %c0_i32_0 = arith.constant 0 : i32
    return %arg0, %c0_i32 : i32, i32
  }
  func.func @transform_4(%arg0: i32) -> (i32, i32) {
    %c0_i32 = arith.constant 0 : i32
    %c0_i32_0 = arith.constant 0 : i32
    %c0_i32_1 = arith.constant 0 : i32
    return %c0_i32, %c0_i32_0 : i32, i32
  }
}

module attributes {stable_mosaic.version = 11 : i64} {
  func.func @kernel(%arg0: i32, %arg1: memref<64x256xf32, #tpu.memory_space<vmem>>, %arg2: memref<2x256xf32, #tpu.memory_space<vmem>>, %arg3: memref<256x128xf32, #tpu.memory_space<vmem>>, %arg4: memref<64x128xf32, #tpu.memory_space<vmem>>, %arg5: memref<2x128xf32, #tpu.memory_space<vmem>>) attributes {dimension_semantics = [#tpu.dimension_semantics<arbitrary>], iteration_bounds = array<i64: 1>, scalar_prefetch = 0 : i64, scratch_operands = 0 : i64, tpu.core_type = #tpu.core_type<tc>, window_params = [{transform_indices = @transform_0, window_bounds = array<i64: 64, 256>}, {pipeline_mode = #tpu.pipeline_mode<synchronous>, transform_indices = @transform_1, window_bounds = array<i64: 2, 256>}, {pipeline_mode = #tpu.pipeline_mode<synchronous>, transform_indices = @transform_2, window_bounds = array<i64: 256, 128>}, {transform_indices = @transform_3, window_bounds = array<i64: 64, 128>}, {pipeline_mode = #tpu.pipeline_mode<synchronous>, transform_indices = @transform_4, window_bounds = array<i64: 2, 128>}]} {
    %c0 = arith.constant 0 : index
    %c0_0 = arith.constant 0 : index
    %0 = vector.load %arg1[%c0, %c0_0] : memref<64x256xf32, #tpu.memory_space<vmem>>, vector<64x256xf32>
    %c0_1 = arith.constant 0 : index
    %c0_2 = arith.constant 0 : index
    %1 = vector.load %arg2[%c0_1, %c0_2] : memref<2x256xf32, #tpu.memory_space<vmem>>, vector<1x256xf32>
    %2 = vector.broadcast %1 : vector<1x256xf32> to vector<64x256xf32>
    %3 = arith.mulf %0, %2 : vector<64x256xf32>
    %c1 = arith.constant 1 : index
    %c0_3 = arith.constant 0 : index
    %4 = vector.load %arg2[%c1, %c0_3] : memref<2x256xf32, #tpu.memory_space<vmem>>, vector<1x256xf32>
    %5 = vector.broadcast %4 : vector<1x256xf32> to vector<64x256xf32>
    %6 = arith.addf %3, %5 : vector<64x256xf32>
    %cst = arith.constant 0.000000e+00 : f32
    %7 = vector.broadcast %cst : f32 to vector<64x256xf32>
    %8 = arith.cmpf oge, %6, %7 : vector<64x256xf32>
    %cst_4 = arith.constant 1.000000e-01 : f32
    %9 = vector.broadcast %cst_4 : f32 to vector<64x256xf32>
    %10 = arith.mulf %9, %6 : vector<64x256xf32>
    %11 = arith.select %8, %6, %10 : vector<64x256xi1>, vector<64x256xf32>
    %12 = tpu.iota {dimensions = array<i32: 0>} : vector<64x1xi32>
    %c64_i32 = arith.constant 64 : i32
    %13 = arith.muli %arg0, %c64_i32 : i32
    %14 = vector.broadcast %13 : i32 to vector<64x1xi32>
    %15 = arith.addi %12, %14 : vector<64x1xi32>
    %c64_i32_5 = arith.constant 64 : i32
    %16 = vector.broadcast %c64_i32_5 : i32 to vector<64x1xi32>
    %17 = arith.cmpi slt, %15, %16 : vector<64x1xi32>
    %cst_6 = arith.constant 0.000000e+00 : f32
    %18 = vector.shape_cast %17 : vector<64x1xi1> to vector<64x1xi1>
    %19 = vector.broadcast %18 : vector<64x1xi1> to vector<64x256xi1>
    %20 = vector.broadcast %cst_6 : f32 to vector<64x256xf32>
    %21 = arith.select %19, %11, %20 : vector<64x256xi1>, vector<64x256xf32>
    %c0_7 = arith.constant 0 : index
    %c0_8 = arith.constant 0 : index
    %22 = vector.load %arg3[%c0_7, %c0_8] : memref<256x128xf32, #tpu.memory_space<vmem>>, vector<256x128xf32>
    %cst_9 = arith.constant dense<0.000000e+00> : vector<64x128xf32>
    %23 = tpu.matmul %21, %22, %cst_9 {dimension_numbers = #tpu.dot_dimension_numbers<[1], [0], [0], [1], [0, 0, 1, 1], [], []>} : vector<64x256xf32>, vector<256x128xf32>, vector<64x128xf32> -> vector<64x128xf32>
    %c0_10 = arith.constant 0 : index
    %c0_11 = arith.constant 0 : index
    %24 = vector.load %arg4[%c0_10, %c0_11] : memref<64x128xf32, #tpu.memory_space<vmem>>, vector<64x128xf32>
    tpu.vector_store %arg4[%c0_10, %c0_11], %23 {strides = array<i32>} : memref<64x128xf32, #tpu.memory_space<vmem>>, vector<64x128xf32>,
    %c0_i32 = arith.constant 0 : i32
    %25 = arith.cmpi eq, %arg0, %c0_i32 : i32
    %26 = arith.extui %25 : i1 to i32
    %c0_i32_12 = arith.constant 0 : i32
    %27 = arith.cmpi ne, %26, %c0_i32_12 : i32
    scf.if %27 {
      %cst_19 = arith.constant 0.000000e+00 : f32
      %37 = vector.broadcast %cst_19 : f32 to vector<2x128xf32>
      %c0_20 = arith.constant 0 : index
      %c0_21 = arith.constant 0 : index
      %38 = vector.load %arg5[%c0_20, %c0_21] : memref<2x128xf32, #tpu.memory_space<vmem>>, vector<2x128xf32>
      tpu.vector_store %arg5[%c0_20, %c0_21], %37 {strides = array<i32>} : memref<2x128xf32, #tpu.memory_space<vmem>>, vector<2x128xf32>,
    } else {
    }
    %c0_13 = arith.constant 0 : index
    %c0_14 = arith.constant 0 : index
    %28 = vector.load %arg5[%c0_13, %c0_14] : memref<2x128xf32, #tpu.memory_space<vmem>>, vector<2x128xf32>
    %cst_15 = arith.constant dense<0.000000e+00> : vector<128xf32>
    %29 = vector.multi_reduction <add>, %23, %cst_15 [0] : vector<64x128xf32> to vector<128xf32>
    %30 = vector.shape_cast %29 : vector<128xf32> to vector<1x128xf32>
    %31 = arith.mulf %23, %23 : vector<64x128xf32>
    %cst_16 = arith.constant dense<0.000000e+00> : vector<128xf32>
    %32 = vector.multi_reduction <add>, %31, %cst_16 [0] : vector<64x128xf32> to vector<128xf32>
    %33 = vector.shape_cast %32 : vector<128xf32> to vector<1x128xf32>
    %34 = tpu.concatenate %30, %33 in 0 : vector<1x128xf32>, vector<1x128xf32> -> vector<2x128xf32>
    %35 = arith.addf %28, %34 : vector<2x128xf32>
    %c0_17 = arith.constant 0 : index
    %c0_18 = arith.constant 0 : index
    %36 = vector.load %arg5[%c0_17, %c0_18] : memref<2x128xf32, #tpu.memory_space<vmem>>, vector<2x128xf32>
    tpu.vector_store %arg5[%c0_17, %c0_18], %35 {strides = array<i32>} : memref<2x128xf32, #tpu.memory_space<vmem>>, vector<2x128xf32>,
    return
  }
  func.func @transform_0(%arg0: i32) -> (i32, i32) {
    %c0_i32 = arith.constant 0 : i32
    %c0_i32_0 = arith.constant 0 : i32
    return %arg0, %c0_i32 : i32, i32
  }
  func.func @transform_1(%arg0: i32) -> (i32, i32) {
    %c0_i32 = arith.constant 0 : i32
    %c0_i32_0 = arith.constant 0 : i32
    %c0_i32_1 = arith.constant 0 : i32
    return %c0_i32, %c0_i32_0 : i32, i32
  }
  func.func @transform_2(%arg0: i32) -> (i32, i32) {
    %c0_i32 = arith.constant 0 : i32
    %c0_i32_0 = arith.constant 0 : i32
    %c0_i32_1 = arith.constant 0 : i32
    return %c0_i32, %c0_i32_0 : i32, i32
  }
  func.func @transform_3(%arg0: i32) -> (i32, i32) {
    %c0_i32 = arith.constant 0 : i32
    %c0_i32_0 = arith.constant 0 : i32
    return %arg0, %c0_i32 : i32, i32
  }
  func.func @transform_4(%arg0: i32) -> (i32, i32) {
    %c0_i32 = arith.constant 0 : i32
    %c0_i32_0 = arith.constant 0 : i32
    %c0_i32_1 = arith.constant 0 : i32
    return %c0_i32, %c0_i32_0 : i32, i32
  }
}

module attributes {stable_mosaic.version = 11 : i64} {
  func.func @kernel(%arg0: i32, %arg1: memref<32x256xf32, #tpu.memory_space<vmem>>, %arg2: memref<2x256xf32, #tpu.memory_space<vmem>>, %arg3: memref<256x128xf32, #tpu.memory_space<vmem>>, %arg4: memref<32x128xf32, #tpu.memory_space<vmem>>, %arg5: memref<2x128xf32, #tpu.memory_space<vmem>>) attributes {dimension_semantics = [#tpu.dimension_semantics<arbitrary>], iteration_bounds = array<i64: 1>, scalar_prefetch = 0 : i64, scratch_operands = 0 : i64, tpu.core_type = #tpu.core_type<tc>, window_params = [{transform_indices = @transform_0, window_bounds = array<i64: 32, 256>}, {pipeline_mode = #tpu.pipeline_mode<synchronous>, transform_indices = @transform_1, window_bounds = array<i64: 2, 256>}, {pipeline_mode = #tpu.pipeline_mode<synchronous>, transform_indices = @transform_2, window_bounds = array<i64: 256, 128>}, {transform_indices = @transform_3, window_bounds = array<i64: 32, 128>}, {pipeline_mode = #tpu.pipeline_mode<synchronous>, transform_indices = @transform_4, window_bounds = array<i64: 2, 128>}]} {
    %c0 = arith.constant 0 : index
    %c0_0 = arith.constant 0 : index
    %0 = vector.load %arg1[%c0, %c0_0] : memref<32x256xf32, #tpu.memory_space<vmem>>, vector<32x256xf32>
    %c0_1 = arith.constant 0 : index
    %c0_2 = arith.constant 0 : index
    %1 = vector.load %arg2[%c0_1, %c0_2] : memref<2x256xf32, #tpu.memory_space<vmem>>, vector<1x256xf32>
    %2 = vector.broadcast %1 : vector<1x256xf32> to vector<32x256xf32>
    %3 = arith.mulf %0, %2 : vector<32x256xf32>
    %c1 = arith.constant 1 : index
    %c0_3 = arith.constant 0 : index
    %4 = vector.load %arg2[%c1, %c0_3] : memref<2x256xf32, #tpu.memory_space<vmem>>, vector<1x256xf32>
    %5 = vector.broadcast %4 : vector<1x256xf32> to vector<32x256xf32>
    %6 = arith.addf %3, %5 : vector<32x256xf32>
    %cst = arith.constant 0.000000e+00 : f32
    %7 = vector.broadcast %cst : f32 to vector<32x256xf32>
    %8 = arith.cmpf oge, %6, %7 : vector<32x256xf32>
    %cst_4 = arith.constant 1.000000e-01 : f32
    %9 = vector.broadcast %cst_4 : f32 to vector<32x256xf32>
    %10 = arith.mulf %9, %6 : vector<32x256xf32>
    %11 = arith.select %8, %6, %10 : vector<32x256xi1>, vector<32x256xf32>
    %12 = tpu.iota {dimensions = array<i32: 0>} : vector<32x1xi32>
    %c32_i32 = arith.constant 32 : i32
    %13 = arith.muli %arg0, %c32_i32 : i32
    %14 = vector.broadcast %13 : i32 to vector<32x1xi32>
    %15 = arith.addi %12, %14 : vector<32x1xi32>
    %c32_i32_5 = arith.constant 32 : i32
    %16 = vector.broadcast %c32_i32_5 : i32 to vector<32x1xi32>
    %17 = arith.cmpi slt, %15, %16 : vector<32x1xi32>
    %cst_6 = arith.constant 0.000000e+00 : f32
    %18 = vector.shape_cast %17 : vector<32x1xi1> to vector<32x1xi1>
    %19 = vector.broadcast %18 : vector<32x1xi1> to vector<32x256xi1>
    %20 = vector.broadcast %cst_6 : f32 to vector<32x256xf32>
    %21 = arith.select %19, %11, %20 : vector<32x256xi1>, vector<32x256xf32>
    %c0_7 = arith.constant 0 : index
    %c0_8 = arith.constant 0 : index
    %22 = vector.load %arg3[%c0_7, %c0_8] : memref<256x128xf32, #tpu.memory_space<vmem>>, vector<256x128xf32>
    %cst_9 = arith.constant dense<0.000000e+00> : vector<32x128xf32>
    %23 = tpu.matmul %21, %22, %cst_9 {dimension_numbers = #tpu.dot_dimension_numbers<[1], [0], [0], [1], [0, 0, 1, 1], [], []>} : vector<32x256xf32>, vector<256x128xf32>, vector<32x128xf32> -> vector<32x128xf32>
    %c0_10 = arith.constant 0 : index
    %c0_11 = arith.constant 0 : index
    %24 = vector.load %arg4[%c0_10, %c0_11] : memref<32x128xf32, #tpu.memory_space<vmem>>, vector<32x128xf32>
    tpu.vector_store %arg4[%c0_10, %c0_11], %23 {strides = array<i32>} : memref<32x128xf32, #tpu.memory_space<vmem>>, vector<32x128xf32>,
    %c0_i32 = arith.constant 0 : i32
    %25 = arith.cmpi eq, %arg0, %c0_i32 : i32
    %26 = arith.extui %25 : i1 to i32
    %c0_i32_12 = arith.constant 0 : i32
    %27 = arith.cmpi ne, %26, %c0_i32_12 : i32
    scf.if %27 {
      %cst_19 = arith.constant 0.000000e+00 : f32
      %37 = vector.broadcast %cst_19 : f32 to vector<2x128xf32>
      %c0_20 = arith.constant 0 : index
      %c0_21 = arith.constant 0 : index
      %38 = vector.load %arg5[%c0_20, %c0_21] : memref<2x128xf32, #tpu.memory_space<vmem>>, vector<2x128xf32>
      tpu.vector_store %arg5[%c0_20, %c0_21], %37 {strides = array<i32>} : memref<2x128xf32, #tpu.memory_space<vmem>>, vector<2x128xf32>,
    } else {
    }
    %c0_13 = arith.constant 0 : index
    %c0_14 = arith.constant 0 : index
    %28 = vector.load %arg5[%c0_13, %c0_14] : memref<2x128xf32, #tpu.memory_space<vmem>>, vector<2x128xf32>
    %cst_15 = arith.constant dense<0.000000e+00> : vector<128xf32>
    %29 = vector.multi_reduction <add>, %23, %cst_15 [0] : vector<32x128xf32> to vector<128xf32>
    %30 = vector.shape_cast %29 : vector<128xf32> to vector<1x128xf32>
    %31 = arith.mulf %23, %23 : vector<32x128xf32>
    %cst_16 = arith.constant dense<0.000000e+00> : vector<128xf32>
    %32 = vector.multi_reduction <add>, %31, %cst_16 [0] : vector<32x128xf32> to vector<128xf32>
    %33 = vector.shape_cast %32 : vector<128xf32> to vector<1x128xf32>
    %34 = tpu.concatenate %30, %33 in 0 : vector<1x128xf32>, vector<1x128xf32> -> vector<2x128xf32>
    %35 = arith.addf %28, %34 : vector<2x128xf32>
    %c0_17 = arith.constant 0 : index
    %c0_18 = arith.constant 0 : index
    %36 = vector.load %arg5[%c0_17, %c0_18] : memref<2x128xf32, #tpu.memory_space<vmem>>, vector<2x128xf32>
    tpu.vector_store %arg5[%c0_17, %c0_18], %35 {strides = array<i32>} : memref<2x128xf32, #tpu.memory_space<vmem>>, vector<2x128xf32>,
    return
  }
  func.func @transform_0(%arg0: i32) -> (i32, i32) {
    %c0_i32 = arith.constant 0 : i32
    %c0_i32_0 = arith.constant 0 : i32
    return %arg0, %c0_i32 : i32, i32
  }
  func.func @transform_1(%arg0: i32) -> (i32, i32) {
    %c0_i32 = arith.constant 0 : i32
    %c0_i32_0 = arith.constant 0 : i32
    %c0_i32_1 = arith.constant 0 : i32
    return %c0_i32, %c0_i32_0 : i32, i32
  }
  func.func @transform_2(%arg0: i32) -> (i32, i32) {
    %c0_i32 = arith.constant 0 : i32
    %c0_i32_0 = arith.constant 0 : i32
    %c0_i32_1 = arith.constant 0 : i32
    return %c0_i32, %c0_i32_0 : i32, i32
  }
  func.func @transform_3(%arg0: i32) -> (i32, i32) {
    %c0_i32 = arith.constant 0 : i32
    %c0_i32_0 = arith.constant 0 : i32
    return %arg0, %c0_i32 : i32, i32
  }
  func.func @transform_4(%arg0: i32) -> (i32, i32) {
    %c0_i32 = arith.constant 0 : i32
    %c0_i32_0 = arith.constant 0 : i32
    %c0_i32_1 = arith.constant 0 : i32
    return %c0_i32, %c0_i32_0 : i32, i32
  }
}

module attributes {stable_mosaic.version = 11 : i64} {
  func.func @kernel(%arg0: i32, %arg1: memref<16x256xf32, #tpu.memory_space<vmem>>, %arg2: memref<2x256xf32, #tpu.memory_space<vmem>>, %arg3: memref<256x128xf32, #tpu.memory_space<vmem>>, %arg4: memref<16x128xf32, #tpu.memory_space<vmem>>, %arg5: memref<2x128xf32, #tpu.memory_space<vmem>>) attributes {dimension_semantics = [#tpu.dimension_semantics<arbitrary>], iteration_bounds = array<i64: 1>, scalar_prefetch = 0 : i64, scratch_operands = 0 : i64, tpu.core_type = #tpu.core_type<tc>, window_params = [{transform_indices = @transform_0, window_bounds = array<i64: 16, 256>}, {pipeline_mode = #tpu.pipeline_mode<synchronous>, transform_indices = @transform_1, window_bounds = array<i64: 2, 256>}, {pipeline_mode = #tpu.pipeline_mode<synchronous>, transform_indices = @transform_2, window_bounds = array<i64: 256, 128>}, {transform_indices = @transform_3, window_bounds = array<i64: 16, 128>}, {pipeline_mode = #tpu.pipeline_mode<synchronous>, transform_indices = @transform_4, window_bounds = array<i64: 2, 128>}]} {
    %c0 = arith.constant 0 : index
    %c0_0 = arith.constant 0 : index
    %0 = vector.load %arg1[%c0, %c0_0] : memref<16x256xf32, #tpu.memory_space<vmem>>, vector<16x256xf32>
    %c0_1 = arith.constant 0 : index
    %c0_2 = arith.constant 0 : index
    %1 = vector.load %arg2[%c0_1, %c0_2] : memref<2x256xf32, #tpu.memory_space<vmem>>, vector<1x256xf32>
    %2 = vector.broadcast %1 : vector<1x256xf32> to vector<16x256xf32>
    %3 = arith.mulf %0, %2 : vector<16x256xf32>
    %c1 = arith.constant 1 : index
    %c0_3 = arith.constant 0 : index
    %4 = vector.load %arg2[%c1, %c0_3] : memref<2x256xf32, #tpu.memory_space<vmem>>, vector<1x256xf32>
    %5 = vector.broadcast %4 : vector<1x256xf32> to vector<16x256xf32>
    %6 = arith.addf %3, %5 : vector<16x256xf32>
    %cst = arith.constant 0.000000e+00 : f32
    %7 = vector.broadcast %cst : f32 to vector<16x256xf32>
    %8 = arith.cmpf oge, %6, %7 : vector<16x256xf32>
    %cst_4 = arith.constant 1.000000e-01 : f32
    %9 = vector.broadcast %cst_4 : f32 to vector<16x256xf32>
    %10 = arith.mulf %9, %6 : vector<16x256xf32>
    %11 = arith.select %8, %6, %10 : vector<16x256xi1>, vector<16x256xf32>
    %12 = tpu.iota {dimensions = array<i32: 0>} : vector<16x1xi32>
    %c16_i32 = arith.constant 16 : i32
    %13 = arith.muli %arg0, %c16_i32 : i32
    %14 = vector.broadcast %13 : i32 to vector<16x1xi32>
    %15 = arith.addi %12, %14 : vector<16x1xi32>
    %c16_i32_5 = arith.constant 16 : i32
    %16 = vector.broadcast %c16_i32_5 : i32 to vector<16x1xi32>
    %17 = arith.cmpi slt, %15, %16 : vector<16x1xi32>
    %cst_6 = arith.constant 0.000000e+00 : f32
    %18 = vector.shape_cast %17 : vector<16x1xi1> to vector<16x1xi1>
    %19 = vector.broadcast %18 : vector<16x1xi1> to vector<16x256xi1>
    %20 = vector.broadcast %cst_6 : f32 to vector<16x256xf32>
    %21 = arith.select %19, %11, %20 : vector<16x256xi1>, vector<16x256xf32>
    %c0_7 = arith.constant 0 : index
    %c0_8 = arith.constant 0 : index
    %22 = vector.load %arg3[%c0_7, %c0_8] : memref<256x128xf32, #tpu.memory_space<vmem>>, vector<256x128xf32>
    %cst_9 = arith.constant dense<0.000000e+00> : vector<16x128xf32>
    %23 = tpu.matmul %21, %22, %cst_9 {dimension_numbers = #tpu.dot_dimension_numbers<[1], [0], [0], [1], [0, 0, 1, 1], [], []>} : vector<16x256xf32>, vector<256x128xf32>, vector<16x128xf32> -> vector<16x128xf32>
    %c0_10 = arith.constant 0 : index
    %c0_11 = arith.constant 0 : index
    %24 = vector.load %arg4[%c0_10, %c0_11] : memref<16x128xf32, #tpu.memory_space<vmem>>, vector<16x128xf32>
    tpu.vector_store %arg4[%c0_10, %c0_11], %23 {strides = array<i32>} : memref<16x128xf32, #tpu.memory_space<vmem>>, vector<16x128xf32>,
    %c0_i32 = arith.constant 0 : i32
    %25 = arith.cmpi eq, %arg0, %c0_i32 : i32
    %26 = arith.extui %25 : i1 to i32
    %c0_i32_12 = arith.constant 0 : i32
    %27 = arith.cmpi ne, %26, %c0_i32_12 : i32
    scf.if %27 {
      %cst_19 = arith.constant 0.000000e+00 : f32
      %37 = vector.broadcast %cst_19 : f32 to vector<2x128xf32>
      %c0_20 = arith.constant 0 : index
      %c0_21 = arith.constant 0 : index
      %38 = vector.load %arg5[%c0_20, %c0_21] : memref<2x128xf32, #tpu.memory_space<vmem>>, vector<2x128xf32>
      tpu.vector_store %arg5[%c0_20, %c0_21], %37 {strides = array<i32>} : memref<2x128xf32, #tpu.memory_space<vmem>>, vector<2x128xf32>,
    } else {
    }
    %c0_13 = arith.constant 0 : index
    %c0_14 = arith.constant 0 : index
    %28 = vector.load %arg5[%c0_13, %c0_14] : memref<2x128xf32, #tpu.memory_space<vmem>>, vector<2x128xf32>
    %cst_15 = arith.constant dense<0.000000e+00> : vector<128xf32>
    %29 = vector.multi_reduction <add>, %23, %cst_15 [0] : vector<16x128xf32> to vector<128xf32>
    %30 = vector.shape_cast %29 : vector<128xf32> to vector<1x128xf32>
    %31 = arith.mulf %23, %23 : vector<16x128xf32>
    %cst_16 = arith.constant dense<0.000000e+00> : vector<128xf32>
    %32 = vector.multi_reduction <add>, %31, %cst_16 [0] : vector<16x128xf32> to vector<128xf32>
    %33 = vector.shape_cast %32 : vector<128xf32> to vector<1x128xf32>
    %34 = tpu.concatenate %30, %33 in 0 : vector<1x128xf32>, vector<1x128xf32> -> vector<2x128xf32>
    %35 = arith.addf %28, %34 : vector<2x128xf32>
    %c0_17 = arith.constant 0 : index
    %c0_18 = arith.constant 0 : index
    %36 = vector.load %arg5[%c0_17, %c0_18] : memref<2x128xf32, #tpu.memory_space<vmem>>, vector<2x128xf32>
    tpu.vector_store %arg5[%c0_17, %c0_18], %35 {strides = array<i32>} : memref<2x128xf32, #tpu.memory_space<vmem>>, vector<2x128xf32>,
    return
  }
  func.func @transform_0(%arg0: i32) -> (i32, i32) {
    %c0_i32 = arith.constant 0 : i32
    %c0_i32_0 = arith.constant 0 : i32
    return %arg0, %c0_i32 : i32, i32
  }
  func.func @transform_1(%arg0: i32) -> (i32, i32) {
    %c0_i32 = arith.constant 0 : i32
    %c0_i32_0 = arith.constant 0 : i32
    %c0_i32_1 = arith.constant 0 : i32
    return %c0_i32, %c0_i32_0 : i32, i32
  }
  func.func @transform_2(%arg0: i32) -> (i32, i32) {
    %c0_i32 = arith.constant 0 : i32
    %c0_i32_0 = arith.constant 0 : i32
    %c0_i32_1 = arith.constant 0 : i32
    return %c0_i32, %c0_i32_0 : i32, i32
  }
  func.func @transform_3(%arg0: i32) -> (i32, i32) {
    %c0_i32 = arith.constant 0 : i32
    %c0_i32_0 = arith.constant 0 : i32
    return %arg0, %c0_i32 : i32, i32
  }
  func.func @transform_4(%arg0: i32) -> (i32, i32) {
    %c0_i32 = arith.constant 0 : i32
    %c0_i32_0 = arith.constant 0 : i32
    %c0_i32_1 = arith.constant 0 : i32
    return %c0_i32, %c0_i32_0 : i32, i32
  }
}

module attributes {stable_mosaic.version = 11 : i64} {
  func.func @_mlp_kernel(%arg0: i32, %arg1: memref<8x512xf32, #tpu.memory_space<vmem>>, %arg2: memref<2x512xf32, #tpu.memory_space<vmem>>, %arg3: memref<512x2048xf32, #tpu.memory_space<vmem>>, %arg4: memref<1x2048xf32, #tpu.memory_space<vmem>>, %arg5: memref<2048x128xf32, #tpu.memory_space<vmem>>, %arg6: memref<1x128xf32, #tpu.memory_space<vmem>>, %arg7: memref<8x128xf32, #tpu.memory_space<vmem>>) attributes {dimension_semantics = [#tpu.dimension_semantics<parallel>], iteration_bounds = array<i64: 1>, scalar_prefetch = 0 : i64, scratch_operands = 0 : i64, tpu.core_type = #tpu.core_type<tc>, window_params = [{transform_indices = @transform_0, window_bounds = array<i64: 8, 512>}, {pipeline_mode = #tpu.pipeline_mode<synchronous>, transform_indices = @transform_1, window_bounds = array<i64: 2, 512>}, {pipeline_mode = #tpu.pipeline_mode<synchronous>, transform_indices = @transform_2, window_bounds = array<i64: 512, 2048>}, {pipeline_mode = #tpu.pipeline_mode<synchronous>, transform_indices = @transform_3, window_bounds = array<i64: 1, 2048>}, {pipeline_mode = #tpu.pipeline_mode<synchronous>, transform_indices = @transform_4, window_bounds = array<i64: 2048, 128>}, {pipeline_mode = #tpu.pipeline_mode<synchronous>, transform_indices = @transform_5, window_bounds = array<i64: 1, 128>}, {transform_indices = @transform_6, window_bounds = array<i64: 8, 128>}]} {
    %c0 = arith.constant 0 : index
    %c0_0 = arith.constant 0 : index
    %0 = vector.load %arg1[%c0, %c0_0] : memref<8x512xf32, #tpu.memory_space<vmem>>, vector<8x512xf32>
    %c0_1 = arith.constant 0 : index
    %c0_2 = arith.constant 0 : index
    %1 = vector.load %arg2[%c0_1, %c0_2] : memref<2x512xf32, #tpu.memory_space<vmem>>, vector<1x512xf32>
    %2 = vector.broadcast %1 : vector<1x512xf32> to vector<8x512xf32>
    %3 = arith.mulf %0, %2 : vector<8x512xf32>
    %c1 = arith.constant 1 : index
    %c0_3 = arith.constant 0 : index
    %4 = vector.load %arg2[%c1, %c0_3] : memref<2x512xf32, #tpu.memory_space<vmem>>, vector<1x512xf32>
    %5 = vector.broadcast %4 : vector<1x512xf32> to vector<8x512xf32>
    %6 = arith.addf %3, %5 : vector<8x512xf32>
    %cst = arith.constant 0.000000e+00 : f32
    %7 = vector.broadcast %cst : f32 to vector<8x512xf32>
    %8 = arith.cmpf oge, %6, %7 : vector<8x512xf32>
    %cst_4 = arith.constant 1.000000e-01 : f32
    %9 = vector.broadcast %cst_4 : f32 to vector<8x512xf32>
    %10 = arith.mulf %9, %6 : vector<8x512xf32>
    %11 = arith.select %8, %6, %10 : vector<8x512xi1>, vector<8x512xf32>
    %c0_5 = arith.constant 0 : index
    %c0_6 = arith.constant 0 : index
    %12 = vector.load %arg3[%c0_5, %c0_6] : memref<512x2048xf32, #tpu.memory_space<vmem>>, vector<512x2048xf32>
    %cst_7 = arith.constant dense<0.000000e+00> : vector<8x2048xf32>
    %13 = tpu.matmul %11, %12, %cst_7 {dimension_numbers = #tpu.dot_dimension_numbers<[1], [0], [0], [1], [0, 0, 1, 1], [], []>} : vector<8x512xf32>, vector<512x2048xf32>, vector<8x2048xf32> -> vector<8x2048xf32>
    %c0_8 = arith.constant 0 : index
    %c0_9 = arith.constant 0 : index
    %14 = vector.load %arg4[%c0_8, %c0_9] : memref<1x2048xf32, #tpu.memory_space<vmem>>, vector<1x2048xf32>
    %15 = vector.broadcast %14 : vector<1x2048xf32> to vector<8x2048xf32>
    %16 = arith.addf %13, %15 : vector<8x2048xf32>
    %cst_10 = arith.constant 0.000000e+00 : f32
    %17 = vector.broadcast %cst_10 : f32 to vector<8x2048xf32>
    %18 = arith.maximumf %16, %17 : vector<8x2048xf32>
    %c0_11 = arith.constant 0 : index
    %c0_12 = arith.constant 0 : index
    %19 = vector.load %arg5[%c0_11, %c0_12] : memref<2048x128xf32, #tpu.memory_space<vmem>>, vector<2048x128xf32>
    %cst_13 = arith.constant dense<0.000000e+00> : vector<8x128xf32>
    %20 = tpu.matmul %18, %19, %cst_13 {dimension_numbers = #tpu.dot_dimension_numbers<[1], [0], [0], [1], [0, 0, 1, 1], [], []>} : vector<8x2048xf32>, vector<2048x128xf32>, vector<8x128xf32> -> vector<8x128xf32>
    %c0_14 = arith.constant 0 : index
    %c0_15 = arith.constant 0 : index
    %21 = vector.load %arg6[%c0_14, %c0_15] : memref<1x128xf32, #tpu.memory_space<vmem>>, vector<1x128xf32>
    %22 = vector.broadcast %21 : vector<1x128xf32> to vector<8x128xf32>
    %23 = arith.addf %20, %22 : vector<8x128xf32>
    %c0_16 = arith.constant 0 : index
    %c0_17 = arith.constant 0 : index
    %24 = vector.load %arg7[%c0_16, %c0_17] : memref<8x128xf32, #tpu.memory_space<vmem>>, vector<8x128xf32>
    tpu.vector_store %arg7[%c0_16, %c0_17], %23 {strides = array<i32>} : memref<8x128xf32, #tpu.memory_space<vmem>>, vector<8x128xf32>,
    return
  }
  func.func @transform_0(%arg0: i32) -> (i32, i32) {
    %c0_i32 = arith.constant 0 : i32
    %c0_i32_0 = arith.constant 0 : i32
    return %arg0, %c0_i32 : i32, i32
  }
  func.func @transform_1(%arg0: i32) -> (i32, i32) {
    %c0_i32 = arith.constant 0 : i32
    %c0_i32_0 = arith.constant 0 : i32
    %c0_i32_1 = arith.constant 0 : i32
    return %c0_i32, %c0_i32_0 : i32, i32
  }
  func.func @transform_2(%arg0: i32) -> (i32, i32) {
    %c0_i32 = arith.constant 0 : i32
    %c0_i32_0 = arith.constant 0 : i32
    %c0_i32_1 = arith.constant 0 : i32
    return %c0_i32, %c0_i32_0 : i32, i32
  }
  func.func @transform_3(%arg0: i32) -> (i32, i32) {
    %c0_i32 = arith.constant 0 : i32
    %c0_i32_0 = arith.constant 0 : i32
    %c0_i32_1 = arith.constant 0 : i32
    return %c0_i32, %c0_i32_0 : i32, i32
  }
  func.func @transform_4(%arg0: i32) -> (i32, i32) {
    %c0_i32 = arith.constant 0 : i32
    %c0_i32_0 = arith.constant 0 : i32
    %c0_i32_1 = arith.constant 0 : i32
    return %c0_i32, %c0_i32_0 : i32, i32
  }
  func.func @transform_5(%arg0: i32) -> (i32, i32) {
    %c0_i32 = arith.constant 0 : i32
    %c0_i32_0 = arith.constant 0 : i32
    %c0_i32_1 = arith.constant 0 : i32
    return %c0_i32, %c0_i32_0 : i32, i32
  }
  func.func @transform_6(%arg0: i32) -> (i32, i32) {
    %c0_i32 = arith.constant 0 : i32
    %c0_i32_0 = arith.constant 0 : i32
    return %arg0, %c0_i32 : i32, i32
  }
}

</mosaic_0001>

<bundles_post_ra>
// kernel: fwd.7
= control target key start
LH: loop header
LB: loop body
LE: loop exit
PB: predicated region body
PF: predicated region fallthrough
CT: control target
= control target key end

     0   :  { %10 = vsyncpa [#allocation3], 0  ;;  %s322_s18 = smov [#allocation2]   ;;  %s323_s20 = smov 128   ;;  %s420_s0 = inlined_call_operand.vmem [shape: f32[32,256], index: 0, kind: input, shape index: {}]   ;;  %s421_s1 = inlined_call_operand.vmem [shape: f32[2,256], index: 1, kind: input, shape index: {}]   ;;  %s422_s2 = inlined_call_operand.hbm [shape: f32[256,128], index: 2, kind: input, shape index: {}]   ;;  %s423_s3 = inlined_call_operand.vmem [shape: f32[32,128], index: 3, kind: output, shape index: {0}]   ;;  %s424_s4 = inlined_call_operand.vmem [shape: f32[2,128], index: 4, kind: output, shape index: {1}]  }
   0x1   :  { %s19_s17 = sshll.u32 %s422_s2, 4  ;;  %s21_s19 = sshll.u32 %s322_s18, 4  ;;  %s20_s17 = int_to_ptr.hbm [resolvable:$true] %s19_s17  ;;  %s22_s19 = int_to_ptr.vmem [resolvable:$true] %s21_s19 }
   0x2   :  { %s324_s21 = smov 8  }
   0x3   :  { %27 = dma.hbm_to_vmem [thread:$0]  %s20_s17, 4096, %s22_s19, [#allocation3], %s323_s20, %s323_s20, %s324_s21  }
   0x4   :  { %320 = dma.done.wait [#allocation3], 4096  }
   0x5   :  { %321 = vsyncadd [#allocation3], 4294963200  ;;  %v139_v0 = vld [vmem:[#allocation2 + $0x78] sm:$0xff]  ;;  %v138_v2 = vld [vmem:[#allocation2 + $0x70] sm:$0xff]  ;;  %vm246_vm8 = vcmask 1040384  }
   0x6   :  { %v155_v1 = vld [vmem:[#allocation2 + $0xf8] sm:$0xff]  ;;  %156 = vmatpush.msra.mxu0 %v139_v0  ;;  %260 = vmatpush.msra.mxu2 %v139_v0  ;;  %v154_v3 = vld [vmem:[#allocation2 + $0xf0] sm:$0xff]  ;;  %v137_v4 = vld [vmem:[#allocation2 + $0x68] sm:$0xff] }
   0x7   :  { %185 = vmatpush.msra.mxu1 %v155_v1  ;;  %276 = vmatpush.msra.mxu3 %v155_v1  ;;  %v153_v5 = vld [vmem:[#allocation2 + $0xe8] sm:$0xff]  ;;  %v136_v6 = vld [vmem:[#allocation2 + $0x60] sm:$0xff]  ;;  %v135_v8 = vld [vmem:[#allocation2 + $0x58] sm:$0xff] }
   0x8   :  { %157 = vmatpush.msra.mxu0 %v138_v2  ;;  %261 = vmatpush.msra.mxu2 %v138_v2  ;;  %v152_v7 = vld [vmem:[#allocation2 + $0xe0] sm:$0xff]  ;;  %v151_v9 = vld [vmem:[#allocation2 + $0xd8] sm:$0xff]  ;;  %v134_v10 = vld [vmem:[#allocation2 + $0x50] sm:$0xff] }
   0x9   :  { %186 = vmatpush.msra.mxu1 %v154_v3  ;;  %277 = vmatpush.msra.mxu3 %v154_v3  ;;  %v150_v11 = vld [vmem:[#allocation2 + $0xd0] sm:$0xff]  ;;  %v133_v12 = vld [vmem:[#allocation2 + $0x48] sm:$0xff]  ;;  %v40_v14 = vld [vmem:[%s421_s1] ss:$2 sm:$0x3] }
   0xa   :  { %158 = vmatpush.msra.mxu0 %v137_v4  ;;  %262 = vmatpush.msra.mxu2 %v137_v4  ;;  %v149_v13 = vld [vmem:[#allocation2 + $0xc8] sm:$0xff]  ;;  %v132_v15 = vld [vmem:[#allocation2 + $0x40] sm:$0xff]  ;;  %v42_v17 = vperm.slane %v40_v14, 0  ;;  %v131_v18 = vld [vmem:[#allocation2 + $0x38] sm:$0xff]  ;;  %v363_v21 = vperm.slane %v40_v14, 1  ;;  %v325_v14 = vmov 0.0  }
   0xb   :  { %187 = vmatpush.msra.mxu1 %v153_v5  ;;  %278 = vmatpush.msra.mxu3 %v153_v5  ;;  %v148_v16 = vld [vmem:[#allocation2 + $0xc0] sm:$0xff]  ;;  %v147_v22 = vld [vmem:[#allocation2 + $0xb8] sm:$0xff]  ;;  %v33_v24 = vld [vmem:[%s420_s0 + $0x8] sm:$0xff]  ;;  %222 = vst [vmem:[%s424_s4] sm:$0x3] %v325_v14 }
   0xc   :  { %159 = vmatpush.msra.mxu0 %v136_v6  ;;  %263 = vmatpush.msra.mxu2 %v136_v6  ;;  %v32_v19 = vld [vmem:[%s420_s0] sm:$0xff]  ;;  %v130_v25 = vld [vmem:[#allocation2 + $0x30] sm:$0xff]  ;;  %v37_v26 = vld [vmem:[%s420_s0 + $0x28] sm:$0xff]  ;;  %v47_v32 = vmul.f32 %v363_v21, %v33_v24 }
   0xd   :  { %188 = vmatpush.msra.mxu1 %v152_v7  ;;  %279 = vmatpush.msra.mxu3 %v152_v7  ;;  %v259_v20 = vld [vmem:[%s421_s1 + $0x1] ss:$2 sm:$0x3]  ;;  %v146_v27 = vld [vmem:[#allocation2 + $0xb0] sm:$0xff]  ;;  %v46_v28 = vmul.f32 %v42_v17, %v32_v19  ;;  %v129_v30 = vld [vmem:[#allocation2 + $0x28] sm:$0xff]  ;;  %v51_v35 = vmul.f32 %v363_v21, %v37_v26 }
   0xe   :  { %160 = vmatpush.msra.mxu0 %v135_v8  ;;  %264 = vmatpush.msra.mxu2 %v135_v8  ;;  %v36_v23 = vld [vmem:[%s420_s0 + $0x20] sm:$0xff]  ;;  %v57_v29 = vperm.slane %v259_v20, 0  ;;  %v375_v33 = vperm.slane %v259_v20, 1  ;;  %v145_v34 = vld [vmem:[#allocation2 + $0xa8] sm:$0xff]  ;;  %v127_v39 = vld [vmem:[#allocation2 + $0x18] sm:$0xff] }
   0xf   :  { %189 = vmatpush.msra.mxu1 %v151_v9  ;;  %280 = vmatpush.msra.mxu3 %v151_v9  ;;  %v50_v31 = vmul.f32 %v42_v17, %v36_v23  ;;  %v128_v36 = vld [vmem:[#allocation2 + $0x20] sm:$0xff]  ;;  %v34_v42 = vld [vmem:[%s420_s0 + $0x10] sm:$0xff]  ;;  %v143_v44 = vld [vmem:[#allocation2 + $0x98] sm:$0xff] }
  0x10   :  { %161 = vmatpush.msra.mxu0 %v134_v10  ;;  %265 = vmatpush.msra.mxu2 %v134_v10  ;;  %v144_v37 = vld [vmem:[#allocation2 + $0xa0] sm:$0xff]  ;;  %v61_v38 = vadd.f32 %v57_v29, %v46_v28  ;;  %v62_v41 = vadd.f32 %v375_v33, %v47_v32  ;;  %v38_v43 = vld [vmem:[%s420_s0 + $0x30] sm:$0xff]  ;;  %v66_v45 = vadd.f32 %v375_v33, %v51_v35  ;;  %v35_v47 = vld [vmem:[%s420_s0 + $0x18] sm:$0xff] }
  0x11   :  { %190 = vmatpush.msra.mxu1 %v150_v11  ;;  %281 = vmatpush.msra.mxu3 %v150_v11  ;;  %v65_v40 = vadd.f32 %v57_v29, %v50_v31  ;;  %v126_v46 = vld [vmem:[#allocation2 + $0x10] sm:$0xff]  ;;  %v39_v48 = vld [vmem:[%s420_s0 + $0x38] sm:$0xff]  ;;  %v125_v50 = vld [vmem:[#allocation2 + $0x8] sm:$0xff]  ;;  %v48_v52 = vmul.f32 %v42_v17, %v34_v42  ;;  %v52_v53 = vmul.f32 %v42_v17, %v38_v43 }
  0x12   :  { %162 = vmatpush.msra.mxu0 %v133_v12  ;;  %266 = vmatpush.msra.mxu2 %v133_v12  ;;  %v142_v49 = vld [vmem:[#allocation2 + $0x90] sm:$0xff]  ;;  %v77_v51 = vmul.f32 0.1, %v61_v38  ;;  %vm69_vm0 = vcmp.ge.f32.partialorder %v61_v38, 0.0  ;;  %v78_v55 = vmul.f32 0.1, %v62_v41  ;;  %v49_v58 = vmul.f32 %v363_v21, %v35_v47 }
  0x13   :  { %191 = vmatpush.msra.mxu1 %v149_v13  ;;  %282 = vmatpush.msra.mxu3 %v149_v13  ;;  %vm73_vm1 = vcmp.ge.f32.partialorder %v65_v40, 0.0  ;;  %v81_v54 = vmul.f32 0.1, %v65_v40  ;;  %v141_v56 = vld [vmem:[#allocation2 + $0x88] sm:$0xff]  ;;  %vm70_vm2 = vcmp.ge.f32.partialorder %v62_v41, 0.0  ;;  %v53_v59 = vmul.f32 %v363_v21, %v39_v48  ;;  %v124_v60 = vld [vmem:[#allocation2] sm:$0xff] }
  0x14   :  { %163 = vmatpush.msra.mxu0 %v132_v15  ;;  %267 = vmatpush.msra.mxu2 %v132_v15  ;;  %v82_v57 = vmul.f32 0.1, %v66_v45  ;;  %vm74_vm3 = vcmp.ge.f32.partialorder %v66_v45, 0.0  ;;  %v140_v61 = vld [vmem:[#allocation2 + $0x80] sm:$0xff]  ;;  %v63_v62 = vadd.f32 %v57_v29, %v48_v52  ;;  %v67_v63 = vadd.f32 %v57_v29, %v52_v53 }
  0x15   :  { %192 = vmatpush.msra.mxu1 %v148_v16  ;;  %283 = vmatpush.msra.mxu3 %v148_v16  ;;  %v85_v0 = vsel %vm69_vm0, %v61_v38, %v77_v51  ;;  %v89_v1 = vsel %vm73_vm1, %v65_v40, %v81_v54  ;;  %v86_v2 = vsel %vm70_vm2, %v62_v41, %v78_v55  ;;  %v223_v47 = vld [vmem:[%s424_s4] sm:$0x3] }
  0x16   :  { %164 = vmatpush.msra.mxu0 %v131_v18  ;;  %268 = vmatpush.msra.mxu2 %v131_v18  ;;  %v90_v3 = vsel %vm74_vm3, %v66_v45, %v82_v57  ;;  %v64_v4 = vadd.f32 %v375_v33, %v49_v58  ;;  %v68_v5 = vadd.f32 %v375_v33, %v53_v59  ;;  %v79_v6 = vmul.f32 0.1, %v63_v62 }
  0x17   :  { %193 = vmatpush.msra.mxu1 %v147_v22  ;;  %284 = vmatpush.msra.mxu3 %v147_v22  ;;  %v83_v7 = vmul.f32 0.1, %v67_v63  ;;  %vm71_vm4 = vcmp.ge.f32.partialorder %v63_v62, 0.0  ;;  %vm75_vm5 = vcmp.ge.f32.partialorder %v67_v63, 0.0 }
  0x18   :  { %165 = vmatpush.msra.mxu0 %v130_v25  ;;  %269 = vmatpush.msra.mxu2 %v130_v25  ;;  %v80_v8 = vmul.f32 0.1, %v64_v4  ;;  %v84_v9 = vmul.f32 0.1, %v68_v5  ;;  %vm72_vm6 = vcmp.ge.f32.partialorder %v64_v4, 0.0  ;;  %vm76_vm7 = vcmp.ge.f32.partialorder %v68_v5, 0.0 }
  0x19   :  { %194 = vmatpush.msra.mxu1 %v146_v27  ;;  %285 = vmatpush.msra.mxu3 %v146_v27  ;;  %v87_v10 = vsel %vm71_vm4, %v63_v62, %v79_v6  ;;  %v91_v11 = vsel %vm75_vm5, %v67_v63, %v83_v7 }
  0x1a   :  { %166 = vmatpush.msra.mxu0 %v129_v30  ;;  %270 = vmatpush.msra.mxu2 %v129_v30  ;;  %v88_v12 = vsel %vm72_vm6, %v64_v4, %v80_v8  ;;  %v92_v13 = vsel %vm76_vm7, %v68_v5, %v84_v9 }
  0x1b   :  { %195 = vmatpush.msra.mxu1 %v145_v34  ;;  %286 = vmatpush.msra.mxu3 %v145_v34 }
  0x1c   :  { %167 = vmatpush.msra.mxu0 %v128_v36  ;;  %271 = vmatpush.msra.mxu2 %v128_v36 }
  0x1d   :  { %196 = vmatpush.msra.mxu1 %v144_v37  ;;  %287 = vmatpush.msra.mxu3 %v144_v37 }
  0x1e   :  { %168 = vmatpush.msra.mxu0 %v127_v39  ;;  %272 = vmatpush.msra.mxu2 %v127_v39 }
  0x1f   :  { %197 = vmatpush.msra.mxu1 %v143_v44  ;;  %288 = vmatpush.msra.mxu3 %v143_v44 }
  0x20   :  { %169 = vmatpush.msra.mxu0 %v126_v46  ;;  %273 = vmatpush.msra.mxu2 %v126_v46 }
  0x21   :  { %198 = vmatpush.msra.mxu1 %v142_v49  ;;  %289 = vmatpush.msra.mxu3 %v142_v49 }
  0x22   :  { %170 = vmatpush.msra.mxu0 %v125_v50  ;;  %274 = vmatpush.msra.mxu2 %v125_v50 }
  0x23   :  { %199 = vmatpush.msra.mxu1 %v141_v56  ;;  %290 = vmatpush.msra.mxu3 %v141_v56 }
  0x24   :  { %171 = vmatpush.msra.mxu0 %v124_v60  ;;  %275 = vmatpush.msra.mxu2 %v124_v60 }
  0x25   :  { %200 = vmatpush.msra.mxu1 %v140_v61  ;;  %291 = vmatpush.msra.mxu3 %v140_v61 }
  0x26   :  { %172 = vmatmul.f32.vlgmr.msra.gmra.mxu0 %v85_v0  ;;  %178 = vmatmul.f32.vlgmr.msra.gmra.mxu2 %v89_v1 }
  0x27   :  { %201 = vmatmul.f32.vlgmr.msra.gmra.mxu1 %v86_v2  ;;  %207 = vmatmul.f32.vlgmr.msra.gmra.mxu3 %v90_v3 }
  0x2e   :  { %175 = vmatmul.f32.gmra.mxu0 %v87_v10  ;;  %181 = vmatmul.f32.gmra.mxu2 %v91_v11 }
  0x2f   :  { %204 = vmatmul.f32.gmra.mxu1 %v88_v12  ;;  %210 = vmatmul.f32.gmra.mxu3 %v92_v13 }
  0xa3   :  { %v173_v15 = vpop.f32.mrf.mxu0 }
  0xa4   :  { %v202_v16 = vpop.f32.mrf.mxu1 }
  0xa5   :  { %v203_v17 = vadd.f32 %v202_v16, %v173_v15 }
  0xa7   :  { %214 = vst [vmem:[%s423_s3] sm:$0xff] %v203_v17  ;;  %v233_v24 = vmul.f32 %v203_v17, %v203_v17 }
  0xa9   :  { %v179_v18 = vpop.f32.mrf.mxu2 }
  0xaa   :  { %v208_v19 = vpop.f32.mrf.mxu3 }
  0xab   :  { %v209_v20 = vadd.f32 %v208_v19, %v179_v18  ;;  %v176_v21 = vpop.f32.mrf.mxu0 }
  0xac   :  { %v205_v22 = vpop.f32.mrf.mxu1 }
  0xad   :  { %216 = vst [vmem:[%s423_s3 + $0x10] sm:$0xff] %v209_v20  ;;  %v206_v23 = vadd.f32 %v205_v22, %v176_v21  ;;  %v235_v30 = vmul.f32 %v209_v20, %v209_v20 }
  0xaf   :  { %215 = vst [vmem:[%s423_s3 + $0x8] sm:$0xff] %v206_v23  ;;  %v224_v25 = vadd.f32 %v206_v23, %v203_v17  ;;  %v234_v26 = vmul.f32 %v206_v23, %v206_v23 }
  0xb1   :  { %v237_v27 = vadd.f32 %v234_v26, %v233_v24  ;;  %v182_v28 = vpop.f32.mrf.mxu2  ;;  %v225_v32 = vadd.f32 %v224_v25, %v209_v20 }
  0xb2   :  { %v211_v29 = vpop.f32.mrf.mxu3 }
  0xb3   :  { %v212_v31 = vadd.f32 %v211_v29, %v182_v28  ;;  %v238_v35 = vadd.f32 %v237_v27, %v235_v30 }
  0xb5   :  { %217 = vst [vmem:[%s423_s3 + $0x18] sm:$0xff] %v212_v31  ;;  %v226_v33 = vadd.f32 %v225_v32, %v212_v31  ;;  %v236_v34 = vmul.f32 %v212_v31, %v212_v31 }
  0xb7   :  { %v227_v36 = vrot.slane %v226_v33, 4  ;;  %v239_v37 = vadd.f32 %v238_v35, %v236_v34 }
  0xb9   :  { %v228_v38 = vadd.f32 %v227_v36, %v226_v33  ;;  %v240_v39 = vrot.slane %v239_v37, 4 }
  0xbb   :  { %v229_v40 = vrot.slane %v228_v38, 2  ;;  %v241_v41 = vadd.f32 %v240_v39, %v239_v37 }
  0xbd   :  { %v230_v42 = vadd.f32 %v229_v40, %v228_v38  ;;  %v242_v43 = vrot.slane %v241_v41, 2 }
  0xbf   :  { %v231_v44 = vrot.slane %v230_v42, 1  ;;  %v243_v45 = vadd.f32 %v242_v43, %v241_v41 }
  0xc1   :  { %v244_v46 = vrot.slane %v243_v45, 1  ;;  %v232_v48 = vadd.f32 %v231_v44, %v230_v42 }
  0xc3   :  { %v245_v49 = vadd.f32 %v244_v46, %v243_v45 }
  0xc5   :  { %v247_v50 = vsel %vm246_vm8, %v232_v48, %v245_v49 }
  0xc6   :  { %v248_v51 = vadd.f32 %v247_v50, %v223_v47 }
  0xc8   :  { %249 = vst [vmem:[%s424_s4] sm:$0x3] %v248_v51 }
  0xc9   :  { %258 = vsyncpa [#allocation3], 1 }

// kernel: fwd.6
= control target key start
LH: loop header
LB: loop body
LE: loop exit
PB: predicated region body
PF: predicated region fallthrough
CT: control target
= control target key end

     0   :  { %10 = vsyncpa [#allocation3], 0  ;;  %s438_s18 = smov [#allocation2]   ;;  %s439_s20 = smov 128   ;;  %s600_s0 = inlined_call_operand.vmem [shape: f32[64,256], index: 0, kind: input, shape index: {}]   ;;  %s601_s1 = inlined_call_operand.vmem [shape: f32[2,256], index: 1, kind: input, shape index: {}]   ;;  %s602_s2 = inlined_call_operand.hbm [shape: f32[256,128], index: 2, kind: input, shape index: {}]   ;;  %s603_s3 = inlined_call_operand.vmem [shape: f32[64,128], index: 3, kind: output, shape index: {0}]   ;;  %s604_s4 = inlined_call_operand.vmem [shape: f32[2,128], index: 4, kind: output, shape index: {1}]  }
   0x1   :  { %s19_s17 = sshll.u32 %s602_s2, 4  ;;  %s21_s19 = sshll.u32 %s438_s18, 4  ;;  %s20_s17 = int_to_ptr.hbm [resolvable:$true] %s19_s17  ;;  %s22_s19 = int_to_ptr.vmem [resolvable:$true] %s21_s19 }
   0x2   :  { %s440_s21 = smov 8  }
   0x3   :  { %27 = dma.hbm_to_vmem [thread:$0]  %s20_s17, 4096, %s22_s19, [#allocation3], %s439_s20, %s439_s20, %s440_s21  }
   0x4   :  { %436 = dma.done.wait [#allocation3], 4096  }
   0x5   :  { %437 = vsyncadd [#allocation3], 4294963200  ;;  %v215_v0 = vld [vmem:[#allocation2 + $0x78] sm:$0xff]  ;;  %v214_v2 = vld [vmem:[#allocation2 + $0x70] sm:$0xff] }
   0x6   :  { %v231_v1 = vld [vmem:[#allocation2 + $0xf8] sm:$0xff]  ;;  %232 = vmatpush.msra.mxu0 %v215_v0  ;;  %v230_v3 = vld [vmem:[#allocation2 + $0xf0] sm:$0xff]  ;;  %376 = vmatpush.msra.mxu2 %v215_v0  ;;  %v213_v4 = vld [vmem:[#allocation2 + $0x68] sm:$0xff] }
   0x7   :  { %273 = vmatpush.msra.mxu1 %v231_v1  ;;  %392 = vmatpush.msra.mxu3 %v231_v1  ;;  %v229_v5 = vld [vmem:[#allocation2 + $0xe8] sm:$0xff]  ;;  %v212_v6 = vld [vmem:[#allocation2 + $0x60] sm:$0xff]  ;;  %v211_v8 = vld [vmem:[#allocation2 + $0x58] sm:$0xff] }
   0x8   :  { %233 = vmatpush.msra.mxu0 %v214_v2  ;;  %377 = vmatpush.msra.mxu2 %v214_v2  ;;  %v228_v7 = vld [vmem:[#allocation2 + $0xe0] sm:$0xff]  ;;  %v227_v9 = vld [vmem:[#allocation2 + $0xd8] sm:$0xff]  ;;  %v210_v10 = vld [vmem:[#allocation2 + $0x50] sm:$0xff] }
   0x9   :  { %274 = vmatpush.msra.mxu1 %v230_v3  ;;  %393 = vmatpush.msra.mxu3 %v230_v3  ;;  %v226_v11 = vld [vmem:[#allocation2 + $0xd0] sm:$0xff]  ;;  %v209_v12 = vld [vmem:[#allocation2 + $0x48] sm:$0xff]  ;;  %v48_v14 = vld [vmem:[%s601_s1] ss:$2 sm:$0x3] }
   0xa   :  { %234 = vmatpush.msra.mxu0 %v213_v4  ;;  %378 = vmatpush.msra.mxu2 %v213_v4  ;;  %v225_v13 = vld [vmem:[#allocation2 + $0xc8] sm:$0xff]  ;;  %v208_v15 = vld [vmem:[#allocation2 + $0x40] sm:$0xff]  ;;  %v207_v17 = vld [vmem:[#allocation2 + $0x38] sm:$0xff]  ;;  %v473_v19 = vperm.slane %v48_v14, 0  ;;  %v475_v20 = vperm.slane %v48_v14, 1 }
   0xb   :  { %275 = vmatpush.msra.mxu1 %v229_v5  ;;  %394 = vmatpush.msra.mxu3 %v229_v5  ;;  %v224_v16 = vld [vmem:[#allocation2 + $0xc0] sm:$0xff]  ;;  %v223_v18 = vld [vmem:[#allocation2 + $0xb8] sm:$0xff]  ;;  %v33_v23 = vld [vmem:[%s600_s0 + $0x8] sm:$0xff] }
   0xc   :  { %235 = vmatpush.msra.mxu0 %v212_v6  ;;  %379 = vmatpush.msra.mxu2 %v212_v6  ;;  %v32_v21 = vld [vmem:[%s600_s0] sm:$0xff]  ;;  %v206_v25 = vld [vmem:[#allocation2 + $0x30] sm:$0xff]  ;;  %v41_v27 = vld [vmem:[%s600_s0 + $0x48] sm:$0xff]  ;;  %v55_v30 = vmul.f32 %v475_v20, %v33_v23 }
   0xd   :  { %276 = vmatpush.msra.mxu1 %v228_v7  ;;  %395 = vmatpush.msra.mxu3 %v228_v7  ;;  %v375_v22 = vld [vmem:[%s601_s1 + $0x1] ss:$2 sm:$0x3]  ;;  %v222_v26 = vld [vmem:[#allocation2 + $0xb0] sm:$0xff]  ;;  %v54_v28 = vmul.f32 %v473_v19, %v32_v21  ;;  %v205_v32 = vld [vmem:[#allocation2 + $0x28] sm:$0xff]  ;;  %v63_v35 = vmul.f32 %v475_v20, %v41_v27 }
   0xe   :  { %236 = vmatpush.msra.mxu0 %v211_v8  ;;  %380 = vmatpush.msra.mxu2 %v211_v8  ;;  %v40_v24 = vld [vmem:[%s600_s0 + $0x40] sm:$0xff]  ;;  %v493_v29 = vperm.slane %v375_v22, 0  ;;  %v496_v31 = vperm.slane %v375_v22, 1  ;;  %v221_v33 = vld [vmem:[#allocation2 + $0xa8] sm:$0xff]  ;;  %v34_v40 = vld [vmem:[%s600_s0 + $0x10] sm:$0xff] }
   0xf   :  { %277 = vmatpush.msra.mxu1 %v227_v9  ;;  %396 = vmatpush.msra.mxu3 %v227_v9  ;;  %v62_v34 = vmul.f32 %v473_v19, %v40_v24  ;;  %v204_v36 = vld [vmem:[#allocation2 + $0x20] sm:$0xff]  ;;  %v203_v41 = vld [vmem:[#allocation2 + $0x18] sm:$0xff]  ;;  %v202_v45 = vld [vmem:[#allocation2 + $0x10] sm:$0xff]  ;;  %v56_v48 = vmul.f32 %v473_v19, %v34_v40 }
  0x10   :  { %237 = vmatpush.msra.mxu0 %v210_v10  ;;  %381 = vmatpush.msra.mxu2 %v210_v10  ;;  %v220_v37 = vld [vmem:[#allocation2 + $0xa0] sm:$0xff]  ;;  %v77_v38 = vadd.f32 %v493_v29, %v54_v28  ;;  %v78_v39 = vadd.f32 %v496_v31, %v55_v30  ;;  %v219_v42 = vld [vmem:[#allocation2 + $0x98] sm:$0xff]  ;;  %v86_v46 = vadd.f32 %v496_v31, %v63_v35  ;;  %v218_v47 = vld [vmem:[#allocation2 + $0x90] sm:$0xff] }
  0x11   :  { %278 = vmatpush.msra.mxu1 %v226_v11  ;;  %397 = vmatpush.msra.mxu3 %v226_v11  ;;  %v85_v43 = vadd.f32 %v493_v29, %v62_v34  ;;  %v35_v44 = vld [vmem:[%s600_s0 + $0x18] sm:$0xff]  ;;  %v42_v49 = vld [vmem:[%s600_s0 + $0x50] sm:$0xff]  ;;  %v201_v54 = vld [vmem:[#allocation2 + $0x8] sm:$0xff]  ;;  %v79_v62 = vadd.f32 %v493_v29, %v56_v48 }
  0x12   :  { %238 = vmatpush.msra.mxu0 %v209_v12  ;;  %382 = vmatpush.msra.mxu2 %v209_v12  ;;  %v43_v50 = vld [vmem:[%s600_s0 + $0x58] sm:$0xff]  ;;  %v109_v51 = vmul.f32 0.1, %v77_v38  ;;  %v110_v52 = vmul.f32 0.1, %v78_v39  ;;  %v57_v53 = vmul.f32 %v475_v20, %v35_v44  ;;  %v217_v55 = vld [vmem:[#allocation2 + $0x88] sm:$0xff]  ;;  %v64_v58 = vmul.f32 %v473_v19, %v42_v49 }
  0x13   :  { %279 = vmatpush.msra.mxu1 %v225_v13  ;;  %398 = vmatpush.msra.mxu3 %v225_v13  ;;  %vm93_vm0 = vcmp.ge.f32.partialorder %v77_v38, 0.0  ;;  %vm94_vm1 = vcmp.ge.f32.partialorder %v78_v39, 0.0  ;;  %v117_v56 = vmul.f32 0.1, %v85_v43  ;;  %vm101_vm2 = vcmp.ge.f32.partialorder %v85_v43, 0.0  ;;  %v200_v60 = vld [vmem:[#allocation2] sm:$0xff] }
  0x14   :  { %239 = vmatpush.msra.mxu0 %v208_v15  ;;  %383 = vmatpush.msra.mxu2 %v208_v15  ;;  %v118_v57 = vmul.f32 0.1, %v86_v46  ;;  %v65_v59 = vmul.f32 %v475_v20, %v43_v50  ;;  %v216_v61 = vld [vmem:[#allocation2 + $0x80] sm:$0xff]  ;;  %vm102_vm3 = vcmp.ge.f32.partialorder %v86_v46, 0.0  ;;  %v125_v63 = vsel %vm93_vm0, %v77_v38, %v109_v51  ;;  %v37_v4 = vld [vmem:[%s600_s0 + $0x28] sm:$0xff]  ;;  %v38_v24 = vld [vmem:[%s600_s0 + $0x30] sm:$0xff] }
  0x15   :  { %280 = vmatpush.msra.mxu1 %v224_v16  ;;  %399 = vmatpush.msra.mxu3 %v224_v16  ;;  %v126_v0 = vsel %vm94_vm1, %v78_v39, %v110_v52  ;;  %v80_v1 = vadd.f32 %v496_v31, %v57_v53  ;;  %v133_v2 = vsel %vm101_vm2, %v85_v43, %v117_v56  ;;  %v36_v3 = vld [vmem:[%s600_s0 + $0x20] sm:$0xff]  ;;  %v45_v9 = vld [vmem:[%s600_s0 + $0x68] sm:$0xff]  ;;  %v111_v10 = vmul.f32 0.1, %v79_v62 }
  0x16   :  { %240 = vmatpush.msra.mxu0 %v207_v17  ;;  %384 = vmatpush.msra.mxu2 %v207_v17  ;;  %v134_v5 = vsel %vm102_vm3, %v86_v46, %v118_v57  ;;  %v87_v6 = vadd.f32 %v493_v29, %v64_v58  ;;  %v88_v7 = vadd.f32 %v496_v31, %v65_v59  ;;  %v44_v8 = vld [vmem:[%s600_s0 + $0x60] sm:$0xff]  ;;  %vm95_vm4 = vcmp.ge.f32.partialorder %v79_v62, 0.0 }
  0x17   :  { %281 = vmatpush.msra.mxu1 %v223_v18  ;;  %400 = vmatpush.msra.mxu3 %v223_v18  ;;  %v112_v11 = vmul.f32 0.1, %v80_v1  ;;  %v58_v12 = vmul.f32 %v473_v19, %v36_v3  ;;  %v59_v13 = vmul.f32 %v475_v20, %v37_v4  ;;  %vm96_vm5 = vcmp.ge.f32.partialorder %v80_v1, 0.0 }
  0x18   :  { %241 = vmatpush.msra.mxu0 %v206_v25  ;;  %385 = vmatpush.msra.mxu2 %v206_v25  ;;  %v119_v14 = vmul.f32 0.1, %v87_v6  ;;  %v120_v15 = vmul.f32 0.1, %v88_v7  ;;  %v66_v16 = vmul.f32 %v473_v19, %v44_v8  ;;  %v67_v17 = vmul.f32 %v475_v20, %v45_v9  ;;  %v39_v25 = vld [vmem:[%s600_s0 + $0x38] sm:$0xff] }
  0x19   :  { %282 = vmatpush.msra.mxu1 %v222_v26  ;;  %401 = vmatpush.msra.mxu3 %v222_v26  ;;  %vm103_vm6 = vcmp.ge.f32.partialorder %v87_v6, 0.0  ;;  %vm104_vm7 = vcmp.ge.f32.partialorder %v88_v7, 0.0  ;;  %v127_v18 = vsel %vm95_vm4, %v79_v62, %v111_v10  ;;  %v128_v21 = vsel %vm96_vm5, %v80_v1, %v112_v11 }
  0x1a   :  { %242 = vmatpush.msra.mxu0 %v205_v32  ;;  %386 = vmatpush.msra.mxu2 %v205_v32  ;;  %v81_v22 = vadd.f32 %v493_v29, %v58_v12  ;;  %v82_v23 = vadd.f32 %v496_v31, %v59_v13  ;;  %v135_v26 = vsel %vm103_vm6, %v87_v6, %v119_v14  ;;  %v46_v32 = vld [vmem:[%s600_s0 + $0x70] sm:$0xff]  ;;  %v441_v57 = vmov 0.0  }
  0x1b   :  { %283 = vmatpush.msra.mxu1 %v221_v33  ;;  %402 = vmatpush.msra.mxu3 %v221_v33  ;;  %v136_v27 = vsel %vm104_vm7, %v88_v7, %v120_v15  ;;  %v89_v28 = vadd.f32 %v493_v29, %v66_v16  ;;  %v90_v30 = vadd.f32 %v496_v31, %v67_v17  ;;  %v47_v33 = vld [vmem:[%s600_s0 + $0x78] sm:$0xff]  ;;  %vm362_vm0 = vcmask 1040384  }
  0x1c   :  { %243 = vmatpush.msra.mxu0 %v204_v36  ;;  %387 = vmatpush.msra.mxu2 %v204_v36  ;;  %v113_v34 = vmul.f32 0.1, %v81_v22  ;;  %v114_v35 = vmul.f32 0.1, %v82_v23  ;;  %v60_v36 = vmul.f32 %v473_v19, %v38_v24  ;;  %vm97_vm8 = vcmp.ge.f32.partialorder %v81_v22, 0.0  ;;  %326 = vst [vmem:[%s604_s4] sm:$0x3] %v441_v57 }
  0x1d   :  { %284 = vmatpush.msra.mxu1 %v220_v37  ;;  %403 = vmatpush.msra.mxu3 %v220_v37  ;;  %v61_v37 = vmul.f32 %v475_v20, %v39_v25  ;;  %vm98_vm9 = vcmp.ge.f32.partialorder %v82_v23, 0.0  ;;  %v121_v38 = vmul.f32 0.1, %v89_v28  ;;  %v122_v39 = vmul.f32 0.1, %v90_v30 }
  0x1e   :  { %244 = vmatpush.msra.mxu0 %v203_v41  ;;  %388 = vmatpush.msra.mxu2 %v203_v41  ;;  %v68_v40 = vmul.f32 %v473_v19, %v46_v32  ;;  %v69_v41 = vmul.f32 %v475_v20, %v47_v33  ;;  %vm105_vm10 = vcmp.ge.f32.partialorder %v89_v28, 0.0  ;;  %vm106_vm11 = vcmp.ge.f32.partialorder %v90_v30, 0.0 }
  0x1f   :  { %285 = vmatpush.msra.mxu1 %v219_v42  ;;  %404 = vmatpush.msra.mxu3 %v219_v42  ;;  %v129_v42 = vsel %vm97_vm8, %v81_v22, %v113_v34  ;;  %v130_v43 = vsel %vm98_vm9, %v82_v23, %v114_v35  ;;  %v83_v44 = vadd.f32 %v493_v29, %v60_v36 }
  0x20   :  { %245 = vmatpush.msra.mxu0 %v202_v45  ;;  %389 = vmatpush.msra.mxu2 %v202_v45  ;;  %v84_v45 = vadd.f32 %v496_v31, %v61_v37  ;;  %v137_v46 = vsel %vm105_vm10, %v89_v28, %v121_v38  ;;  %v91_v48 = vadd.f32 %v493_v29, %v68_v40 }
  0x21   :  { %286 = vmatpush.msra.mxu1 %v218_v47  ;;  %405 = vmatpush.msra.mxu3 %v218_v47  ;;  %v138_v47 = vsel %vm106_vm11, %v90_v30, %v122_v39  ;;  %v92_v49 = vadd.f32 %v496_v31, %v69_v41  ;;  %v115_v50 = vmul.f32 0.1, %v83_v44  ;;  %vm99_vm12 = vcmp.ge.f32.partialorder %v83_v44, 0.0 }
  0x22   :  { %246 = vmatpush.msra.mxu0 %v201_v54  ;;  %390 = vmatpush.msra.mxu2 %v201_v54  ;;  %v116_v19 = vmul.f32 0.1, %v84_v45  ;;  %vm100_vm13 = vcmp.ge.f32.partialorder %v84_v45, 0.0  ;;  %v123_v20 = vmul.f32 0.1, %v91_v48  ;;  %vm107_vm14 = vcmp.ge.f32.partialorder %v91_v48, 0.0 }
  0x23   :  { %287 = vmatpush.msra.mxu1 %v217_v55  ;;  %406 = vmatpush.msra.mxu3 %v217_v55  ;;  %v124_v51 = vmul.f32 0.1, %v92_v49  ;;  %vm108_vm15 = vcmp.ge.f32.partialorder %v92_v49, 0.0  ;;  %v131_v52 = vsel %vm99_vm12, %v83_v44, %v115_v50 }
  0x24   :  { %247 = vmatpush.msra.mxu0 %v200_v60  ;;  %391 = vmatpush.msra.mxu2 %v200_v60  ;;  %v132_v53 = vsel %vm100_vm13, %v84_v45, %v116_v19  ;;  %v139_v54 = vsel %vm107_vm14, %v91_v48, %v123_v20  ;;  %v327_v19 = vld [vmem:[%s604_s4] sm:$0x3] }
  0x25   :  { %288 = vmatpush.msra.mxu1 %v216_v61  ;;  %248 = vmatmul.f32.vlgmr.msra.gmra.mxu0 %v125_v63  ;;  %v140_v55 = vsel %vm108_vm15, %v92_v49, %v124_v51 }
  0x26   :  { %289 = vmatmul.f32.vlgmr.msra.gmra.mxu1 %v126_v0  ;;  %407 = vmatpush.msra.mxu3 %v216_v61 }
  0x27   :  { %260 = vmatmul.f32.vlgmr.msra.gmra.mxu2 %v133_v2  ;;  %301 = vmatmul.f32.vlgmr.msra.gmra.mxu3 %v134_v5 }
  0x2d   :  { %251 = vmatmul.f32.gmra.mxu0 %v127_v18 }
  0x2e   :  { %292 = vmatmul.f32.gmra.mxu1 %v128_v21 }
  0x2f   :  { %263 = vmatmul.f32.gmra.mxu2 %v135_v26  ;;  %304 = vmatmul.f32.gmra.mxu3 %v136_v27 }
  0x35   :  { %254 = vmatmul.f32.gmra.mxu0 %v129_v42 }
  0x36   :  { %295 = vmatmul.f32.gmra.mxu1 %v130_v43 }
  0x37   :  { %266 = vmatmul.f32.gmra.mxu2 %v137_v46  ;;  %307 = vmatmul.f32.gmra.mxu3 %v138_v47 }
  0x3d   :  { %257 = vmatmul.f32.gmra.mxu0 %v131_v52 }
  0x3e   :  { %298 = vmatmul.f32.gmra.mxu1 %v132_v53 }
  0x3f   :  { %269 = vmatmul.f32.gmra.mxu2 %v139_v54  ;;  %310 = vmatmul.f32.gmra.mxu3 %v140_v55 }
  0xa2   :  { %v249_v29 = vpop.f32.mrf.mxu0 }
  0xa3   :  { %v290_v31 = vpop.f32.mrf.mxu1 }
  0xa4   :  { %v291_v56 = vadd.f32 %v290_v31, %v249_v29 }
  0xa6   :  { %314 = vst [vmem:[%s603_s3] sm:$0xff] %v291_v56  ;;  %v341_v7 = vmul.f32 %v291_v56, %v291_v56 }
  0xaa   :  { %v252_v58 = vpop.f32.mrf.mxu0  ;;  %v261_v59 = vpop.f32.mrf.mxu2 }
  0xab   :  { %v293_v60 = vpop.f32.mrf.mxu1  ;;  %v302_v61 = vpop.f32.mrf.mxu3 }
  0xac   :  { %v294_v62 = vadd.f32 %v293_v60, %v252_v58  ;;  %v303_v63 = vadd.f32 %v302_v61, %v261_v59 }
  0xae   :  { %315 = vst [vmem:[%s603_s3 + $0x8] sm:$0xff] %v294_v62  ;;  %v342_v6 = vmul.f32 %v294_v62, %v294_v62  ;;  %v328_v8 = vadd.f32 %v294_v62, %v291_v56  ;;  %v345_v23 = vmul.f32 %v303_v63, %v303_v63 }
  0xaf   :  { %318 = vst [vmem:[%s603_s3 + $0x20] sm:$0xff] %v303_v63 }
  0xb0   :  { %v349_v14 = vadd.f32 %v342_v6, %v341_v7 }
  0xb2   :  { %v255_v0 = vpop.f32.mrf.mxu0  ;;  %v264_v1 = vpop.f32.mrf.mxu2 }
  0xb3   :  { %v296_v2 = vpop.f32.mrf.mxu1  ;;  %v305_v3 = vpop.f32.mrf.mxu3 }
  0xb4   :  { %v297_v4 = vadd.f32 %v296_v2, %v255_v0  ;;  %v306_v5 = vadd.f32 %v305_v3, %v264_v1 }
  0xb6   :  { %316 = vst [vmem:[%s603_s3 + $0x10] sm:$0xff] %v297_v4  ;;  %v343_v9 = vmul.f32 %v297_v4, %v297_v4  ;;  %v329_v15 = vadd.f32 %v328_v8, %v297_v4  ;;  %v346_v26 = vmul.f32 %v306_v5, %v306_v5 }
  0xb7   :  { %319 = vst [vmem:[%s603_s3 + $0x28] sm:$0xff] %v306_v5 }
  0xb8   :  { %v350_v18 = vadd.f32 %v349_v14, %v343_v9 }
  0xba   :  { %v258_v10 = vpop.f32.mrf.mxu0  ;;  %v267_v11 = vpop.f32.mrf.mxu2 }
  0xbb   :  { %v299_v12 = vpop.f32.mrf.mxu1  ;;  %v308_v13 = vpop.f32.mrf.mxu3 }
  0xbc   :  { %v300_v16 = vadd.f32 %v299_v12, %v258_v10  ;;  %v309_v17 = vadd.f32 %v308_v13, %v267_v11 }
  0xbe   :  { %317 = vst [vmem:[%s603_s3 + $0x18] sm:$0xff] %v300_v16  ;;  %v330_v21 = vadd.f32 %v329_v15, %v300_v16  ;;  %v344_v22 = vmul.f32 %v300_v16, %v300_v16  ;;  %v347_v34 = vmul.f32 %v309_v17, %v309_v17 }
  0xbf   :  { %320 = vst [vmem:[%s603_s3 + $0x30] sm:$0xff] %v309_v17 }
  0xc0   :  { %v331_v24 = vadd.f32 %v330_v21, %v303_v63  ;;  %v351_v25 = vadd.f32 %v350_v18, %v344_v22 }
  0xc2   :  { %v352_v27 = vadd.f32 %v351_v25, %v345_v23  ;;  %v332_v28 = vadd.f32 %v331_v24, %v306_v5  ;;  %v270_v30 = vpop.f32.mrf.mxu2 }
  0xc3   :  { %v311_v32 = vpop.f32.mrf.mxu3 }
  0xc4   :  { %v333_v33 = vadd.f32 %v332_v28, %v309_v17  ;;  %v353_v35 = vadd.f32 %v352_v27, %v346_v26  ;;  %v312_v36 = vadd.f32 %v311_v32, %v270_v30 }
  0xc6   :  { %v354_v37 = vadd.f32 %v353_v35, %v347_v34  ;;  %321 = vst [vmem:[%s603_s3 + $0x38] sm:$0xff] %v312_v36  ;;  %v334_v38 = vadd.f32 %v333_v33, %v312_v36  ;;  %v348_v39 = vmul.f32 %v312_v36, %v312_v36 }
  0xc8   :  { %v335_v40 = vrot.slane %v334_v38, 4  ;;  %v355_v41 = vadd.f32 %v354_v37, %v348_v39 }
  0xca   :  { %v336_v42 = vadd.f32 %v335_v40, %v334_v38  ;;  %v356_v43 = vrot.slane %v355_v41, 4 }
  0xcc   :  { %v337_v44 = vrot.slane %v336_v42, 2  ;;  %v357_v45 = vadd.f32 %v356_v43, %v355_v41 }
  0xce   :  { %v338_v46 = vadd.f32 %v337_v44, %v336_v42  ;;  %v358_v47 = vrot.slane %v357_v45, 2 }
  0xd0   :  { %v339_v48 = vrot.slane %v338_v46, 1  ;;  %v359_v49 = vadd.f32 %v358_v47, %v357_v45 }
  0xd2   :  { %v360_v50 = vrot.slane %v359_v49, 1  ;;  %v340_v20 = vadd.f32 %v339_v48, %v338_v46 }
  0xd4   :  { %v361_v51 = vadd.f32 %v360_v50, %v359_v49 }
  0xd6   :  { %v363_v52 = vsel %vm362_vm0, %v340_v20, %v361_v51 }
  0xd7   :  { %v364_v53 = vadd.f32 %v363_v52, %v327_v19 }
  0xd9   :  { %365 = vst [vmem:[%s604_s4] sm:$0x3] %v364_v53 }
  0xda   :  { %374 = vsyncpa [#allocation3], 1 }

// kernel: fwd.5
= control target key start
LH: loop header
LB: loop body
LE: loop exit
PB: predicated region body
PF: predicated region fallthrough
CT: control target
= control target key end

     0   :  { %10 = vsyncpa [#allocation3], 0  ;;  %s496_s18 = smov [#allocation2]   ;;  %s497_s20 = smov 128   ;;  %s705_s0 = inlined_call_operand.vmem [shape: f32[128,256], index: 0, kind: input, shape index: {}]   ;;  %s706_s1 = inlined_call_operand.vmem [shape: f32[2,256], index: 1, kind: input, shape index: {}]   ;;  %s707_s2 = inlined_call_operand.hbm [shape: f32[256,128], index: 2, kind: input, shape index: {}]   ;;  %s708_s3 = inlined_call_operand.vmem [shape: f32[128,128], index: 3, kind: output, shape index: {0}]   ;;  %s709_s4 = inlined_call_operand.vmem [shape: f32[2,128], index: 4, kind: output, shape index: {1}]  }
   0x1   :  { %s19_s17 = sshll.u32 %s707_s2, 4  ;;  %s21_s19 = sshll.u32 %s496_s18, 4  ;;  %s20_s17 = int_to_ptr.hbm [resolvable:$true] %s19_s17  ;;  %s22_s19 = int_to_ptr.vmem [resolvable:$true] %s21_s19 }
   0x2   :  { %s498_s1 = smov 8  }
   0x3   :  { %27 = dma.hbm_to_vmem [thread:$0]  %s20_s17, 4096, %s22_s19, [#allocation3], %s497_s20, %s497_s20, %s498_s1  }
   0x4   :  { %494 = dma.done.wait [#allocation3], 4096  }
   0x5   :  { %495 = vsyncadd [#allocation3], 4294963200  ;;  %v194_v0 = vld [vmem:[#allocation2 + $0x78] sm:$0xff]  ;;  %v193_v2 = vld [vmem:[#allocation2 + $0x70] sm:$0xff]  ;;  %vm421_vm0 = vcmask 1040384  }
   0x6   :  { %v210_v1 = vld [vmem:[#allocation2 + $0xf8] sm:$0xff]  ;;  %211 = vmatpush.msra.mxu0 %v194_v0  ;;  %v209_v3 = vld [vmem:[#allocation2 + $0xf0] sm:$0xff]  ;;  %v192_v4 = vld [vmem:[#allocation2 + $0x68] sm:$0xff]  ;;  %434 = vmatpush.msra.mxu2 %v194_v0 }
   0x7   :  { %276 = vmatpush.msra.mxu1 %v210_v1  ;;  %v208_v5 = vld [vmem:[#allocation2 + $0xe8] sm:$0xff]  ;;  %450 = vmatpush.msra.mxu3 %v210_v1  ;;  %v191_v6 = vld [vmem:[#allocation2 + $0x60] sm:$0xff]  ;;  %v190_v8 = vld [vmem:[#allocation2 + $0x58] sm:$0xff] }
   0x8   :  { %212 = vmatpush.msra.mxu0 %v193_v2  ;;  %v207_v7 = vld [vmem:[#allocation2 + $0xe0] sm:$0xff]  ;;  %435 = vmatpush.msra.mxu2 %v193_v2  ;;  %v206_v9 = vld [vmem:[#allocation2 + $0xd8] sm:$0xff]  ;;  %v189_v10 = vld [vmem:[#allocation2 + $0x50] sm:$0xff] }
   0x9   :  { %277 = vmatpush.msra.mxu1 %v209_v3  ;;  %451 = vmatpush.msra.mxu3 %v209_v3  ;;  %v205_v11 = vld [vmem:[#allocation2 + $0xd0] sm:$0xff]  ;;  %v188_v12 = vld [vmem:[#allocation2 + $0x48] sm:$0xff]  ;;  %v187_v14 = vld [vmem:[#allocation2 + $0x40] sm:$0xff] }
   0xa   :  { %213 = vmatpush.msra.mxu0 %v192_v4  ;;  %436 = vmatpush.msra.mxu2 %v192_v4  ;;  %v204_v13 = vld [vmem:[#allocation2 + $0xc8] sm:$0xff]  ;;  %v203_v15 = vld [vmem:[#allocation2 + $0xc0] sm:$0xff]  ;;  %v186_v16 = vld [vmem:[#allocation2 + $0x38] sm:$0xff] }
   0xb   :  { %278 = vmatpush.msra.mxu1 %v208_v5  ;;  %452 = vmatpush.msra.mxu3 %v208_v5  ;;  %v202_v17 = vld [vmem:[#allocation2 + $0xb8] sm:$0xff]  ;;  %v185_v18 = vld [vmem:[#allocation2 + $0x30] sm:$0xff]  ;;  %v184_v20 = vld [vmem:[#allocation2 + $0x28] sm:$0xff] }
   0xc   :  { %214 = vmatpush.msra.mxu0 %v191_v6  ;;  %437 = vmatpush.msra.mxu2 %v191_v6  ;;  %v201_v19 = vld [vmem:[#allocation2 + $0xb0] sm:$0xff]  ;;  %v200_v21 = vld [vmem:[#allocation2 + $0xa8] sm:$0xff]  ;;  %v183_v22 = vld [vmem:[#allocation2 + $0x20] sm:$0xff] }
   0xd   :  { %279 = vmatpush.msra.mxu1 %v207_v7  ;;  %453 = vmatpush.msra.mxu3 %v207_v7  ;;  %v199_v23 = vld [vmem:[#allocation2 + $0xa0] sm:$0xff]  ;;  %v182_v24 = vld [vmem:[#allocation2 + $0x18] sm:$0xff]  ;;  %v181_v26 = vld [vmem:[#allocation2 + $0x10] sm:$0xff] }
   0xe   :  { %215 = vmatpush.msra.mxu0 %v190_v8  ;;  %438 = vmatpush.msra.mxu2 %v190_v8  ;;  %v198_v25 = vld [vmem:[#allocation2 + $0x98] sm:$0xff]  ;;  %v197_v27 = vld [vmem:[#allocation2 + $0x90] sm:$0xff]  ;;  %v180_v28 = vld [vmem:[#allocation2 + $0x8] sm:$0xff] }
   0xf   :  { %280 = vmatpush.msra.mxu1 %v206_v9  ;;  %454 = vmatpush.msra.mxu3 %v206_v9  ;;  %v196_v29 = vld [vmem:[#allocation2 + $0x88] sm:$0xff]  ;;  %v179_v30 = vld [vmem:[#allocation2] sm:$0xff]  ;;  %v34_v36 = vld [vmem:[%s705_s0 + $0x10] sm:$0xff] }
  0x10   :  { %216 = vmatpush.msra.mxu0 %v189_v10  ;;  %439 = vmatpush.msra.mxu2 %v189_v10  ;;  %v195_v31 = vld [vmem:[#allocation2 + $0x80] sm:$0xff]  ;;  %v33_v33 = vld [vmem:[%s705_s0 + $0x8] sm:$0xff]  ;;  %v35_v37 = vld [vmem:[%s705_s0 + $0x18] sm:$0xff] }
  0x11   :  { %281 = vmatpush.msra.mxu1 %v205_v11  ;;  %455 = vmatpush.msra.mxu3 %v205_v11  ;;  %v32_v32 = vld [vmem:[%s705_s0] sm:$0xff]  ;;  %v49_v35 = vld [vmem:[%s705_s0 + $0x88] sm:$0xff]  ;;  %v50_v38 = vld [vmem:[%s705_s0 + $0x90] sm:$0xff] }
  0x12   :  { %217 = vmatpush.msra.mxu0 %v188_v12  ;;  %440 = vmatpush.msra.mxu2 %v188_v12  ;;  %v48_v34 = vld [vmem:[%s705_s0 + $0x80] sm:$0xff]  ;;  %v51_v39 = vld [vmem:[%s705_s0 + $0x98] sm:$0xff]  ;;  %v37_v41 = vld [vmem:[%s705_s0 + $0x28] sm:$0xff] }
  0x13   :  { %282 = vmatpush.msra.mxu1 %v204_v13  ;;  %456 = vmatpush.msra.mxu3 %v204_v13  ;;  %v36_v40 = vld [vmem:[%s705_s0 + $0x20] sm:$0xff]  ;;  %v53_v43 = vld [vmem:[%s705_s0 + $0xa8] sm:$0xff]  ;;  %v38_v44 = vld [vmem:[%s705_s0 + $0x30] sm:$0xff] }
  0x14   :  { %218 = vmatpush.msra.mxu0 %v187_v14  ;;  %441 = vmatpush.msra.mxu2 %v187_v14  ;;  %v52_v42 = vld [vmem:[%s705_s0 + $0xa0] sm:$0xff]  ;;  %v39_v45 = vld [vmem:[%s705_s0 + $0x38] sm:$0xff]  ;;  %v54_v46 = vld [vmem:[%s705_s0 + $0xb0] sm:$0xff] }
  0x15   :  { %283 = vmatpush.msra.mxu1 %v203_v15  ;;  %457 = vmatpush.msra.mxu3 %v203_v15  ;;  %v55_v47 = vld [vmem:[%s705_s0 + $0xb8] sm:$0xff]  ;;  %v40_v48 = vld [vmem:[%s705_s0 + $0x40] sm:$0xff]  ;;  %v41_v49 = vld [vmem:[%s705_s0 + $0x48] sm:$0xff] }
  0x16   :  { %219 = vmatpush.msra.mxu0 %v186_v16  ;;  %442 = vmatpush.msra.mxu2 %v186_v16  ;;  %v56_v50 = vld [vmem:[%s705_s0 + $0xc0] sm:$0xff]  ;;  %v57_v51 = vld [vmem:[%s705_s0 + $0xc8] sm:$0xff]  ;;  %v42_v52 = vld [vmem:[%s705_s0 + $0x50] sm:$0xff] }
  0x17   :  { %284 = vmatpush.msra.mxu1 %v202_v17  ;;  %458 = vmatpush.msra.mxu3 %v202_v17  ;;  %v43_v53 = vld [vmem:[%s705_s0 + $0x58] sm:$0xff]  ;;  %v58_v54 = vld [vmem:[%s705_s0 + $0xd0] sm:$0xff]  ;;  %v44_v56 = vld [vmem:[%s705_s0 + $0x60] sm:$0xff] }
  0x18   :  { %220 = vmatpush.msra.mxu0 %v185_v18  ;;  %443 = vmatpush.msra.mxu2 %v185_v18  ;;  %v59_v55 = vld [vmem:[%s705_s0 + $0xd8] sm:$0xff]  ;;  %v45_v57 = vld [vmem:[%s705_s0 + $0x68] sm:$0xff]  ;;  %v60_v58 = vld [vmem:[%s705_s0 + $0xe0] sm:$0xff] }
  0x19   :  { %285 = vmatpush.msra.mxu1 %v201_v19  ;;  %459 = vmatpush.msra.mxu3 %v201_v19  ;;  %v61_v59 = vld [vmem:[%s705_s0 + $0xe8] sm:$0xff]  ;;  %v46_v60 = vld [vmem:[%s705_s0 + $0x70] sm:$0xff]  ;;  %v47_v61 = vld [vmem:[%s705_s0 + $0x78] sm:$0xff] }
  0x1a   :  { %221 = vmatpush.msra.mxu0 %v184_v20  ;;  %444 = vmatpush.msra.mxu2 %v184_v20  ;;  %v62_v62 = vld [vmem:[%s705_s0 + $0xf0] sm:$0xff]  ;;  %v63_v63 = vld [vmem:[%s705_s0 + $0xf8] sm:$0xff] }
  0x1b   :  { %286 = vmatpush.msra.mxu1 %v200_v21  ;;  %460 = vmatpush.msra.mxu3 %v200_v21 }
  0x1c   :  { %222 = vmatpush.msra.mxu0 %v183_v22  ;;  %445 = vmatpush.msra.mxu2 %v183_v22 }
  0x1d   :  { %287 = vmatpush.msra.mxu1 %v199_v23  ;;  %461 = vmatpush.msra.mxu3 %v199_v23 }
  0x1e   :  { %223 = vmatpush.msra.mxu0 %v182_v24  ;;  %446 = vmatpush.msra.mxu2 %v182_v24 }
  0x1f   :  { %288 = vmatpush.msra.mxu1 %v198_v25  ;;  %462 = vmatpush.msra.mxu3 %v198_v25 }
  0x20   :  { %224 = vmatpush.msra.mxu0 %v181_v26  ;;  %447 = vmatpush.msra.mxu2 %v181_v26 }
  0x21   :  { %289 = vmatpush.msra.mxu1 %v197_v27  ;;  %463 = vmatpush.msra.mxu3 %v197_v27 }
  0x22   :  { %225 = vmatpush.msra.mxu0 %v180_v28  ;;  %448 = vmatpush.msra.mxu2 %v180_v28 }
  0x23   :  { %290 = vmatpush.msra.mxu1 %v196_v29  ;;  %464 = vmatpush.msra.mxu3 %v196_v29 }
  0x24   :  { %226 = vmatpush.msra.mxu0 %v179_v30  ;;  %449 = vmatpush.msra.mxu2 %v179_v30 }
  0x25   :  { %291 = vmatpush.msra.mxu1 %v195_v31  ;;  %227 = vmatmul.f32.vlgmr.msra.gmra.mxu0 %v32_v32 }
  0x26   :  { %292 = vmatmul.f32.vlgmr.msra.gmra.mxu1 %v33_v33  ;;  %465 = vmatpush.msra.mxu3 %v195_v31 }
  0x27   :  { %251 = vmatmul.f32.vlgmr.msra.gmra.mxu2 %v48_v34  ;;  %316 = vmatmul.f32.vlgmr.msra.gmra.mxu3 %v49_v35  ;;  %v499_v34 = vmov 0.0  }
  0x28   :  { %361 = vst [vmem:[%s709_s4] sm:$0x3] %v499_v34 }
  0x2d   :  { %230 = vmatmul.f32.gmra.mxu0 %v34_v36 }
  0x2e   :  { %295 = vmatmul.f32.gmra.mxu1 %v35_v37 }
  0x2f   :  { %254 = vmatmul.f32.gmra.mxu2 %v50_v38  ;;  %319 = vmatmul.f32.gmra.mxu3 %v51_v39 }
  0x35   :  { %233 = vmatmul.f32.gmra.mxu0 %v36_v40 }
  0x36   :  { %298 = vmatmul.f32.gmra.mxu1 %v37_v41 }
  0x37   :  { %257 = vmatmul.f32.gmra.mxu2 %v52_v42  ;;  %322 = vmatmul.f32.gmra.mxu3 %v53_v43 }
  0x3d   :  { %236 = vmatmul.f32.gmra.mxu0 %v38_v44 }
  0x3e   :  { %301 = vmatmul.f32.gmra.mxu1 %v39_v45 }
  0x3f   :  { %260 = vmatmul.f32.gmra.mxu2 %v54_v46  ;;  %325 = vmatmul.f32.gmra.mxu3 %v55_v47 }
  0x45   :  { %239 = vmatmul.f32.gmra.mxu0 %v40_v48 }
  0x46   :  { %304 = vmatmul.f32.gmra.mxu1 %v41_v49 }
  0x47   :  { %263 = vmatmul.f32.gmra.mxu2 %v56_v50  ;;  %328 = vmatmul.f32.gmra.mxu3 %v57_v51 }
  0x4d   :  { %242 = vmatmul.f32.gmra.mxu0 %v42_v52 }
  0x4e   :  { %307 = vmatmul.f32.gmra.mxu1 %v43_v53 }
  0x4f   :  { %266 = vmatmul.f32.gmra.mxu2 %v58_v54  ;;  %331 = vmatmul.f32.gmra.mxu3 %v59_v55 }
  0x55   :  { %245 = vmatmul.f32.gmra.mxu0 %v44_v56 }
  0x56   :  { %310 = vmatmul.f32.gmra.mxu1 %v45_v57 }
  0x57   :  { %269 = vmatmul.f32.gmra.mxu2 %v60_v58  ;;  %334 = vmatmul.f32.gmra.mxu3 %v61_v59 }
  0x5d   :  { %248 = vmatmul.f32.gmra.mxu0 %v46_v60 }
  0x5e   :  { %313 = vmatmul.f32.gmra.mxu1 %v47_v61 }
  0x5f   :  { %272 = vmatmul.f32.gmra.mxu2 %v62_v62  ;;  %337 = vmatmul.f32.gmra.mxu3 %v63_v63 }
  0xa2   :  { %v228_v0 = vpop.f32.mrf.mxu0 }
  0xa3   :  { %v293_v1 = vpop.f32.mrf.mxu1 }
  0xa4   :  { %v294_v2 = vadd.f32 %v293_v1, %v228_v0 }
  0xa6   :  { %341 = vst [vmem:[%s708_s3] sm:$0xff] %v294_v2  ;;  %v384_v35 = vmul.f32 %v294_v2, %v294_v2 }
  0xaa   :  { %v231_v3 = vpop.f32.mrf.mxu0  ;;  %v252_v6 = vpop.f32.mrf.mxu2 }
  0xab   :  { %v296_v4 = vpop.f32.mrf.mxu1  ;;  %v317_v7 = vpop.f32.mrf.mxu3 }
  0xac   :  { %v297_v5 = vadd.f32 %v296_v4, %v231_v3  ;;  %v627_v8 = vadd.f32 %v317_v7, %v252_v6 }
  0xae   :  { %342 = vst [vmem:[%s708_s3 + $0x8] sm:$0xff] %v297_v5  ;;  %v385_v33 = vmul.f32 %v297_v5, %v297_v5  ;;  %v363_v36 = vadd.f32 %v297_v5, %v294_v2  ;;  %v392_v3 = vmul.f32 %v627_v8, %v627_v8 }
  0xaf   :  { %349 = vst [vmem:[%s708_s3 + $0x40] sm:$0xff] %v627_v8 }
  0xb0   :  { %v400_v40 = vadd.f32 %v385_v33, %v384_v35 }
  0xb2   :  { %v234_v9 = vpop.f32.mrf.mxu0  ;;  %v255_v12 = vpop.f32.mrf.mxu2 }
  0xb3   :  { %v299_v10 = vpop.f32.mrf.mxu1  ;;  %v320_v13 = vpop.f32.mrf.mxu3 }
  0xb4   :  { %v300_v11 = vadd.f32 %v299_v10, %v234_v9  ;;  %v636_v14 = vadd.f32 %v320_v13, %v255_v12 }
  0xb6   :  { %343 = vst [vmem:[%s708_s3 + $0x10] sm:$0xff] %v300_v11  ;;  %v386_v37 = vmul.f32 %v300_v11, %v300_v11  ;;  %v364_v41 = vadd.f32 %v363_v36, %v300_v11  ;;  %v393_v6 = vmul.f32 %v636_v14, %v636_v14 }
  0xb7   :  { %350 = vst [vmem:[%s708_s3 + $0x48] sm:$0xff] %v636_v14 }
  0xb8   :  { %v401_v47 = vadd.f32 %v400_v40, %v386_v37 }
  0xba   :  { %v237_v15 = vpop.f32.mrf.mxu0  ;;  %v258_v18 = vpop.f32.mrf.mxu2 }
  0xbb   :  { %v302_v16 = vpop.f32.mrf.mxu1  ;;  %v323_v19 = vpop.f32.mrf.mxu3 }
  0xbc   :  { %v303_v17 = vadd.f32 %v302_v16, %v237_v15  ;;  %v645_v20 = vadd.f32 %v323_v19, %v258_v18 }
  0xbe   :  { %344 = vst [vmem:[%s708_s3 + $0x18] sm:$0xff] %v303_v17  ;;  %v387_v42 = vmul.f32 %v303_v17, %v303_v17  ;;  %v365_v48 = vadd.f32 %v364_v41, %v303_v17  ;;  %v394_v10 = vmul.f32 %v645_v20, %v645_v20  ;;  %v362_v41 = vld [vmem:[%s709_s4] sm:$0x3] }
  0xbf   :  { %351 = vst [vmem:[%s708_s3 + $0x50] sm:$0xff] %v645_v20 }
  0xc0   :  { %v402_v50 = vadd.f32 %v401_v47, %v387_v42 }
  0xc2   :  { %v240_v21 = vpop.f32.mrf.mxu0  ;;  %v261_v24 = vpop.f32.mrf.mxu2 }
  0xc3   :  { %v305_v22 = vpop.f32.mrf.mxu1  ;;  %v326_v25 = vpop.f32.mrf.mxu3 }
  0xc4   :  { %v306_v23 = vadd.f32 %v305_v22, %v240_v21  ;;  %v654_v26 = vadd.f32 %v326_v25, %v261_v24 }
  0xc6   :  { %345 = vst [vmem:[%s708_s3 + $0x20] sm:$0xff] %v306_v23  ;;  %v388_v49 = vmul.f32 %v306_v23, %v306_v23  ;;  %v366_v51 = vadd.f32 %v365_v48, %v306_v23  ;;  %v395_v17 = vmul.f32 %v654_v26, %v654_v26 }
  0xc7   :  { %352 = vst [vmem:[%s708_s3 + $0x58] sm:$0xff] %v654_v26 }
  0xc8   :  { %v403_v53 = vadd.f32 %v402_v50, %v388_v49 }
  0xca   :  { %v243_v27 = vpop.f32.mrf.mxu0  ;;  %v264_v30 = vpop.f32.mrf.mxu2 }
  0xcb   :  { %v308_v28 = vpop.f32.mrf.mxu1  ;;  %v329_v31 = vpop.f32.mrf.mxu3 }
  0xcc   :  { %v309_v29 = vadd.f32 %v308_v28, %v243_v27  ;;  %v330_v32 = vadd.f32 %v329_v31, %v264_v30 }
  0xce   :  { %346 = vst [vmem:[%s708_s3 + $0x28] sm:$0xff] %v309_v29  ;;  %v389_v52 = vmul.f32 %v309_v29, %v309_v29  ;;  %v367_v54 = vadd.f32 %v366_v51, %v309_v29 }
  0xcf   :  { %353 = vst [vmem:[%s708_s3 + $0x60] sm:$0xff] %v330_v32 }
  0xd0   :  { %v404_v58 = vadd.f32 %v403_v53, %v389_v52 }
  0xd2   :  { %v246_v38 = vpop.f32.mrf.mxu0  ;;  %v267_v44 = vpop.f32.mrf.mxu2 }
  0xd3   :  { %v311_v39 = vpop.f32.mrf.mxu1  ;;  %v332_v45 = vpop.f32.mrf.mxu3 }
  0xd4   :  { %v312_v43 = vadd.f32 %v311_v39, %v246_v38  ;;  %v333_v46 = vadd.f32 %v332_v45, %v267_v44 }
  0xd6   :  { %347 = vst [vmem:[%s708_s3 + $0x30] sm:$0xff] %v312_v43  ;;  %v390_v55 = vmul.f32 %v312_v43, %v312_v43  ;;  %v368_v59 = vadd.f32 %v367_v54, %v312_v43  ;;  %v397_v23 = vmul.f32 %v333_v46, %v333_v46 }
  0xd7   :  { %354 = vst [vmem:[%s708_s3 + $0x68] sm:$0xff] %v333_v46 }
  0xd8   :  { %v405_v0 = vadd.f32 %v404_v58, %v390_v55 }
  0xda   :  { %v249_v56 = vpop.f32.mrf.mxu0  ;;  %v270_v61 = vpop.f32.mrf.mxu2 }
  0xdb   :  { %v314_v57 = vpop.f32.mrf.mxu1  ;;  %v335_v62 = vpop.f32.mrf.mxu3 }
  0xdc   :  { %v315_v60 = vadd.f32 %v314_v57, %v249_v56  ;;  %v336_v63 = vadd.f32 %v335_v62, %v270_v61 }
  0xde   :  { %348 = vst [vmem:[%s708_s3 + $0x38] sm:$0xff] %v315_v60  ;;  %v369_v1 = vadd.f32 %v368_v59, %v315_v60  ;;  %v391_v2 = vmul.f32 %v315_v60, %v315_v60  ;;  %v398_v27 = vmul.f32 %v336_v63, %v336_v63 }
  0xdf   :  { %355 = vst [vmem:[%s708_s3 + $0x70] sm:$0xff] %v336_v63 }
  0xe0   :  { %v370_v4 = vadd.f32 %v369_v1, %v627_v8  ;;  %v406_v5 = vadd.f32 %v405_v0, %v391_v2 }
  0xe2   :  { %v371_v7 = vadd.f32 %v370_v4, %v636_v14  ;;  %v407_v9 = vadd.f32 %v406_v5, %v392_v3  ;;  %v273_v13 = vpop.f32.mrf.mxu2  ;;  %v396_v14 = vmul.f32 %v330_v32, %v330_v32 }
  0xe3   :  { %v338_v15 = vpop.f32.mrf.mxu3 }
  0xe4   :  { %v408_v11 = vadd.f32 %v407_v9, %v393_v6  ;;  %v372_v12 = vadd.f32 %v371_v7, %v645_v20  ;;  %v339_v16 = vadd.f32 %v338_v15, %v273_v13 }
  0xe6   :  { %v373_v8 = vadd.f32 %v372_v12, %v654_v26  ;;  %v409_v18 = vadd.f32 %v408_v11, %v394_v10  ;;  %356 = vst [vmem:[%s708_s3 + $0x78] sm:$0xff] %v339_v16  ;;  %v399_v28 = vmul.f32 %v339_v16, %v339_v16 }
  0xe8   :  { %v374_v19 = vadd.f32 %v373_v8, %v330_v32  ;;  %v410_v21 = vadd.f32 %v409_v18, %v395_v17 }
  0xea   :  { %v375_v22 = vadd.f32 %v374_v19, %v333_v46  ;;  %v411_v24 = vadd.f32 %v410_v21, %v396_v14 }
  0xec   :  { %v412_v20 = vadd.f32 %v411_v24, %v397_v23  ;;  %v376_v25 = vadd.f32 %v375_v22, %v336_v63 }
  0xee   :  { %v413_v29 = vadd.f32 %v412_v20, %v398_v27  ;;  %v377_v30 = vadd.f32 %v376_v25, %v339_v16 }
  0xf0   :  { %v378_v31 = vrot.slane %v377_v30, 4  ;;  %v414_v33 = vadd.f32 %v413_v29, %v399_v28 }
  0xf2   :  { %v379_v26 = vadd.f32 %v378_v31, %v377_v30  ;;  %v415_v34 = vrot.slane %v414_v33, 4 }
  0xf4   :  { %v380_v35 = vrot.slane %v379_v26, 2  ;;  %v416_v36 = vadd.f32 %v415_v34, %v414_v33 }
  0xf6   :  { %v381_v37 = vadd.f32 %v380_v35, %v379_v26  ;;  %v417_v38 = vrot.slane %v416_v36, 2 }
  0xf8   :  { %v382_v39 = vrot.slane %v381_v37, 1  ;;  %v418_v32 = vadd.f32 %v417_v38, %v416_v36 }
  0xfa   :  { %v419_v40 = vrot.slane %v418_v32, 1  ;;  %v383_v42 = vadd.f32 %v382_v39, %v381_v37 }
  0xfc   :  { %v420_v43 = vadd.f32 %v419_v40, %v418_v32 }
  0xfe   :  { %v422_v44 = vsel %vm421_vm0, %v383_v42, %v420_v43 }
  0xff   :  { %v423_v45 = vadd.f32 %v422_v44, %v362_v41 }
 0x101   :  { %424 = vst [vmem:[%s709_s4] sm:$0x3] %v423_v45 }
 0x102   :  { %433 = vsyncpa [#allocation3], 1 }

// kernel: fwd.8
= control target key start
LH: loop header
LB: loop body
LE: loop exit
PB: predicated region body
PF: predicated region fallthrough
CT: control target
= control target key end

     0   :  { %10 = vsyncpa [#allocation3], 0  ;;  %s264_s18 = smov [#allocation2]   ;;  %s265_s20 = smov 128   ;;  %s329_s0 = inlined_call_operand.vmem [shape: f32[16,256], index: 0, kind: input, shape index: {}]   ;;  %s330_s1 = inlined_call_operand.vmem [shape: f32[2,256], index: 1, kind: input, shape index: {}]   ;;  %s331_s2 = inlined_call_operand.hbm [shape: f32[256,128], index: 2, kind: input, shape index: {}]   ;;  %s332_s3 = inlined_call_operand.vmem [shape: f32[16,128], index: 3, kind: output, shape index: {0}]   ;;  %s333_s4 = inlined_call_operand.vmem [shape: f32[2,128], index: 4, kind: output, shape index: {1}]  }
   0x1   :  { %s19_s17 = sshll.u32 %s331_s2, 4  ;;  %s21_s19 = sshll.u32 %s264_s18, 4  ;;  %s20_s17 = int_to_ptr.hbm [resolvable:$true] %s19_s17  ;;  %s22_s19 = int_to_ptr.vmem [resolvable:$true] %s21_s19 }
   0x2   :  { %s266_s21 = smov 8  }
   0x3   :  { %27 = dma.hbm_to_vmem [thread:$0]  %s20_s17, 4096, %s22_s19, [#allocation3], %s265_s20, %s265_s20, %s266_s21  }
   0x4   :  { %262 = dma.done.wait [#allocation3], 4096  }
   0x5   :  { %263 = vsyncadd [#allocation3], 4294963200  ;;  %v101_v0 = vld [vmem:[#allocation2 + $0x78] sm:$0xff]  ;;  %v100_v2 = vld [vmem:[#allocation2 + $0x70] sm:$0xff]  ;;  %v267_v58 = vmov 0.0   ;;  %vm188_vm4 = vcmask 1040384  }
   0x6   :  { %v117_v1 = vld [vmem:[#allocation2 + $0xf8] sm:$0xff]  ;;  %202 = vmatpush.msra.mxu2 %v101_v0  ;;  %v116_v3 = vld [vmem:[#allocation2 + $0xf0] sm:$0xff]  ;;  %v99_v4 = vld [vmem:[#allocation2 + $0x68] sm:$0xff]  ;;  %118 = vmatpush.msra.mxu0 %v101_v0  ;;  %170 = vst [vmem:[%s333_s4] sm:$0x3] %v267_v58 }
   0x7   :  { %218 = vmatpush.msra.mxu3 %v117_v1  ;;  %v115_v5 = vld [vmem:[#allocation2 + $0xe8] sm:$0xff]  ;;  %141 = vmatpush.msra.mxu1 %v117_v1  ;;  %v98_v6 = vld [vmem:[#allocation2 + $0x60] sm:$0xff]  ;;  %v97_v8 = vld [vmem:[#allocation2 + $0x58] sm:$0xff] }
   0x8   :  { %203 = vmatpush.msra.mxu2 %v100_v2  ;;  %v114_v7 = vld [vmem:[#allocation2 + $0xe0] sm:$0xff]  ;;  %119 = vmatpush.msra.mxu0 %v100_v2  ;;  %v113_v9 = vld [vmem:[#allocation2 + $0xd8] sm:$0xff]  ;;  %v96_v10 = vld [vmem:[#allocation2 + $0x50] sm:$0xff] }
   0x9   :  { %219 = vmatpush.msra.mxu3 %v116_v3  ;;  %142 = vmatpush.msra.mxu1 %v116_v3  ;;  %v112_v11 = vld [vmem:[#allocation2 + $0xd0] sm:$0xff]  ;;  %v95_v12 = vld [vmem:[#allocation2 + $0x48] sm:$0xff]  ;;  %v36_v14 = vld [vmem:[%s330_s1] ss:$2 sm:$0x3] }
   0xa   :  { %204 = vmatpush.msra.mxu2 %v99_v4  ;;  %120 = vmatpush.msra.mxu0 %v99_v4  ;;  %v111_v13 = vld [vmem:[#allocation2 + $0xc8] sm:$0xff]  ;;  %v94_v15 = vld [vmem:[#allocation2 + $0x40] sm:$0xff]  ;;  %v93_v17 = vld [vmem:[#allocation2 + $0x38] sm:$0xff]  ;;  %v38_v19 = vperm.slane %v36_v14, 0  ;;  %v39_v20 = vperm.slane %v36_v14, 1 }
   0xb   :  { %220 = vmatpush.msra.mxu3 %v115_v5  ;;  %143 = vmatpush.msra.mxu1 %v115_v5  ;;  %v110_v16 = vld [vmem:[#allocation2 + $0xc0] sm:$0xff]  ;;  %v109_v18 = vld [vmem:[#allocation2 + $0xb8] sm:$0xff]  ;;  %v34_v21 = vld [vmem:[%s329_s0 + $0x10] sm:$0xff] }
   0xc   :  { %205 = vmatpush.msra.mxu2 %v98_v6  ;;  %121 = vmatpush.msra.mxu0 %v98_v6  ;;  %v201_v22 = vld [vmem:[%s330_s1 + $0x1] ss:$2 sm:$0x3]  ;;  %v35_v23 = vld [vmem:[%s329_s0 + $0x18] sm:$0xff]  ;;  %v92_v24 = vld [vmem:[#allocation2 + $0x30] sm:$0xff]  ;;  %v44_v28 = vmul.f32 %v38_v19, %v34_v21 }
   0xd   :  { %221 = vmatpush.msra.mxu3 %v114_v7  ;;  %144 = vmatpush.msra.mxu1 %v114_v7  ;;  %v108_v25 = vld [vmem:[#allocation2 + $0xb0] sm:$0xff]  ;;  %v32_v26 = vld [vmem:[%s329_s0] sm:$0xff]  ;;  %v33_v27 = vld [vmem:[%s329_s0 + $0x8] sm:$0xff]  ;;  %v49_v29 = vperm.slane %v201_v22, 0  ;;  %v45_v30 = vmul.f32 %v39_v20, %v35_v23  ;;  %v50_v31 = vperm.slane %v201_v22, 1 }
   0xe   :  { %206 = vmatpush.msra.mxu2 %v97_v8  ;;  %122 = vmatpush.msra.mxu0 %v97_v8  ;;  %v91_v32 = vld [vmem:[#allocation2 + $0x28] sm:$0xff]  ;;  %v42_v34 = vmul.f32 %v38_v19, %v32_v26  ;;  %v43_v35 = vmul.f32 %v39_v20, %v33_v27  ;;  %v90_v36 = vld [vmem:[#allocation2 + $0x20] sm:$0xff]  ;;  %v89_v40 = vld [vmem:[#allocation2 + $0x18] sm:$0xff] }
   0xf   :  { %222 = vmatpush.msra.mxu3 %v113_v9  ;;  %145 = vmatpush.msra.mxu1 %v113_v9  ;;  %v107_v33 = vld [vmem:[#allocation2 + $0xa8] sm:$0xff]  ;;  %v106_v37 = vld [vmem:[#allocation2 + $0xa0] sm:$0xff]  ;;  %v55_v38 = vadd.f32 %v49_v29, %v44_v28  ;;  %v56_v39 = vadd.f32 %v50_v31, %v45_v30  ;;  %v105_v41 = vld [vmem:[#allocation2 + $0x98] sm:$0xff] }
  0x10   :  { %207 = vmatpush.msra.mxu2 %v96_v10  ;;  %123 = vmatpush.msra.mxu0 %v96_v10  ;;  %v53_v42 = vadd.f32 %v49_v29, %v42_v34  ;;  %v54_v43 = vadd.f32 %v50_v31, %v43_v35  ;;  %v88_v44 = vld [vmem:[#allocation2 + $0x10] sm:$0xff]  ;;  %v87_v48 = vld [vmem:[#allocation2 + $0x8] sm:$0xff]  ;;  %v86_v52 = vld [vmem:[#allocation2] sm:$0xff] }
  0x11   :  { %223 = vmatpush.msra.mxu3 %v112_v11  ;;  %146 = vmatpush.msra.mxu1 %v112_v11  ;;  %v104_v45 = vld [vmem:[#allocation2 + $0x90] sm:$0xff]  ;;  %v63_v46 = vmul.f32 0.1, %v55_v38  ;;  %v64_v47 = vmul.f32 0.1, %v56_v39  ;;  %v103_v49 = vld [vmem:[#allocation2 + $0x88] sm:$0xff] }
  0x12   :  { %208 = vmatpush.msra.mxu2 %v95_v12  ;;  %124 = vmatpush.msra.mxu0 %v95_v12  ;;  %vm59_vm0 = vcmp.ge.f32.partialorder %v55_v38, 0.0  ;;  %vm60_vm1 = vcmp.ge.f32.partialorder %v56_v39, 0.0  ;;  %v61_v50 = vmul.f32 0.1, %v53_v42  ;;  %v62_v51 = vmul.f32 0.1, %v54_v43 }
  0x13   :  { %224 = vmatpush.msra.mxu3 %v111_v13  ;;  %147 = vmatpush.msra.mxu1 %v111_v13  ;;  %v102_v53 = vld [vmem:[#allocation2 + $0x80] sm:$0xff]  ;;  %vm57_vm2 = vcmp.ge.f32.partialorder %v53_v42, 0.0  ;;  %vm58_vm3 = vcmp.ge.f32.partialorder %v54_v43, 0.0  ;;  %v67_v54 = vsel %vm59_vm0, %v55_v38, %v63_v46  ;;  %v68_v55 = vsel %vm60_vm1, %v56_v39, %v64_v47 }
  0x14   :  { %209 = vmatpush.msra.mxu2 %v94_v15  ;;  %125 = vmatpush.msra.mxu0 %v94_v15  ;;  %v65_v56 = vsel %vm57_vm2, %v53_v42, %v61_v50  ;;  %v66_v57 = vsel %vm58_vm3, %v54_v43, %v62_v51  ;;  %v171_v15 = vld [vmem:[%s333_s4] sm:$0x3] }
  0x15   :  { %225 = vmatpush.msra.mxu3 %v110_v16  ;;  %148 = vmatpush.msra.mxu1 %v110_v16 }
  0x16   :  { %210 = vmatpush.msra.mxu2 %v93_v17  ;;  %126 = vmatpush.msra.mxu0 %v93_v17 }
  0x17   :  { %226 = vmatpush.msra.mxu3 %v109_v18  ;;  %149 = vmatpush.msra.mxu1 %v109_v18 }
  0x18   :  { %211 = vmatpush.msra.mxu2 %v92_v24  ;;  %127 = vmatpush.msra.mxu0 %v92_v24 }
  0x19   :  { %227 = vmatpush.msra.mxu3 %v108_v25  ;;  %150 = vmatpush.msra.mxu1 %v108_v25 }
  0x1a   :  { %212 = vmatpush.msra.mxu2 %v91_v32  ;;  %128 = vmatpush.msra.mxu0 %v91_v32 }
  0x1b   :  { %228 = vmatpush.msra.mxu3 %v107_v33  ;;  %151 = vmatpush.msra.mxu1 %v107_v33 }
  0x1c   :  { %213 = vmatpush.msra.mxu2 %v90_v36  ;;  %129 = vmatpush.msra.mxu0 %v90_v36 }
  0x1d   :  { %229 = vmatpush.msra.mxu3 %v106_v37  ;;  %152 = vmatpush.msra.mxu1 %v106_v37 }
  0x1e   :  { %214 = vmatpush.msra.mxu2 %v89_v40  ;;  %130 = vmatpush.msra.mxu0 %v89_v40 }
  0x1f   :  { %230 = vmatpush.msra.mxu3 %v105_v41  ;;  %153 = vmatpush.msra.mxu1 %v105_v41 }
  0x20   :  { %215 = vmatpush.msra.mxu2 %v88_v44  ;;  %131 = vmatpush.msra.mxu0 %v88_v44 }
  0x21   :  { %231 = vmatpush.msra.mxu3 %v104_v45  ;;  %154 = vmatpush.msra.mxu1 %v104_v45 }
  0x22   :  { %216 = vmatpush.msra.mxu2 %v87_v48  ;;  %132 = vmatpush.msra.mxu0 %v87_v48 }
  0x23   :  { %232 = vmatpush.msra.mxu3 %v103_v49  ;;  %155 = vmatpush.msra.mxu1 %v103_v49 }
  0x24   :  { %217 = vmatpush.msra.mxu2 %v86_v52  ;;  %133 = vmatpush.msra.mxu0 %v86_v52 }
  0x25   :  { %233 = vmatpush.msra.mxu3 %v102_v53  ;;  %137 = vmatmul.f32.vlgmr.msra.gmra.mxu2 %v67_v54 }
  0x26   :  { %160 = vmatmul.f32.vlgmr.msra.gmra.mxu3 %v68_v55  ;;  %156 = vmatpush.msra.mxu1 %v102_v53 }
  0x27   :  { %134 = vmatmul.f32.vlgmr.msra.gmra.mxu0 %v65_v56  ;;  %157 = vmatmul.f32.vlgmr.msra.gmra.mxu1 %v66_v57 }
  0xa4   :  { %v135_v59 = vpop.f32.mrf.mxu0  ;;  %v158_v60 = vpop.f32.mrf.mxu1 }
  0xa5   :  { %v159_v61 = vadd.f32 %v158_v60, %v135_v59 }
  0xa7   :  { %164 = vst [vmem:[%s332_s3] sm:$0xff] %v159_v61  ;;  %v179_v0 = vmul.f32 %v159_v61, %v159_v61 }
  0xa8   :  { %v138_v62 = vpop.f32.mrf.mxu2 }
  0xa9   :  { %v161_v63 = vpop.f32.mrf.mxu3 }
  0xaa   :  { %v162_v1 = vadd.f32 %v161_v63, %v138_v62 }
  0xac   :  { %165 = vst [vmem:[%s332_s3 + $0x8] sm:$0xff] %v162_v1  ;;  %v172_v2 = vadd.f32 %v162_v1, %v159_v61  ;;  %v180_v3 = vmul.f32 %v162_v1, %v162_v1 }
  0xae   :  { %v173_v4 = vrot.slane %v172_v2, 4  ;;  %v181_v5 = vadd.f32 %v180_v3, %v179_v0 }
  0xb0   :  { %v174_v6 = vadd.f32 %v173_v4, %v172_v2  ;;  %v182_v7 = vrot.slane %v181_v5, 4 }
  0xb2   :  { %v175_v8 = vrot.slane %v174_v6, 2  ;;  %v183_v9 = vadd.f32 %v182_v7, %v181_v5 }
  0xb4   :  { %v176_v10 = vadd.f32 %v175_v8, %v174_v6  ;;  %v184_v11 = vrot.slane %v183_v9, 2 }
  0xb6   :  { %v177_v12 = vrot.slane %v176_v10, 1  ;;  %v185_v13 = vadd.f32 %v184_v11, %v183_v9 }
  0xb8   :  { %v186_v14 = vrot.slane %v185_v13, 1  ;;  %v178_v16 = vadd.f32 %v177_v12, %v176_v10 }
  0xba   :  { %v187_v17 = vadd.f32 %v186_v14, %v185_v13 }
  0xbc   :  { %v189_v18 = vsel %vm188_vm4, %v178_v16, %v187_v17 }
  0xbd   :  { %v190_v19 = vadd.f32 %v189_v18, %v171_v15 }
  0xbf   :  { %191 = vst [vmem:[%s333_s4] sm:$0x3] %v190_v19 }
  0xc0   :  { %200 = vsyncpa [#allocation3], 1 }

// kernel: fwd.9
= control target key start
LH: loop header
LB: loop body
LE: loop exit
PB: predicated region body
PF: predicated region fallthrough
CT: control target
= control target key end

     0   :  { %11 = vsyncpa [#allocation3], 0  ;;  %s3447_s0 = inlined_call_operand.vmem [shape: f32[8,512], index: 0, kind: input, shape index: {}]   ;;  %s3448_s1 = inlined_call_operand.vmem [shape: f32[2,512], index: 1, kind: input, shape index: {}]   ;;  %s3449_s2 = inlined_call_operand.hbm [shape: f32[512,2048], index: 2, kind: input, shape index: {}]   ;;  %s3450_s3 = inlined_call_operand.hbm [shape: f32[1,2048], index: 3, kind: input, shape index: {}]   ;;  %s3451_s4 = inlined_call_operand.hbm [shape: f32[2048,128], index: 4, kind: input, shape index: {}]   ;;  %s3452_s5 = inlined_call_operand.hbm [shape: f32[1,128], index: 5, kind: input, shape index: {}]   ;;  %s3453_s6 = inlined_call_operand.vmem [shape: f32[8,128], index: 6, kind: output, shape index: {}]  }
   0x1   :  { %12 = vsyncpa [#allocation5], 0  ;;  %s36_s23 = sshll.u32 %s3450_s3, 4  ;;  %s37_s23 = int_to_ptr.hbm [resolvable:$true] %s36_s23 }
   0x2   :  { %13 = vsyncpa [#allocation8], 0  ;;  %s3182_s24 = smov [#allocation4]   ;;  %s22_s28 = sshll.u32 %s3449_s2, 4  ;;  %s23_s28 = int_to_ptr.hbm [resolvable:$true] %s22_s28 }
   0x3   :  { %s38_s25 = sshll.u32 %s3182_s24, 4  ;;  %s3183_s29 = smov [#allocation2]   ;;  %s39_s25 = int_to_ptr.vmem [resolvable:$true] %s38_s25 }
   0x4   :  { %41 = dma.hbm_to_vmem [thread:$0]  %s37_s23, 256, %s39_s25, [#allocation5]  }
   0x5   :  { %s24_s30 = sshll.u32 %s3183_s29, 4  ;;  %s3184_s7 = smov 2048   ;;  %s25_s30 = int_to_ptr.vmem [resolvable:$true] %s24_s30 }
   0x6   :  { %s3185_s8 = smov 128   ;;  %s46_s3 = sshll.u32 %s3451_s4, 4  ;;  %s47_s3 = int_to_ptr.hbm [resolvable:$true] %s46_s3 }
   0x7   :  { %30 = dma.hbm_to_vmem [thread:$0]  %s23_s28, 131072, %s25_s30, [#allocation3], %s3184_s7, %s3184_s7, %s3185_s8  }
   0x8   :  { %s3186_s11 = smov [#allocation6]   ;;  %s3187_s13 = smov 8  }
   0x9   :  { %s48_s12 = sshll.u32 %s3186_s11, 4  ;;  %s60_s15 = sshll.u32 %s3452_s5, 4  ;;  %s49_s12 = int_to_ptr.vmem [resolvable:$true] %s48_s12  ;;  %s61_s15 = int_to_ptr.hbm [resolvable:$true] %s60_s15 }
   0xa   :  { %54 = dma.hbm_to_vmem [thread:$0]  %s47_s3, 32768, %s49_s12, [#allocation5], %s3185_s8, %s3185_s8, %s3187_s13  }
   0xb   :  { %s3188_s16 = smov [#allocation7]  }
   0xc   :  { %s62_s17 = sshll.u32 %s3188_s16, 4  ;;  %s63_s17 = int_to_ptr.vmem [resolvable:$true] %s62_s17 }
   0xd   :  { %65 = dma.hbm_to_vmem [thread:$0]  %s61_s15, 16, %s63_s17, [#allocation8]  }
   0xe   :  { %3176 = dma.done.wait [#allocation3], 131072  }
   0xf   :  { %3177 = vsyncadd [#allocation3], 4294836224 }
  0x10   :  { %3178 = dma.done.wait [#allocation5], 33024  }
  0x11   :  { %3179 = vsyncadd [#allocation5], 4294934272 }
  0x12   :  { %3180 = dma.done.wait [#allocation8], 16  }
  0x13   :  { %3181 = vsyncadd [#allocation8], 4294967280  ;;  %v367_v0 = vld [vmem:[#allocation2 + $0x780] sm:$0xff] }
  0x14   :  { %v623_v1 = vld [vmem:[#allocation2 + $0xf80] sm:$0xff]  ;;  %1187 = vmatpush.msra.mxu0 %v367_v0  ;;  %v368_v0 = vld [vmem:[#allocation2 + $0x788] sm:$0xff] }
  0x15   :  { %v879_v2 = vld [vmem:[#allocation2 + $0x1780] sm:$0xff]  ;;  %1207 = vmatpush.msra.mxu1 %v623_v1  ;;  %v624_v1 = vld [vmem:[#allocation2 + $0xf88] sm:$0xff] }
  0x16   :  { %v1135_v3 = vld [vmem:[#allocation2 + $0x1f80] sm:$0xff]  ;;  %1227 = vmatpush.msra.mxu2 %v879_v2  ;;  %v880_v2 = vld [vmem:[#allocation2 + $0x1788] sm:$0xff] }
  0x17   :  { %v351_v4 = vld [vmem:[#allocation2 + $0x700] sm:$0xff]  ;;  %1247 = vmatpush.msra.mxu3 %v1135_v3  ;;  %v1136_v3 = vld [vmem:[#allocation2 + $0x1f88] sm:$0xff] }
  0x18   :  { %v607_v5 = vld [vmem:[#allocation2 + $0xf00] sm:$0xff]  ;;  %1188 = vmatpush.msra.mxu0 %v351_v4  ;;  %v352_v4 = vld [vmem:[#allocation2 + $0x708] sm:$0xff] }
  0x19   :  { %v863_v6 = vld [vmem:[#allocation2 + $0x1700] sm:$0xff]  ;;  %1208 = vmatpush.msra.mxu1 %v607_v5  ;;  %v608_v5 = vld [vmem:[#allocation2 + $0xf08] sm:$0xff] }
  0x1a   :  { %v1119_v7 = vld [vmem:[#allocation2 + $0x1f00] sm:$0xff]  ;;  %1228 = vmatpush.msra.mxu2 %v863_v6  ;;  %v864_v6 = vld [vmem:[#allocation2 + $0x1708] sm:$0xff] }
  0x1b   :  { %v335_v8 = vld [vmem:[#allocation2 + $0x680] sm:$0xff]  ;;  %1248 = vmatpush.msra.mxu3 %v1119_v7  ;;  %v1120_v7 = vld [vmem:[#allocation2 + $0x1f08] sm:$0xff] }
  0x1c   :  { %v591_v9 = vld [vmem:[#allocation2 + $0xe80] sm:$0xff]  ;;  %1189 = vmatpush.msra.mxu0 %v335_v8  ;;  %v336_v8 = vld [vmem:[#allocation2 + $0x688] sm:$0xff] }
  0x1d   :  { %v847_v10 = vld [vmem:[#allocation2 + $0x1680] sm:$0xff]  ;;  %1209 = vmatpush.msra.mxu1 %v591_v9  ;;  %v592_v9 = vld [vmem:[#allocation2 + $0xe88] sm:$0xff] }
  0x1e   :  { %v1103_v11 = vld [vmem:[#allocation2 + $0x1e80] sm:$0xff]  ;;  %1229 = vmatpush.msra.mxu2 %v847_v10  ;;  %v848_v10 = vld [vmem:[#allocation2 + $0x1688] sm:$0xff] }
  0x1f   :  { %v319_v12 = vld [vmem:[#allocation2 + $0x600] sm:$0xff]  ;;  %1249 = vmatpush.msra.mxu3 %v1103_v11  ;;  %v1104_v11 = vld [vmem:[#allocation2 + $0x1e88] sm:$0xff] }
  0x20   :  { %v575_v13 = vld [vmem:[#allocation2 + $0xe00] sm:$0xff]  ;;  %1190 = vmatpush.msra.mxu0 %v319_v12  ;;  %v320_v12 = vld [vmem:[#allocation2 + $0x608] sm:$0xff] }
  0x21   :  { %v831_v14 = vld [vmem:[#allocation2 + $0x1600] sm:$0xff]  ;;  %1210 = vmatpush.msra.mxu1 %v575_v13  ;;  %v576_v13 = vld [vmem:[#allocation2 + $0xe08] sm:$0xff] }
  0x22   :  { %v1087_v15 = vld [vmem:[#allocation2 + $0x1e00] sm:$0xff]  ;;  %1230 = vmatpush.msra.mxu2 %v831_v14  ;;  %v832_v14 = vld [vmem:[#allocation2 + $0x1608] sm:$0xff] }
  0x23   :  { %v303_v16 = vld [vmem:[#allocation2 + $0x580] sm:$0xff]  ;;  %1250 = vmatpush.msra.mxu3 %v1087_v15  ;;  %v1088_v15 = vld [vmem:[#allocation2 + $0x1e08] sm:$0xff] }
  0x24   :  { %v559_v17 = vld [vmem:[#allocation2 + $0xd80] sm:$0xff]  ;;  %1191 = vmatpush.msra.mxu0 %v303_v16  ;;  %v304_v16 = vld [vmem:[#allocation2 + $0x588] sm:$0xff] }
  0x25   :  { %v815_v18 = vld [vmem:[#allocation2 + $0x1580] sm:$0xff]  ;;  %1211 = vmatpush.msra.mxu1 %v559_v17  ;;  %v560_v17 = vld [vmem:[#allocation2 + $0xd88] sm:$0xff] }
  0x26   :  { %v1071_v19 = vld [vmem:[#allocation2 + $0x1d80] sm:$0xff]  ;;  %1231 = vmatpush.msra.mxu2 %v815_v18  ;;  %v816_v18 = vld [vmem:[#allocation2 + $0x1588] sm:$0xff] }
  0x27   :  { %v287_v20 = vld [vmem:[#allocation2 + $0x500] sm:$0xff]  ;;  %1251 = vmatpush.msra.mxu3 %v1071_v19  ;;  %v1072_v19 = vld [vmem:[#allocation2 + $0x1d88] sm:$0xff] }
  0x28   :  { %v543_v21 = vld [vmem:[#allocation2 + $0xd00] sm:$0xff]  ;;  %1192 = vmatpush.msra.mxu0 %v287_v20  ;;  %v288_v20 = vld [vmem:[#allocation2 + $0x508] sm:$0xff] }
  0x29   :  { %v799_v22 = vld [vmem:[#allocation2 + $0x1500] sm:$0xff]  ;;  %1212 = vmatpush.msra.mxu1 %v543_v21  ;;  %v544_v21 = vld [vmem:[#allocation2 + $0xd08] sm:$0xff] }
  0x2a   :  { %v1055_v23 = vld [vmem:[#allocation2 + $0x1d00] sm:$0xff]  ;;  %1232 = vmatpush.msra.mxu2 %v799_v22  ;;  %v800_v22 = vld [vmem:[#allocation2 + $0x1508] sm:$0xff] }
  0x2b   :  { %v271_v24 = vld [vmem:[#allocation2 + $0x480] sm:$0xff]  ;;  %1252 = vmatpush.msra.mxu3 %v1055_v23  ;;  %v1056_v23 = vld [vmem:[#allocation2 + $0x1d08] sm:$0xff] }
  0x2c   :  { %v527_v25 = vld [vmem:[#allocation2 + $0xc80] sm:$0xff]  ;;  %1193 = vmatpush.msra.mxu0 %v271_v24  ;;  %v272_v24 = vld [vmem:[#allocation2 + $0x488] sm:$0xff] }
  0x2d   :  { %v783_v26 = vld [vmem:[#allocation2 + $0x1480] sm:$0xff]  ;;  %1213 = vmatpush.msra.mxu1 %v527_v25  ;;  %v528_v25 = vld [vmem:[#allocation2 + $0xc88] sm:$0xff] }
  0x2e   :  { %v1039_v27 = vld [vmem:[#allocation2 + $0x1c80] sm:$0xff]  ;;  %1233 = vmatpush.msra.mxu2 %v783_v26  ;;  %v784_v26 = vld [vmem:[#allocation2 + $0x1488] sm:$0xff] }
  0x2f   :  { %v255_v28 = vld [vmem:[#allocation2 + $0x400] sm:$0xff]  ;;  %1253 = vmatpush.msra.mxu3 %v1039_v27  ;;  %v1040_v27 = vld [vmem:[#allocation2 + $0x1c88] sm:$0xff] }
  0x30   :  { %v511_v29 = vld [vmem:[#allocation2 + $0xc00] sm:$0xff]  ;;  %1194 = vmatpush.msra.mxu0 %v255_v28  ;;  %v256_v28 = vld [vmem:[#allocation2 + $0x408] sm:$0xff] }
  0x31   :  { %v767_v30 = vld [vmem:[#allocation2 + $0x1400] sm:$0xff]  ;;  %1214 = vmatpush.msra.mxu1 %v511_v29 }
  0x32   :  { %v1023_v31 = vld [vmem:[#allocation2 + $0x1c00] sm:$0xff]  ;;  %1234 = vmatpush.msra.mxu2 %v767_v30  ;;  %v512_v30 = vld [vmem:[#allocation2 + $0xc08] sm:$0xff] }
  0x33   :  { %v239_v32 = vld [vmem:[#allocation2 + $0x380] sm:$0xff]  ;;  %1254 = vmatpush.msra.mxu3 %v1023_v31  ;;  %v768_v31 = vld [vmem:[#allocation2 + $0x1408] sm:$0xff] }
  0x34   :  { %v495_v33 = vld [vmem:[#allocation2 + $0xb80] sm:$0xff]  ;;  %1195 = vmatpush.msra.mxu0 %v239_v32  ;;  %v1024_v32 = vld [vmem:[#allocation2 + $0x1c08] sm:$0xff] }
  0x35   :  { %v751_v34 = vld [vmem:[#allocation2 + $0x1380] sm:$0xff]  ;;  %1215 = vmatpush.msra.mxu1 %v495_v33  ;;  %v240_v33 = vld [vmem:[#allocation2 + $0x388] sm:$0xff] }
  0x36   :  { %v1007_v35 = vld [vmem:[#allocation2 + $0x1b80] sm:$0xff]  ;;  %1235 = vmatpush.msra.mxu2 %v751_v34  ;;  %v496_v34 = vld [vmem:[#allocation2 + $0xb88] sm:$0xff] }
  0x37   :  { %v223_v36 = vld [vmem:[#allocation2 + $0x300] sm:$0xff]  ;;  %1255 = vmatpush.msra.mxu3 %v1007_v35  ;;  %v752_v35 = vld [vmem:[#allocation2 + $0x1388] sm:$0xff] }
  0x38   :  { %v479_v37 = vld [vmem:[#allocation2 + $0xb00] sm:$0xff]  ;;  %1196 = vmatpush.msra.mxu0 %v223_v36  ;;  %v1008_v36 = vld [vmem:[#allocation2 + $0x1b88] sm:$0xff] }
  0x39   :  { %v735_v38 = vld [vmem:[#allocation2 + $0x1300] sm:$0xff]  ;;  %1216 = vmatpush.msra.mxu1 %v479_v37  ;;  %v224_v37 = vld [vmem:[#allocation2 + $0x308] sm:$0xff] }
  0x3a   :  { %v991_v39 = vld [vmem:[#allocation2 + $0x1b00] sm:$0xff]  ;;  %1236 = vmatpush.msra.mxu2 %v735_v38 }
  0x3b   :  { %v207_v40 = vld [vmem:[#allocation2 + $0x280] sm:$0xff]  ;;  %1256 = vmatpush.msra.mxu3 %v991_v39 }
  0x3c   :  { %v463_v41 = vld [vmem:[#allocation2 + $0xa80] sm:$0xff]  ;;  %1197 = vmatpush.msra.mxu0 %v207_v40 }
  0x3d   :  { %v719_v42 = vld [vmem:[#allocation2 + $0x1280] sm:$0xff]  ;;  %1217 = vmatpush.msra.mxu1 %v463_v41 }
  0x3e   :  { %v975_v43 = vld [vmem:[#allocation2 + $0x1a80] sm:$0xff]  ;;  %1237 = vmatpush.msra.mxu2 %v719_v42  ;;  %v83_v42 = vld [vmem:[%s3447_s0 + $0x8] sm:$0xff] }
  0x3f   :  { %v191_v44 = vld [vmem:[#allocation2 + $0x200] sm:$0xff]  ;;  %1257 = vmatpush.msra.mxu3 %v975_v43 }
  0x40   :  { %v447_v45 = vld [vmem:[#allocation2 + $0xa00] sm:$0xff]  ;;  %1198 = vmatpush.msra.mxu0 %v191_v44 }
  0x41   :  { %v703_v46 = vld [vmem:[#allocation2 + $0x1200] sm:$0xff]  ;;  %1218 = vmatpush.msra.mxu1 %v447_v45  ;;  %v480_v45 = vld [vmem:[#allocation2 + $0xb08] sm:$0xff] }
  0x42   :  { %v959_v47 = vld [vmem:[#allocation2 + $0x1a00] sm:$0xff]  ;;  %1238 = vmatpush.msra.mxu2 %v703_v46  ;;  %v84_v46 = vld [vmem:[%s3447_s0 + $0x10] sm:$0xff] }
  0x43   :  { %v175_v48 = vld [vmem:[#allocation2 + $0x180] sm:$0xff]  ;;  %1258 = vmatpush.msra.mxu3 %v959_v47  ;;  %v85_v47 = vld [vmem:[%s3447_s0 + $0x18] sm:$0xff] }
  0x44   :  { %v431_v49 = vld [vmem:[#allocation2 + $0x980] sm:$0xff]  ;;  %1199 = vmatpush.msra.mxu0 %v175_v48  ;;  %v736_v48 = vld [vmem:[#allocation2 + $0x1308] sm:$0xff] }
  0x45   :  { %v687_v50 = vld [vmem:[#allocation2 + $0x1180] sm:$0xff]  ;;  %1219 = vmatpush.msra.mxu1 %v431_v49  ;;  %v992_v49 = vld [vmem:[#allocation2 + $0x1b08] sm:$0xff] }
  0x46   :  { %v943_v51 = vld [vmem:[#allocation2 + $0x1980] sm:$0xff]  ;;  %1239 = vmatpush.msra.mxu2 %v687_v50  ;;  %v208_v50 = vld [vmem:[#allocation2 + $0x288] sm:$0xff] }
  0x47   :  { %v159_v52 = vld [vmem:[#allocation2 + $0x100] sm:$0xff]  ;;  %1259 = vmatpush.msra.mxu3 %v943_v51  ;;  %v464_v51 = vld [vmem:[#allocation2 + $0xa88] sm:$0xff] }
  0x48   :  { %v415_v53 = vld [vmem:[#allocation2 + $0x900] sm:$0xff]  ;;  %1200 = vmatpush.msra.mxu0 %v159_v52 }
  0x49   :  { %v671_v54 = vld [vmem:[#allocation2 + $0x1100] sm:$0xff]  ;;  %1220 = vmatpush.msra.mxu1 %v415_v53 }
  0x4a   :  { %v927_v55 = vld [vmem:[#allocation2 + $0x1900] sm:$0xff]  ;;  %1240 = vmatpush.msra.mxu2 %v671_v54 }
  0x4b   :  { %v143_v56 = vld [vmem:[#allocation2 + $0x80] sm:$0xff]  ;;  %1260 = vmatpush.msra.mxu3 %v927_v55 }
  0x4c   :  { %v399_v57 = vld [vmem:[#allocation2 + $0x880] sm:$0xff]  ;;  %1201 = vmatpush.msra.mxu0 %v143_v56  ;;  %v720_v56 = vld [vmem:[#allocation2 + $0x1288] sm:$0xff] }
  0x4d   :  { %v655_v58 = vld [vmem:[#allocation2 + $0x1080] sm:$0xff]  ;;  %1221 = vmatpush.msra.mxu1 %v399_v57  ;;  %v976_v57 = vld [vmem:[#allocation2 + $0x1a88] sm:$0xff] }
  0x4e   :  { %v911_v59 = vld [vmem:[#allocation2 + $0x1880] sm:$0xff]  ;;  %1241 = vmatpush.msra.mxu2 %v655_v58 }
  0x4f   :  { %v127_v60 = vld [vmem:[#allocation2] sm:$0xff]  ;;  %1261 = vmatpush.msra.mxu3 %v911_v59 }
  0x50   :  { %v383_v61 = vld [vmem:[#allocation2 + $0x800] sm:$0xff]  ;;  %1202 = vmatpush.msra.mxu0 %v127_v60 }
  0x51   :  { %v639_v62 = vld [vmem:[#allocation2 + $0x1000] sm:$0xff]  ;;  %1222 = vmatpush.msra.mxu1 %v383_v61 }
  0x52   :  { %v895_v63 = vld [vmem:[#allocation2 + $0x1800] sm:$0xff]  ;;  %1242 = vmatpush.msra.mxu2 %v639_v62  ;;  %1267 = vmatpush.msrb.mxu0 %v368_v0  ;;  %v192_v62 = vld [vmem:[#allocation2 + $0x208] sm:$0xff] }
  0x53   :  { %1262 = vmatpush.msra.mxu3 %v895_v63  ;;  %1287 = vmatpush.msrb.mxu1 %v624_v1  ;;  %v86_v29 = vld [vmem:[%s3448_s1] ss:$2 sm:$0xf]  ;;  %v3071_v41 = vld [vmem:[%s3448_s1 + $0x1] ss:$2 sm:$0xf] }
  0x54   :  { %1307 = vmatpush.msrb.mxu2 %v880_v2  ;;  %1268 = vmatpush.msrb.mxu0 %v352_v4  ;;  %v82_v38 = vld [vmem:[%s3447_s0] sm:$0xff]  ;;  %v88_v39 = vperm.slane %v86_v29, 0  ;;  %v89_v40 = vperm.slane %v86_v29, 1  ;;  %v90_v43 = vperm.slane %v86_v29, 2  ;;  %v91_v44 = vperm.slane %v86_v29, 3  ;;  %v448_v63 = vld [vmem:[#allocation2 + $0xa08] sm:$0xff] }
  0x55   :  { %1327 = vmatpush.msrb.mxu3 %v1136_v3  ;;  %1288 = vmatpush.msrb.mxu1 %v608_v5  ;;  %v103_v53 = vperm.slane %v3071_v41, 0  ;;  %v104_v55 = vperm.slane %v3071_v41, 1  ;;  %v105_v59 = vperm.slane %v3071_v41, 2  ;;  %v106_v61 = vperm.slane %v3071_v41, 3  ;;  %v704_v0 = vld [vmem:[#allocation2 + $0x1208] sm:$0xff]  ;;  %v1105_v41 = vld [vmem:[#allocation2 + $0x1e90] sm:$0xff] }
  0x56   :  { %1308 = vmatpush.msrb.mxu2 %v864_v6  ;;  %1269 = vmatpush.msrb.mxu0 %v336_v8  ;;  %v96_v52 = vmul.f32 %v88_v39, %v82_v38  ;;  %v97_v54 = vmul.f32 %v89_v40, %v83_v42  ;;  %v98_v58 = vmul.f32 %v90_v43, %v84_v46  ;;  %v960_v1 = vld [vmem:[#allocation2 + $0x1a08] sm:$0xff]  ;;  %v337_v38 = vld [vmem:[#allocation2 + $0x690] sm:$0xff] }
  0x57   :  { %1328 = vmatpush.msrb.mxu3 %v1120_v7  ;;  %1289 = vmatpush.msrb.mxu1 %v592_v9  ;;  %v99_v60 = vmul.f32 %v91_v44, %v85_v47  ;;  %v176_v2 = vld [vmem:[#allocation2 + $0x188] sm:$0xff]  ;;  %v593_v39 = vld [vmem:[#allocation2 + $0xe90] sm:$0xff] }
  0x58   :  { %1309 = vmatpush.msrb.mxu2 %v848_v10  ;;  %1270 = vmatpush.msrb.mxu0 %v320_v12  ;;  %v432_v3 = vld [vmem:[#allocation2 + $0x988] sm:$0xff]  ;;  %v111_v4 = vadd.f32 %v103_v53, %v96_v52  ;;  %v112_v5 = vadd.f32 %v104_v55, %v97_v54  ;;  %v113_v8 = vadd.f32 %v105_v59, %v98_v58  ;;  %v849_v40 = vld [vmem:[#allocation2 + $0x1690] sm:$0xff] }
  0x59   :  { %1329 = vmatpush.msrb.mxu3 %v1104_v11  ;;  %1290 = vmatpush.msrb.mxu1 %v576_v13  ;;  %v688_v6 = vld [vmem:[#allocation2 + $0x1188] sm:$0xff]  ;;  %v114_v9 = vadd.f32 %v106_v61, %v99_v60  ;;  %v321_v42 = vld [vmem:[#allocation2 + $0x610] sm:$0xff] }
  0x5a   :  { %1310 = vmatpush.msrb.mxu2 %v832_v14  ;;  %1271 = vmatpush.msrb.mxu0 %v304_v16  ;;  %v944_v7 = vld [vmem:[#allocation2 + $0x1988] sm:$0xff]  ;;  %vm115_vm0 = vcmp.ge.f32.partialorder %v111_v4, 0.0  ;;  %vm116_vm1 = vcmp.ge.f32.partialorder %v112_v5, 0.0  ;;  %vm117_vm2 = vcmp.ge.f32.partialorder %v113_v8, 0.0  ;;  %v577_v43 = vld [vmem:[#allocation2 + $0xe10] sm:$0xff] }
  0x5b   :  { %1330 = vmatpush.msrb.mxu3 %v1088_v15  ;;  %1291 = vmatpush.msrb.mxu1 %v560_v17  ;;  %v160_v10 = vld [vmem:[#allocation2 + $0x108] sm:$0xff]  ;;  %vm118_vm3 = vcmp.ge.f32.partialorder %v114_v9, 0.0  ;;  %v833_v44 = vld [vmem:[#allocation2 + $0x1610] sm:$0xff] }
  0x5c   :  { %1311 = vmatpush.msrb.mxu2 %v816_v18  ;;  %1272 = vmatpush.msrb.mxu0 %v288_v20  ;;  %v416_v11 = vld [vmem:[#allocation2 + $0x908] sm:$0xff]  ;;  %v119_v18 = vmul.f32 0.1, %v111_v4  ;;  %v121_v20 = vmul.f32 0.1, %v113_v8  ;;  %v305_v46 = vld [vmem:[#allocation2 + $0x590] sm:$0xff] }
  0x5d   :  { %1331 = vmatpush.msrb.mxu3 %v1072_v19  ;;  %1292 = vmatpush.msrb.mxu1 %v544_v21  ;;  %v672_v12 = vld [vmem:[#allocation2 + $0x1108] sm:$0xff]  ;;  %v120_v19 = vmul.f32 0.1, %v112_v5  ;;  %v122_v21 = vmul.f32 0.1, %v114_v9  ;;  %v561_v47 = vld [vmem:[#allocation2 + $0xd90] sm:$0xff] }
  0x5e   :  { %1312 = vmatpush.msrb.mxu2 %v800_v22  ;;  %1273 = vmatpush.msrb.mxu0 %v272_v24  ;;  %v928_v13 = vld [vmem:[#allocation2 + $0x1908] sm:$0xff]  ;;  %v801_v52 = vld [vmem:[#allocation2 + $0x1510] sm:$0xff] }
  0x5f   :  { %1332 = vmatpush.msrb.mxu3 %v1056_v23  ;;  %1293 = vmatpush.msrb.mxu1 %v528_v25  ;;  %v144_v14 = vld [vmem:[#allocation2 + $0x88] sm:$0xff]  ;;  %v3262_v29 = vsel %vm118_vm3, %v114_v9, %v122_v21  ;;  %v1057_v53 = vld [vmem:[#allocation2 + $0x1d10] sm:$0xff] }
  0x60   :  { %1313 = vmatpush.msrb.mxu2 %v784_v26  ;;  %1274 = vmatpush.msrb.mxu0 %v256_v28  ;;  %v400_v15 = vld [vmem:[#allocation2 + $0x888] sm:$0xff]  ;;  %v3255_v26 = vsel %vm115_vm0, %v111_v4, %v119_v18  ;;  %v3260_v28 = vsel %vm117_vm2, %v113_v8, %v121_v20  ;;  %v273_v54 = vld [vmem:[#allocation2 + $0x490] sm:$0xff] }
  0x61   :  { %1333 = vmatpush.msrb.mxu3 %v1040_v27  ;;  %1294 = vmatpush.msrb.mxu1 %v512_v30  ;;  %v656_v16 = vld [vmem:[#allocation2 + $0x1088] sm:$0xff]  ;;  %v3258_v27 = vsel %vm116_vm1, %v112_v5, %v120_v19  ;;  %v369_v30 = vld [vmem:[#allocation2 + $0x790] sm:$0xff] }
  0x62   :  { %1314 = vmatpush.msrb.mxu2 %v768_v31  ;;  %1275 = vmatpush.msrb.mxu0 %v240_v33  ;;  %v912_v17 = vld [vmem:[#allocation2 + $0x1888] sm:$0xff]  ;;  %v625_v31 = vld [vmem:[#allocation2 + $0xf90] sm:$0xff] }
  0x63   :  { %1334 = vmatpush.msrb.mxu3 %v1024_v32  ;;  %1295 = vmatpush.msrb.mxu1 %v496_v34  ;;  %v128_v22 = vld [vmem:[#allocation2 + $0x8] sm:$0xff]  ;;  %v881_v32 = vld [vmem:[#allocation2 + $0x1790] sm:$0xff] }
  0x64   :  { %1315 = vmatpush.msrb.mxu2 %v752_v35  ;;  %1276 = vmatpush.msrb.mxu0 %v224_v37  ;;  %v384_v23 = vld [vmem:[#allocation2 + $0x808] sm:$0xff]  ;;  %v1137_v33 = vld [vmem:[#allocation2 + $0x1f90] sm:$0xff] }
  0x65   :  { %1335 = vmatpush.msrb.mxu3 %v1008_v36  ;;  %1296 = vmatpush.msrb.mxu1 %v480_v45  ;;  %v640_v24 = vld [vmem:[#allocation2 + $0x1008] sm:$0xff]  ;;  %v353_v34 = vld [vmem:[#allocation2 + $0x710] sm:$0xff] }
  0x66   :  { %1316 = vmatpush.msrb.mxu2 %v736_v48  ;;  %1277 = vmatpush.msrb.mxu0 %v208_v50  ;;  %v896_v25 = vld [vmem:[#allocation2 + $0x1808] sm:$0xff]  ;;  %v609_v35 = vld [vmem:[#allocation2 + $0xf10] sm:$0xff] }
  0x67   :  { %1336 = vmatpush.msrb.mxu3 %v992_v49  ;;  %1297 = vmatpush.msrb.mxu1 %v464_v51  ;;  %v865_v36 = vld [vmem:[#allocation2 + $0x1710] sm:$0xff] }
  0x68   :  { %1317 = vmatpush.msrb.mxu2 %v720_v56  ;;  %1278 = vmatpush.msrb.mxu0 %v192_v62  ;;  %v1121_v37 = vld [vmem:[#allocation2 + $0x1f10] sm:$0xff] }
  0x69   :  { %1337 = vmatpush.msrb.mxu3 %v976_v57  ;;  %1298 = vmatpush.msrb.mxu1 %v448_v63  ;;  %v1089_v45 = vld [vmem:[#allocation2 + $0x1e10] sm:$0xff] }
  0x6a   :  { %1318 = vmatpush.msrb.mxu2 %v704_v0  ;;  %1279 = vmatpush.msrb.mxu0 %v176_v2  ;;  %v817_v48 = vld [vmem:[#allocation2 + $0x1590] sm:$0xff] }
  0x6b   :  { %1338 = vmatpush.msrb.mxu3 %v960_v1  ;;  %1299 = vmatpush.msrb.mxu1 %v432_v3  ;;  %v1073_v49 = vld [vmem:[#allocation2 + $0x1d90] sm:$0xff] }
  0x6c   :  { %1319 = vmatpush.msrb.mxu2 %v688_v6  ;;  %1280 = vmatpush.msrb.mxu0 %v160_v10  ;;  %v289_v50 = vld [vmem:[#allocation2 + $0x510] sm:$0xff] }
  0x6d   :  { %1339 = vmatpush.msrb.mxu3 %v944_v7  ;;  %1300 = vmatpush.msrb.mxu1 %v416_v11  ;;  %v545_v51 = vld [vmem:[#allocation2 + $0xd10] sm:$0xff] }
  0x6e   :  { %1320 = vmatpush.msrb.mxu2 %v672_v12  ;;  %1281 = vmatpush.msrb.mxu0 %v144_v14  ;;  %v529_v55 = vld [vmem:[#allocation2 + $0xc90] sm:$0xff] }
  0x6f   :  { %1340 = vmatpush.msrb.mxu3 %v928_v13  ;;  %1301 = vmatpush.msrb.mxu1 %v400_v15  ;;  %v785_v56 = vld [vmem:[#allocation2 + $0x1490] sm:$0xff] }
  0x70   :  { %1321 = vmatpush.msrb.mxu2 %v656_v16  ;;  %1282 = vmatpush.msrb.mxu0 %v128_v22  ;;  %v1041_v57 = vld [vmem:[#allocation2 + $0x1c90] sm:$0xff] }
  0x71   :  { %1341 = vmatpush.msrb.mxu3 %v912_v17  ;;  %1302 = vmatpush.msrb.mxu1 %v384_v23  ;;  %v257_v58 = vld [vmem:[#allocation2 + $0x410] sm:$0xff] }
  0x72   :  { %1322 = vmatpush.msrb.mxu2 %v640_v24  ;;  %1203 = vmatmul.f32.vlgmr.msra.gmra.mxu0 %v3255_v26  ;;  %v513_v59 = vld [vmem:[#allocation2 + $0xc10] sm:$0xff] }
  0x73   :  { %1342 = vmatpush.msrb.mxu3 %v896_v25  ;;  %1223 = vmatmul.f32.vlgmr.msra.gmra.mxu1 %v3258_v27  ;;  %v769_v60 = vld [vmem:[#allocation2 + $0x1410] sm:$0xff] }
  0x74   :  { %1243 = vmatmul.f32.vlgmr.msra.gmra.mxu2 %v3260_v28  ;;  %1263 = vmatmul.f32.vlgmr.msra.gmra.mxu3 %v3262_v29  ;;  %v1025_v61 = vld [vmem:[#allocation2 + $0x1c10] sm:$0xff] }
  0x75   :  { %1347 = vmatpush.msra.mxu0 %v369_v30  ;;  %1367 = vmatpush.msra.mxu1 %v625_v31  ;;  %v241_v62 = vld [vmem:[#allocation2 + $0x390] sm:$0xff] }
  0x76   :  { %1387 = vmatpush.msra.mxu2 %v881_v32  ;;  %1407 = vmatpush.msra.mxu3 %v1137_v33  ;;  %v497_v63 = vld [vmem:[#allocation2 + $0xb90] sm:$0xff] }
  0x77   :  { %1348 = vmatpush.msra.mxu0 %v353_v34  ;;  %1368 = vmatpush.msra.mxu1 %v609_v35  ;;  %v753_v0 = vld [vmem:[#allocation2 + $0x1390] sm:$0xff]  ;;  %v370_v34 = vld [vmem:[#allocation2 + $0x798] sm:$0xff] }
  0x78   :  { %1388 = vmatpush.msra.mxu2 %v865_v36  ;;  %1408 = vmatpush.msra.mxu3 %v1121_v37  ;;  %v1009_v1 = vld [vmem:[#allocation2 + $0x1b90] sm:$0xff]  ;;  %v626_v35 = vld [vmem:[#allocation2 + $0xf98] sm:$0xff] }
  0x79   :  { %1349 = vmatpush.msra.mxu0 %v337_v38  ;;  %1369 = vmatpush.msra.mxu1 %v593_v39  ;;  %v225_v2 = vld [vmem:[#allocation2 + $0x310] sm:$0xff]  ;;  %v882_v36 = vld [vmem:[#allocation2 + $0x1798] sm:$0xff] }
  0x7a   :  { %1389 = vmatpush.msra.mxu2 %v849_v40  ;;  %1409 = vmatpush.msra.mxu3 %v1105_v41  ;;  %v481_v3 = vld [vmem:[#allocation2 + $0xb10] sm:$0xff]  ;;  %v1138_v37 = vld [vmem:[#allocation2 + $0x1f98] sm:$0xff] }
  0x7b   :  { %1350 = vmatpush.msra.mxu0 %v321_v42  ;;  %1370 = vmatpush.msra.mxu1 %v577_v43  ;;  %v737_v4 = vld [vmem:[#allocation2 + $0x1310] sm:$0xff]  ;;  %v354_v38 = vld [vmem:[#allocation2 + $0x718] sm:$0xff] }
  0x7c   :  { %1390 = vmatpush.msra.mxu2 %v833_v44  ;;  %1410 = vmatpush.msra.mxu3 %v1089_v45  ;;  %v993_v5 = vld [vmem:[#allocation2 + $0x1b10] sm:$0xff]  ;;  %v610_v39 = vld [vmem:[#allocation2 + $0xf18] sm:$0xff] }
  0x7d   :  { %1351 = vmatpush.msra.mxu0 %v305_v46  ;;  %1371 = vmatpush.msra.mxu1 %v561_v47  ;;  %v209_v6 = vld [vmem:[#allocation2 + $0x290] sm:$0xff]  ;;  %v866_v40 = vld [vmem:[#allocation2 + $0x1718] sm:$0xff] }
  0x7e   :  { %1391 = vmatpush.msra.mxu2 %v817_v48  ;;  %1411 = vmatpush.msra.mxu3 %v1073_v49  ;;  %v465_v7 = vld [vmem:[#allocation2 + $0xa90] sm:$0xff]  ;;  %v1122_v41 = vld [vmem:[#allocation2 + $0x1f18] sm:$0xff] }
  0x7f   :  { %1352 = vmatpush.msra.mxu0 %v289_v50  ;;  %1372 = vmatpush.msra.mxu1 %v545_v51  ;;  %v721_v8 = vld [vmem:[#allocation2 + $0x1290] sm:$0xff]  ;;  %v338_v42 = vld [vmem:[#allocation2 + $0x698] sm:$0xff] }
  0x80   :  { %1392 = vmatpush.msra.mxu2 %v801_v52  ;;  %1412 = vmatpush.msra.mxu3 %v1057_v53  ;;  %v977_v9 = vld [vmem:[#allocation2 + $0x1a90] sm:$0xff]  ;;  %v594_v43 = vld [vmem:[#allocation2 + $0xe98] sm:$0xff] }
  0x81   :  { %1353 = vmatpush.msra.mxu0 %v273_v54  ;;  %1373 = vmatpush.msra.mxu1 %v529_v55  ;;  %v193_v10 = vld [vmem:[#allocation2 + $0x210] sm:$0xff]  ;;  %v850_v44 = vld [vmem:[#allocation2 + $0x1698] sm:$0xff] }
  0x82   :  { %1393 = vmatpush.msra.mxu2 %v785_v56  ;;  %1413 = vmatpush.msra.mxu3 %v1041_v57  ;;  %v449_v11 = vld [vmem:[#allocation2 + $0xa10] sm:$0xff]  ;;  %v1106_v45 = vld [vmem:[#allocation2 + $0x1e98] sm:$0xff] }
  0x83   :  { %1354 = vmatpush.msra.mxu0 %v257_v58  ;;  %1374 = vmatpush.msra.mxu1 %v513_v59  ;;  %v705_v12 = vld [vmem:[#allocation2 + $0x1210] sm:$0xff]  ;;  %v322_v46 = vld [vmem:[#allocation2 + $0x618] sm:$0xff] }
  0x84   :  { %1394 = vmatpush.msra.mxu2 %v769_v60  ;;  %1414 = vmatpush.msra.mxu3 %v1025_v61  ;;  %v961_v13 = vld [vmem:[#allocation2 + $0x1a10] sm:$0xff]  ;;  %v578_v47 = vld [vmem:[#allocation2 + $0xe18] sm:$0xff] }
  0x85   :  { %1355 = vmatpush.msra.mxu0 %v241_v62  ;;  %1375 = vmatpush.msra.mxu1 %v497_v63  ;;  %v177_v14 = vld [vmem:[#allocation2 + $0x190] sm:$0xff]  ;;  %v834_v48 = vld [vmem:[#allocation2 + $0x1618] sm:$0xff] }
  0x86   :  { %1395 = vmatpush.msra.mxu2 %v753_v0  ;;  %1415 = vmatpush.msra.mxu3 %v1009_v1  ;;  %v433_v15 = vld [vmem:[#allocation2 + $0x990] sm:$0xff]  ;;  %v1090_v49 = vld [vmem:[#allocation2 + $0x1e18] sm:$0xff] }
  0x87   :  { %1356 = vmatpush.msra.mxu0 %v225_v2  ;;  %1376 = vmatpush.msra.mxu1 %v481_v3  ;;  %v689_v16 = vld [vmem:[#allocation2 + $0x1190] sm:$0xff]  ;;  %v306_v50 = vld [vmem:[#allocation2 + $0x598] sm:$0xff] }
  0x88   :  { %1396 = vmatpush.msra.mxu2 %v737_v4  ;;  %1416 = vmatpush.msra.mxu3 %v993_v5  ;;  %v945_v17 = vld [vmem:[#allocation2 + $0x1990] sm:$0xff]  ;;  %v562_v51 = vld [vmem:[#allocation2 + $0xd98] sm:$0xff] }
  0x89   :  { %1357 = vmatpush.msra.mxu0 %v209_v6  ;;  %1377 = vmatpush.msra.mxu1 %v465_v7  ;;  %v161_v18 = vld [vmem:[#allocation2 + $0x110] sm:$0xff]  ;;  %v818_v52 = vld [vmem:[#allocation2 + $0x1598] sm:$0xff] }
  0x8a   :  { %1397 = vmatpush.msra.mxu2 %v721_v8  ;;  %1417 = vmatpush.msra.mxu3 %v977_v9  ;;  %v417_v19 = vld [vmem:[#allocation2 + $0x910] sm:$0xff]  ;;  %v1074_v53 = vld [vmem:[#allocation2 + $0x1d98] sm:$0xff] }
  0x8b   :  { %1358 = vmatpush.msra.mxu0 %v193_v10  ;;  %1378 = vmatpush.msra.mxu1 %v449_v11  ;;  %v673_v20 = vld [vmem:[#allocation2 + $0x1110] sm:$0xff]  ;;  %v290_v54 = vld [vmem:[#allocation2 + $0x518] sm:$0xff] }
  0x8c   :  { %1398 = vmatpush.msra.mxu2 %v705_v12  ;;  %1418 = vmatpush.msra.mxu3 %v961_v13  ;;  %v929_v21 = vld [vmem:[#allocation2 + $0x1910] sm:$0xff]  ;;  %v546_v55 = vld [vmem:[#allocation2 + $0xd18] sm:$0xff] }
  0x8d   :  { %1359 = vmatpush.msra.mxu0 %v177_v14  ;;  %1379 = vmatpush.msra.mxu1 %v433_v15  ;;  %v145_v22 = vld [vmem:[#allocation2 + $0x90] sm:$0xff]  ;;  %v802_v56 = vld [vmem:[#allocation2 + $0x1518] sm:$0xff] }
  0x8e   :  { %1399 = vmatpush.msra.mxu2 %v689_v16  ;;  %1419 = vmatpush.msra.mxu3 %v945_v17  ;;  %v401_v23 = vld [vmem:[#allocation2 + $0x890] sm:$0xff]  ;;  %v1058_v57 = vld [vmem:[#allocation2 + $0x1d18] sm:$0xff] }
  0x8f   :  { %1360 = vmatpush.msra.mxu0 %v161_v18  ;;  %1380 = vmatpush.msra.mxu1 %v417_v19  ;;  %v657_v24 = vld [vmem:[#allocation2 + $0x1090] sm:$0xff]  ;;  %v274_v58 = vld [vmem:[#allocation2 + $0x498] sm:$0xff] }
  0x90   :  { %v913_v25 = vld [vmem:[#allocation2 + $0x1890] sm:$0xff]  ;;  %1400 = vmatpush.msra.mxu2 %v673_v20  ;;  %1420 = vmatpush.msra.mxu3 %v929_v21  ;;  %v530_v59 = vld [vmem:[#allocation2 + $0xc98] sm:$0xff] }
  0x91   :  { %v129_v30 = vld [vmem:[#allocation2 + $0x10] sm:$0xff]  ;;  %1361 = vmatpush.msra.mxu0 %v145_v22  ;;  %1381 = vmatpush.msra.mxu1 %v401_v23  ;;  %v786_v60 = vld [vmem:[#allocation2 + $0x1498] sm:$0xff] }
  0x92   :  { %v385_v31 = vld [vmem:[#allocation2 + $0x810] sm:$0xff]  ;;  %1401 = vmatpush.msra.mxu2 %v657_v24  ;;  %1421 = vmatpush.msra.mxu3 %v913_v25  ;;  %v1042_v61 = vld [vmem:[#allocation2 + $0x1c98] sm:$0xff] }
  0x93   :  { %v641_v32 = vld [vmem:[#allocation2 + $0x1010] sm:$0xff]  ;;  %1362 = vmatpush.msra.mxu0 %v129_v30  ;;  %1382 = vmatpush.msra.mxu1 %v385_v31  ;;  %v258_v62 = vld [vmem:[#allocation2 + $0x418] sm:$0xff] }
  0x94   :  { %v897_v33 = vld [vmem:[#allocation2 + $0x1810] sm:$0xff]  ;;  %1402 = vmatpush.msra.mxu2 %v641_v32  ;;  %1283 = vmatmul.f32.vlgmr.msrb.gmra.mxu0 %v3255_v26  ;;  %v514_v63 = vld [vmem:[#allocation2 + $0xc18] sm:$0xff] }
  0x95   :  { %1422 = vmatpush.msra.mxu3 %v897_v33  ;;  %1303 = vmatmul.f32.vlgmr.msrb.gmra.mxu1 %v3258_v27  ;;  %v770_v0 = vld [vmem:[#allocation2 + $0x1418] sm:$0xff] }
  0x96   :  { %1323 = vmatmul.f32.vlgmr.msrb.gmra.mxu2 %v3260_v28  ;;  %1343 = vmatmul.f32.vlgmr.msrb.gmra.mxu3 %v3262_v29  ;;  %v1026_v1 = vld [vmem:[#allocation2 + $0x1c18] sm:$0xff] }
  0x97   :  { %1427 = vmatpush.msrb.mxu0 %v370_v34  ;;  %1447 = vmatpush.msrb.mxu1 %v626_v35  ;;  %v242_v2 = vld [vmem:[#allocation2 + $0x398] sm:$0xff] }
  0x98   :  { %1467 = vmatpush.msrb.mxu2 %v882_v36  ;;  %1487 = vmatpush.msrb.mxu3 %v1138_v37  ;;  %v498_v3 = vld [vmem:[#allocation2 + $0xb98] sm:$0xff] }
  0x99   :  { %1428 = vmatpush.msrb.mxu0 %v354_v38  ;;  %1448 = vmatpush.msrb.mxu1 %v610_v39  ;;  %v754_v4 = vld [vmem:[#allocation2 + $0x1398] sm:$0xff]  ;;  %v371_v38 = vld [vmem:[#allocation2 + $0x7a0] sm:$0xff] }
  0x9a   :  { %1468 = vmatpush.msrb.mxu2 %v866_v40  ;;  %1488 = vmatpush.msrb.mxu3 %v1122_v41  ;;  %v1010_v5 = vld [vmem:[#allocation2 + $0x1b98] sm:$0xff]  ;;  %v627_v39 = vld [vmem:[#allocation2 + $0xfa0] sm:$0xff] }
  0x9b   :  { %1429 = vmatpush.msrb.mxu0 %v338_v42  ;;  %1449 = vmatpush.msrb.mxu1 %v594_v43  ;;  %v226_v6 = vld [vmem:[#allocation2 + $0x318] sm:$0xff]  ;;  %v883_v40 = vld [vmem:[#allocation2 + $0x17a0] sm:$0xff] }
  0x9c   :  { %1469 = vmatpush.msrb.mxu2 %v850_v44  ;;  %1489 = vmatpush.msrb.mxu3 %v1106_v45  ;;  %v482_v7 = vld [vmem:[#allocation2 + $0xb18] sm:$0xff]  ;;  %v1139_v41 = vld [vmem:[#allocation2 + $0x1fa0] sm:$0xff] }
  0x9d   :  { %1430 = vmatpush.msrb.mxu0 %v322_v46  ;;  %1450 = vmatpush.msrb.mxu1 %v578_v47  ;;  %v738_v8 = vld [vmem:[#allocation2 + $0x1318] sm:$0xff]  ;;  %v355_v42 = vld [vmem:[#allocation2 + $0x720] sm:$0xff] }
  0x9e   :  { %1470 = vmatpush.msrb.mxu2 %v834_v48  ;;  %1490 = vmatpush.msrb.mxu3 %v1090_v49  ;;  %v994_v9 = vld [vmem:[#allocation2 + $0x1b18] sm:$0xff]  ;;  %v611_v43 = vld [vmem:[#allocation2 + $0xf20] sm:$0xff] }
  0x9f   :  { %1431 = vmatpush.msrb.mxu0 %v306_v50  ;;  %1451 = vmatpush.msrb.mxu1 %v562_v51  ;;  %v210_v10 = vld [vmem:[#allocation2 + $0x298] sm:$0xff]  ;;  %v867_v44 = vld [vmem:[#allocation2 + $0x1720] sm:$0xff] }
  0xa0   :  { %1471 = vmatpush.msrb.mxu2 %v818_v52  ;;  %1491 = vmatpush.msrb.mxu3 %v1074_v53  ;;  %v466_v11 = vld [vmem:[#allocation2 + $0xa98] sm:$0xff]  ;;  %v1123_v45 = vld [vmem:[#allocation2 + $0x1f20] sm:$0xff] }
  0xa1   :  { %1432 = vmatpush.msrb.mxu0 %v290_v54  ;;  %1452 = vmatpush.msrb.mxu1 %v546_v55  ;;  %v722_v12 = vld [vmem:[#allocation2 + $0x1298] sm:$0xff]  ;;  %v339_v46 = vld [vmem:[#allocation2 + $0x6a0] sm:$0xff] }
  0xa2   :  { %1472 = vmatpush.msrb.mxu2 %v802_v56  ;;  %1492 = vmatpush.msrb.mxu3 %v1058_v57  ;;  %v978_v13 = vld [vmem:[#allocation2 + $0x1a98] sm:$0xff]  ;;  %v595_v47 = vld [vmem:[#allocation2 + $0xea0] sm:$0xff] }
  0xa3   :  { %1433 = vmatpush.msrb.mxu0 %v274_v58  ;;  %1453 = vmatpush.msrb.mxu1 %v530_v59  ;;  %v194_v14 = vld [vmem:[#allocation2 + $0x218] sm:$0xff]  ;;  %v851_v48 = vld [vmem:[#allocation2 + $0x16a0] sm:$0xff] }
  0xa4   :  { %1473 = vmatpush.msrb.mxu2 %v786_v60  ;;  %1493 = vmatpush.msrb.mxu3 %v1042_v61  ;;  %v450_v15 = vld [vmem:[#allocation2 + $0xa18] sm:$0xff]  ;;  %v1107_v49 = vld [vmem:[#allocation2 + $0x1ea0] sm:$0xff] }
  0xa5   :  { %1434 = vmatpush.msrb.mxu0 %v258_v62  ;;  %1454 = vmatpush.msrb.mxu1 %v514_v63  ;;  %v706_v16 = vld [vmem:[#allocation2 + $0x1218] sm:$0xff]  ;;  %v323_v50 = vld [vmem:[#allocation2 + $0x620] sm:$0xff] }
  0xa6   :  { %1474 = vmatpush.msrb.mxu2 %v770_v0  ;;  %1494 = vmatpush.msrb.mxu3 %v1026_v1  ;;  %v962_v17 = vld [vmem:[#allocation2 + $0x1a18] sm:$0xff]  ;;  %v579_v51 = vld [vmem:[#allocation2 + $0xe20] sm:$0xff] }
  0xa7   :  { %1435 = vmatpush.msrb.mxu0 %v242_v2  ;;  %1455 = vmatpush.msrb.mxu1 %v498_v3  ;;  %v178_v18 = vld [vmem:[#allocation2 + $0x198] sm:$0xff]  ;;  %v835_v52 = vld [vmem:[#allocation2 + $0x1620] sm:$0xff] }
  0xa8   :  { %1475 = vmatpush.msrb.mxu2 %v754_v4  ;;  %1495 = vmatpush.msrb.mxu3 %v1010_v5  ;;  %v434_v19 = vld [vmem:[#allocation2 + $0x998] sm:$0xff]  ;;  %v1091_v53 = vld [vmem:[#allocation2 + $0x1e20] sm:$0xff] }
  0xa9   :  { %1436 = vmatpush.msrb.mxu0 %v226_v6  ;;  %1456 = vmatpush.msrb.mxu1 %v482_v7  ;;  %v690_v20 = vld [vmem:[#allocation2 + $0x1198] sm:$0xff]  ;;  %v307_v54 = vld [vmem:[#allocation2 + $0x5a0] sm:$0xff] }
  0xaa   :  { %1476 = vmatpush.msrb.mxu2 %v738_v8  ;;  %1496 = vmatpush.msrb.mxu3 %v994_v9  ;;  %v946_v21 = vld [vmem:[#allocation2 + $0x1998] sm:$0xff]  ;;  %v563_v55 = vld [vmem:[#allocation2 + $0xda0] sm:$0xff] }
  0xab   :  { %1437 = vmatpush.msrb.mxu0 %v210_v10  ;;  %1457 = vmatpush.msrb.mxu1 %v466_v11  ;;  %v162_v22 = vld [vmem:[#allocation2 + $0x118] sm:$0xff]  ;;  %v819_v56 = vld [vmem:[#allocation2 + $0x15a0] sm:$0xff] }
  0xac   :  { %1477 = vmatpush.msrb.mxu2 %v722_v12  ;;  %1497 = vmatpush.msrb.mxu3 %v978_v13  ;;  %v418_v23 = vld [vmem:[#allocation2 + $0x918] sm:$0xff]  ;;  %v1075_v57 = vld [vmem:[#allocation2 + $0x1da0] sm:$0xff] }
  0xad   :  { %1438 = vmatpush.msrb.mxu0 %v194_v14  ;;  %1458 = vmatpush.msrb.mxu1 %v450_v15  ;;  %v674_v24 = vld [vmem:[#allocation2 + $0x1118] sm:$0xff]  ;;  %v291_v58 = vld [vmem:[#allocation2 + $0x520] sm:$0xff] }
  0xae   :  { %1478 = vmatpush.msrb.mxu2 %v706_v16  ;;  %1498 = vmatpush.msrb.mxu3 %v962_v17  ;;  %v930_v25 = vld [vmem:[#allocation2 + $0x1918] sm:$0xff]  ;;  %v547_v59 = vld [vmem:[#allocation2 + $0xd20] sm:$0xff] }
  0xaf   :  { %1439 = vmatpush.msrb.mxu0 %v178_v18  ;;  %1459 = vmatpush.msrb.mxu1 %v434_v19  ;;  %v146_v30 = vld [vmem:[#allocation2 + $0x98] sm:$0xff]  ;;  %v803_v60 = vld [vmem:[#allocation2 + $0x1520] sm:$0xff] }
  0xb0   :  { %1479 = vmatpush.msrb.mxu2 %v690_v20  ;;  %1499 = vmatpush.msrb.mxu3 %v946_v21  ;;  %v402_v31 = vld [vmem:[#allocation2 + $0x898] sm:$0xff]  ;;  %v1059_v61 = vld [vmem:[#allocation2 + $0x1d20] sm:$0xff] }
  0xb1   :  { %1440 = vmatpush.msrb.mxu0 %v162_v22  ;;  %1460 = vmatpush.msrb.mxu1 %v418_v23  ;;  %v658_v32 = vld [vmem:[#allocation2 + $0x1098] sm:$0xff]  ;;  %v275_v62 = vld [vmem:[#allocation2 + $0x4a0] sm:$0xff] }
  0xb2   :  { %v914_v33 = vld [vmem:[#allocation2 + $0x1898] sm:$0xff]  ;;  %1480 = vmatpush.msrb.mxu2 %v674_v24  ;;  %1500 = vmatpush.msrb.mxu3 %v930_v25  ;;  %v531_v63 = vld [vmem:[#allocation2 + $0xca0] sm:$0xff] }
  0xb3   :  { %v130_v34 = vld [vmem:[#allocation2 + $0x18] sm:$0xff]  ;;  %1441 = vmatpush.msrb.mxu0 %v146_v30  ;;  %1461 = vmatpush.msrb.mxu1 %v402_v31  ;;  %v787_v0 = vld [vmem:[#allocation2 + $0x14a0] sm:$0xff] }
  0xb4   :  { %v386_v35 = vld [vmem:[#allocation2 + $0x818] sm:$0xff]  ;;  %1481 = vmatpush.msrb.mxu2 %v658_v32  ;;  %1501 = vmatpush.msrb.mxu3 %v914_v33  ;;  %v1043_v1 = vld [vmem:[#allocation2 + $0x1ca0] sm:$0xff] }
  0xb5   :  { %v642_v36 = vld [vmem:[#allocation2 + $0x1018] sm:$0xff]  ;;  %1442 = vmatpush.msrb.mxu0 %v130_v34  ;;  %1462 = vmatpush.msrb.mxu1 %v386_v35  ;;  %v259_v2 = vld [vmem:[#allocation2 + $0x420] sm:$0xff] }
  0xb6   :  { %v898_v37 = vld [vmem:[#allocation2 + $0x1818] sm:$0xff]  ;;  %1482 = vmatpush.msrb.mxu2 %v642_v36  ;;  %1363 = vmatmul.f32.vlgmr.msra.gmra.mxu0 %v3255_v26  ;;  %v515_v3 = vld [vmem:[#allocation2 + $0xc20] sm:$0xff] }
  0xb7   :  { %1502 = vmatpush.msrb.mxu3 %v898_v37  ;;  %1383 = vmatmul.f32.vlgmr.msra.gmra.mxu1 %v3258_v27  ;;  %v771_v4 = vld [vmem:[#allocation2 + $0x1420] sm:$0xff] }
  0xb8   :  { %1403 = vmatmul.f32.vlgmr.msra.gmra.mxu2 %v3260_v28  ;;  %1423 = vmatmul.f32.vlgmr.msra.gmra.mxu3 %v3262_v29  ;;  %v1027_v5 = vld [vmem:[#allocation2 + $0x1c20] sm:$0xff] }
  0xb9   :  { %1507 = vmatpush.msra.mxu0 %v371_v38  ;;  %1527 = vmatpush.msra.mxu1 %v627_v39  ;;  %v243_v6 = vld [vmem:[#allocation2 + $0x3a0] sm:$0xff] }
  0xba   :  { %1547 = vmatpush.msra.mxu2 %v883_v40  ;;  %1567 = vmatpush.msra.mxu3 %v1139_v41  ;;  %v499_v7 = vld [vmem:[#allocation2 + $0xba0] sm:$0xff] }
  0xbb   :  { %1508 = vmatpush.msra.mxu0 %v355_v42  ;;  %1528 = vmatpush.msra.mxu1 %v611_v43  ;;  %v755_v8 = vld [vmem:[#allocation2 + $0x13a0] sm:$0xff]  ;;  %v372_v42 = vld [vmem:[#allocation2 + $0x7a8] sm:$0xff] }
  0xbc   :  { %1548 = vmatpush.msra.mxu2 %v867_v44  ;;  %1568 = vmatpush.msra.mxu3 %v1123_v45  ;;  %v1011_v9 = vld [vmem:[#allocation2 + $0x1ba0] sm:$0xff]  ;;  %v628_v43 = vld [vmem:[#allocation2 + $0xfa8] sm:$0xff] }
  0xbd   :  { %1509 = vmatpush.msra.mxu0 %v339_v46  ;;  %1529 = vmatpush.msra.mxu1 %v595_v47  ;;  %v227_v10 = vld [vmem:[#allocation2 + $0x320] sm:$0xff]  ;;  %v884_v44 = vld [vmem:[#allocation2 + $0x17a8] sm:$0xff] }
  0xbe   :  { %1549 = vmatpush.msra.mxu2 %v851_v48  ;;  %1569 = vmatpush.msra.mxu3 %v1107_v49  ;;  %v483_v11 = vld [vmem:[#allocation2 + $0xb20] sm:$0xff]  ;;  %v1140_v45 = vld [vmem:[#allocation2 + $0x1fa8] sm:$0xff] }
  0xbf   :  { %1510 = vmatpush.msra.mxu0 %v323_v50  ;;  %1530 = vmatpush.msra.mxu1 %v579_v51  ;;  %v739_v12 = vld [vmem:[#allocation2 + $0x1320] sm:$0xff]  ;;  %v356_v46 = vld [vmem:[#allocation2 + $0x728] sm:$0xff] }
  0xc0   :  { %1550 = vmatpush.msra.mxu2 %v835_v52  ;;  %1570 = vmatpush.msra.mxu3 %v1091_v53  ;;  %v995_v13 = vld [vmem:[#allocation2 + $0x1b20] sm:$0xff]  ;;  %v612_v47 = vld [vmem:[#allocation2 + $0xf28] sm:$0xff] }
  0xc1   :  { %1511 = vmatpush.msra.mxu0 %v307_v54  ;;  %1531 = vmatpush.msra.mxu1 %v563_v55  ;;  %v211_v14 = vld [vmem:[#allocation2 + $0x2a0] sm:$0xff]  ;;  %v868_v48 = vld [vmem:[#allocation2 + $0x1728] sm:$0xff] }
  0xc2   :  { %1551 = vmatpush.msra.mxu2 %v819_v56  ;;  %1571 = vmatpush.msra.mxu3 %v1075_v57  ;;  %v467_v15 = vld [vmem:[#allocation2 + $0xaa0] sm:$0xff]  ;;  %v1124_v49 = vld [vmem:[#allocation2 + $0x1f28] sm:$0xff] }
  0xc3   :  { %1512 = vmatpush.msra.mxu0 %v291_v58  ;;  %1532 = vmatpush.msra.mxu1 %v547_v59  ;;  %v723_v16 = vld [vmem:[#allocation2 + $0x12a0] sm:$0xff]  ;;  %v340_v50 = vld [vmem:[#allocation2 + $0x6a8] sm:$0xff] }
  0xc4   :  { %1552 = vmatpush.msra.mxu2 %v803_v60  ;;  %1572 = vmatpush.msra.mxu3 %v1059_v61  ;;  %v979_v17 = vld [vmem:[#allocation2 + $0x1aa0] sm:$0xff]  ;;  %v596_v51 = vld [vmem:[#allocation2 + $0xea8] sm:$0xff] }
  0xc5   :  { %1513 = vmatpush.msra.mxu0 %v275_v62  ;;  %1533 = vmatpush.msra.mxu1 %v531_v63  ;;  %v195_v18 = vld [vmem:[#allocation2 + $0x220] sm:$0xff]  ;;  %v852_v52 = vld [vmem:[#allocation2 + $0x16a8] sm:$0xff] }
  0xc6   :  { %1553 = vmatpush.msra.mxu2 %v787_v0  ;;  %1573 = vmatpush.msra.mxu3 %v1043_v1  ;;  %v451_v19 = vld [vmem:[#allocation2 + $0xa20] sm:$0xff]  ;;  %v1108_v53 = vld [vmem:[#allocation2 + $0x1ea8] sm:$0xff] }
  0xc7   :  { %1514 = vmatpush.msra.mxu0 %v259_v2  ;;  %1534 = vmatpush.msra.mxu1 %v515_v3  ;;  %v707_v20 = vld [vmem:[#allocation2 + $0x1220] sm:$0xff]  ;;  %v324_v54 = vld [vmem:[#allocation2 + $0x628] sm:$0xff] }
  0xc8   :  { %1554 = vmatpush.msra.mxu2 %v771_v4  ;;  %1574 = vmatpush.msra.mxu3 %v1027_v5  ;;  %v963_v21 = vld [vmem:[#allocation2 + $0x1a20] sm:$0xff]  ;;  %v580_v55 = vld [vmem:[#allocation2 + $0xe28] sm:$0xff] }
  0xc9   :  { %1515 = vmatpush.msra.mxu0 %v243_v6  ;;  %1535 = vmatpush.msra.mxu1 %v499_v7  ;;  %v179_v22 = vld [vmem:[#allocation2 + $0x1a0] sm:$0xff]  ;;  %v836_v56 = vld [vmem:[#allocation2 + $0x1628] sm:$0xff] }
  0xca   :  { %1555 = vmatpush.msra.mxu2 %v755_v8  ;;  %1575 = vmatpush.msra.mxu3 %v1011_v9  ;;  %v435_v23 = vld [vmem:[#allocation2 + $0x9a0] sm:$0xff]  ;;  %v1092_v57 = vld [vmem:[#allocation2 + $0x1e28] sm:$0xff] }
  0xcb   :  { %1516 = vmatpush.msra.mxu0 %v227_v10  ;;  %1536 = vmatpush.msra.mxu1 %v483_v11  ;;  %v691_v24 = vld [vmem:[#allocation2 + $0x11a0] sm:$0xff]  ;;  %v308_v58 = vld [vmem:[#allocation2 + $0x5a8] sm:$0xff] }
  0xcc   :  { %1556 = vmatpush.msra.mxu2 %v739_v12  ;;  %1576 = vmatpush.msra.mxu3 %v995_v13  ;;  %v947_v25 = vld [vmem:[#allocation2 + $0x19a0] sm:$0xff]  ;;  %v564_v59 = vld [vmem:[#allocation2 + $0xda8] sm:$0xff] }
  0xcd   :  { %1517 = vmatpush.msra.mxu0 %v211_v14  ;;  %1537 = vmatpush.msra.mxu1 %v467_v15  ;;  %v163_v30 = vld [vmem:[#allocation2 + $0x120] sm:$0xff]  ;;  %v820_v60 = vld [vmem:[#allocation2 + $0x15a8] sm:$0xff] }
  0xce   :  { %1557 = vmatpush.msra.mxu2 %v723_v16  ;;  %1577 = vmatpush.msra.mxu3 %v979_v17  ;;  %v419_v31 = vld [vmem:[#allocation2 + $0x920] sm:$0xff]  ;;  %v1076_v61 = vld [vmem:[#allocation2 + $0x1da8] sm:$0xff] }
  0xcf   :  { %1518 = vmatpush.msra.mxu0 %v195_v18  ;;  %1538 = vmatpush.msra.mxu1 %v451_v19  ;;  %v675_v32 = vld [vmem:[#allocation2 + $0x1120] sm:$0xff]  ;;  %v292_v62 = vld [vmem:[#allocation2 + $0x528] sm:$0xff] }
  0xd0   :  { %1558 = vmatpush.msra.mxu2 %v707_v20  ;;  %1578 = vmatpush.msra.mxu3 %v963_v21  ;;  %v931_v33 = vld [vmem:[#allocation2 + $0x1920] sm:$0xff]  ;;  %v548_v63 = vld [vmem:[#allocation2 + $0xd28] sm:$0xff] }
  0xd1   :  { %1519 = vmatpush.msra.mxu0 %v179_v22  ;;  %1539 = vmatpush.msra.mxu1 %v435_v23  ;;  %v147_v34 = vld [vmem:[#allocation2 + $0xa0] sm:$0xff]  ;;  %v804_v0 = vld [vmem:[#allocation2 + $0x1528] sm:$0xff] }
  0xd2   :  { %1559 = vmatpush.msra.mxu2 %v691_v24  ;;  %1579 = vmatpush.msra.mxu3 %v947_v25  ;;  %v403_v35 = vld [vmem:[#allocation2 + $0x8a0] sm:$0xff]  ;;  %v1060_v1 = vld [vmem:[#allocation2 + $0x1d28] sm:$0xff] }
  0xd3   :  { %1520 = vmatpush.msra.mxu0 %v163_v30  ;;  %1540 = vmatpush.msra.mxu1 %v419_v31  ;;  %v659_v36 = vld [vmem:[#allocation2 + $0x10a0] sm:$0xff]  ;;  %v276_v2 = vld [vmem:[#allocation2 + $0x4a8] sm:$0xff] }
  0xd4   :  { %v915_v37 = vld [vmem:[#allocation2 + $0x18a0] sm:$0xff]  ;;  %1560 = vmatpush.msra.mxu2 %v675_v32  ;;  %1580 = vmatpush.msra.mxu3 %v931_v33  ;;  %v532_v3 = vld [vmem:[#allocation2 + $0xca8] sm:$0xff] }
  0xd5   :  { %v131_v38 = vld [vmem:[#allocation2 + $0x20] sm:$0xff]  ;;  %1521 = vmatpush.msra.mxu0 %v147_v34  ;;  %1541 = vmatpush.msra.mxu1 %v403_v35  ;;  %v788_v4 = vld [vmem:[#allocation2 + $0x14a8] sm:$0xff] }
  0xd6   :  { %v387_v39 = vld [vmem:[#allocation2 + $0x820] sm:$0xff]  ;;  %1561 = vmatpush.msra.mxu2 %v659_v36  ;;  %1581 = vmatpush.msra.mxu3 %v915_v37  ;;  %v1044_v5 = vld [vmem:[#allocation2 + $0x1ca8] sm:$0xff] }
  0xd7   :  { %v643_v40 = vld [vmem:[#allocation2 + $0x1020] sm:$0xff]  ;;  %1522 = vmatpush.msra.mxu0 %v131_v38  ;;  %1542 = vmatpush.msra.mxu1 %v387_v39  ;;  %v260_v6 = vld [vmem:[#allocation2 + $0x428] sm:$0xff] }
  0xd8   :  { %v899_v41 = vld [vmem:[#allocation2 + $0x1820] sm:$0xff]  ;;  %1562 = vmatpush.msra.mxu2 %v643_v40  ;;  %1443 = vmatmul.f32.vlgmr.msrb.gmra.mxu0 %v3255_v26  ;;  %v516_v7 = vld [vmem:[#allocation2 + $0xc28] sm:$0xff] }
  0xd9   :  { %1582 = vmatpush.msra.mxu3 %v899_v41  ;;  %1463 = vmatmul.f32.vlgmr.msrb.gmra.mxu1 %v3258_v27  ;;  %v772_v8 = vld [vmem:[#allocation2 + $0x1428] sm:$0xff] }
  0xda   :  { %1483 = vmatmul.f32.vlgmr.msrb.gmra.mxu2 %v3260_v28  ;;  %1503 = vmatmul.f32.vlgmr.msrb.gmra.mxu3 %v3262_v29  ;;  %v1028_v9 = vld [vmem:[#allocation2 + $0x1c28] sm:$0xff] }
  0xdb   :  { %1587 = vmatpush.msrb.mxu0 %v372_v42  ;;  %1607 = vmatpush.msrb.mxu1 %v628_v43  ;;  %v244_v10 = vld [vmem:[#allocation2 + $0x3a8] sm:$0xff] }
  0xdc   :  { %1627 = vmatpush.msrb.mxu2 %v884_v44  ;;  %1647 = vmatpush.msrb.mxu3 %v1140_v45  ;;  %v500_v11 = vld [vmem:[#allocation2 + $0xba8] sm:$0xff] }
  0xdd   :  { %1588 = vmatpush.msrb.mxu0 %v356_v46  ;;  %1608 = vmatpush.msrb.mxu1 %v612_v47  ;;  %v756_v12 = vld [vmem:[#allocation2 + $0x13a8] sm:$0xff]  ;;  %v373_v46 = vld [vmem:[#allocation2 + $0x7b0] sm:$0xff] }
  0xde   :  { %1628 = vmatpush.msrb.mxu2 %v868_v48  ;;  %1648 = vmatpush.msrb.mxu3 %v1124_v49  ;;  %v1012_v13 = vld [vmem:[#allocation2 + $0x1ba8] sm:$0xff]  ;;  %v629_v47 = vld [vmem:[#allocation2 + $0xfb0] sm:$0xff] }
  0xdf   :  { %1589 = vmatpush.msrb.mxu0 %v340_v50  ;;  %1609 = vmatpush.msrb.mxu1 %v596_v51  ;;  %v228_v14 = vld [vmem:[#allocation2 + $0x328] sm:$0xff]  ;;  %v885_v48 = vld [vmem:[#allocation2 + $0x17b0] sm:$0xff] }
  0xe0   :  { %1629 = vmatpush.msrb.mxu2 %v852_v52  ;;  %1649 = vmatpush.msrb.mxu3 %v1108_v53  ;;  %v484_v15 = vld [vmem:[#allocation2 + $0xb28] sm:$0xff]  ;;  %v1141_v49 = vld [vmem:[#allocation2 + $0x1fb0] sm:$0xff] }
  0xe1   :  { %1590 = vmatpush.msrb.mxu0 %v324_v54  ;;  %1610 = vmatpush.msrb.mxu1 %v580_v55  ;;  %v740_v16 = vld [vmem:[#allocation2 + $0x1328] sm:$0xff]  ;;  %v357_v50 = vld [vmem:[#allocation2 + $0x730] sm:$0xff] }
  0xe2   :  { %1630 = vmatpush.msrb.mxu2 %v836_v56  ;;  %1650 = vmatpush.msrb.mxu3 %v1092_v57  ;;  %v996_v17 = vld [vmem:[#allocation2 + $0x1b28] sm:$0xff]  ;;  %v613_v51 = vld [vmem:[#allocation2 + $0xf30] sm:$0xff] }
  0xe3   :  { %1591 = vmatpush.msrb.mxu0 %v308_v58  ;;  %1611 = vmatpush.msrb.mxu1 %v564_v59  ;;  %v212_v18 = vld [vmem:[#allocation2 + $0x2a8] sm:$0xff]  ;;  %v869_v52 = vld [vmem:[#allocation2 + $0x1730] sm:$0xff] }
  0xe4   :  { %1631 = vmatpush.msrb.mxu2 %v820_v60  ;;  %1651 = vmatpush.msrb.mxu3 %v1076_v61  ;;  %v468_v19 = vld [vmem:[#allocation2 + $0xaa8] sm:$0xff]  ;;  %v1125_v53 = vld [vmem:[#allocation2 + $0x1f30] sm:$0xff] }
  0xe5   :  { %1592 = vmatpush.msrb.mxu0 %v292_v62  ;;  %1612 = vmatpush.msrb.mxu1 %v548_v63  ;;  %v724_v20 = vld [vmem:[#allocation2 + $0x12a8] sm:$0xff]  ;;  %v341_v54 = vld [vmem:[#allocation2 + $0x6b0] sm:$0xff] }
  0xe6   :  { %1632 = vmatpush.msrb.mxu2 %v804_v0  ;;  %1652 = vmatpush.msrb.mxu3 %v1060_v1  ;;  %v980_v21 = vld [vmem:[#allocation2 + $0x1aa8] sm:$0xff]  ;;  %v597_v55 = vld [vmem:[#allocation2 + $0xeb0] sm:$0xff] }
  0xe7   :  { %1593 = vmatpush.msrb.mxu0 %v276_v2  ;;  %1613 = vmatpush.msrb.mxu1 %v532_v3  ;;  %v196_v22 = vld [vmem:[#allocation2 + $0x228] sm:$0xff]  ;;  %v853_v56 = vld [vmem:[#allocation2 + $0x16b0] sm:$0xff] }
  0xe8   :  { %1633 = vmatpush.msrb.mxu2 %v788_v4  ;;  %1653 = vmatpush.msrb.mxu3 %v1044_v5  ;;  %v452_v23 = vld [vmem:[#allocation2 + $0xa28] sm:$0xff]  ;;  %v1109_v57 = vld [vmem:[#allocation2 + $0x1eb0] sm:$0xff] }
  0xe9   :  { %1594 = vmatpush.msrb.mxu0 %v260_v6  ;;  %1614 = vmatpush.msrb.mxu1 %v516_v7  ;;  %v708_v24 = vld [vmem:[#allocation2 + $0x1228] sm:$0xff]  ;;  %v325_v58 = vld [vmem:[#allocation2 + $0x630] sm:$0xff] }
  0xea   :  { %1634 = vmatpush.msrb.mxu2 %v772_v8  ;;  %1654 = vmatpush.msrb.mxu3 %v1028_v9  ;;  %v964_v25 = vld [vmem:[#allocation2 + $0x1a28] sm:$0xff]  ;;  %v581_v59 = vld [vmem:[#allocation2 + $0xe30] sm:$0xff] }
  0xeb   :  { %1595 = vmatpush.msrb.mxu0 %v244_v10  ;;  %1615 = vmatpush.msrb.mxu1 %v500_v11  ;;  %v180_v30 = vld [vmem:[#allocation2 + $0x1a8] sm:$0xff]  ;;  %v837_v60 = vld [vmem:[#allocation2 + $0x1630] sm:$0xff] }
  0xec   :  { %1635 = vmatpush.msrb.mxu2 %v756_v12  ;;  %1655 = vmatpush.msrb.mxu3 %v1012_v13  ;;  %v436_v31 = vld [vmem:[#allocation2 + $0x9a8] sm:$0xff]  ;;  %v1093_v61 = vld [vmem:[#allocation2 + $0x1e30] sm:$0xff] }
  0xed   :  { %1596 = vmatpush.msrb.mxu0 %v228_v14  ;;  %1616 = vmatpush.msrb.mxu1 %v484_v15  ;;  %v692_v32 = vld [vmem:[#allocation2 + $0x11a8] sm:$0xff]  ;;  %v309_v62 = vld [vmem:[#allocation2 + $0x5b0] sm:$0xff] }
  0xee   :  { %1636 = vmatpush.msrb.mxu2 %v740_v16  ;;  %1656 = vmatpush.msrb.mxu3 %v996_v17  ;;  %v948_v33 = vld [vmem:[#allocation2 + $0x19a8] sm:$0xff]  ;;  %v565_v63 = vld [vmem:[#allocation2 + $0xdb0] sm:$0xff] }
  0xef   :  { %1597 = vmatpush.msrb.mxu0 %v212_v18  ;;  %1617 = vmatpush.msrb.mxu1 %v468_v19  ;;  %v164_v34 = vld [vmem:[#allocation2 + $0x128] sm:$0xff]  ;;  %v821_v0 = vld [vmem:[#allocation2 + $0x15b0] sm:$0xff] }
  0xf0   :  { %1637 = vmatpush.msrb.mxu2 %v724_v20  ;;  %1657 = vmatpush.msrb.mxu3 %v980_v21  ;;  %v420_v35 = vld [vmem:[#allocation2 + $0x928] sm:$0xff]  ;;  %v1077_v1 = vld [vmem:[#allocation2 + $0x1db0] sm:$0xff] }
  0xf1   :  { %1598 = vmatpush.msrb.mxu0 %v196_v22  ;;  %1618 = vmatpush.msrb.mxu1 %v452_v23  ;;  %v676_v36 = vld [vmem:[#allocation2 + $0x1128] sm:$0xff]  ;;  %v293_v2 = vld [vmem:[#allocation2 + $0x530] sm:$0xff] }
  0xf2   :  { %1638 = vmatpush.msrb.mxu2 %v708_v24  ;;  %1658 = vmatpush.msrb.mxu3 %v964_v25  ;;  %v932_v37 = vld [vmem:[#allocation2 + $0x1928] sm:$0xff]  ;;  %v549_v3 = vld [vmem:[#allocation2 + $0xd30] sm:$0xff] }
  0xf3   :  { %1599 = vmatpush.msrb.mxu0 %v180_v30  ;;  %1619 = vmatpush.msrb.mxu1 %v436_v31  ;;  %v148_v38 = vld [vmem:[#allocation2 + $0xa8] sm:$0xff]  ;;  %v805_v4 = vld [vmem:[#allocation2 + $0x1530] sm:$0xff] }
  0xf4   :  { %1639 = vmatpush.msrb.mxu2 %v692_v32  ;;  %1659 = vmatpush.msrb.mxu3 %v948_v33  ;;  %v404_v39 = vld [vmem:[#allocation2 + $0x8a8] sm:$0xff]  ;;  %v1061_v5 = vld [vmem:[#allocation2 + $0x1d30] sm:$0xff] }
  0xf5   :  { %1600 = vmatpush.msrb.mxu0 %v164_v34  ;;  %1620 = vmatpush.msrb.mxu1 %v420_v35  ;;  %v660_v40 = vld [vmem:[#allocation2 + $0x10a8] sm:$0xff]  ;;  %v277_v6 = vld [vmem:[#allocation2 + $0x4b0] sm:$0xff] }
  0xf6   :  { %v916_v41 = vld [vmem:[#allocation2 + $0x18a8] sm:$0xff]  ;;  %1640 = vmatpush.msrb.mxu2 %v676_v36  ;;  %1660 = vmatpush.msrb.mxu3 %v932_v37  ;;  %v533_v7 = vld [vmem:[#allocation2 + $0xcb0] sm:$0xff] }
  0xf7   :  { %v132_v42 = vld [vmem:[#allocation2 + $0x28] sm:$0xff]  ;;  %1601 = vmatpush.msrb.mxu0 %v148_v38  ;;  %1621 = vmatpush.msrb.mxu1 %v404_v39  ;;  %v789_v8 = vld [vmem:[#allocation2 + $0x14b0] sm:$0xff] }
  0xf8   :  { %v388_v43 = vld [vmem:[#allocation2 + $0x828] sm:$0xff]  ;;  %1641 = vmatpush.msrb.mxu2 %v660_v40  ;;  %1661 = vmatpush.msrb.mxu3 %v916_v41  ;;  %v1045_v9 = vld [vmem:[#allocation2 + $0x1cb0] sm:$0xff] }
  0xf9   :  { %v644_v44 = vld [vmem:[#allocation2 + $0x1028] sm:$0xff]  ;;  %1602 = vmatpush.msrb.mxu0 %v132_v42  ;;  %1622 = vmatpush.msrb.mxu1 %v388_v43  ;;  %v261_v10 = vld [vmem:[#allocation2 + $0x430] sm:$0xff] }
  0xfa   :  { %v900_v45 = vld [vmem:[#allocation2 + $0x1828] sm:$0xff]  ;;  %1642 = vmatpush.msrb.mxu2 %v644_v44  ;;  %1523 = vmatmul.f32.vlgmr.msra.gmra.mxu0 %v3255_v26  ;;  %v517_v11 = vld [vmem:[#allocation2 + $0xc30] sm:$0xff] }
  0xfb   :  { %1662 = vmatpush.msrb.mxu3 %v900_v45  ;;  %1543 = vmatmul.f32.vlgmr.msra.gmra.mxu1 %v3258_v27  ;;  %v773_v12 = vld [vmem:[#allocation2 + $0x1430] sm:$0xff] }
  0xfc   :  { %1563 = vmatmul.f32.vlgmr.msra.gmra.mxu2 %v3260_v28  ;;  %1583 = vmatmul.f32.vlgmr.msra.gmra.mxu3 %v3262_v29  ;;  %v1029_v13 = vld [vmem:[#allocation2 + $0x1c30] sm:$0xff] }
  0xfd   :  { %1667 = vmatpush.msra.mxu0 %v373_v46  ;;  %1687 = vmatpush.msra.mxu1 %v629_v47  ;;  %v245_v14 = vld [vmem:[#allocation2 + $0x3b0] sm:$0xff] }
  0xfe   :  { %1707 = vmatpush.msra.mxu2 %v885_v48  ;;  %1727 = vmatpush.msra.mxu3 %v1141_v49  ;;  %v501_v15 = vld [vmem:[#allocation2 + $0xbb0] sm:$0xff] }
  0xff   :  { %1668 = vmatpush.msra.mxu0 %v357_v50  ;;  %1688 = vmatpush.msra.mxu1 %v613_v51  ;;  %v757_v16 = vld [vmem:[#allocation2 + $0x13b0] sm:$0xff]  ;;  %v374_v50 = vld [vmem:[#allocation2 + $0x7b8] sm:$0xff] }
 0x100   :  { %1708 = vmatpush.msra.mxu2 %v869_v52  ;;  %1728 = vmatpush.msra.mxu3 %v1125_v53  ;;  %v1013_v17 = vld [vmem:[#allocation2 + $0x1bb0] sm:$0xff]  ;;  %v630_v51 = vld [vmem:[#allocation2 + $0xfb8] sm:$0xff] }
 0x101   :  { %1669 = vmatpush.msra.mxu0 %v341_v54  ;;  %1689 = vmatpush.msra.mxu1 %v597_v55  ;;  %v229_v18 = vld [vmem:[#allocation2 + $0x330] sm:$0xff]  ;;  %v886_v52 = vld [vmem:[#allocation2 + $0x17b8] sm:$0xff] }
 0x102   :  { %1709 = vmatpush.msra.mxu2 %v853_v56  ;;  %1729 = vmatpush.msra.mxu3 %v1109_v57  ;;  %v485_v19 = vld [vmem:[#allocation2 + $0xb30] sm:$0xff]  ;;  %v1142_v53 = vld [vmem:[#allocation2 + $0x1fb8] sm:$0xff] }
 0x103   :  { %1670 = vmatpush.msra.mxu0 %v325_v58  ;;  %1690 = vmatpush.msra.mxu1 %v581_v59  ;;  %v741_v20 = vld [vmem:[#allocation2 + $0x1330] sm:$0xff]  ;;  %v358_v54 = vld [vmem:[#allocation2 + $0x738] sm:$0xff] }
 0x104   :  { %1710 = vmatpush.msra.mxu2 %v837_v60  ;;  %1730 = vmatpush.msra.mxu3 %v1093_v61  ;;  %v997_v21 = vld [vmem:[#allocation2 + $0x1b30] sm:$0xff]  ;;  %v614_v55 = vld [vmem:[#allocation2 + $0xf38] sm:$0xff] }
 0x105   :  { %1671 = vmatpush.msra.mxu0 %v309_v62  ;;  %1691 = vmatpush.msra.mxu1 %v565_v63  ;;  %v213_v22 = vld [vmem:[#allocation2 + $0x2b0] sm:$0xff]  ;;  %v870_v56 = vld [vmem:[#allocation2 + $0x1738] sm:$0xff] }
 0x106   :  { %1711 = vmatpush.msra.mxu2 %v821_v0  ;;  %1731 = vmatpush.msra.mxu3 %v1077_v1  ;;  %v469_v23 = vld [vmem:[#allocation2 + $0xab0] sm:$0xff]  ;;  %v1126_v57 = vld [vmem:[#allocation2 + $0x1f38] sm:$0xff] }
 0x107   :  { %1672 = vmatpush.msra.mxu0 %v293_v2  ;;  %1692 = vmatpush.msra.mxu1 %v549_v3  ;;  %v725_v24 = vld [vmem:[#allocation2 + $0x12b0] sm:$0xff]  ;;  %v342_v58 = vld [vmem:[#allocation2 + $0x6b8] sm:$0xff] }
 0x108   :  { %1712 = vmatpush.msra.mxu2 %v805_v4  ;;  %1732 = vmatpush.msra.mxu3 %v1061_v5  ;;  %v981_v25 = vld [vmem:[#allocation2 + $0x1ab0] sm:$0xff]  ;;  %v598_v59 = vld [vmem:[#allocation2 + $0xeb8] sm:$0xff] }
 0x109   :  { %1673 = vmatpush.msra.mxu0 %v277_v6  ;;  %1693 = vmatpush.msra.mxu1 %v533_v7  ;;  %v197_v30 = vld [vmem:[#allocation2 + $0x230] sm:$0xff]  ;;  %v854_v60 = vld [vmem:[#allocation2 + $0x16b8] sm:$0xff] }
 0x10a   :  { %1713 = vmatpush.msra.mxu2 %v789_v8  ;;  %1733 = vmatpush.msra.mxu3 %v1045_v9  ;;  %v453_v31 = vld [vmem:[#allocation2 + $0xa30] sm:$0xff]  ;;  %v1110_v61 = vld [vmem:[#allocation2 + $0x1eb8] sm:$0xff] }
 0x10b   :  { %1674 = vmatpush.msra.mxu0 %v261_v10  ;;  %1694 = vmatpush.msra.mxu1 %v517_v11  ;;  %v709_v32 = vld [vmem:[#allocation2 + $0x1230] sm:$0xff]  ;;  %v326_v62 = vld [vmem:[#allocation2 + $0x638] sm:$0xff] }
 0x10c   :  { %1714 = vmatpush.msra.mxu2 %v773_v12  ;;  %1734 = vmatpush.msra.mxu3 %v1029_v13  ;;  %v965_v33 = vld [vmem:[#allocation2 + $0x1a30] sm:$0xff]  ;;  %v582_v63 = vld [vmem:[#allocation2 + $0xe38] sm:$0xff] }
 0x10d   :  { %1675 = vmatpush.msra.mxu0 %v245_v14  ;;  %1695 = vmatpush.msra.mxu1 %v501_v15  ;;  %v181_v34 = vld [vmem:[#allocation2 + $0x1b0] sm:$0xff]  ;;  %v838_v0 = vld [vmem:[#allocation2 + $0x1638] sm:$0xff] }
 0x10e   :  { %1715 = vmatpush.msra.mxu2 %v757_v16  ;;  %1735 = vmatpush.msra.mxu3 %v1013_v17  ;;  %v437_v35 = vld [vmem:[#allocation2 + $0x9b0] sm:$0xff]  ;;  %v1094_v1 = vld [vmem:[#allocation2 + $0x1e38] sm:$0xff] }
 0x10f   :  { %1676 = vmatpush.msra.mxu0 %v229_v18  ;;  %1696 = vmatpush.msra.mxu1 %v485_v19  ;;  %v693_v36 = vld [vmem:[#allocation2 + $0x11b0] sm:$0xff]  ;;  %v310_v2 = vld [vmem:[#allocation2 + $0x5b8] sm:$0xff] }
 0x110   :  { %1716 = vmatpush.msra.mxu2 %v741_v20  ;;  %1736 = vmatpush.msra.mxu3 %v997_v21  ;;  %v949_v37 = vld [vmem:[#allocation2 + $0x19b0] sm:$0xff]  ;;  %v566_v3 = vld [vmem:[#allocation2 + $0xdb8] sm:$0xff] }
 0x111   :  { %1677 = vmatpush.msra.mxu0 %v213_v22  ;;  %1697 = vmatpush.msra.mxu1 %v469_v23  ;;  %v165_v38 = vld [vmem:[#allocation2 + $0x130] sm:$0xff]  ;;  %v822_v4 = vld [vmem:[#allocation2 + $0x15b8] sm:$0xff] }
 0x112   :  { %1717 = vmatpush.msra.mxu2 %v725_v24  ;;  %1737 = vmatpush.msra.mxu3 %v981_v25  ;;  %v421_v39 = vld [vmem:[#allocation2 + $0x930] sm:$0xff]  ;;  %v1078_v5 = vld [vmem:[#allocation2 + $0x1db8] sm:$0xff] }
 0x113   :  { %1678 = vmatpush.msra.mxu0 %v197_v30  ;;  %1698 = vmatpush.msra.mxu1 %v453_v31  ;;  %v677_v40 = vld [vmem:[#allocation2 + $0x1130] sm:$0xff]  ;;  %v294_v6 = vld [vmem:[#allocation2 + $0x538] sm:$0xff] }
 0x114   :  { %1718 = vmatpush.msra.mxu2 %v709_v32  ;;  %1738 = vmatpush.msra.mxu3 %v965_v33  ;;  %v933_v41 = vld [vmem:[#allocation2 + $0x1930] sm:$0xff]  ;;  %v550_v7 = vld [vmem:[#allocation2 + $0xd38] sm:$0xff] }
 0x115   :  { %1679 = vmatpush.msra.mxu0 %v181_v34  ;;  %1699 = vmatpush.msra.mxu1 %v437_v35  ;;  %v149_v42 = vld [vmem:[#allocation2 + $0xb0] sm:$0xff]  ;;  %v806_v8 = vld [vmem:[#allocation2 + $0x1538] sm:$0xff] }
 0x116   :  { %1719 = vmatpush.msra.mxu2 %v693_v36  ;;  %1739 = vmatpush.msra.mxu3 %v949_v37  ;;  %v405_v43 = vld [vmem:[#allocation2 + $0x8b0] sm:$0xff]  ;;  %v1062_v9 = vld [vmem:[#allocation2 + $0x1d38] sm:$0xff] }
 0x117   :  { %1680 = vmatpush.msra.mxu0 %v165_v38  ;;  %1700 = vmatpush.msra.mxu1 %v421_v39  ;;  %v661_v44 = vld [vmem:[#allocation2 + $0x10b0] sm:$0xff]  ;;  %v278_v10 = vld [vmem:[#allocation2 + $0x4b8] sm:$0xff] }
 0x118   :  { %v917_v45 = vld [vmem:[#allocation2 + $0x18b0] sm:$0xff]  ;;  %1720 = vmatpush.msra.mxu2 %v677_v40  ;;  %1740 = vmatpush.msra.mxu3 %v933_v41  ;;  %v534_v11 = vld [vmem:[#allocation2 + $0xcb8] sm:$0xff] }
 0x119   :  { %v133_v46 = vld [vmem:[#allocation2 + $0x30] sm:$0xff]  ;;  %1681 = vmatpush.msra.mxu0 %v149_v42  ;;  %1701 = vmatpush.msra.mxu1 %v405_v43  ;;  %v790_v12 = vld [vmem:[#allocation2 + $0x14b8] sm:$0xff] }
 0x11a   :  { %v389_v47 = vld [vmem:[#allocation2 + $0x830] sm:$0xff]  ;;  %1721 = vmatpush.msra.mxu2 %v661_v44  ;;  %1741 = vmatpush.msra.mxu3 %v917_v45  ;;  %v1046_v13 = vld [vmem:[#allocation2 + $0x1cb8] sm:$0xff] }
 0x11b   :  { %v645_v48 = vld [vmem:[#allocation2 + $0x1030] sm:$0xff]  ;;  %1682 = vmatpush.msra.mxu0 %v133_v46  ;;  %1702 = vmatpush.msra.mxu1 %v389_v47  ;;  %v262_v14 = vld [vmem:[#allocation2 + $0x438] sm:$0xff] }
 0x11c   :  { %v901_v49 = vld [vmem:[#allocation2 + $0x1830] sm:$0xff]  ;;  %1722 = vmatpush.msra.mxu2 %v645_v48  ;;  %1603 = vmatmul.f32.vlgmr.msrb.gmra.mxu0 %v3255_v26  ;;  %v518_v15 = vld [vmem:[#allocation2 + $0xc38] sm:$0xff] }
 0x11d   :  { %1742 = vmatpush.msra.mxu3 %v901_v49  ;;  %1623 = vmatmul.f32.vlgmr.msrb.gmra.mxu1 %v3258_v27  ;;  %v774_v16 = vld [vmem:[#allocation2 + $0x1438] sm:$0xff] }
 0x11e   :  { %1643 = vmatmul.f32.vlgmr.msrb.gmra.mxu2 %v3260_v28  ;;  %1663 = vmatmul.f32.vlgmr.msrb.gmra.mxu3 %v3262_v29  ;;  %v1030_v17 = vld [vmem:[#allocation2 + $0x1c38] sm:$0xff] }
 0x11f   :  { %1747 = vmatpush.msrb.mxu0 %v374_v50  ;;  %1767 = vmatpush.msrb.mxu1 %v630_v51  ;;  %v246_v18 = vld [vmem:[#allocation2 + $0x3b8] sm:$0xff] }
 0x120   :  { %1787 = vmatpush.msrb.mxu2 %v886_v52  ;;  %1807 = vmatpush.msrb.mxu3 %v1142_v53  ;;  %v502_v19 = vld [vmem:[#allocation2 + $0xbb8] sm:$0xff] }
 0x121   :  { %1748 = vmatpush.msrb.mxu0 %v358_v54  ;;  %1768 = vmatpush.msrb.mxu1 %v614_v55  ;;  %v758_v20 = vld [vmem:[#allocation2 + $0x13b8] sm:$0xff]  ;;  %v375_v54 = vld [vmem:[#allocation2 + $0x7c0] sm:$0xff] }
 0x122   :  { %1788 = vmatpush.msrb.mxu2 %v870_v56  ;;  %1808 = vmatpush.msrb.mxu3 %v1126_v57  ;;  %v1014_v21 = vld [vmem:[#allocation2 + $0x1bb8] sm:$0xff]  ;;  %v631_v55 = vld [vmem:[#allocation2 + $0xfc0] sm:$0xff] }
 0x123   :  { %1749 = vmatpush.msrb.mxu0 %v342_v58  ;;  %1769 = vmatpush.msrb.mxu1 %v598_v59  ;;  %v230_v22 = vld [vmem:[#allocation2 + $0x338] sm:$0xff]  ;;  %v887_v56 = vld [vmem:[#allocation2 + $0x17c0] sm:$0xff] }
 0x124   :  { %1789 = vmatpush.msrb.mxu2 %v854_v60  ;;  %1809 = vmatpush.msrb.mxu3 %v1110_v61  ;;  %v486_v23 = vld [vmem:[#allocation2 + $0xb38] sm:$0xff]  ;;  %v1143_v57 = vld [vmem:[#allocation2 + $0x1fc0] sm:$0xff] }
 0x125   :  { %1750 = vmatpush.msrb.mxu0 %v326_v62  ;;  %1770 = vmatpush.msrb.mxu1 %v582_v63  ;;  %v742_v24 = vld [vmem:[#allocation2 + $0x1338] sm:$0xff]  ;;  %v359_v58 = vld [vmem:[#allocation2 + $0x740] sm:$0xff] }
 0x126   :  { %1790 = vmatpush.msrb.mxu2 %v838_v0  ;;  %1810 = vmatpush.msrb.mxu3 %v1094_v1  ;;  %v998_v25 = vld [vmem:[#allocation2 + $0x1b38] sm:$0xff]  ;;  %v615_v59 = vld [vmem:[#allocation2 + $0xf40] sm:$0xff] }
 0x127   :  { %1751 = vmatpush.msrb.mxu0 %v310_v2  ;;  %1771 = vmatpush.msrb.mxu1 %v566_v3  ;;  %v214_v30 = vld [vmem:[#allocation2 + $0x2b8] sm:$0xff]  ;;  %v871_v60 = vld [vmem:[#allocation2 + $0x1740] sm:$0xff] }
 0x128   :  { %1791 = vmatpush.msrb.mxu2 %v822_v4  ;;  %1811 = vmatpush.msrb.mxu3 %v1078_v5  ;;  %v470_v31 = vld [vmem:[#allocation2 + $0xab8] sm:$0xff]  ;;  %v1127_v61 = vld [vmem:[#allocation2 + $0x1f40] sm:$0xff] }
 0x129   :  { %1752 = vmatpush.msrb.mxu0 %v294_v6  ;;  %1772 = vmatpush.msrb.mxu1 %v550_v7  ;;  %v726_v32 = vld [vmem:[#allocation2 + $0x12b8] sm:$0xff]  ;;  %v343_v62 = vld [vmem:[#allocation2 + $0x6c0] sm:$0xff] }
 0x12a   :  { %1792 = vmatpush.msrb.mxu2 %v806_v8  ;;  %1812 = vmatpush.msrb.mxu3 %v1062_v9  ;;  %v982_v33 = vld [vmem:[#allocation2 + $0x1ab8] sm:$0xff]  ;;  %v599_v63 = vld [vmem:[#allocation2 + $0xec0] sm:$0xff] }
 0x12b   :  { %1753 = vmatpush.msrb.mxu0 %v278_v10  ;;  %1773 = vmatpush.msrb.mxu1 %v534_v11  ;;  %v198_v34 = vld [vmem:[#allocation2 + $0x238] sm:$0xff]  ;;  %v855_v0 = vld [vmem:[#allocation2 + $0x16c0] sm:$0xff] }
 0x12c   :  { %1793 = vmatpush.msrb.mxu2 %v790_v12  ;;  %1813 = vmatpush.msrb.mxu3 %v1046_v13  ;;  %v454_v35 = vld [vmem:[#allocation2 + $0xa38] sm:$0xff]  ;;  %v1111_v1 = vld [vmem:[#allocation2 + $0x1ec0] sm:$0xff] }
 0x12d   :  { %1754 = vmatpush.msrb.mxu0 %v262_v14  ;;  %1774 = vmatpush.msrb.mxu1 %v518_v15  ;;  %v710_v36 = vld [vmem:[#allocation2 + $0x1238] sm:$0xff]  ;;  %v327_v2 = vld [vmem:[#allocation2 + $0x640] sm:$0xff] }
 0x12e   :  { %1794 = vmatpush.msrb.mxu2 %v774_v16  ;;  %1814 = vmatpush.msrb.mxu3 %v1030_v17  ;;  %v966_v37 = vld [vmem:[#allocation2 + $0x1a38] sm:$0xff]  ;;  %v583_v3 = vld [vmem:[#allocation2 + $0xe40] sm:$0xff] }
 0x12f   :  { %1755 = vmatpush.msrb.mxu0 %v246_v18  ;;  %1775 = vmatpush.msrb.mxu1 %v502_v19  ;;  %v182_v38 = vld [vmem:[#allocation2 + $0x1b8] sm:$0xff]  ;;  %v839_v4 = vld [vmem:[#allocation2 + $0x1640] sm:$0xff] }
 0x130   :  { %1795 = vmatpush.msrb.mxu2 %v758_v20  ;;  %1815 = vmatpush.msrb.mxu3 %v1014_v21  ;;  %v438_v39 = vld [vmem:[#allocation2 + $0x9b8] sm:$0xff]  ;;  %v1095_v5 = vld [vmem:[#allocation2 + $0x1e40] sm:$0xff] }
 0x131   :  { %1756 = vmatpush.msrb.mxu0 %v230_v22  ;;  %1776 = vmatpush.msrb.mxu1 %v486_v23  ;;  %v694_v40 = vld [vmem:[#allocation2 + $0x11b8] sm:$0xff]  ;;  %v311_v6 = vld [vmem:[#allocation2 + $0x5c0] sm:$0xff] }
 0x132   :  { %1796 = vmatpush.msrb.mxu2 %v742_v24  ;;  %1816 = vmatpush.msrb.mxu3 %v998_v25  ;;  %v950_v41 = vld [vmem:[#allocation2 + $0x19b8] sm:$0xff]  ;;  %v567_v7 = vld [vmem:[#allocation2 + $0xdc0] sm:$0xff] }
 0x133   :  { %1757 = vmatpush.msrb.mxu0 %v214_v30  ;;  %1777 = vmatpush.msrb.mxu1 %v470_v31  ;;  %v166_v42 = vld [vmem:[#allocation2 + $0x138] sm:$0xff]  ;;  %v823_v8 = vld [vmem:[#allocation2 + $0x15c0] sm:$0xff] }
 0x134   :  { %1797 = vmatpush.msrb.mxu2 %v726_v32  ;;  %1817 = vmatpush.msrb.mxu3 %v982_v33  ;;  %v422_v43 = vld [vmem:[#allocation2 + $0x938] sm:$0xff]  ;;  %v1079_v9 = vld [vmem:[#allocation2 + $0x1dc0] sm:$0xff] }
 0x135   :  { %1758 = vmatpush.msrb.mxu0 %v198_v34  ;;  %1778 = vmatpush.msrb.mxu1 %v454_v35  ;;  %v678_v44 = vld [vmem:[#allocation2 + $0x1138] sm:$0xff]  ;;  %v295_v10 = vld [vmem:[#allocation2 + $0x540] sm:$0xff] }
 0x136   :  { %1798 = vmatpush.msrb.mxu2 %v710_v36  ;;  %1818 = vmatpush.msrb.mxu3 %v966_v37  ;;  %v934_v45 = vld [vmem:[#allocation2 + $0x1938] sm:$0xff]  ;;  %v551_v11 = vld [vmem:[#allocation2 + $0xd40] sm:$0xff] }
 0x137   :  { %1759 = vmatpush.msrb.mxu0 %v182_v38  ;;  %1779 = vmatpush.msrb.mxu1 %v438_v39  ;;  %v150_v46 = vld [vmem:[#allocation2 + $0xb8] sm:$0xff]  ;;  %v807_v12 = vld [vmem:[#allocation2 + $0x1540] sm:$0xff] }
 0x138   :  { %1799 = vmatpush.msrb.mxu2 %v694_v40  ;;  %1819 = vmatpush.msrb.mxu3 %v950_v41  ;;  %v406_v47 = vld [vmem:[#allocation2 + $0x8b8] sm:$0xff]  ;;  %v1063_v13 = vld [vmem:[#allocation2 + $0x1d40] sm:$0xff] }
 0x139   :  { %1760 = vmatpush.msrb.mxu0 %v166_v42  ;;  %1780 = vmatpush.msrb.mxu1 %v422_v43  ;;  %v662_v48 = vld [vmem:[#allocation2 + $0x10b8] sm:$0xff]  ;;  %v279_v14 = vld [vmem:[#allocation2 + $0x4c0] sm:$0xff] }
 0x13a   :  { %v918_v49 = vld [vmem:[#allocation2 + $0x18b8] sm:$0xff]  ;;  %1800 = vmatpush.msrb.mxu2 %v678_v44  ;;  %1820 = vmatpush.msrb.mxu3 %v934_v45  ;;  %v535_v15 = vld [vmem:[#allocation2 + $0xcc0] sm:$0xff] }
 0x13b   :  { %v134_v50 = vld [vmem:[#allocation2 + $0x38] sm:$0xff]  ;;  %1761 = vmatpush.msrb.mxu0 %v150_v46  ;;  %1781 = vmatpush.msrb.mxu1 %v406_v47  ;;  %v791_v16 = vld [vmem:[#allocation2 + $0x14c0] sm:$0xff] }
 0x13c   :  { %v390_v51 = vld [vmem:[#allocation2 + $0x838] sm:$0xff]  ;;  %1801 = vmatpush.msrb.mxu2 %v662_v48  ;;  %1821 = vmatpush.msrb.mxu3 %v918_v49  ;;  %v1047_v17 = vld [vmem:[#allocation2 + $0x1cc0] sm:$0xff] }
 0x13d   :  { %v646_v52 = vld [vmem:[#allocation2 + $0x1038] sm:$0xff]  ;;  %1762 = vmatpush.msrb.mxu0 %v134_v50  ;;  %1782 = vmatpush.msrb.mxu1 %v390_v51  ;;  %v263_v18 = vld [vmem:[#allocation2 + $0x440] sm:$0xff] }
 0x13e   :  { %v902_v53 = vld [vmem:[#allocation2 + $0x1838] sm:$0xff]  ;;  %1802 = vmatpush.msrb.mxu2 %v646_v52  ;;  %1683 = vmatmul.f32.vlgmr.msra.gmra.mxu0 %v3255_v26  ;;  %v519_v19 = vld [vmem:[#allocation2 + $0xc40] sm:$0xff] }
 0x13f   :  { %1822 = vmatpush.msrb.mxu3 %v902_v53  ;;  %1703 = vmatmul.f32.vlgmr.msra.gmra.mxu1 %v3258_v27  ;;  %v775_v20 = vld [vmem:[#allocation2 + $0x1440] sm:$0xff] }
 0x140   :  { %1723 = vmatmul.f32.vlgmr.msra.gmra.mxu2 %v3260_v28  ;;  %1743 = vmatmul.f32.vlgmr.msra.gmra.mxu3 %v3262_v29  ;;  %v1031_v21 = vld [vmem:[#allocation2 + $0x1c40] sm:$0xff] }
 0x141   :  { %1827 = vmatpush.msra.mxu0 %v375_v54  ;;  %1847 = vmatpush.msra.mxu1 %v631_v55  ;;  %v247_v22 = vld [vmem:[#allocation2 + $0x3c0] sm:$0xff] }
 0x142   :  { %1867 = vmatpush.msra.mxu2 %v887_v56  ;;  %1887 = vmatpush.msra.mxu3 %v1143_v57  ;;  %v503_v23 = vld [vmem:[#allocation2 + $0xbc0] sm:$0xff] }
 0x143   :  { %1828 = vmatpush.msra.mxu0 %v359_v58  ;;  %1848 = vmatpush.msra.mxu1 %v615_v59  ;;  %v759_v24 = vld [vmem:[#allocation2 + $0x13c0] sm:$0xff]  ;;  %v376_v58 = vld [vmem:[#allocation2 + $0x7c8] sm:$0xff] }
 0x144   :  { %1868 = vmatpush.msra.mxu2 %v871_v60  ;;  %1888 = vmatpush.msra.mxu3 %v1127_v61  ;;  %v1015_v25 = vld [vmem:[#allocation2 + $0x1bc0] sm:$0xff]  ;;  %v632_v59 = vld [vmem:[#allocation2 + $0xfc8] sm:$0xff] }
 0x145   :  { %1829 = vmatpush.msra.mxu0 %v343_v62  ;;  %1849 = vmatpush.msra.mxu1 %v599_v63  ;;  %v231_v30 = vld [vmem:[#allocation2 + $0x340] sm:$0xff]  ;;  %v888_v60 = vld [vmem:[#allocation2 + $0x17c8] sm:$0xff] }
 0x146   :  { %1869 = vmatpush.msra.mxu2 %v855_v0  ;;  %1889 = vmatpush.msra.mxu3 %v1111_v1  ;;  %v487_v31 = vld [vmem:[#allocation2 + $0xb40] sm:$0xff]  ;;  %v1144_v61 = vld [vmem:[#allocation2 + $0x1fc8] sm:$0xff] }
 0x147   :  { %1830 = vmatpush.msra.mxu0 %v327_v2  ;;  %1850 = vmatpush.msra.mxu1 %v583_v3  ;;  %v743_v32 = vld [vmem:[#allocation2 + $0x1340] sm:$0xff]  ;;  %v360_v62 = vld [vmem:[#allocation2 + $0x748] sm:$0xff] }
 0x148   :  { %1870 = vmatpush.msra.mxu2 %v839_v4  ;;  %1890 = vmatpush.msra.mxu3 %v1095_v5  ;;  %v999_v33 = vld [vmem:[#allocation2 + $0x1b40] sm:$0xff]  ;;  %v616_v63 = vld [vmem:[#allocation2 + $0xf48] sm:$0xff] }
 0x149   :  { %1831 = vmatpush.msra.mxu0 %v311_v6  ;;  %1851 = vmatpush.msra.mxu1 %v567_v7  ;;  %v215_v34 = vld [vmem:[#allocation2 + $0x2c0] sm:$0xff]  ;;  %v872_v0 = vld [vmem:[#allocation2 + $0x1748] sm:$0xff] }
 0x14a   :  { %1871 = vmatpush.msra.mxu2 %v823_v8  ;;  %1891 = vmatpush.msra.mxu3 %v1079_v9  ;;  %v471_v35 = vld [vmem:[#allocation2 + $0xac0] sm:$0xff]  ;;  %v1128_v1 = vld [vmem:[#allocation2 + $0x1f48] sm:$0xff] }
 0x14b   :  { %1832 = vmatpush.msra.mxu0 %v295_v10  ;;  %1852 = vmatpush.msra.mxu1 %v551_v11  ;;  %v727_v36 = vld [vmem:[#allocation2 + $0x12c0] sm:$0xff]  ;;  %v344_v2 = vld [vmem:[#allocation2 + $0x6c8] sm:$0xff] }
 0x14c   :  { %1872 = vmatpush.msra.mxu2 %v807_v12  ;;  %1892 = vmatpush.msra.mxu3 %v1063_v13  ;;  %v983_v37 = vld [vmem:[#allocation2 + $0x1ac0] sm:$0xff]  ;;  %v600_v3 = vld [vmem:[#allocation2 + $0xec8] sm:$0xff] }
 0x14d   :  { %1833 = vmatpush.msra.mxu0 %v279_v14  ;;  %1853 = vmatpush.msra.mxu1 %v535_v15  ;;  %v199_v38 = vld [vmem:[#allocation2 + $0x240] sm:$0xff]  ;;  %v856_v4 = vld [vmem:[#allocation2 + $0x16c8] sm:$0xff] }
 0x14e   :  { %1873 = vmatpush.msra.mxu2 %v791_v16  ;;  %1893 = vmatpush.msra.mxu3 %v1047_v17  ;;  %v455_v39 = vld [vmem:[#allocation2 + $0xa40] sm:$0xff]  ;;  %v1112_v5 = vld [vmem:[#allocation2 + $0x1ec8] sm:$0xff] }
 0x14f   :  { %1834 = vmatpush.msra.mxu0 %v263_v18  ;;  %1854 = vmatpush.msra.mxu1 %v519_v19  ;;  %v711_v40 = vld [vmem:[#allocation2 + $0x1240] sm:$0xff]  ;;  %v328_v6 = vld [vmem:[#allocation2 + $0x648] sm:$0xff] }
 0x150   :  { %1874 = vmatpush.msra.mxu2 %v775_v20  ;;  %1894 = vmatpush.msra.mxu3 %v1031_v21  ;;  %v967_v41 = vld [vmem:[#allocation2 + $0x1a40] sm:$0xff]  ;;  %v584_v7 = vld [vmem:[#allocation2 + $0xe48] sm:$0xff] }
 0x151   :  { %1835 = vmatpush.msra.mxu0 %v247_v22  ;;  %1855 = vmatpush.msra.mxu1 %v503_v23  ;;  %v183_v42 = vld [vmem:[#allocation2 + $0x1c0] sm:$0xff]  ;;  %v840_v8 = vld [vmem:[#allocation2 + $0x1648] sm:$0xff] }
 0x152   :  { %1875 = vmatpush.msra.mxu2 %v759_v24  ;;  %1895 = vmatpush.msra.mxu3 %v1015_v25  ;;  %v439_v43 = vld [vmem:[#allocation2 + $0x9c0] sm:$0xff]  ;;  %v1096_v9 = vld [vmem:[#allocation2 + $0x1e48] sm:$0xff] }
 0x153   :  { %1836 = vmatpush.msra.mxu0 %v231_v30  ;;  %1856 = vmatpush.msra.mxu1 %v487_v31  ;;  %v695_v44 = vld [vmem:[#allocation2 + $0x11c0] sm:$0xff]  ;;  %v312_v10 = vld [vmem:[#allocation2 + $0x5c8] sm:$0xff] }
 0x154   :  { %1876 = vmatpush.msra.mxu2 %v743_v32  ;;  %1896 = vmatpush.msra.mxu3 %v999_v33  ;;  %v951_v45 = vld [vmem:[#allocation2 + $0x19c0] sm:$0xff]  ;;  %v568_v11 = vld [vmem:[#allocation2 + $0xdc8] sm:$0xff] }
 0x155   :  { %1837 = vmatpush.msra.mxu0 %v215_v34  ;;  %1857 = vmatpush.msra.mxu1 %v471_v35  ;;  %v167_v46 = vld [vmem:[#allocation2 + $0x140] sm:$0xff]  ;;  %v824_v12 = vld [vmem:[#allocation2 + $0x15c8] sm:$0xff] }
 0x156   :  { %1877 = vmatpush.msra.mxu2 %v727_v36  ;;  %1897 = vmatpush.msra.mxu3 %v983_v37  ;;  %v423_v47 = vld [vmem:[#allocation2 + $0x940] sm:$0xff]  ;;  %v1080_v13 = vld [vmem:[#allocation2 + $0x1dc8] sm:$0xff] }
 0x157   :  { %1838 = vmatpush.msra.mxu0 %v199_v38  ;;  %1858 = vmatpush.msra.mxu1 %v455_v39  ;;  %v679_v48 = vld [vmem:[#allocation2 + $0x1140] sm:$0xff]  ;;  %v296_v14 = vld [vmem:[#allocation2 + $0x548] sm:$0xff] }
 0x158   :  { %1878 = vmatpush.msra.mxu2 %v711_v40  ;;  %1898 = vmatpush.msra.mxu3 %v967_v41  ;;  %v935_v49 = vld [vmem:[#allocation2 + $0x1940] sm:$0xff]  ;;  %v552_v15 = vld [vmem:[#allocation2 + $0xd48] sm:$0xff] }
 0x159   :  { %1839 = vmatpush.msra.mxu0 %v183_v42  ;;  %1859 = vmatpush.msra.mxu1 %v439_v43  ;;  %v151_v50 = vld [vmem:[#allocation2 + $0xc0] sm:$0xff]  ;;  %v808_v16 = vld [vmem:[#allocation2 + $0x1548] sm:$0xff] }
 0x15a   :  { %1879 = vmatpush.msra.mxu2 %v695_v44  ;;  %1899 = vmatpush.msra.mxu3 %v951_v45  ;;  %v407_v51 = vld [vmem:[#allocation2 + $0x8c0] sm:$0xff]  ;;  %v1064_v17 = vld [vmem:[#allocation2 + $0x1d48] sm:$0xff] }
 0x15b   :  { %1840 = vmatpush.msra.mxu0 %v167_v46  ;;  %1860 = vmatpush.msra.mxu1 %v423_v47  ;;  %v663_v52 = vld [vmem:[#allocation2 + $0x10c0] sm:$0xff]  ;;  %v280_v18 = vld [vmem:[#allocation2 + $0x4c8] sm:$0xff] }
 0x15c   :  { %v919_v53 = vld [vmem:[#allocation2 + $0x18c0] sm:$0xff]  ;;  %1880 = vmatpush.msra.mxu2 %v679_v48  ;;  %1900 = vmatpush.msra.mxu3 %v935_v49  ;;  %v536_v19 = vld [vmem:[#allocation2 + $0xcc8] sm:$0xff] }
 0x15d   :  { %v135_v54 = vld [vmem:[#allocation2 + $0x40] sm:$0xff]  ;;  %1841 = vmatpush.msra.mxu0 %v151_v50  ;;  %1861 = vmatpush.msra.mxu1 %v407_v51  ;;  %v792_v20 = vld [vmem:[#allocation2 + $0x14c8] sm:$0xff] }
 0x15e   :  { %v391_v55 = vld [vmem:[#allocation2 + $0x840] sm:$0xff]  ;;  %1881 = vmatpush.msra.mxu2 %v663_v52  ;;  %1901 = vmatpush.msra.mxu3 %v919_v53  ;;  %v1048_v21 = vld [vmem:[#allocation2 + $0x1cc8] sm:$0xff] }
 0x15f   :  { %v647_v56 = vld [vmem:[#allocation2 + $0x1040] sm:$0xff]  ;;  %1842 = vmatpush.msra.mxu0 %v135_v54  ;;  %1862 = vmatpush.msra.mxu1 %v391_v55  ;;  %v264_v22 = vld [vmem:[#allocation2 + $0x448] sm:$0xff] }
 0x160   :  { %v903_v57 = vld [vmem:[#allocation2 + $0x1840] sm:$0xff]  ;;  %1882 = vmatpush.msra.mxu2 %v647_v56  ;;  %1763 = vmatmul.f32.vlgmr.msrb.gmra.mxu0 %v3255_v26  ;;  %v520_v23 = vld [vmem:[#allocation2 + $0xc48] sm:$0xff] }
 0x161   :  { %1902 = vmatpush.msra.mxu3 %v903_v57  ;;  %1783 = vmatmul.f32.vlgmr.msrb.gmra.mxu1 %v3258_v27  ;;  %v776_v24 = vld [vmem:[#allocation2 + $0x1448] sm:$0xff] }
 0x162   :  { %1803 = vmatmul.f32.vlgmr.msrb.gmra.mxu2 %v3260_v28  ;;  %1823 = vmatmul.f32.vlgmr.msrb.gmra.mxu3 %v3262_v29  ;;  %v1032_v25 = vld [vmem:[#allocation2 + $0x1c48] sm:$0xff] }
 0x163   :  { %1907 = vmatpush.msrb.mxu0 %v376_v58  ;;  %1927 = vmatpush.msrb.mxu1 %v632_v59  ;;  %v248_v30 = vld [vmem:[#allocation2 + $0x3c8] sm:$0xff] }
 0x164   :  { %1947 = vmatpush.msrb.mxu2 %v888_v60  ;;  %1967 = vmatpush.msrb.mxu3 %v1144_v61  ;;  %v504_v31 = vld [vmem:[#allocation2 + $0xbc8] sm:$0xff] }
 0x165   :  { %1908 = vmatpush.msrb.mxu0 %v360_v62  ;;  %1928 = vmatpush.msrb.mxu1 %v616_v63  ;;  %v760_v32 = vld [vmem:[#allocation2 + $0x13c8] sm:$0xff]  ;;  %v377_v62 = vld [vmem:[#allocation2 + $0x7d0] sm:$0xff] }
 0x166   :  { %1948 = vmatpush.msrb.mxu2 %v872_v0  ;;  %1968 = vmatpush.msrb.mxu3 %v1128_v1  ;;  %v1016_v33 = vld [vmem:[#allocation2 + $0x1bc8] sm:$0xff]  ;;  %v633_v63 = vld [vmem:[#allocation2 + $0xfd0] sm:$0xff] }
 0x167   :  { %1909 = vmatpush.msrb.mxu0 %v344_v2  ;;  %1929 = vmatpush.msrb.mxu1 %v600_v3  ;;  %v232_v34 = vld [vmem:[#allocation2 + $0x348] sm:$0xff]  ;;  %v889_v0 = vld [vmem:[#allocation2 + $0x17d0] sm:$0xff] }
 0x168   :  { %1949 = vmatpush.msrb.mxu2 %v856_v4  ;;  %1969 = vmatpush.msrb.mxu3 %v1112_v5  ;;  %v488_v35 = vld [vmem:[#allocation2 + $0xb48] sm:$0xff]  ;;  %v1145_v1 = vld [vmem:[#allocation2 + $0x1fd0] sm:$0xff] }
 0x169   :  { %1910 = vmatpush.msrb.mxu0 %v328_v6  ;;  %1930 = vmatpush.msrb.mxu1 %v584_v7  ;;  %v744_v36 = vld [vmem:[#allocation2 + $0x1348] sm:$0xff]  ;;  %v361_v2 = vld [vmem:[#allocation2 + $0x750] sm:$0xff] }
 0x16a   :  { %1950 = vmatpush.msrb.mxu2 %v840_v8  ;;  %1970 = vmatpush.msrb.mxu3 %v1096_v9  ;;  %v1000_v37 = vld [vmem:[#allocation2 + $0x1b48] sm:$0xff]  ;;  %v617_v3 = vld [vmem:[#allocation2 + $0xf50] sm:$0xff] }
 0x16b   :  { %1911 = vmatpush.msrb.mxu0 %v312_v10  ;;  %1931 = vmatpush.msrb.mxu1 %v568_v11  ;;  %v216_v38 = vld [vmem:[#allocation2 + $0x2c8] sm:$0xff]  ;;  %v873_v4 = vld [vmem:[#allocation2 + $0x1750] sm:$0xff] }
 0x16c   :  { %1951 = vmatpush.msrb.mxu2 %v824_v12  ;;  %1971 = vmatpush.msrb.mxu3 %v1080_v13  ;;  %v472_v39 = vld [vmem:[#allocation2 + $0xac8] sm:$0xff]  ;;  %v1129_v5 = vld [vmem:[#allocation2 + $0x1f50] sm:$0xff] }
 0x16d   :  { %1912 = vmatpush.msrb.mxu0 %v296_v14  ;;  %1932 = vmatpush.msrb.mxu1 %v552_v15  ;;  %v728_v40 = vld [vmem:[#allocation2 + $0x12c8] sm:$0xff]  ;;  %v345_v6 = vld [vmem:[#allocation2 + $0x6d0] sm:$0xff] }
 0x16e   :  { %1952 = vmatpush.msrb.mxu2 %v808_v16  ;;  %1972 = vmatpush.msrb.mxu3 %v1064_v17  ;;  %v984_v41 = vld [vmem:[#allocation2 + $0x1ac8] sm:$0xff]  ;;  %v601_v7 = vld [vmem:[#allocation2 + $0xed0] sm:$0xff] }
 0x16f   :  { %1913 = vmatpush.msrb.mxu0 %v280_v18  ;;  %1933 = vmatpush.msrb.mxu1 %v536_v19  ;;  %v200_v42 = vld [vmem:[#allocation2 + $0x248] sm:$0xff]  ;;  %v857_v8 = vld [vmem:[#allocation2 + $0x16d0] sm:$0xff] }
 0x170   :  { %1953 = vmatpush.msrb.mxu2 %v792_v20  ;;  %1973 = vmatpush.msrb.mxu3 %v1048_v21  ;;  %v456_v43 = vld [vmem:[#allocation2 + $0xa48] sm:$0xff]  ;;  %v1113_v9 = vld [vmem:[#allocation2 + $0x1ed0] sm:$0xff] }
 0x171   :  { %1914 = vmatpush.msrb.mxu0 %v264_v22  ;;  %1934 = vmatpush.msrb.mxu1 %v520_v23  ;;  %v712_v44 = vld [vmem:[#allocation2 + $0x1248] sm:$0xff]  ;;  %v329_v10 = vld [vmem:[#allocation2 + $0x650] sm:$0xff] }
 0x172   :  { %1954 = vmatpush.msrb.mxu2 %v776_v24  ;;  %1974 = vmatpush.msrb.mxu3 %v1032_v25  ;;  %v968_v45 = vld [vmem:[#allocation2 + $0x1a48] sm:$0xff]  ;;  %v585_v11 = vld [vmem:[#allocation2 + $0xe50] sm:$0xff] }
 0x173   :  { %1915 = vmatpush.msrb.mxu0 %v248_v30  ;;  %1935 = vmatpush.msrb.mxu1 %v504_v31  ;;  %v184_v46 = vld [vmem:[#allocation2 + $0x1c8] sm:$0xff]  ;;  %v841_v12 = vld [vmem:[#allocation2 + $0x1650] sm:$0xff] }
 0x174   :  { %1955 = vmatpush.msrb.mxu2 %v760_v32  ;;  %1975 = vmatpush.msrb.mxu3 %v1016_v33  ;;  %v440_v47 = vld [vmem:[#allocation2 + $0x9c8] sm:$0xff]  ;;  %v1097_v13 = vld [vmem:[#allocation2 + $0x1e50] sm:$0xff] }
 0x175   :  { %1916 = vmatpush.msrb.mxu0 %v232_v34  ;;  %1936 = vmatpush.msrb.mxu1 %v488_v35  ;;  %v696_v48 = vld [vmem:[#allocation2 + $0x11c8] sm:$0xff]  ;;  %v313_v14 = vld [vmem:[#allocation2 + $0x5d0] sm:$0xff] }
 0x176   :  { %1956 = vmatpush.msrb.mxu2 %v744_v36  ;;  %1976 = vmatpush.msrb.mxu3 %v1000_v37  ;;  %v952_v49 = vld [vmem:[#allocation2 + $0x19c8] sm:$0xff]  ;;  %v569_v15 = vld [vmem:[#allocation2 + $0xdd0] sm:$0xff] }
 0x177   :  { %1917 = vmatpush.msrb.mxu0 %v216_v38  ;;  %1937 = vmatpush.msrb.mxu1 %v472_v39  ;;  %v168_v50 = vld [vmem:[#allocation2 + $0x148] sm:$0xff]  ;;  %v825_v16 = vld [vmem:[#allocation2 + $0x15d0] sm:$0xff] }
 0x178   :  { %1957 = vmatpush.msrb.mxu2 %v728_v40  ;;  %1977 = vmatpush.msrb.mxu3 %v984_v41  ;;  %v424_v51 = vld [vmem:[#allocation2 + $0x948] sm:$0xff]  ;;  %v1081_v17 = vld [vmem:[#allocation2 + $0x1dd0] sm:$0xff] }
 0x179   :  { %1918 = vmatpush.msrb.mxu0 %v200_v42  ;;  %1938 = vmatpush.msrb.mxu1 %v456_v43  ;;  %v680_v52 = vld [vmem:[#allocation2 + $0x1148] sm:$0xff]  ;;  %v297_v18 = vld [vmem:[#allocation2 + $0x550] sm:$0xff] }
 0x17a   :  { %1958 = vmatpush.msrb.mxu2 %v712_v44  ;;  %1978 = vmatpush.msrb.mxu3 %v968_v45  ;;  %v936_v53 = vld [vmem:[#allocation2 + $0x1948] sm:$0xff]  ;;  %v553_v19 = vld [vmem:[#allocation2 + $0xd50] sm:$0xff] }
 0x17b   :  { %1919 = vmatpush.msrb.mxu0 %v184_v46  ;;  %1939 = vmatpush.msrb.mxu1 %v440_v47  ;;  %v152_v54 = vld [vmem:[#allocation2 + $0xc8] sm:$0xff]  ;;  %v809_v20 = vld [vmem:[#allocation2 + $0x1550] sm:$0xff] }
 0x17c   :  { %1959 = vmatpush.msrb.mxu2 %v696_v48  ;;  %1979 = vmatpush.msrb.mxu3 %v952_v49  ;;  %v408_v55 = vld [vmem:[#allocation2 + $0x8c8] sm:$0xff]  ;;  %v1065_v21 = vld [vmem:[#allocation2 + $0x1d50] sm:$0xff] }
 0x17d   :  { %1920 = vmatpush.msrb.mxu0 %v168_v50  ;;  %1940 = vmatpush.msrb.mxu1 %v424_v51  ;;  %v664_v56 = vld [vmem:[#allocation2 + $0x10c8] sm:$0xff]  ;;  %v281_v22 = vld [vmem:[#allocation2 + $0x4d0] sm:$0xff] }
 0x17e   :  { %v920_v57 = vld [vmem:[#allocation2 + $0x18c8] sm:$0xff]  ;;  %1960 = vmatpush.msrb.mxu2 %v680_v52  ;;  %1980 = vmatpush.msrb.mxu3 %v936_v53  ;;  %v537_v23 = vld [vmem:[#allocation2 + $0xcd0] sm:$0xff] }
 0x17f   :  { %v136_v58 = vld [vmem:[#allocation2 + $0x48] sm:$0xff]  ;;  %1921 = vmatpush.msrb.mxu0 %v152_v54  ;;  %1941 = vmatpush.msrb.mxu1 %v408_v55  ;;  %v793_v24 = vld [vmem:[#allocation2 + $0x14d0] sm:$0xff] }
 0x180   :  { %v392_v59 = vld [vmem:[#allocation2 + $0x848] sm:$0xff]  ;;  %1961 = vmatpush.msrb.mxu2 %v664_v56  ;;  %1981 = vmatpush.msrb.mxu3 %v920_v57  ;;  %v1049_v25 = vld [vmem:[#allocation2 + $0x1cd0] sm:$0xff] }
 0x181   :  { %v648_v60 = vld [vmem:[#allocation2 + $0x1048] sm:$0xff]  ;;  %1922 = vmatpush.msrb.mxu0 %v136_v58  ;;  %1942 = vmatpush.msrb.mxu1 %v392_v59  ;;  %v265_v30 = vld [vmem:[#allocation2 + $0x450] sm:$0xff] }
 0x182   :  { %v904_v61 = vld [vmem:[#allocation2 + $0x1848] sm:$0xff]  ;;  %1962 = vmatpush.msrb.mxu2 %v648_v60  ;;  %1843 = vmatmul.f32.vlgmr.msra.gmra.mxu0 %v3255_v26  ;;  %v521_v31 = vld [vmem:[#allocation2 + $0xc50] sm:$0xff] }
 0x183   :  { %1982 = vmatpush.msrb.mxu3 %v904_v61  ;;  %1863 = vmatmul.f32.vlgmr.msra.gmra.mxu1 %v3258_v27  ;;  %v777_v32 = vld [vmem:[#allocation2 + $0x1450] sm:$0xff] }
 0x184   :  { %1883 = vmatmul.f32.vlgmr.msra.gmra.mxu2 %v3260_v28  ;;  %1903 = vmatmul.f32.vlgmr.msra.gmra.mxu3 %v3262_v29  ;;  %v1033_v33 = vld [vmem:[#allocation2 + $0x1c50] sm:$0xff] }
 0x185   :  { %1987 = vmatpush.msra.mxu0 %v377_v62  ;;  %2007 = vmatpush.msra.mxu1 %v633_v63  ;;  %v249_v34 = vld [vmem:[#allocation2 + $0x3d0] sm:$0xff] }
 0x186   :  { %2027 = vmatpush.msra.mxu2 %v889_v0  ;;  %2047 = vmatpush.msra.mxu3 %v1145_v1  ;;  %v505_v35 = vld [vmem:[#allocation2 + $0xbd0] sm:$0xff] }
 0x187   :  { %1988 = vmatpush.msra.mxu0 %v361_v2  ;;  %2008 = vmatpush.msra.mxu1 %v617_v3  ;;  %v761_v36 = vld [vmem:[#allocation2 + $0x13d0] sm:$0xff]  ;;  %v378_v2 = vld [vmem:[#allocation2 + $0x7d8] sm:$0xff] }
 0x188   :  { %2028 = vmatpush.msra.mxu2 %v873_v4  ;;  %2048 = vmatpush.msra.mxu3 %v1129_v5  ;;  %v1017_v37 = vld [vmem:[#allocation2 + $0x1bd0] sm:$0xff]  ;;  %v634_v3 = vld [vmem:[#allocation2 + $0xfd8] sm:$0xff] }
 0x189   :  { %1989 = vmatpush.msra.mxu0 %v345_v6  ;;  %2009 = vmatpush.msra.mxu1 %v601_v7  ;;  %v233_v38 = vld [vmem:[#allocation2 + $0x350] sm:$0xff]  ;;  %v890_v4 = vld [vmem:[#allocation2 + $0x17d8] sm:$0xff] }
 0x18a   :  { %2029 = vmatpush.msra.mxu2 %v857_v8  ;;  %2049 = vmatpush.msra.mxu3 %v1113_v9  ;;  %v489_v39 = vld [vmem:[#allocation2 + $0xb50] sm:$0xff]  ;;  %v1146_v5 = vld [vmem:[#allocation2 + $0x1fd8] sm:$0xff] }
 0x18b   :  { %1990 = vmatpush.msra.mxu0 %v329_v10  ;;  %2010 = vmatpush.msra.mxu1 %v585_v11  ;;  %v745_v40 = vld [vmem:[#allocation2 + $0x1350] sm:$0xff]  ;;  %v362_v6 = vld [vmem:[#allocation2 + $0x758] sm:$0xff] }
 0x18c   :  { %2030 = vmatpush.msra.mxu2 %v841_v12  ;;  %2050 = vmatpush.msra.mxu3 %v1097_v13  ;;  %v1001_v41 = vld [vmem:[#allocation2 + $0x1b50] sm:$0xff]  ;;  %v618_v7 = vld [vmem:[#allocation2 + $0xf58] sm:$0xff] }
 0x18d   :  { %1991 = vmatpush.msra.mxu0 %v313_v14  ;;  %2011 = vmatpush.msra.mxu1 %v569_v15  ;;  %v217_v42 = vld [vmem:[#allocation2 + $0x2d0] sm:$0xff]  ;;  %v874_v8 = vld [vmem:[#allocation2 + $0x1758] sm:$0xff] }
 0x18e   :  { %2031 = vmatpush.msra.mxu2 %v825_v16  ;;  %2051 = vmatpush.msra.mxu3 %v1081_v17  ;;  %v473_v43 = vld [vmem:[#allocation2 + $0xad0] sm:$0xff]  ;;  %v1130_v9 = vld [vmem:[#allocation2 + $0x1f58] sm:$0xff] }
 0x18f   :  { %1992 = vmatpush.msra.mxu0 %v297_v18  ;;  %2012 = vmatpush.msra.mxu1 %v553_v19  ;;  %v729_v44 = vld [vmem:[#allocation2 + $0x12d0] sm:$0xff]  ;;  %v346_v10 = vld [vmem:[#allocation2 + $0x6d8] sm:$0xff] }
 0x190   :  { %2032 = vmatpush.msra.mxu2 %v809_v20  ;;  %2052 = vmatpush.msra.mxu3 %v1065_v21  ;;  %v985_v45 = vld [vmem:[#allocation2 + $0x1ad0] sm:$0xff]  ;;  %v602_v11 = vld [vmem:[#allocation2 + $0xed8] sm:$0xff] }
 0x191   :  { %1993 = vmatpush.msra.mxu0 %v281_v22  ;;  %2013 = vmatpush.msra.mxu1 %v537_v23  ;;  %v201_v46 = vld [vmem:[#allocation2 + $0x250] sm:$0xff]  ;;  %v858_v12 = vld [vmem:[#allocation2 + $0x16d8] sm:$0xff] }
 0x192   :  { %2033 = vmatpush.msra.mxu2 %v793_v24  ;;  %2053 = vmatpush.msra.mxu3 %v1049_v25  ;;  %v457_v47 = vld [vmem:[#allocation2 + $0xa50] sm:$0xff]  ;;  %v1114_v13 = vld [vmem:[#allocation2 + $0x1ed8] sm:$0xff] }
 0x193   :  { %1994 = vmatpush.msra.mxu0 %v265_v30  ;;  %2014 = vmatpush.msra.mxu1 %v521_v31  ;;  %v713_v48 = vld [vmem:[#allocation2 + $0x1250] sm:$0xff]  ;;  %v330_v14 = vld [vmem:[#allocation2 + $0x658] sm:$0xff] }
 0x194   :  { %2034 = vmatpush.msra.mxu2 %v777_v32  ;;  %2054 = vmatpush.msra.mxu3 %v1033_v33  ;;  %v969_v49 = vld [vmem:[#allocation2 + $0x1a50] sm:$0xff]  ;;  %v586_v15 = vld [vmem:[#allocation2 + $0xe58] sm:$0xff] }
 0x195   :  { %1995 = vmatpush.msra.mxu0 %v249_v34  ;;  %2015 = vmatpush.msra.mxu1 %v505_v35  ;;  %v185_v50 = vld [vmem:[#allocation2 + $0x1d0] sm:$0xff]  ;;  %v842_v16 = vld [vmem:[#allocation2 + $0x1658] sm:$0xff] }
 0x196   :  { %2035 = vmatpush.msra.mxu2 %v761_v36  ;;  %2055 = vmatpush.msra.mxu3 %v1017_v37  ;;  %v441_v51 = vld [vmem:[#allocation2 + $0x9d0] sm:$0xff]  ;;  %v1098_v17 = vld [vmem:[#allocation2 + $0x1e58] sm:$0xff] }
 0x197   :  { %1996 = vmatpush.msra.mxu0 %v233_v38  ;;  %2016 = vmatpush.msra.mxu1 %v489_v39  ;;  %v697_v52 = vld [vmem:[#allocation2 + $0x11d0] sm:$0xff]  ;;  %v314_v18 = vld [vmem:[#allocation2 + $0x5d8] sm:$0xff] }
 0x198   :  { %2036 = vmatpush.msra.mxu2 %v745_v40  ;;  %2056 = vmatpush.msra.mxu3 %v1001_v41  ;;  %v953_v53 = vld [vmem:[#allocation2 + $0x19d0] sm:$0xff]  ;;  %v570_v19 = vld [vmem:[#allocation2 + $0xdd8] sm:$0xff] }
 0x199   :  { %1997 = vmatpush.msra.mxu0 %v217_v42  ;;  %2017 = vmatpush.msra.mxu1 %v473_v43  ;;  %v169_v54 = vld [vmem:[#allocation2 + $0x150] sm:$0xff]  ;;  %v826_v20 = vld [vmem:[#allocation2 + $0x15d8] sm:$0xff] }
 0x19a   :  { %2037 = vmatpush.msra.mxu2 %v729_v44  ;;  %2057 = vmatpush.msra.mxu3 %v985_v45  ;;  %v425_v55 = vld [vmem:[#allocation2 + $0x950] sm:$0xff]  ;;  %v1082_v21 = vld [vmem:[#allocation2 + $0x1dd8] sm:$0xff] }
 0x19b   :  { %1998 = vmatpush.msra.mxu0 %v201_v46  ;;  %2018 = vmatpush.msra.mxu1 %v457_v47  ;;  %v681_v56 = vld [vmem:[#allocation2 + $0x1150] sm:$0xff]  ;;  %v298_v22 = vld [vmem:[#allocation2 + $0x558] sm:$0xff] }
 0x19c   :  { %2038 = vmatpush.msra.mxu2 %v713_v48  ;;  %2058 = vmatpush.msra.mxu3 %v969_v49  ;;  %v937_v57 = vld [vmem:[#allocation2 + $0x1950] sm:$0xff]  ;;  %v554_v23 = vld [vmem:[#allocation2 + $0xd58] sm:$0xff] }
 0x19d   :  { %1999 = vmatpush.msra.mxu0 %v185_v50  ;;  %2019 = vmatpush.msra.mxu1 %v441_v51  ;;  %v153_v58 = vld [vmem:[#allocation2 + $0xd0] sm:$0xff]  ;;  %v810_v24 = vld [vmem:[#allocation2 + $0x1558] sm:$0xff] }
 0x19e   :  { %2039 = vmatpush.msra.mxu2 %v697_v52  ;;  %2059 = vmatpush.msra.mxu3 %v953_v53  ;;  %v409_v59 = vld [vmem:[#allocation2 + $0x8d0] sm:$0xff]  ;;  %v1066_v25 = vld [vmem:[#allocation2 + $0x1d58] sm:$0xff] }
 0x19f   :  { %2000 = vmatpush.msra.mxu0 %v169_v54  ;;  %2020 = vmatpush.msra.mxu1 %v425_v55  ;;  %v665_v60 = vld [vmem:[#allocation2 + $0x10d0] sm:$0xff]  ;;  %v282_v30 = vld [vmem:[#allocation2 + $0x4d8] sm:$0xff] }
 0x1a0   :  { %v921_v61 = vld [vmem:[#allocation2 + $0x18d0] sm:$0xff]  ;;  %2040 = vmatpush.msra.mxu2 %v681_v56  ;;  %2060 = vmatpush.msra.mxu3 %v937_v57  ;;  %v538_v31 = vld [vmem:[#allocation2 + $0xcd8] sm:$0xff] }
 0x1a1   :  { %v137_v62 = vld [vmem:[#allocation2 + $0x50] sm:$0xff]  ;;  %2001 = vmatpush.msra.mxu0 %v153_v58  ;;  %2021 = vmatpush.msra.mxu1 %v409_v59  ;;  %v794_v32 = vld [vmem:[#allocation2 + $0x14d8] sm:$0xff] }
 0x1a2   :  { %v393_v63 = vld [vmem:[#allocation2 + $0x850] sm:$0xff]  ;;  %2041 = vmatpush.msra.mxu2 %v665_v60  ;;  %2061 = vmatpush.msra.mxu3 %v921_v61  ;;  %v1050_v33 = vld [vmem:[#allocation2 + $0x1cd8] sm:$0xff] }
 0x1a3   :  { %v649_v0 = vld [vmem:[#allocation2 + $0x1050] sm:$0xff]  ;;  %2002 = vmatpush.msra.mxu0 %v137_v62  ;;  %2022 = vmatpush.msra.mxu1 %v393_v63  ;;  %v266_v34 = vld [vmem:[#allocation2 + $0x458] sm:$0xff] }
 0x1a4   :  { %v905_v1 = vld [vmem:[#allocation2 + $0x1850] sm:$0xff]  ;;  %2042 = vmatpush.msra.mxu2 %v649_v0  ;;  %1923 = vmatmul.f32.vlgmr.msrb.gmra.mxu0 %v3255_v26  ;;  %v522_v35 = vld [vmem:[#allocation2 + $0xc58] sm:$0xff] }
 0x1a5   :  { %2062 = vmatpush.msra.mxu3 %v905_v1  ;;  %1943 = vmatmul.f32.vlgmr.msrb.gmra.mxu1 %v3258_v27  ;;  %v778_v36 = vld [vmem:[#allocation2 + $0x1458] sm:$0xff] }
 0x1a6   :  { %1963 = vmatmul.f32.vlgmr.msrb.gmra.mxu2 %v3260_v28  ;;  %1983 = vmatmul.f32.vlgmr.msrb.gmra.mxu3 %v3262_v29  ;;  %v1034_v37 = vld [vmem:[#allocation2 + $0x1c58] sm:$0xff] }
 0x1a7   :  { %2067 = vmatpush.msrb.mxu0 %v378_v2  ;;  %2087 = vmatpush.msrb.mxu1 %v634_v3  ;;  %v250_v38 = vld [vmem:[#allocation2 + $0x3d8] sm:$0xff] }
 0x1a8   :  { %2107 = vmatpush.msrb.mxu2 %v890_v4  ;;  %2127 = vmatpush.msrb.mxu3 %v1146_v5  ;;  %v506_v39 = vld [vmem:[#allocation2 + $0xbd8] sm:$0xff] }
 0x1a9   :  { %2068 = vmatpush.msrb.mxu0 %v362_v6  ;;  %2088 = vmatpush.msrb.mxu1 %v618_v7  ;;  %v762_v40 = vld [vmem:[#allocation2 + $0x13d8] sm:$0xff]  ;;  %v379_v6 = vld [vmem:[#allocation2 + $0x7e0] sm:$0xff] }
 0x1aa   :  { %2108 = vmatpush.msrb.mxu2 %v874_v8  ;;  %2128 = vmatpush.msrb.mxu3 %v1130_v9  ;;  %v1018_v41 = vld [vmem:[#allocation2 + $0x1bd8] sm:$0xff]  ;;  %v635_v7 = vld [vmem:[#allocation2 + $0xfe0] sm:$0xff] }
 0x1ab   :  { %2069 = vmatpush.msrb.mxu0 %v346_v10  ;;  %2089 = vmatpush.msrb.mxu1 %v602_v11  ;;  %v234_v42 = vld [vmem:[#allocation2 + $0x358] sm:$0xff]  ;;  %v891_v8 = vld [vmem:[#allocation2 + $0x17e0] sm:$0xff] }
 0x1ac   :  { %2109 = vmatpush.msrb.mxu2 %v858_v12  ;;  %2129 = vmatpush.msrb.mxu3 %v1114_v13  ;;  %v490_v43 = vld [vmem:[#allocation2 + $0xb58] sm:$0xff]  ;;  %v1147_v9 = vld [vmem:[#allocation2 + $0x1fe0] sm:$0xff] }
 0x1ad   :  { %2070 = vmatpush.msrb.mxu0 %v330_v14  ;;  %2090 = vmatpush.msrb.mxu1 %v586_v15  ;;  %v746_v44 = vld [vmem:[#allocation2 + $0x1358] sm:$0xff]  ;;  %v363_v10 = vld [vmem:[#allocation2 + $0x760] sm:$0xff] }
 0x1ae   :  { %2110 = vmatpush.msrb.mxu2 %v842_v16  ;;  %2130 = vmatpush.msrb.mxu3 %v1098_v17  ;;  %v1002_v45 = vld [vmem:[#allocation2 + $0x1b58] sm:$0xff]  ;;  %v619_v11 = vld [vmem:[#allocation2 + $0xf60] sm:$0xff] }
 0x1af   :  { %2071 = vmatpush.msrb.mxu0 %v314_v18  ;;  %2091 = vmatpush.msrb.mxu1 %v570_v19  ;;  %v218_v46 = vld [vmem:[#allocation2 + $0x2d8] sm:$0xff]  ;;  %v875_v12 = vld [vmem:[#allocation2 + $0x1760] sm:$0xff] }
 0x1b0   :  { %2111 = vmatpush.msrb.mxu2 %v826_v20  ;;  %2131 = vmatpush.msrb.mxu3 %v1082_v21  ;;  %v474_v47 = vld [vmem:[#allocation2 + $0xad8] sm:$0xff]  ;;  %v1131_v13 = vld [vmem:[#allocation2 + $0x1f60] sm:$0xff] }
 0x1b1   :  { %2072 = vmatpush.msrb.mxu0 %v298_v22  ;;  %2092 = vmatpush.msrb.mxu1 %v554_v23  ;;  %v730_v48 = vld [vmem:[#allocation2 + $0x12d8] sm:$0xff]  ;;  %v347_v14 = vld [vmem:[#allocation2 + $0x6e0] sm:$0xff] }
 0x1b2   :  { %2112 = vmatpush.msrb.mxu2 %v810_v24  ;;  %2132 = vmatpush.msrb.mxu3 %v1066_v25  ;;  %v986_v49 = vld [vmem:[#allocation2 + $0x1ad8] sm:$0xff]  ;;  %v603_v15 = vld [vmem:[#allocation2 + $0xee0] sm:$0xff] }
 0x1b3   :  { %2073 = vmatpush.msrb.mxu0 %v282_v30  ;;  %2093 = vmatpush.msrb.mxu1 %v538_v31  ;;  %v202_v50 = vld [vmem:[#allocation2 + $0x258] sm:$0xff]  ;;  %v859_v16 = vld [vmem:[#allocation2 + $0x16e0] sm:$0xff] }
 0x1b4   :  { %2113 = vmatpush.msrb.mxu2 %v794_v32  ;;  %2133 = vmatpush.msrb.mxu3 %v1050_v33  ;;  %v458_v51 = vld [vmem:[#allocation2 + $0xa58] sm:$0xff]  ;;  %v1115_v17 = vld [vmem:[#allocation2 + $0x1ee0] sm:$0xff] }
 0x1b5   :  { %2074 = vmatpush.msrb.mxu0 %v266_v34  ;;  %2094 = vmatpush.msrb.mxu1 %v522_v35  ;;  %v714_v52 = vld [vmem:[#allocation2 + $0x1258] sm:$0xff]  ;;  %v331_v18 = vld [vmem:[#allocation2 + $0x660] sm:$0xff] }
 0x1b6   :  { %2114 = vmatpush.msrb.mxu2 %v778_v36  ;;  %2134 = vmatpush.msrb.mxu3 %v1034_v37  ;;  %v970_v53 = vld [vmem:[#allocation2 + $0x1a58] sm:$0xff]  ;;  %v587_v19 = vld [vmem:[#allocation2 + $0xe60] sm:$0xff] }
 0x1b7   :  { %2075 = vmatpush.msrb.mxu0 %v250_v38  ;;  %2095 = vmatpush.msrb.mxu1 %v506_v39  ;;  %v186_v54 = vld [vmem:[#allocation2 + $0x1d8] sm:$0xff]  ;;  %v843_v20 = vld [vmem:[#allocation2 + $0x1660] sm:$0xff] }
 0x1b8   :  { %2115 = vmatpush.msrb.mxu2 %v762_v40  ;;  %2135 = vmatpush.msrb.mxu3 %v1018_v41  ;;  %v442_v55 = vld [vmem:[#allocation2 + $0x9d8] sm:$0xff]  ;;  %v1099_v21 = vld [vmem:[#allocation2 + $0x1e60] sm:$0xff] }
 0x1b9   :  { %2076 = vmatpush.msrb.mxu0 %v234_v42  ;;  %2096 = vmatpush.msrb.mxu1 %v490_v43  ;;  %v698_v56 = vld [vmem:[#allocation2 + $0x11d8] sm:$0xff]  ;;  %v315_v22 = vld [vmem:[#allocation2 + $0x5e0] sm:$0xff] }
 0x1ba   :  { %2116 = vmatpush.msrb.mxu2 %v746_v44  ;;  %2136 = vmatpush.msrb.mxu3 %v1002_v45  ;;  %v954_v57 = vld [vmem:[#allocation2 + $0x19d8] sm:$0xff]  ;;  %v571_v23 = vld [vmem:[#allocation2 + $0xde0] sm:$0xff] }
 0x1bb   :  { %2077 = vmatpush.msrb.mxu0 %v218_v46  ;;  %2097 = vmatpush.msrb.mxu1 %v474_v47  ;;  %v170_v58 = vld [vmem:[#allocation2 + $0x158] sm:$0xff]  ;;  %v827_v24 = vld [vmem:[#allocation2 + $0x15e0] sm:$0xff] }
 0x1bc   :  { %2117 = vmatpush.msrb.mxu2 %v730_v48  ;;  %2137 = vmatpush.msrb.mxu3 %v986_v49  ;;  %v426_v59 = vld [vmem:[#allocation2 + $0x958] sm:$0xff]  ;;  %v1083_v25 = vld [vmem:[#allocation2 + $0x1de0] sm:$0xff] }
 0x1bd   :  { %2078 = vmatpush.msrb.mxu0 %v202_v50  ;;  %2098 = vmatpush.msrb.mxu1 %v458_v51  ;;  %v682_v60 = vld [vmem:[#allocation2 + $0x1158] sm:$0xff]  ;;  %v299_v30 = vld [vmem:[#allocation2 + $0x560] sm:$0xff] }
 0x1be   :  { %2118 = vmatpush.msrb.mxu2 %v714_v52  ;;  %2138 = vmatpush.msrb.mxu3 %v970_v53  ;;  %v938_v61 = vld [vmem:[#allocation2 + $0x1958] sm:$0xff]  ;;  %v555_v31 = vld [vmem:[#allocation2 + $0xd60] sm:$0xff] }
 0x1bf   :  { %2079 = vmatpush.msrb.mxu0 %v186_v54  ;;  %2099 = vmatpush.msrb.mxu1 %v442_v55  ;;  %v154_v62 = vld [vmem:[#allocation2 + $0xd8] sm:$0xff]  ;;  %v811_v32 = vld [vmem:[#allocation2 + $0x1560] sm:$0xff] }
 0x1c0   :  { %2119 = vmatpush.msrb.mxu2 %v698_v56  ;;  %2139 = vmatpush.msrb.mxu3 %v954_v57  ;;  %v410_v63 = vld [vmem:[#allocation2 + $0x8d8] sm:$0xff]  ;;  %v1067_v33 = vld [vmem:[#allocation2 + $0x1d60] sm:$0xff] }
 0x1c1   :  { %2080 = vmatpush.msrb.mxu0 %v170_v58  ;;  %2100 = vmatpush.msrb.mxu1 %v426_v59  ;;  %v666_v0 = vld [vmem:[#allocation2 + $0x10d8] sm:$0xff]  ;;  %v283_v34 = vld [vmem:[#allocation2 + $0x4e0] sm:$0xff] }
 0x1c2   :  { %v922_v1 = vld [vmem:[#allocation2 + $0x18d8] sm:$0xff]  ;;  %2120 = vmatpush.msrb.mxu2 %v682_v60  ;;  %2140 = vmatpush.msrb.mxu3 %v938_v61  ;;  %v539_v35 = vld [vmem:[#allocation2 + $0xce0] sm:$0xff] }
 0x1c3   :  { %v138_v2 = vld [vmem:[#allocation2 + $0x58] sm:$0xff]  ;;  %2081 = vmatpush.msrb.mxu0 %v154_v62  ;;  %2101 = vmatpush.msrb.mxu1 %v410_v63  ;;  %v795_v36 = vld [vmem:[#allocation2 + $0x14e0] sm:$0xff] }
 0x1c4   :  { %v394_v3 = vld [vmem:[#allocation2 + $0x858] sm:$0xff]  ;;  %2121 = vmatpush.msrb.mxu2 %v666_v0  ;;  %2141 = vmatpush.msrb.mxu3 %v922_v1  ;;  %v1051_v37 = vld [vmem:[#allocation2 + $0x1ce0] sm:$0xff] }
 0x1c5   :  { %v650_v4 = vld [vmem:[#allocation2 + $0x1058] sm:$0xff]  ;;  %2082 = vmatpush.msrb.mxu0 %v138_v2  ;;  %2102 = vmatpush.msrb.mxu1 %v394_v3  ;;  %v267_v38 = vld [vmem:[#allocation2 + $0x460] sm:$0xff] }
 0x1c6   :  { %v906_v5 = vld [vmem:[#allocation2 + $0x1858] sm:$0xff]  ;;  %2122 = vmatpush.msrb.mxu2 %v650_v4  ;;  %2003 = vmatmul.f32.vlgmr.msra.gmra.mxu0 %v3255_v26  ;;  %v523_v39 = vld [vmem:[#allocation2 + $0xc60] sm:$0xff] }
 0x1c7   :  { %2142 = vmatpush.msrb.mxu3 %v906_v5  ;;  %2023 = vmatmul.f32.vlgmr.msra.gmra.mxu1 %v3258_v27  ;;  %v779_v40 = vld [vmem:[#allocation2 + $0x1460] sm:$0xff] }
 0x1c8   :  { %2043 = vmatmul.f32.vlgmr.msra.gmra.mxu2 %v3260_v28  ;;  %2063 = vmatmul.f32.vlgmr.msra.gmra.mxu3 %v3262_v29  ;;  %v1035_v41 = vld [vmem:[#allocation2 + $0x1c60] sm:$0xff] }
 0x1c9   :  { %2147 = vmatpush.msra.mxu0 %v379_v6  ;;  %2167 = vmatpush.msra.mxu1 %v635_v7  ;;  %v251_v42 = vld [vmem:[#allocation2 + $0x3e0] sm:$0xff] }
 0x1ca   :  { %2187 = vmatpush.msra.mxu2 %v891_v8  ;;  %2207 = vmatpush.msra.mxu3 %v1147_v9  ;;  %v507_v43 = vld [vmem:[#allocation2 + $0xbe0] sm:$0xff] }
 0x1cb   :  { %2148 = vmatpush.msra.mxu0 %v363_v10  ;;  %2168 = vmatpush.msra.mxu1 %v619_v11  ;;  %v763_v44 = vld [vmem:[#allocation2 + $0x13e0] sm:$0xff]  ;;  %v380_v10 = vld [vmem:[#allocation2 + $0x7e8] sm:$0xff] }
 0x1cc   :  { %2188 = vmatpush.msra.mxu2 %v875_v12  ;;  %2208 = vmatpush.msra.mxu3 %v1131_v13  ;;  %v1019_v45 = vld [vmem:[#allocation2 + $0x1be0] sm:$0xff]  ;;  %v636_v11 = vld [vmem:[#allocation2 + $0xfe8] sm:$0xff] }
 0x1cd   :  { %2149 = vmatpush.msra.mxu0 %v347_v14  ;;  %2169 = vmatpush.msra.mxu1 %v603_v15  ;;  %v235_v46 = vld [vmem:[#allocation2 + $0x360] sm:$0xff]  ;;  %v892_v12 = vld [vmem:[#allocation2 + $0x17e8] sm:$0xff] }
 0x1ce   :  { %2189 = vmatpush.msra.mxu2 %v859_v16  ;;  %2209 = vmatpush.msra.mxu3 %v1115_v17  ;;  %v491_v47 = vld [vmem:[#allocation2 + $0xb60] sm:$0xff]  ;;  %v1148_v13 = vld [vmem:[#allocation2 + $0x1fe8] sm:$0xff] }
 0x1cf   :  { %2150 = vmatpush.msra.mxu0 %v331_v18  ;;  %2170 = vmatpush.msra.mxu1 %v587_v19  ;;  %v747_v48 = vld [vmem:[#allocation2 + $0x1360] sm:$0xff]  ;;  %v364_v14 = vld [vmem:[#allocation2 + $0x768] sm:$0xff] }
 0x1d0   :  { %2190 = vmatpush.msra.mxu2 %v843_v20  ;;  %2210 = vmatpush.msra.mxu3 %v1099_v21  ;;  %v1003_v49 = vld [vmem:[#allocation2 + $0x1b60] sm:$0xff]  ;;  %v620_v15 = vld [vmem:[#allocation2 + $0xf68] sm:$0xff] }
 0x1d1   :  { %2151 = vmatpush.msra.mxu0 %v315_v22  ;;  %2171 = vmatpush.msra.mxu1 %v571_v23  ;;  %v219_v50 = vld [vmem:[#allocation2 + $0x2e0] sm:$0xff]  ;;  %v876_v16 = vld [vmem:[#allocation2 + $0x1768] sm:$0xff] }
 0x1d2   :  { %2191 = vmatpush.msra.mxu2 %v827_v24  ;;  %2211 = vmatpush.msra.mxu3 %v1083_v25  ;;  %v475_v51 = vld [vmem:[#allocation2 + $0xae0] sm:$0xff]  ;;  %v1132_v17 = vld [vmem:[#allocation2 + $0x1f68] sm:$0xff] }
 0x1d3   :  { %2152 = vmatpush.msra.mxu0 %v299_v30  ;;  %2172 = vmatpush.msra.mxu1 %v555_v31  ;;  %v731_v52 = vld [vmem:[#allocation2 + $0x12e0] sm:$0xff]  ;;  %v348_v18 = vld [vmem:[#allocation2 + $0x6e8] sm:$0xff] }
 0x1d4   :  { %2192 = vmatpush.msra.mxu2 %v811_v32  ;;  %2212 = vmatpush.msra.mxu3 %v1067_v33  ;;  %v987_v53 = vld [vmem:[#allocation2 + $0x1ae0] sm:$0xff]  ;;  %v604_v19 = vld [vmem:[#allocation2 + $0xee8] sm:$0xff] }
 0x1d5   :  { %2153 = vmatpush.msra.mxu0 %v283_v34  ;;  %2173 = vmatpush.msra.mxu1 %v539_v35  ;;  %v203_v54 = vld [vmem:[#allocation2 + $0x260] sm:$0xff]  ;;  %v860_v20 = vld [vmem:[#allocation2 + $0x16e8] sm:$0xff] }
 0x1d6   :  { %2193 = vmatpush.msra.mxu2 %v795_v36  ;;  %2213 = vmatpush.msra.mxu3 %v1051_v37  ;;  %v459_v55 = vld [vmem:[#allocation2 + $0xa60] sm:$0xff]  ;;  %v1116_v21 = vld [vmem:[#allocation2 + $0x1ee8] sm:$0xff] }
 0x1d7   :  { %2154 = vmatpush.msra.mxu0 %v267_v38  ;;  %2174 = vmatpush.msra.mxu1 %v523_v39  ;;  %v715_v56 = vld [vmem:[#allocation2 + $0x1260] sm:$0xff]  ;;  %v332_v22 = vld [vmem:[#allocation2 + $0x668] sm:$0xff] }
 0x1d8   :  { %2194 = vmatpush.msra.mxu2 %v779_v40  ;;  %2214 = vmatpush.msra.mxu3 %v1035_v41  ;;  %v971_v57 = vld [vmem:[#allocation2 + $0x1a60] sm:$0xff]  ;;  %v588_v23 = vld [vmem:[#allocation2 + $0xe68] sm:$0xff] }
 0x1d9   :  { %2155 = vmatpush.msra.mxu0 %v251_v42  ;;  %2175 = vmatpush.msra.mxu1 %v507_v43  ;;  %v187_v58 = vld [vmem:[#allocation2 + $0x1e0] sm:$0xff]  ;;  %v844_v24 = vld [vmem:[#allocation2 + $0x1668] sm:$0xff] }
 0x1da   :  { %2195 = vmatpush.msra.mxu2 %v763_v44  ;;  %2215 = vmatpush.msra.mxu3 %v1019_v45  ;;  %v443_v59 = vld [vmem:[#allocation2 + $0x9e0] sm:$0xff]  ;;  %v1100_v25 = vld [vmem:[#allocation2 + $0x1e68] sm:$0xff] }
 0x1db   :  { %2156 = vmatpush.msra.mxu0 %v235_v46  ;;  %2176 = vmatpush.msra.mxu1 %v491_v47  ;;  %v699_v60 = vld [vmem:[#allocation2 + $0x11e0] sm:$0xff]  ;;  %v316_v30 = vld [vmem:[#allocation2 + $0x5e8] sm:$0xff] }
 0x1dc   :  { %2196 = vmatpush.msra.mxu2 %v747_v48  ;;  %2216 = vmatpush.msra.mxu3 %v1003_v49  ;;  %v955_v61 = vld [vmem:[#allocation2 + $0x19e0] sm:$0xff]  ;;  %v572_v31 = vld [vmem:[#allocation2 + $0xde8] sm:$0xff] }
 0x1dd   :  { %2157 = vmatpush.msra.mxu0 %v219_v50  ;;  %2177 = vmatpush.msra.mxu1 %v475_v51  ;;  %v171_v62 = vld [vmem:[#allocation2 + $0x160] sm:$0xff]  ;;  %v828_v32 = vld [vmem:[#allocation2 + $0x15e8] sm:$0xff] }
 0x1de   :  { %2197 = vmatpush.msra.mxu2 %v731_v52  ;;  %2217 = vmatpush.msra.mxu3 %v987_v53  ;;  %v427_v63 = vld [vmem:[#allocation2 + $0x960] sm:$0xff]  ;;  %v1084_v33 = vld [vmem:[#allocation2 + $0x1de8] sm:$0xff] }
 0x1df   :  { %2158 = vmatpush.msra.mxu0 %v203_v54  ;;  %2178 = vmatpush.msra.mxu1 %v459_v55  ;;  %v683_v0 = vld [vmem:[#allocation2 + $0x1160] sm:$0xff]  ;;  %v300_v34 = vld [vmem:[#allocation2 + $0x568] sm:$0xff] }
 0x1e0   :  { %2198 = vmatpush.msra.mxu2 %v715_v56  ;;  %2218 = vmatpush.msra.mxu3 %v971_v57  ;;  %v939_v1 = vld [vmem:[#allocation2 + $0x1960] sm:$0xff]  ;;  %v556_v35 = vld [vmem:[#allocation2 + $0xd68] sm:$0xff] }
 0x1e1   :  { %2159 = vmatpush.msra.mxu0 %v187_v58  ;;  %2179 = vmatpush.msra.mxu1 %v443_v59  ;;  %v155_v2 = vld [vmem:[#allocation2 + $0xe0] sm:$0xff]  ;;  %v812_v36 = vld [vmem:[#allocation2 + $0x1568] sm:$0xff] }
 0x1e2   :  { %2199 = vmatpush.msra.mxu2 %v699_v60  ;;  %2219 = vmatpush.msra.mxu3 %v955_v61  ;;  %v411_v3 = vld [vmem:[#allocation2 + $0x8e0] sm:$0xff]  ;;  %v1068_v37 = vld [vmem:[#allocation2 + $0x1d68] sm:$0xff] }
 0x1e3   :  { %2160 = vmatpush.msra.mxu0 %v171_v62  ;;  %2180 = vmatpush.msra.mxu1 %v427_v63  ;;  %v667_v4 = vld [vmem:[#allocation2 + $0x10e0] sm:$0xff]  ;;  %v284_v38 = vld [vmem:[#allocation2 + $0x4e8] sm:$0xff] }
 0x1e4   :  { %v923_v5 = vld [vmem:[#allocation2 + $0x18e0] sm:$0xff]  ;;  %2200 = vmatpush.msra.mxu2 %v683_v0  ;;  %2220 = vmatpush.msra.mxu3 %v939_v1  ;;  %v540_v39 = vld [vmem:[#allocation2 + $0xce8] sm:$0xff] }
 0x1e5   :  { %v139_v6 = vld [vmem:[#allocation2 + $0x60] sm:$0xff]  ;;  %2161 = vmatpush.msra.mxu0 %v155_v2  ;;  %2181 = vmatpush.msra.mxu1 %v411_v3  ;;  %v796_v40 = vld [vmem:[#allocation2 + $0x14e8] sm:$0xff] }
 0x1e6   :  { %v395_v7 = vld [vmem:[#allocation2 + $0x860] sm:$0xff]  ;;  %2201 = vmatpush.msra.mxu2 %v667_v4  ;;  %2221 = vmatpush.msra.mxu3 %v923_v5  ;;  %v1052_v41 = vld [vmem:[#allocation2 + $0x1ce8] sm:$0xff] }
 0x1e7   :  { %v651_v8 = vld [vmem:[#allocation2 + $0x1060] sm:$0xff]  ;;  %2162 = vmatpush.msra.mxu0 %v139_v6  ;;  %2182 = vmatpush.msra.mxu1 %v395_v7  ;;  %v268_v42 = vld [vmem:[#allocation2 + $0x468] sm:$0xff] }
 0x1e8   :  { %v907_v9 = vld [vmem:[#allocation2 + $0x1860] sm:$0xff]  ;;  %2202 = vmatpush.msra.mxu2 %v651_v8  ;;  %2083 = vmatmul.f32.vlgmr.msrb.gmra.mxu0 %v3255_v26  ;;  %v524_v43 = vld [vmem:[#allocation2 + $0xc68] sm:$0xff] }
 0x1e9   :  { %2222 = vmatpush.msra.mxu3 %v907_v9  ;;  %2103 = vmatmul.f32.vlgmr.msrb.gmra.mxu1 %v3258_v27  ;;  %v780_v44 = vld [vmem:[#allocation2 + $0x1468] sm:$0xff] }
 0x1ea   :  { %2123 = vmatmul.f32.vlgmr.msrb.gmra.mxu2 %v3260_v28  ;;  %2143 = vmatmul.f32.vlgmr.msrb.gmra.mxu3 %v3262_v29  ;;  %v1036_v45 = vld [vmem:[#allocation2 + $0x1c68] sm:$0xff] }
 0x1eb   :  { %2227 = vmatpush.msrb.mxu0 %v380_v10  ;;  %2247 = vmatpush.msrb.mxu1 %v636_v11  ;;  %v252_v46 = vld [vmem:[#allocation2 + $0x3e8] sm:$0xff] }
 0x1ec   :  { %2267 = vmatpush.msrb.mxu2 %v892_v12  ;;  %2287 = vmatpush.msrb.mxu3 %v1148_v13  ;;  %v508_v47 = vld [vmem:[#allocation2 + $0xbe8] sm:$0xff] }
 0x1ed   :  { %2228 = vmatpush.msrb.mxu0 %v364_v14  ;;  %2248 = vmatpush.msrb.mxu1 %v620_v15  ;;  %v764_v48 = vld [vmem:[#allocation2 + $0x13e8] sm:$0xff]  ;;  %v381_v14 = vld [vmem:[#allocation2 + $0x7f0] sm:$0xff] }
 0x1ee   :  { %2268 = vmatpush.msrb.mxu2 %v876_v16  ;;  %2288 = vmatpush.msrb.mxu3 %v1132_v17  ;;  %v1020_v49 = vld [vmem:[#allocation2 + $0x1be8] sm:$0xff]  ;;  %v637_v15 = vld [vmem:[#allocation2 + $0xff0] sm:$0xff] }
 0x1ef   :  { %2229 = vmatpush.msrb.mxu0 %v348_v18  ;;  %2249 = vmatpush.msrb.mxu1 %v604_v19  ;;  %v236_v50 = vld [vmem:[#allocation2 + $0x368] sm:$0xff]  ;;  %v893_v16 = vld [vmem:[#allocation2 + $0x17f0] sm:$0xff] }
 0x1f0   :  { %2269 = vmatpush.msrb.mxu2 %v860_v20  ;;  %2289 = vmatpush.msrb.mxu3 %v1116_v21  ;;  %v492_v51 = vld [vmem:[#allocation2 + $0xb68] sm:$0xff]  ;;  %v1149_v17 = vld [vmem:[#allocation2 + $0x1ff0] sm:$0xff] }
 0x1f1   :  { %2230 = vmatpush.msrb.mxu0 %v332_v22  ;;  %2250 = vmatpush.msrb.mxu1 %v588_v23  ;;  %v748_v52 = vld [vmem:[#allocation2 + $0x1368] sm:$0xff]  ;;  %v365_v18 = vld [vmem:[#allocation2 + $0x770] sm:$0xff] }
 0x1f2   :  { %2270 = vmatpush.msrb.mxu2 %v844_v24  ;;  %2290 = vmatpush.msrb.mxu3 %v1100_v25  ;;  %v1004_v53 = vld [vmem:[#allocation2 + $0x1b68] sm:$0xff]  ;;  %v621_v19 = vld [vmem:[#allocation2 + $0xf70] sm:$0xff] }
 0x1f3   :  { %2231 = vmatpush.msrb.mxu0 %v316_v30  ;;  %2251 = vmatpush.msrb.mxu1 %v572_v31  ;;  %v220_v54 = vld [vmem:[#allocation2 + $0x2e8] sm:$0xff]  ;;  %v877_v20 = vld [vmem:[#allocation2 + $0x1770] sm:$0xff] }
 0x1f4   :  { %2271 = vmatpush.msrb.mxu2 %v828_v32  ;;  %2291 = vmatpush.msrb.mxu3 %v1084_v33  ;;  %v476_v55 = vld [vmem:[#allocation2 + $0xae8] sm:$0xff]  ;;  %v1133_v21 = vld [vmem:[#allocation2 + $0x1f70] sm:$0xff] }
 0x1f5   :  { %2232 = vmatpush.msrb.mxu0 %v300_v34  ;;  %2252 = vmatpush.msrb.mxu1 %v556_v35  ;;  %v732_v56 = vld [vmem:[#allocation2 + $0x12e8] sm:$0xff]  ;;  %v349_v22 = vld [vmem:[#allocation2 + $0x6f0] sm:$0xff] }
 0x1f6   :  { %2272 = vmatpush.msrb.mxu2 %v812_v36  ;;  %2292 = vmatpush.msrb.mxu3 %v1068_v37  ;;  %v988_v57 = vld [vmem:[#allocation2 + $0x1ae8] sm:$0xff]  ;;  %v605_v23 = vld [vmem:[#allocation2 + $0xef0] sm:$0xff] }
 0x1f7   :  { %2233 = vmatpush.msrb.mxu0 %v284_v38  ;;  %2253 = vmatpush.msrb.mxu1 %v540_v39  ;;  %v204_v58 = vld [vmem:[#allocation2 + $0x268] sm:$0xff]  ;;  %v861_v24 = vld [vmem:[#allocation2 + $0x16f0] sm:$0xff] }
 0x1f8   :  { %2273 = vmatpush.msrb.mxu2 %v796_v40  ;;  %2293 = vmatpush.msrb.mxu3 %v1052_v41  ;;  %v460_v59 = vld [vmem:[#allocation2 + $0xa68] sm:$0xff]  ;;  %v1117_v25 = vld [vmem:[#allocation2 + $0x1ef0] sm:$0xff] }
 0x1f9   :  { %2234 = vmatpush.msrb.mxu0 %v268_v42  ;;  %2254 = vmatpush.msrb.mxu1 %v524_v43  ;;  %v716_v60 = vld [vmem:[#allocation2 + $0x1268] sm:$0xff]  ;;  %v333_v30 = vld [vmem:[#allocation2 + $0x670] sm:$0xff] }
 0x1fa   :  { %2274 = vmatpush.msrb.mxu2 %v780_v44  ;;  %2294 = vmatpush.msrb.mxu3 %v1036_v45  ;;  %v972_v61 = vld [vmem:[#allocation2 + $0x1a68] sm:$0xff]  ;;  %v589_v31 = vld [vmem:[#allocation2 + $0xe70] sm:$0xff] }
 0x1fb   :  { %2235 = vmatpush.msrb.mxu0 %v252_v46  ;;  %2255 = vmatpush.msrb.mxu1 %v508_v47  ;;  %v188_v62 = vld [vmem:[#allocation2 + $0x1e8] sm:$0xff]  ;;  %v845_v32 = vld [vmem:[#allocation2 + $0x1670] sm:$0xff] }
 0x1fc   :  { %2275 = vmatpush.msrb.mxu2 %v764_v48  ;;  %2295 = vmatpush.msrb.mxu3 %v1020_v49  ;;  %v444_v63 = vld [vmem:[#allocation2 + $0x9e8] sm:$0xff]  ;;  %v1101_v33 = vld [vmem:[#allocation2 + $0x1e70] sm:$0xff] }
 0x1fd   :  { %2236 = vmatpush.msrb.mxu0 %v236_v50  ;;  %2256 = vmatpush.msrb.mxu1 %v492_v51  ;;  %v700_v0 = vld [vmem:[#allocation2 + $0x11e8] sm:$0xff]  ;;  %v317_v34 = vld [vmem:[#allocation2 + $0x5f0] sm:$0xff] }
 0x1fe   :  { %2276 = vmatpush.msrb.mxu2 %v748_v52  ;;  %2296 = vmatpush.msrb.mxu3 %v1004_v53  ;;  %v956_v1 = vld [vmem:[#allocation2 + $0x19e8] sm:$0xff]  ;;  %v573_v35 = vld [vmem:[#allocation2 + $0xdf0] sm:$0xff] }
 0x1ff   :  { %2237 = vmatpush.msrb.mxu0 %v220_v54  ;;  %2257 = vmatpush.msrb.mxu1 %v476_v55  ;;  %v172_v2 = vld [vmem:[#allocation2 + $0x168] sm:$0xff]  ;;  %v829_v36 = vld [vmem:[#allocation2 + $0x15f0] sm:$0xff] }
 0x200   :  { %2277 = vmatpush.msrb.mxu2 %v732_v56  ;;  %2297 = vmatpush.msrb.mxu3 %v988_v57  ;;  %v428_v3 = vld [vmem:[#allocation2 + $0x968] sm:$0xff]  ;;  %v1085_v37 = vld [vmem:[#allocation2 + $0x1df0] sm:$0xff] }
 0x201   :  { %2238 = vmatpush.msrb.mxu0 %v204_v58  ;;  %2258 = vmatpush.msrb.mxu1 %v460_v59  ;;  %v684_v4 = vld [vmem:[#allocation2 + $0x1168] sm:$0xff]  ;;  %v301_v38 = vld [vmem:[#allocation2 + $0x570] sm:$0xff] }
 0x202   :  { %2278 = vmatpush.msrb.mxu2 %v716_v60  ;;  %2298 = vmatpush.msrb.mxu3 %v972_v61  ;;  %v940_v5 = vld [vmem:[#allocation2 + $0x1968] sm:$0xff]  ;;  %v557_v39 = vld [vmem:[#allocation2 + $0xd70] sm:$0xff] }
 0x203   :  { %2239 = vmatpush.msrb.mxu0 %v188_v62  ;;  %2259 = vmatpush.msrb.mxu1 %v444_v63  ;;  %v156_v6 = vld [vmem:[#allocation2 + $0xe8] sm:$0xff]  ;;  %v813_v40 = vld [vmem:[#allocation2 + $0x1570] sm:$0xff] }
 0x204   :  { %2279 = vmatpush.msrb.mxu2 %v700_v0  ;;  %2299 = vmatpush.msrb.mxu3 %v956_v1  ;;  %v412_v7 = vld [vmem:[#allocation2 + $0x8e8] sm:$0xff]  ;;  %v1069_v41 = vld [vmem:[#allocation2 + $0x1d70] sm:$0xff] }
 0x205   :  { %2240 = vmatpush.msrb.mxu0 %v172_v2  ;;  %2260 = vmatpush.msrb.mxu1 %v428_v3  ;;  %v668_v8 = vld [vmem:[#allocation2 + $0x10e8] sm:$0xff]  ;;  %v285_v42 = vld [vmem:[#allocation2 + $0x4f0] sm:$0xff] }
 0x206   :  { %v924_v9 = vld [vmem:[#allocation2 + $0x18e8] sm:$0xff]  ;;  %2280 = vmatpush.msrb.mxu2 %v684_v4  ;;  %2300 = vmatpush.msrb.mxu3 %v940_v5  ;;  %v541_v43 = vld [vmem:[#allocation2 + $0xcf0] sm:$0xff] }
 0x207   :  { %v140_v10 = vld [vmem:[#allocation2 + $0x68] sm:$0xff]  ;;  %2241 = vmatpush.msrb.mxu0 %v156_v6  ;;  %2261 = vmatpush.msrb.mxu1 %v412_v7  ;;  %v797_v44 = vld [vmem:[#allocation2 + $0x14f0] sm:$0xff] }
 0x208   :  { %v396_v11 = vld [vmem:[#allocation2 + $0x868] sm:$0xff]  ;;  %2281 = vmatpush.msrb.mxu2 %v668_v8  ;;  %2301 = vmatpush.msrb.mxu3 %v924_v9  ;;  %v1053_v45 = vld [vmem:[#allocation2 + $0x1cf0] sm:$0xff] }
 0x209   :  { %v652_v12 = vld [vmem:[#allocation2 + $0x1068] sm:$0xff]  ;;  %2242 = vmatpush.msrb.mxu0 %v140_v10  ;;  %2262 = vmatpush.msrb.mxu1 %v396_v11  ;;  %v269_v46 = vld [vmem:[#allocation2 + $0x470] sm:$0xff] }
 0x20a   :  { %v908_v13 = vld [vmem:[#allocation2 + $0x1868] sm:$0xff]  ;;  %2282 = vmatpush.msrb.mxu2 %v652_v12  ;;  %2163 = vmatmul.f32.vlgmr.msra.gmra.mxu0 %v3255_v26  ;;  %v525_v47 = vld [vmem:[#allocation2 + $0xc70] sm:$0xff] }
 0x20b   :  { %2302 = vmatpush.msrb.mxu3 %v908_v13  ;;  %2183 = vmatmul.f32.vlgmr.msra.gmra.mxu1 %v3258_v27  ;;  %v781_v48 = vld [vmem:[#allocation2 + $0x1470] sm:$0xff] }
 0x20c   :  { %2203 = vmatmul.f32.vlgmr.msra.gmra.mxu2 %v3260_v28  ;;  %2223 = vmatmul.f32.vlgmr.msra.gmra.mxu3 %v3262_v29  ;;  %v1037_v49 = vld [vmem:[#allocation2 + $0x1c70] sm:$0xff] }
 0x20d   :  { %2307 = vmatpush.msra.mxu0 %v381_v14  ;;  %2327 = vmatpush.msra.mxu1 %v637_v15  ;;  %v253_v50 = vld [vmem:[#allocation2 + $0x3f0] sm:$0xff] }
 0x20e   :  { %2347 = vmatpush.msra.mxu2 %v893_v16  ;;  %2367 = vmatpush.msra.mxu3 %v1149_v17  ;;  %v509_v51 = vld [vmem:[#allocation2 + $0xbf0] sm:$0xff] }
 0x20f   :  { %2308 = vmatpush.msra.mxu0 %v365_v18  ;;  %2328 = vmatpush.msra.mxu1 %v621_v19  ;;  %v765_v52 = vld [vmem:[#allocation2 + $0x13f0] sm:$0xff]  ;;  %v382_v18 = vld [vmem:[#allocation2 + $0x7f8] sm:$0xff] }
 0x210   :  { %2348 = vmatpush.msra.mxu2 %v877_v20  ;;  %2368 = vmatpush.msra.mxu3 %v1133_v21  ;;  %v1021_v53 = vld [vmem:[#allocation2 + $0x1bf0] sm:$0xff]  ;;  %v638_v19 = vld [vmem:[#allocation2 + $0xff8] sm:$0xff] }
 0x211   :  { %2309 = vmatpush.msra.mxu0 %v349_v22  ;;  %2329 = vmatpush.msra.mxu1 %v605_v23  ;;  %v237_v54 = vld [vmem:[#allocation2 + $0x370] sm:$0xff]  ;;  %v894_v20 = vld [vmem:[#allocation2 + $0x17f8] sm:$0xff] }
 0x212   :  { %2349 = vmatpush.msra.mxu2 %v861_v24  ;;  %2369 = vmatpush.msra.mxu3 %v1117_v25  ;;  %v493_v55 = vld [vmem:[#allocation2 + $0xb70] sm:$0xff]  ;;  %v1150_v21 = vld [vmem:[#allocation2 + $0x1ff8] sm:$0xff] }
 0x213   :  { %2310 = vmatpush.msra.mxu0 %v333_v30  ;;  %2330 = vmatpush.msra.mxu1 %v589_v31  ;;  %v749_v56 = vld [vmem:[#allocation2 + $0x1370] sm:$0xff]  ;;  %v366_v22 = vld [vmem:[#allocation2 + $0x778] sm:$0xff] }
 0x214   :  { %2350 = vmatpush.msra.mxu2 %v845_v32  ;;  %2370 = vmatpush.msra.mxu3 %v1101_v33  ;;  %v1005_v57 = vld [vmem:[#allocation2 + $0x1b70] sm:$0xff]  ;;  %v622_v23 = vld [vmem:[#allocation2 + $0xf78] sm:$0xff] }
 0x215   :  { %2311 = vmatpush.msra.mxu0 %v317_v34  ;;  %2331 = vmatpush.msra.mxu1 %v573_v35  ;;  %v221_v58 = vld [vmem:[#allocation2 + $0x2f0] sm:$0xff]  ;;  %v878_v24 = vld [vmem:[#allocation2 + $0x1778] sm:$0xff] }
 0x216   :  { %2351 = vmatpush.msra.mxu2 %v829_v36  ;;  %2371 = vmatpush.msra.mxu3 %v1085_v37  ;;  %v477_v59 = vld [vmem:[#allocation2 + $0xaf0] sm:$0xff]  ;;  %v1134_v25 = vld [vmem:[#allocation2 + $0x1f78] sm:$0xff] }
 0x217   :  { %2312 = vmatpush.msra.mxu0 %v301_v38  ;;  %2332 = vmatpush.msra.mxu1 %v557_v39  ;;  %v733_v60 = vld [vmem:[#allocation2 + $0x12f0] sm:$0xff]  ;;  %v350_v30 = vld [vmem:[#allocation2 + $0x6f8] sm:$0xff] }
 0x218   :  { %2352 = vmatpush.msra.mxu2 %v813_v40  ;;  %2372 = vmatpush.msra.mxu3 %v1069_v41  ;;  %v989_v61 = vld [vmem:[#allocation2 + $0x1af0] sm:$0xff]  ;;  %v606_v31 = vld [vmem:[#allocation2 + $0xef8] sm:$0xff] }
 0x219   :  { %2313 = vmatpush.msra.mxu0 %v285_v42  ;;  %2333 = vmatpush.msra.mxu1 %v541_v43  ;;  %v205_v62 = vld [vmem:[#allocation2 + $0x270] sm:$0xff]  ;;  %v862_v32 = vld [vmem:[#allocation2 + $0x16f8] sm:$0xff] }
 0x21a   :  { %2353 = vmatpush.msra.mxu2 %v797_v44  ;;  %2373 = vmatpush.msra.mxu3 %v1053_v45  ;;  %v461_v63 = vld [vmem:[#allocation2 + $0xa70] sm:$0xff]  ;;  %v1118_v33 = vld [vmem:[#allocation2 + $0x1ef8] sm:$0xff] }
 0x21b   :  { %2314 = vmatpush.msra.mxu0 %v269_v46  ;;  %2334 = vmatpush.msra.mxu1 %v525_v47  ;;  %v717_v0 = vld [vmem:[#allocation2 + $0x1270] sm:$0xff]  ;;  %v334_v34 = vld [vmem:[#allocation2 + $0x678] sm:$0xff] }
 0x21c   :  { %2354 = vmatpush.msra.mxu2 %v781_v48  ;;  %2374 = vmatpush.msra.mxu3 %v1037_v49  ;;  %v973_v1 = vld [vmem:[#allocation2 + $0x1a70] sm:$0xff]  ;;  %v590_v35 = vld [vmem:[#allocation2 + $0xe78] sm:$0xff] }
 0x21d   :  { %2315 = vmatpush.msra.mxu0 %v253_v50  ;;  %2335 = vmatpush.msra.mxu1 %v509_v51  ;;  %v189_v2 = vld [vmem:[#allocation2 + $0x1f0] sm:$0xff]  ;;  %v846_v36 = vld [vmem:[#allocation2 + $0x1678] sm:$0xff] }
 0x21e   :  { %2355 = vmatpush.msra.mxu2 %v765_v52  ;;  %2375 = vmatpush.msra.mxu3 %v1021_v53  ;;  %v445_v3 = vld [vmem:[#allocation2 + $0x9f0] sm:$0xff]  ;;  %v1102_v37 = vld [vmem:[#allocation2 + $0x1e78] sm:$0xff] }
 0x21f   :  { %2316 = vmatpush.msra.mxu0 %v237_v54  ;;  %2336 = vmatpush.msra.mxu1 %v493_v55  ;;  %v701_v4 = vld [vmem:[#allocation2 + $0x11f0] sm:$0xff]  ;;  %v318_v38 = vld [vmem:[#allocation2 + $0x5f8] sm:$0xff] }
 0x220   :  { %2356 = vmatpush.msra.mxu2 %v749_v56  ;;  %2376 = vmatpush.msra.mxu3 %v1005_v57  ;;  %v957_v5 = vld [vmem:[#allocation2 + $0x19f0] sm:$0xff]  ;;  %v574_v39 = vld [vmem:[#allocation2 + $0xdf8] sm:$0xff] }
 0x221   :  { %2317 = vmatpush.msra.mxu0 %v221_v58  ;;  %2337 = vmatpush.msra.mxu1 %v477_v59  ;;  %v173_v6 = vld [vmem:[#allocation2 + $0x170] sm:$0xff]  ;;  %v830_v40 = vld [vmem:[#allocation2 + $0x15f8] sm:$0xff] }
 0x222   :  { %2357 = vmatpush.msra.mxu2 %v733_v60  ;;  %2377 = vmatpush.msra.mxu3 %v989_v61  ;;  %v429_v7 = vld [vmem:[#allocation2 + $0x970] sm:$0xff]  ;;  %v1086_v41 = vld [vmem:[#allocation2 + $0x1df8] sm:$0xff] }
 0x223   :  { %2318 = vmatpush.msra.mxu0 %v205_v62  ;;  %2338 = vmatpush.msra.mxu1 %v461_v63  ;;  %v685_v8 = vld [vmem:[#allocation2 + $0x1170] sm:$0xff]  ;;  %v302_v42 = vld [vmem:[#allocation2 + $0x578] sm:$0xff] }
 0x224   :  { %2358 = vmatpush.msra.mxu2 %v717_v0  ;;  %2378 = vmatpush.msra.mxu3 %v973_v1  ;;  %v941_v9 = vld [vmem:[#allocation2 + $0x1970] sm:$0xff]  ;;  %v558_v43 = vld [vmem:[#allocation2 + $0xd78] sm:$0xff] }
 0x225   :  { %2319 = vmatpush.msra.mxu0 %v189_v2  ;;  %2339 = vmatpush.msra.mxu1 %v445_v3  ;;  %v157_v10 = vld [vmem:[#allocation2 + $0xf0] sm:$0xff]  ;;  %v814_v44 = vld [vmem:[#allocation2 + $0x1578] sm:$0xff] }
 0x226   :  { %2359 = vmatpush.msra.mxu2 %v701_v4  ;;  %2379 = vmatpush.msra.mxu3 %v957_v5  ;;  %v413_v11 = vld [vmem:[#allocation2 + $0x8f0] sm:$0xff]  ;;  %v1070_v45 = vld [vmem:[#allocation2 + $0x1d78] sm:$0xff] }
 0x227   :  { %2320 = vmatpush.msra.mxu0 %v173_v6  ;;  %2340 = vmatpush.msra.mxu1 %v429_v7  ;;  %v669_v12 = vld [vmem:[#allocation2 + $0x10f0] sm:$0xff]  ;;  %v286_v46 = vld [vmem:[#allocation2 + $0x4f8] sm:$0xff] }
 0x228   :  { %v925_v13 = vld [vmem:[#allocation2 + $0x18f0] sm:$0xff]  ;;  %2360 = vmatpush.msra.mxu2 %v685_v8  ;;  %2380 = vmatpush.msra.mxu3 %v941_v9  ;;  %v542_v47 = vld [vmem:[#allocation2 + $0xcf8] sm:$0xff]  ;;  %v3324_v8 = vpop.f32.mrf.mxu0 }
 0x229   :  { %v141_v14 = vld [vmem:[#allocation2 + $0x70] sm:$0xff]  ;;  %2321 = vmatpush.msra.mxu0 %v157_v10  ;;  %2341 = vmatpush.msra.mxu1 %v413_v11  ;;  %v798_v48 = vld [vmem:[#allocation2 + $0x14f8] sm:$0xff] }
 0x22a   :  { %v397_v15 = vld [vmem:[#allocation2 + $0x870] sm:$0xff]  ;;  %2361 = vmatpush.msra.mxu2 %v669_v12  ;;  %2381 = vmatpush.msra.mxu3 %v925_v13  ;;  %v1054_v49 = vld [vmem:[#allocation2 + $0x1cf8] sm:$0xff] }
 0x22b   :  { %v653_v16 = vld [vmem:[#allocation2 + $0x1070] sm:$0xff]  ;;  %2322 = vmatpush.msra.mxu0 %v141_v14  ;;  %2342 = vmatpush.msra.mxu1 %v397_v15  ;;  %v270_v50 = vld [vmem:[#allocation2 + $0x478] sm:$0xff] }
 0x22c   :  { %v909_v17 = vld [vmem:[#allocation2 + $0x1870] sm:$0xff]  ;;  %2362 = vmatpush.msra.mxu2 %v653_v16  ;;  %2243 = vmatmul.f32.vlgmr.msrb.gmra.mxu0 %v3255_v26  ;;  %v526_v51 = vld [vmem:[#allocation2 + $0xc78] sm:$0xff] }
 0x22d   :  { %2382 = vmatpush.msra.mxu3 %v909_v17  ;;  %2263 = vmatmul.f32.vlgmr.msrb.gmra.mxu1 %v3258_v27  ;;  %v782_v52 = vld [vmem:[#allocation2 + $0x1478] sm:$0xff]  ;;  %v3326_v17 = vpop.f32.mrf.mxu1 }
 0x22e   :  { %2283 = vmatmul.f32.vlgmr.msrb.gmra.mxu2 %v3260_v28  ;;  %2303 = vmatmul.f32.vlgmr.msrb.gmra.mxu3 %v3262_v29  ;;  %v1038_v53 = vld [vmem:[#allocation2 + $0x1c78] sm:$0xff] }
 0x22f   :  { %2387 = vmatpush.msrb.mxu0 %v382_v18  ;;  %2407 = vmatpush.msrb.mxu1 %v638_v19  ;;  %v254_v54 = vld [vmem:[#allocation2 + $0x3f8] sm:$0xff] }
 0x230   :  { %2427 = vmatpush.msrb.mxu2 %v894_v20  ;;  %2447 = vmatpush.msrb.mxu3 %v1150_v21  ;;  %v510_v55 = vld [vmem:[#allocation2 + $0xbf8] sm:$0xff] }
 0x231   :  { %2388 = vmatpush.msrb.mxu0 %v366_v22  ;;  %2408 = vmatpush.msrb.mxu1 %v622_v23  ;;  %v766_v56 = vld [vmem:[#allocation2 + $0x13f8] sm:$0xff] }
 0x232   :  { %2428 = vmatpush.msrb.mxu2 %v878_v24  ;;  %2448 = vmatpush.msrb.mxu3 %v1134_v25  ;;  %v1022_v57 = vld [vmem:[#allocation2 + $0x1bf8] sm:$0xff]  ;;  %v2498_v24 = vld [vmem:[#allocation6 + $0x78] sm:$0xff]  ;;  %v3328_v25 = vpop.f32.mrf.mxu2 }
 0x233   :  { %2389 = vmatpush.msrb.mxu0 %v350_v30  ;;  %2409 = vmatpush.msrb.mxu1 %v606_v31  ;;  %v238_v58 = vld [vmem:[#allocation2 + $0x378] sm:$0xff]  ;;  %v3330_v30 = vpop.f32.mrf.mxu0  ;;  %v2514_v31 = vld [vmem:[#allocation6 + $0xf8] sm:$0xff] }
 0x234   :  { %2429 = vmatpush.msrb.mxu2 %v862_v32  ;;  %2449 = vmatpush.msrb.mxu3 %v1118_v33  ;;  %v494_v59 = vld [vmem:[#allocation2 + $0xb78] sm:$0xff]  ;;  %v2530_v32 = vld [vmem:[#allocation6 + $0x178] sm:$0xff] }
 0x235   :  { %2390 = vmatpush.msrb.mxu0 %v334_v34  ;;  %2410 = vmatpush.msrb.mxu1 %v590_v35  ;;  %v750_v60 = vld [vmem:[#allocation2 + $0x1378] sm:$0xff]  ;;  %v2546_v33 = vld [vmem:[#allocation6 + $0x1f8] sm:$0xff]  ;;  %v2497_v34 = vld [vmem:[#allocation6 + $0x70] sm:$0xff] }
 0x236   :  { %2430 = vmatpush.msrb.mxu2 %v846_v36  ;;  %2450 = vmatpush.msrb.mxu3 %v1102_v37  ;;  %v1006_v61 = vld [vmem:[#allocation2 + $0x1b78] sm:$0xff]  ;;  %v2513_v35 = vld [vmem:[#allocation6 + $0xf0] sm:$0xff]  ;;  %v3333_v37 = vpop.f32.mrf.mxu3 }
 0x237   :  { %2391 = vmatpush.msrb.mxu0 %v318_v38  ;;  %2411 = vmatpush.msrb.mxu1 %v574_v39  ;;  %v222_v62 = vld [vmem:[#allocation2 + $0x2f8] sm:$0xff]  ;;  %v2529_v36 = vld [vmem:[#allocation6 + $0x170] sm:$0xff]  ;;  %v3335_v38 = vpop.f32.mrf.mxu1 }
 0x238   :  { %2431 = vmatpush.msrb.mxu2 %v830_v40  ;;  %2451 = vmatpush.msrb.mxu3 %v1086_v41  ;;  %v478_v63 = vld [vmem:[#allocation2 + $0xaf8] sm:$0xff]  ;;  %v2545_v39 = vld [vmem:[#allocation6 + $0x1f0] sm:$0xff] }
 0x239   :  { %2392 = vmatpush.msrb.mxu0 %v302_v42  ;;  %2412 = vmatpush.msrb.mxu1 %v558_v43  ;;  %v734_v0 = vld [vmem:[#allocation2 + $0x12f8] sm:$0xff]  ;;  %v2495_v43 = vld [vmem:[#allocation6 + $0x60] sm:$0xff] }
 0x23a   :  { %2432 = vmatpush.msrb.mxu2 %v814_v44  ;;  %2452 = vmatpush.msrb.mxu3 %v1070_v45  ;;  %v990_v1 = vld [vmem:[#allocation2 + $0x1af8] sm:$0xff]  ;;  %v2511_v44 = vld [vmem:[#allocation6 + $0xe0] sm:$0xff]  ;;  %v3340_v45 = vpop.f32.mrf.mxu2 }
 0x23b   :  { %2393 = vmatpush.msrb.mxu0 %v286_v46  ;;  %2413 = vmatpush.msrb.mxu1 %v542_v47  ;;  %v206_v2 = vld [vmem:[#allocation2 + $0x278] sm:$0xff]  ;;  %v1364_v46 = vpop.f32.mrf.mxu0  ;;  %v2543_v47 = vld [vmem:[#allocation6 + $0x1e0] sm:$0xff] }
 0x23c   :  { %2433 = vmatpush.msrb.mxu2 %v798_v48  ;;  %2453 = vmatpush.msrb.mxu3 %v1054_v49  ;;  %v462_v3 = vld [vmem:[#allocation2 + $0xa78] sm:$0xff]  ;;  %v2510_v48 = vld [vmem:[#allocation6 + $0xd8] sm:$0xff] }
 0x23d   :  { %2394 = vmatpush.msrb.mxu0 %v270_v50  ;;  %2414 = vmatpush.msrb.mxu1 %v526_v51  ;;  %v718_v4 = vld [vmem:[#allocation2 + $0x1278] sm:$0xff]  ;;  %v2526_v49 = vld [vmem:[#allocation6 + $0x158] sm:$0xff]  ;;  %v3342_v51 = vld [vmem:[#allocation4] sm:$0xff] }
 0x23e   :  { %2434 = vmatpush.msrb.mxu2 %v782_v52  ;;  %2454 = vmatpush.msrb.mxu3 %v1038_v53  ;;  %v974_v5 = vld [vmem:[#allocation2 + $0x1a78] sm:$0xff]  ;;  %v2542_v50 = vld [vmem:[#allocation6 + $0x1d8] sm:$0xff]  ;;  %v2509_v52 = vld [vmem:[#allocation6 + $0xd0] sm:$0xff]  ;;  %v3344_v53 = vpop.f32.mrf.mxu3 }
 0x23f   :  { %2395 = vmatpush.msrb.mxu0 %v254_v54  ;;  %2415 = vmatpush.msrb.mxu1 %v510_v55  ;;  %v190_v6 = vld [vmem:[#allocation2 + $0x1f8] sm:$0xff]  ;;  %v1384_v54 = vpop.f32.mrf.mxu1  ;;  %v2525_v55 = vld [vmem:[#allocation6 + $0x150] sm:$0xff] }
 0x240   :  { %2435 = vmatpush.msrb.mxu2 %v766_v56  ;;  %2455 = vmatpush.msrb.mxu3 %v1022_v57  ;;  %v446_v7 = vld [vmem:[#allocation2 + $0x9f8] sm:$0xff]  ;;  %v2541_v56 = vld [vmem:[#allocation6 + $0x1d0] sm:$0xff] }
 0x241   :  { %2363 = vmatmul.f32.vlgmr.msra.gmra.mxu2 %v3260_v28  ;;  %2396 = vmatpush.msrb.mxu0 %v238_v58  ;;  %v702_v9 = vld [vmem:[#allocation2 + $0x11f8] sm:$0xff] }
 0x242   :  { %2416 = vmatpush.msrb.mxu1 %v494_v59  ;;  %2436 = vmatpush.msrb.mxu2 %v750_v60  ;;  %v958_v10 = vld [vmem:[#allocation2 + $0x19f8] sm:$0xff]  ;;  %v1155_v59 = vperm.slane %v3342_v51, 0  ;;  %v1156_v60 = vperm.slane %v3342_v51, 1 }
 0x243   :  { %2456 = vmatpush.msrb.mxu3 %v1006_v61  ;;  %2323 = vmatmul.f32.vlgmr.msra.gmra.mxu0 %v3255_v26  ;;  %v174_v11 = vld [vmem:[#allocation2 + $0x178] sm:$0xff] }
 0x244   :  { %2383 = vmatmul.f32.vlgmr.msra.gmra.mxu3 %v3262_v29  ;;  %2397 = vmatpush.msrb.mxu0 %v222_v62  ;;  %v430_v12 = vld [vmem:[#allocation2 + $0x978] sm:$0xff] }
 0x245   :  { %2417 = vmatpush.msrb.mxu1 %v478_v63  ;;  %2437 = vmatpush.msrb.mxu2 %v734_v0  ;;  %v686_v13 = vld [vmem:[#allocation2 + $0x1178] sm:$0xff]  ;;  %v1157_v63 = vperm.slane %v3342_v51, 2  ;;  %v1158_v0 = vperm.slane %v3342_v51, 3 }
 0x246   :  { %2457 = vmatpush.msrb.mxu3 %v990_v1  ;;  %2343 = vmatmul.f32.vlgmr.msra.gmra.mxu1 %v3258_v27  ;;  %v942_v14 = vld [vmem:[#allocation2 + $0x1978] sm:$0xff]  ;;  %v2491_v1 = vld [vmem:[#allocation6 + $0x40] sm:$0xff] }
 0x247   :  { %2398 = vmatpush.msrb.mxu0 %v206_v2  ;;  %2418 = vmatpush.msrb.mxu1 %v462_v3  ;;  %v158_v15 = vld [vmem:[#allocation2 + $0xf8] sm:$0xff]  ;;  %v2507_v2 = vld [vmem:[#allocation6 + $0xc0] sm:$0xff]  ;;  %v1404_v3 = vpop.f32.mrf.mxu2 }
 0x248   :  { %2438 = vmatpush.msrb.mxu2 %v718_v4  ;;  %2458 = vmatpush.msrb.mxu3 %v974_v5  ;;  %v414_v16 = vld [vmem:[#allocation2 + $0x8f8] sm:$0xff]  ;;  %v1444_v4 = vpop.f32.mrf.mxu0  ;;  %v2523_v5 = vld [vmem:[#allocation6 + $0x140] sm:$0xff] }
 0x249   :  { %2399 = vmatpush.msrb.mxu0 %v190_v6  ;;  %2419 = vmatpush.msrb.mxu1 %v446_v7  ;;  %v670_v18 = vld [vmem:[#allocation2 + $0x10f8] sm:$0xff]  ;;  %v2539_v6 = vld [vmem:[#allocation6 + $0x1c0] sm:$0xff]  ;;  %v2490_v7 = vld [vmem:[#allocation6 + $0x38] sm:$0xff] }
 0x24a   :  { %2439 = vmatpush.msrb.mxu2 %v702_v9  ;;  %2459 = vmatpush.msrb.mxu3 %v958_v10  ;;  %v926_v19 = vld [vmem:[#allocation2 + $0x18f8] sm:$0xff]  ;;  %v2506_v9 = vld [vmem:[#allocation6 + $0xb8] sm:$0xff]  ;;  %v1205_v10 = vadd.f32 %v3324_v8, %v1155_v59 }
 0x24b   :  { %2400 = vmatpush.msrb.mxu0 %v174_v11  ;;  %2420 = vmatpush.msrb.mxu1 %v430_v12  ;;  %v142_v20 = vld [vmem:[#allocation2 + $0x78] sm:$0xff]  ;;  %v1285_v11 = vadd.f32 %v3330_v30, %v1156_v60  ;;  %v2522_v12 = vld [vmem:[#allocation6 + $0x138] sm:$0xff]  ;;  %v2483_v60 = vld [vmem:[#allocation6] sm:$0xff] }
 0x24c   :  { %2440 = vmatpush.msrb.mxu2 %v686_v13  ;;  %2460 = vmatpush.msrb.mxu3 %v942_v14  ;;  %v398_v21 = vld [vmem:[#allocation2 + $0x878] sm:$0xff]  ;;  %v2538_v13 = vld [vmem:[#allocation6 + $0x1b8] sm:$0xff]  ;;  %v1365_v14 = vadd.f32 %v1364_v46, %v1157_v63  ;;  %v2531_v63 = vld [vmem:[#allocation6 + $0x180] sm:$0xff] }
 0x24d   :  { %2401 = vmatpush.msrb.mxu0 %v158_v15  ;;  %2421 = vmatpush.msrb.mxu1 %v414_v16  ;;  %v654_v22 = vld [vmem:[#allocation2 + $0x1078] sm:$0xff]  ;;  %v1445_v15 = vadd.f32 %v1444_v4, %v1158_v0  ;;  %v2489_v16 = vld [vmem:[#allocation6 + $0x30] sm:$0xff]  ;;  %v1305_v30 = vadd.f32 %v3335_v38, %v1285_v11  ;;  %v2534_v46 = vld [vmem:[#allocation6 + $0x198] sm:$0xff] }
 0x24e   :  { %v910_v23 = vld [vmem:[#allocation2 + $0x1878] sm:$0xff]  ;;  %2441 = vmatpush.msrb.mxu2 %v670_v18  ;;  %2461 = vmatpush.msrb.mxu3 %v926_v19  ;;  %v2505_v18 = vld [vmem:[#allocation6 + $0xb0] sm:$0xff]  ;;  %v1424_v19 = vpop.f32.mrf.mxu3  ;;  %v2562_v4 = vld [vmem:[#allocation6 + $0x278] sm:$0xff] }
 0x24f   :  { %2402 = vmatpush.msrb.mxu0 %v142_v20  ;;  %2422 = vmatpush.msrb.mxu1 %v398_v21  ;;  %v2496_v40 = vld [vmem:[#allocation6 + $0x68] sm:$0xff]  ;;  %v1464_v20 = vpop.f32.mrf.mxu1  ;;  %v2521_v21 = vld [vmem:[#allocation6 + $0x130] sm:$0xff] }
 0x250   :  { %2442 = vmatpush.msrb.mxu2 %v654_v22  ;;  %2462 = vmatpush.msrb.mxu3 %v910_v23  ;;  %v2512_v41 = vld [vmem:[#allocation6 + $0xe8] sm:$0xff]  ;;  %v2537_v22 = vld [vmem:[#allocation6 + $0x1b0] sm:$0xff] }
 0x251   :  { %2443 = vmatmul.f32.vlgmr.msrb.gmra.mxu2 %v3260_v28  ;;  %2743 = vmatpush.msra.mxu0 %v2498_v24  ;;  %v2528_v28 = vld [vmem:[#allocation6 + $0x168] sm:$0xff]  ;;  %v1225_v24 = vadd.f32 %v3326_v17, %v1205_v10  ;;  %v2486_v17 = vld [vmem:[#allocation6 + $0x18] sm:$0xff]  ;;  %v2577_v10 = vld [vmem:[#allocation6 + $0x2f0] sm:$0xff] }
 0x252   :  { %2763 = vmatpush.msra.mxu1 %v2514_v31  ;;  %2783 = vmatpush.msra.mxu2 %v2530_v32  ;;  %v2544_v42 = vld [vmem:[#allocation6 + $0x1e8] sm:$0xff] }
 0x253   :  { %2803 = vmatpush.msra.mxu3 %v2546_v33  ;;  %2403 = vmatmul.f32.vlgmr.msrb.gmra.mxu0 %v3255_v26  ;;  %v2527_v26 = vld [vmem:[#allocation6 + $0x160] sm:$0xff]  ;;  %v2492_v57 = vld [vmem:[#allocation6 + $0x48] sm:$0xff]  ;;  %v1385_v33 = vadd.f32 %v1384_v54, %v1365_v14  ;;  %v1245_v38 = vadd.f32 %v3328_v25, %v1225_v24  ;;  %v2609_v14 = vld [vmem:[#allocation6 + $0x3f0] sm:$0xff] }
 0x254   :  { %2463 = vmatmul.f32.vlgmr.msrb.gmra.mxu3 %v3262_v29  ;;  %2744 = vmatpush.msra.mxu0 %v2497_v34  ;;  %v2494_v29 = vld [vmem:[#allocation6 + $0x58] sm:$0xff]  ;;  %v2508_v58 = vld [vmem:[#allocation6 + $0xc8] sm:$0xff]  ;;  %v1465_v34 = vadd.f32 %v1464_v20, %v1445_v15  ;;  %v2559_v20 = vld [vmem:[#allocation6 + $0x260] sm:$0xff] }
 0x255   :  { %2764 = vmatpush.msra.mxu1 %v2513_v35  ;;  %2784 = vmatpush.msra.mxu2 %v2529_v36  ;;  %v2524_v61 = vld [vmem:[#allocation6 + $0x148] sm:$0xff]  ;;  %v2487_v35 = vld [vmem:[#allocation6 + $0x20] sm:$0xff] }
 0x256   :  { %2804 = vmatpush.msra.mxu3 %v2545_v39  ;;  %2423 = vmatmul.f32.vlgmr.msrb.gmra.mxu1 %v3258_v27  ;;  %v2493_v27 = vld [vmem:[#allocation6 + $0x50] sm:$0xff]  ;;  %v2540_v62 = vld [vmem:[#allocation6 + $0x1c8] sm:$0xff]  ;;  %v2503_v36 = vld [vmem:[#allocation6 + $0xa0] sm:$0xff]  ;;  %v1484_v39 = vpop.f32.mrf.mxu2 }
 0x257   :  { %2745 = vmatpush.msra.mxu0 %v2496_v40  ;;  %2765 = vmatpush.msra.mxu1 %v2512_v41  ;;  %v2488_v8 = vld [vmem:[#allocation6 + $0x28] sm:$0xff]  ;;  %v2519_v40 = vld [vmem:[#allocation6 + $0x120] sm:$0xff] }
 0x258   :  { %2785 = vmatpush.msra.mxu2 %v2528_v28  ;;  %2805 = vmatpush.msra.mxu3 %v2544_v42  ;;  %v2504_v23 = vld [vmem:[#allocation6 + $0xa8] sm:$0xff]  ;;  %v2535_v41 = vld [vmem:[#allocation6 + $0x1a0] sm:$0xff]  ;;  %v2502_v28 = vld [vmem:[#allocation6 + $0x98] sm:$0xff]  ;;  %v1325_v42 = vadd.f32 %v3340_v45, %v1305_v30 }
 0x259   :  { %2746 = vmatpush.msra.mxu0 %v2495_v43  ;;  %2766 = vmatpush.msra.mxu1 %v2511_v44  ;;  %v2520_v31 = vld [vmem:[#allocation6 + $0x128] sm:$0xff]  ;;  %v3356_v43 = vpop.f32.mrf.mxu0  ;;  %v2518_v44 = vld [vmem:[#allocation6 + $0x118] sm:$0xff]  ;;  %v2607_v24 = vld [vmem:[#allocation6 + $0x3e0] sm:$0xff] }
 0x25a   :  { %2786 = vmatpush.msra.mxu2 %v2527_v26  ;;  %2806 = vmatpush.msra.mxu3 %v2543_v47  ;;  %v2536_v32 = vld [vmem:[#allocation6 + $0x1a8] sm:$0xff]  ;;  %v1405_v26 = vadd.f32 %v1404_v3, %v1385_v33  ;;  %v1485_v47 = vadd.f32 %v1484_v39, %v1465_v34  ;;  %v1345_v54 = vadd.f32 %v3344_v53, %v1325_v42  ;;  %v2558_v30 = vld [vmem:[#allocation6 + $0x258] sm:$0xff]  ;;  %v2557_v34 = vld [vmem:[#allocation6 + $0x250] sm:$0xff]  ;;  %v1160_v42 = vperm.slane %v3342_v51, 5 }
 0x25b   :  { %2747 = vmatpush.msra.mxu0 %v2494_v29  ;;  %2767 = vmatpush.msra.mxu1 %v2510_v48  ;;  %v2485_v29 = vld [vmem:[#allocation6 + $0x10] sm:$0xff]  ;;  %v2484_v25 = vld [vmem:[#allocation6 + $0x8] sm:$0xff]  ;;  %v2606_v33 = vld [vmem:[#allocation6 + $0x3d8] sm:$0xff] }
 0x25c   :  { %2787 = vmatpush.msra.mxu2 %v2526_v49  ;;  %2807 = vmatpush.msra.mxu3 %v2542_v50  ;;  %v2501_v48 = vld [vmem:[#allocation6 + $0x90] sm:$0xff]  ;;  %v1504_v49 = vpop.f32.mrf.mxu3  ;;  %v2500_v45 = vld [vmem:[#allocation6 + $0x88] sm:$0xff]  ;;  %v2468_v53 = vmax.f32 %v1345_v54, 0.0 }
 0x25d   :  { %2748 = vmatpush.msra.mxu0 %v2493_v27  ;;  %2768 = vmatpush.msra.mxu1 %v2509_v52  ;;  %v2517_v50 = vld [vmem:[#allocation6 + $0x110] sm:$0xff]  ;;  %v1265_v52 = vadd.f32 %v3333_v37, %v1245_v38  ;;  %v1505_v59 = vadd.f32 %v1504_v49, %v1485_v47  ;;  %v2560_v15 = vld [vmem:[#allocation6 + $0x268] sm:$0xff]  ;;  %v1159_v38 = vperm.slane %v3342_v51, 4  ;;  %v1162_v47 = vperm.slane %v3342_v51, 7 }
 0x25e   :  { %2788 = vmatpush.msra.mxu2 %v2525_v55  ;;  %2808 = vmatpush.msra.mxu3 %v2541_v56  ;;  %v2533_v27 = vld [vmem:[#allocation6 + $0x190] sm:$0xff]  ;;  %v3360_v55 = vpop.f32.mrf.mxu1  ;;  %v2516_v56 = vld [vmem:[#allocation6 + $0x108] sm:$0xff]  ;;  %v3362_v0 = vpop.f32.mrf.mxu2 }
 0x25f   :  { %2749 = vmatpush.msra.mxu0 %v2492_v57  ;;  %2769 = vmatpush.msra.mxu1 %v2508_v58  ;;  %v2532_v57 = vld [vmem:[#allocation6 + $0x188] sm:$0xff]  ;;  %v1425_v58 = vadd.f32 %v1424_v19, %v1405_v26  ;;  %v2467_v37 = vmax.f32 %v1265_v52, 0.0  ;;  %v2470_v3 = vmax.f32 %v1505_v59, 0.0  ;;  %v1161_v26 = vperm.slane %v3342_v51, 6  ;;  %v2570_v52 = vld [vmem:[#allocation6 + $0x2b8] sm:$0xff] }
 0x260   :  { %2789 = vmatpush.msra.mxu2 %v2524_v61  ;;  %2809 = vmatpush.msra.mxu3 %v2540_v62  ;;  %v2499_v61 = vld [vmem:[#allocation6 + $0x80] sm:$0xff]  ;;  %v2608_v19 = vld [vmem:[#allocation6 + $0x3e8] sm:$0xff]  ;;  %v1525_v54 = vadd.f32 %v3356_v43, %v1159_v38  ;;  %v2586_v51 = vld [vmem:[#allocation6 + $0x338] sm:$0xff] }
 0x261   :  { %2750 = vmatpush.msra.mxu0 %v2491_v1  ;;  %2770 = vmatpush.msra.mxu1 %v2507_v2  ;;  %v2515_v62 = vld [vmem:[#allocation6 + $0x100] sm:$0xff]  ;;  %v3364_v1 = vpop.f32.mrf.mxu0  ;;  %v2469_v2 = vmax.f32 %v1425_v58, 0.0  ;;  %v2552_v43 = vld [vmem:[#allocation6 + $0x228] sm:$0xff] }
 0x262   :  { %2790 = vmatpush.msra.mxu2 %v2523_v5  ;;  %2810 = vmatpush.msra.mxu3 %v2539_v6  ;;  %v2578_v5 = vld [vmem:[#allocation6 + $0x2f8] sm:$0xff]  ;;  %v2547_v38 = vld [vmem:[#allocation6 + $0x200] sm:$0xff] }
 0x263   :  { %2751 = vmatpush.msra.mxu0 %v2490_v7  ;;  %2771 = vmatpush.msra.mxu1 %v2506_v9  ;;  %v2594_v6 = vld [vmem:[#allocation6 + $0x378] sm:$0xff]  ;;  %v2561_v9 = vld [vmem:[#allocation6 + $0x270] sm:$0xff] }
 0x264   :  { %2791 = vmatpush.msra.mxu2 %v2522_v12  ;;  %2811 = vmatpush.msra.mxu3 %v2538_v13  ;;  %v2610_v7 = vld [vmem:[#allocation6 + $0x3f8] sm:$0xff]  ;;  %v3366_v11 = vpop.f32.mrf.mxu3  ;;  %v2593_v13 = vld [vmem:[#allocation6 + $0x370] sm:$0xff] }
 0x265   :  { %2752 = vmatpush.msra.mxu0 %v2489_v16  ;;  %2772 = vmatpush.msra.mxu1 %v2505_v18  ;;  %v2576_v16 = vld [vmem:[#allocation6 + $0x2e8] sm:$0xff] }
 0x266   :  { %2792 = vmatpush.msra.mxu2 %v2521_v21  ;;  %2812 = vmatpush.msra.mxu3 %v2537_v22  ;;  %v3368_v12 = vpop.f32.mrf.mxu1  ;;  %v2592_v18 = vld [vmem:[#allocation6 + $0x368] sm:$0xff]  ;;  %v2575_v21 = vld [vmem:[#allocation6 + $0x2e0] sm:$0xff]  ;;  %v3370_v22 = vpop.f32.mrf.mxu2 }
 0x267   :  { %2753 = vmatpush.msra.mxu0 %v2488_v8  ;;  %2773 = vmatpush.msra.mxu1 %v2504_v23  ;;  %v2591_v23 = vld [vmem:[#allocation6 + $0x360] sm:$0xff] }
 0x268   :  { %2793 = vmatpush.msra.mxu2 %v2520_v31  ;;  %2813 = vmatpush.msra.mxu3 %v2536_v32  ;;  %v2574_v31 = vld [vmem:[#allocation6 + $0x2d8] sm:$0xff] }
 0x269   :  { %2754 = vmatpush.msra.mxu0 %v2487_v35  ;;  %2774 = vmatpush.msra.mxu1 %v2503_v36  ;;  %v1684_v8 = vpop.f32.mrf.mxu0  ;;  %v2590_v32 = vld [vmem:[#allocation6 + $0x358] sm:$0xff]  ;;  %v2573_v35 = vld [vmem:[#allocation6 + $0x2d0] sm:$0xff] }
 0x26a   :  { %2794 = vmatpush.msra.mxu2 %v2519_v40  ;;  %2814 = vmatpush.msra.mxu3 %v2535_v41  ;;  %v2589_v40 = vld [vmem:[#allocation6 + $0x350] sm:$0xff]  ;;  %v1685_v58 = vadd.f32 %v1684_v8, %v1161_v26 }
 0x26b   :  { %2755 = vmatpush.msra.mxu0 %v2486_v17  ;;  %2775 = vmatpush.msra.mxu1 %v2502_v28  ;;  %v2605_v41 = vld [vmem:[#allocation6 + $0x3d0] sm:$0xff]  ;;  %v2556_v17 = vld [vmem:[#allocation6 + $0x248] sm:$0xff] }
 0x26c   :  { %2795 = vmatpush.msra.mxu2 %v2518_v44  ;;  %2815 = vmatpush.msra.mxu3 %v2534_v46  ;;  %v3372_v36 = vpop.f32.mrf.mxu3  ;;  %v2572_v28 = vld [vmem:[#allocation6 + $0x2c8] sm:$0xff] }
 0x26d   :  { %2756 = vmatpush.msra.mxu0 %v2485_v29  ;;  %2776 = vmatpush.msra.mxu1 %v2501_v48  ;;  %v2588_v44 = vld [vmem:[#allocation6 + $0x348] sm:$0xff]  ;;  %v2555_v29 = vld [vmem:[#allocation6 + $0x240] sm:$0xff] }
 0x26e   :  { %2796 = vmatpush.msra.mxu2 %v2517_v50  ;;  %2816 = vmatpush.msra.mxu3 %v2533_v27  ;;  %v1704_v39 = vpop.f32.mrf.mxu1  ;;  %v2604_v46 = vld [vmem:[#allocation6 + $0x3c8] sm:$0xff]  ;;  %v2571_v48 = vld [vmem:[#allocation6 + $0x2c0] sm:$0xff]  ;;  %v1724_v49 = vpop.f32.mrf.mxu2 }
 0x26f   :  { %2757 = vmatpush.msra.mxu0 %v2484_v25  ;;  %2777 = vmatpush.msra.mxu1 %v2500_v45  ;;  %v2587_v27 = vld [vmem:[#allocation6 + $0x340] sm:$0xff]  ;;  %v2554_v45 = vld [vmem:[#allocation6 + $0x238] sm:$0xff] }
 0x270   :  { %2797 = vmatpush.msra.mxu2 %v2516_v56  ;;  %2817 = vmatpush.msra.mxu3 %v2532_v57  ;;  %v2603_v25 = vld [vmem:[#allocation6 + $0x3c0] sm:$0xff]  ;;  %v1605_v56 = vadd.f32 %v3364_v1, %v1160_v42  ;;  %v2602_v57 = vld [vmem:[#allocation6 + $0x3b8] sm:$0xff]  ;;  %v2568_v1 = vld [vmem:[#allocation6 + $0x2a8] sm:$0xff] }
 0x271   :  { %2758 = vmatpush.msra.mxu0 %v2483_v60  ;;  %2778 = vmatpush.msra.mxu1 %v2499_v61  ;;  %v1764_v50 = vpop.f32.mrf.mxu0  ;;  %v2553_v60 = vld [vmem:[#allocation6 + $0x230] sm:$0xff]  ;;  %v2563_v42 = vld [vmem:[#allocation6 + $0x280] sm:$0xff] }
 0x272   :  { %2798 = vmatpush.msra.mxu2 %v2515_v62  ;;  %2818 = vmatpush.msra.mxu3 %v2531_v63  ;;  %v1765_v59 = vadd.f32 %v1764_v50, %v1162_v47  ;;  %v2569_v61 = vld [vmem:[#allocation6 + $0x2b0] sm:$0xff]  ;;  %v2642_v50 = vld [vmem:[#allocation6 + $0x4f8] sm:$0xff] }
 0x273   :  { %2759 = vmatmul.f32.vlgmr.msra.gmra.mxu0 %v2467_v37  ;;  %2779 = vmatmul.f32.vlgmr.msra.gmra.mxu1 %v2468_v53  ;;  %v2585_v37 = vld [vmem:[#allocation6 + $0x330] sm:$0xff] }
 0x274   :  { %2799 = vmatmul.f32.vlgmr.msra.gmra.mxu2 %v2469_v2  ;;  %2819 = vmatmul.f32.vlgmr.msra.gmra.mxu3 %v2470_v3  ;;  %v1744_v62 = vpop.f32.mrf.mxu3  ;;  %v2601_v53 = vld [vmem:[#allocation6 + $0x3b0] sm:$0xff]  ;;  %v1545_v2 = vadd.f32 %v3360_v55, %v1525_v54  ;;  %v1625_v3 = vadd.f32 %v3368_v12, %v1605_v56  ;;  %v2550_v55 = vld [vmem:[#allocation6 + $0x218] sm:$0xff] }
 0x275   :  { %2823 = vmatpush.msrb.mxu0 %v2562_v4  ;;  %2843 = vmatpush.msrb.mxu1 %v2578_v5  ;;  %v2584_v4 = vld [vmem:[#allocation6 + $0x328] sm:$0xff] }
 0x276   :  { %2863 = vmatpush.msrb.mxu2 %v2594_v6  ;;  %2883 = vmatpush.msrb.mxu3 %v2610_v7  ;;  %v1784_v63 = vpop.f32.mrf.mxu1  ;;  %v2600_v5 = vld [vmem:[#allocation6 + $0x3a8] sm:$0xff]  ;;  %v1705_v6 = vadd.f32 %v1704_v39, %v1685_v58  ;;  %v1565_v12 = vadd.f32 %v3362_v0, %v1545_v2  ;;  %v2622_v2 = vld [vmem:[#allocation6 + $0x458] sm:$0xff] }
 0x277   :  { %2824 = vmatpush.msrb.mxu0 %v2561_v9  ;;  %2844 = vmatpush.msrb.mxu1 %v2577_v10  ;;  %v1785_v7 = vadd.f32 %v1784_v63, %v1765_v59  ;;  %v2551_v9 = vld [vmem:[#allocation6 + $0x220] sm:$0xff]  ;;  %v2548_v0 = vld [vmem:[#allocation6 + $0x208] sm:$0xff] }
 0x278   :  { %2864 = vmatpush.msrb.mxu2 %v2593_v13  ;;  %2884 = vmatpush.msrb.mxu3 %v2609_v14  ;;  %v2567_v10 = vld [vmem:[#allocation6 + $0x2a0] sm:$0xff]  ;;  %v1804_v13 = vpop.f32.mrf.mxu2  ;;  %v1725_v8 = vadd.f32 %v1724_v49, %v1705_v6  ;;  %v2626_v49 = vld [vmem:[#allocation6 + $0x478] sm:$0xff]  ;;  %v2624_v58 = vld [vmem:[#allocation6 + $0x468] sm:$0xff] }
 0x279   :  { %2825 = vmatpush.msrb.mxu0 %v2560_v15  ;;  %2845 = vmatpush.msrb.mxu1 %v2576_v16  ;;  %v2583_v14 = vld [vmem:[#allocation6 + $0x320] sm:$0xff]  ;;  %v2566_v16 = vld [vmem:[#allocation6 + $0x298] sm:$0xff]  ;;  %v2640_v59 = vld [vmem:[#allocation6 + $0x4e8] sm:$0xff] }
 0x27a   :  { %2865 = vmatpush.msrb.mxu2 %v2592_v18  ;;  %2885 = vmatpush.msrb.mxu3 %v2608_v19  ;;  %v2599_v15 = vld [vmem:[#allocation6 + $0x3a0] sm:$0xff]  ;;  %v1645_v18 = vadd.f32 %v3370_v22, %v1625_v3  ;;  %v3384_v19 = vpop.f32.mrf.mxu0  ;;  %v2564_v22 = vld [vmem:[#allocation6 + $0x288] sm:$0xff]  ;;  %v2638_v3 = vld [vmem:[#allocation6 + $0x4d8] sm:$0xff] }
 0x27b   :  { %2826 = vmatpush.msrb.mxu0 %v2559_v20  ;;  %2846 = vmatpush.msrb.mxu1 %v2575_v21  ;;  %v2582_v20 = vld [vmem:[#allocation6 + $0x318] sm:$0xff]  ;;  %v2639_v63 = vld [vmem:[#allocation6 + $0x4e0] sm:$0xff] }
 0x27c   :  { %2866 = vmatpush.msrb.mxu2 %v2591_v23  ;;  %2886 = vmatpush.msrb.mxu3 %v2607_v24  ;;  %v2598_v21 = vld [vmem:[#allocation6 + $0x398] sm:$0xff]  ;;  %v1805_v23 = vadd.f32 %v1804_v13, %v1785_v7  ;;  %v2549_v24 = vld [vmem:[#allocation6 + $0x210] sm:$0xff] }
 0x27d   :  { %2827 = vmatpush.msrb.mxu0 %v2558_v30  ;;  %2847 = vmatpush.msrb.mxu1 %v2574_v31  ;;  %v2565_v30 = vld [vmem:[#allocation6 + $0x290] sm:$0xff]  ;;  %v1824_v31 = vpop.f32.mrf.mxu3  ;;  %v3400_v6 = vld [vmem:[#allocation4 + $0x8] sm:$0xff] }
 0x27e   :  { %2867 = vmatpush.msrb.mxu2 %v2590_v32  ;;  %2887 = vmatpush.msrb.mxu3 %v2606_v33  ;;  %v2581_v32 = vld [vmem:[#allocation6 + $0x310] sm:$0xff]  ;;  %v3388_v39 = vpop.f32.mrf.mxu1 }
 0x27f   :  { %2828 = vmatpush.msrb.mxu0 %v2557_v34  ;;  %2848 = vmatpush.msrb.mxu1 %v2573_v35  ;;  %v2597_v33 = vld [vmem:[#allocation6 + $0x390] sm:$0xff]  ;;  %v1585_v34 = vadd.f32 %v3366_v11, %v1565_v12  ;;  %v1665_v35 = vadd.f32 %v3372_v36, %v1645_v18  ;;  %v1163_v12 = vperm.slane %v3400_v6, 0  ;;  %v1164_v18 = vperm.slane %v3400_v6, 1 }
 0x280   :  { %2868 = vmatpush.msrb.mxu2 %v2589_v40  ;;  %2888 = vmatpush.msrb.mxu3 %v2605_v41  ;;  %v2580_v40 = vld [vmem:[#allocation6 + $0x308] sm:$0xff]  ;;  %v3390_v26 = vpop.f32.mrf.mxu2  ;;  %v2621_v7 = vld [vmem:[#allocation6 + $0x450] sm:$0xff] }
 0x281   :  { %2829 = vmatpush.msrb.mxu0 %v2556_v17  ;;  %2849 = vmatpush.msrb.mxu1 %v2572_v28  ;;  %v2596_v41 = vld [vmem:[#allocation6 + $0x388] sm:$0xff]  ;;  %v1745_v17 = vadd.f32 %v1744_v62, %v1725_v8  ;;  %v1825_v28 = vadd.f32 %v1824_v31, %v1805_v23  ;;  %v2471_v11 = vmax.f32 %v1585_v34, 0.0  ;;  %v2472_v36 = vmax.f32 %v1665_v35, 0.0  ;;  %v2623_v62 = vld [vmem:[#allocation6 + $0x460] sm:$0xff]  ;;  %v2634_v34 = vld [vmem:[#allocation6 + $0x4b8] sm:$0xff] }
 0x282   :  { %2869 = vmatpush.msrb.mxu2 %v2588_v44  ;;  %2889 = vmatpush.msrb.mxu3 %v2604_v46  ;;  %v2579_v44 = vld [vmem:[#allocation6 + $0x300] sm:$0xff]  ;;  %v3392_v47 = vpop.f32.mrf.mxu0  ;;  %v1165_v8 = vperm.slane %v3400_v6, 2  ;;  %v1166_v23 = vperm.slane %v3400_v6, 3  ;;  %v1845_v35 = vadd.f32 %v3384_v19, %v1163_v12  ;;  %v2616_v19 = vld [vmem:[#allocation6 + $0x428] sm:$0xff] }
 0x283   :  { %2830 = vmatpush.msrb.mxu0 %v2555_v29  ;;  %2850 = vmatpush.msrb.mxu1 %v2571_v48  ;;  %v2595_v46 = vld [vmem:[#allocation6 + $0x380] sm:$0xff]  ;;  %v2473_v29 = vmax.f32 %v1745_v17, 0.0  ;;  %v2474_v48 = vmax.f32 %v1825_v28, 0.0  ;;  %v2666_v17 = vld [vmem:[#allocation6 + $0x5b8] sm:$0xff] }
 0x284   :  { %2870 = vmatpush.msrb.mxu2 %v2587_v27  ;;  %2890 = vmatpush.msrb.mxu3 %v2603_v25  ;;  %v2658_v27 = vld [vmem:[#allocation6 + $0x578] sm:$0xff]  ;;  %v2611_v12 = vld [vmem:[#allocation6 + $0x400] sm:$0xff] }
 0x285   :  { %2831 = vmatpush.msrb.mxu0 %v2554_v45  ;;  %2851 = vmatpush.msrb.mxu1 %v2570_v52  ;;  %v2674_v25 = vld [vmem:[#allocation6 + $0x5f8] sm:$0xff]  ;;  %v2625_v45 = vld [vmem:[#allocation6 + $0x470] sm:$0xff]  ;;  %v3394_v54 = vpop.f32.mrf.mxu3 }
 0x286   :  { %2871 = vmatpush.msrb.mxu2 %v2586_v51  ;;  %2891 = vmatpush.msrb.mxu3 %v2602_v57  ;;  %v2641_v52 = vld [vmem:[#allocation6 + $0x4f0] sm:$0xff]  ;;  %v3396_v56 = vpop.f32.mrf.mxu1 }
 0x287   :  { %2832 = vmatpush.msrb.mxu0 %v2553_v60  ;;  %2852 = vmatpush.msrb.mxu1 %v2569_v61  ;;  %v2657_v51 = vld [vmem:[#allocation6 + $0x570] sm:$0xff]  ;;  %v2656_v60 = vld [vmem:[#allocation6 + $0x568] sm:$0xff] }
 0x288   :  { %2872 = vmatpush.msrb.mxu2 %v2585_v37  ;;  %2892 = vmatpush.msrb.mxu3 %v2601_v53  ;;  %v2673_v57 = vld [vmem:[#allocation6 + $0x5f0] sm:$0xff]  ;;  %v2672_v61 = vld [vmem:[#allocation6 + $0x5e8] sm:$0xff]  ;;  %v3398_v37 = vpop.f32.mrf.mxu2 }
 0x289   :  { %2833 = vmatpush.msrb.mxu0 %v2552_v43  ;;  %2853 = vmatpush.msrb.mxu1 %v2568_v1  ;;  %v2655_v43 = vld [vmem:[#allocation6 + $0x560] sm:$0xff] }
 0x28a   :  { %2873 = vmatpush.msrb.mxu2 %v2584_v4  ;;  %2893 = vmatpush.msrb.mxu3 %v2600_v5  ;;  %v2004_v53 = vpop.f32.mrf.mxu0  ;;  %v2671_v1 = vld [vmem:[#allocation6 + $0x5e0] sm:$0xff]  ;;  %v2654_v4 = vld [vmem:[#allocation6 + $0x558] sm:$0xff] }
 0x28b   :  { %2834 = vmatpush.msrb.mxu0 %v2551_v9  ;;  %2854 = vmatpush.msrb.mxu1 %v2567_v10  ;;  %v2670_v5 = vld [vmem:[#allocation6 + $0x5d8] sm:$0xff]  ;;  %v2637_v9 = vld [vmem:[#allocation6 + $0x4d0] sm:$0xff]  ;;  %v2005_v28 = vadd.f32 %v2004_v53, %v1165_v8 }
 0x28c   :  { %2874 = vmatpush.msrb.mxu2 %v2583_v14  ;;  %2894 = vmatpush.msrb.mxu3 %v2599_v15  ;;  %v2653_v14 = vld [vmem:[#allocation6 + $0x550] sm:$0xff] }
 0x28d   :  { %2835 = vmatpush.msrb.mxu0 %v2550_v55  ;;  %2855 = vmatpush.msrb.mxu1 %v2566_v16  ;;  %v3402_v10 = vpop.f32.mrf.mxu3  ;;  %v2669_v15 = vld [vmem:[#allocation6 + $0x5d0] sm:$0xff]  ;;  %v2620_v55 = vld [vmem:[#allocation6 + $0x448] sm:$0xff] }
 0x28e   :  { %2875 = vmatpush.msrb.mxu2 %v2582_v20  ;;  %2895 = vmatpush.msrb.mxu3 %v2598_v21  ;;  %v2024_v13 = vpop.f32.mrf.mxu1  ;;  %v2636_v16 = vld [vmem:[#allocation6 + $0x4c8] sm:$0xff] }
 0x28f   :  { %2836 = vmatpush.msrb.mxu0 %v2549_v24  ;;  %2856 = vmatpush.msrb.mxu1 %v2565_v30  ;;  %v2652_v20 = vld [vmem:[#allocation6 + $0x548] sm:$0xff]  ;;  %v2619_v24 = vld [vmem:[#allocation6 + $0x440] sm:$0xff] }
 0x290   :  { %2876 = vmatpush.msrb.mxu2 %v2581_v32  ;;  %2896 = vmatpush.msrb.mxu3 %v2597_v33  ;;  %v2668_v21 = vld [vmem:[#allocation6 + $0x5c8] sm:$0xff]  ;;  %v2635_v30 = vld [vmem:[#allocation6 + $0x4c0] sm:$0xff]  ;;  %v2044_v31 = vpop.f32.mrf.mxu2 }
 0x291   :  { %2837 = vmatpush.msrb.mxu0 %v2548_v0  ;;  %2857 = vmatpush.msrb.mxu1 %v2564_v22  ;;  %v2651_v33 = vld [vmem:[#allocation6 + $0x540] sm:$0xff]  ;;  %v2618_v22 = vld [vmem:[#allocation6 + $0x438] sm:$0xff] }
 0x292   :  { %2877 = vmatpush.msrb.mxu2 %v2580_v40  ;;  %2897 = vmatpush.msrb.mxu3 %v2596_v41  ;;  %v2084_v32 = vpop.f32.mrf.mxu0  ;;  %v2667_v0 = vld [vmem:[#allocation6 + $0x5c0] sm:$0xff]  ;;  %v1925_v40 = vadd.f32 %v3392_v47, %v1164_v18  ;;  %v2650_v41 = vld [vmem:[#allocation6 + $0x538] sm:$0xff]  ;;  %v2632_v47 = vld [vmem:[#allocation6 + $0x4a8] sm:$0xff] }
 0x293   :  { %2838 = vmatpush.msrb.mxu0 %v2547_v38  ;;  %2858 = vmatpush.msrb.mxu1 %v2563_v42  ;;  %v2085_v38 = vadd.f32 %v2084_v32, %v1166_v23  ;;  %v2617_v42 = vld [vmem:[#allocation6 + $0x430] sm:$0xff]  ;;  %v2627_v18 = vld [vmem:[#allocation6 + $0x480] sm:$0xff]  ;;  %v2722_v32 = vld [vmem:[#allocation6 + $0x778] sm:$0xff] }
 0x294   :  { %2878 = vmatpush.msrb.mxu2 %v2579_v44  ;;  %2898 = vmatpush.msrb.mxu3 %v2595_v46  ;;  %v2633_v44 = vld [vmem:[#allocation6 + $0x4b0] sm:$0xff] }
 0x295   :  { %2839 = vmatmul.f32.vlgmr.msrb.gmra.mxu0 %v2471_v11  ;;  %2859 = vmatmul.f32.vlgmr.msrb.gmra.mxu1 %v2472_v36  ;;  %v2064_v46 = vpop.f32.mrf.mxu3  ;;  %v2649_v36 = vld [vmem:[#allocation6 + $0x530] sm:$0xff] }
 0x296   :  { %2879 = vmatmul.f32.vlgmr.msrb.gmra.mxu2 %v2473_v29  ;;  %2899 = vmatmul.f32.vlgmr.msrb.gmra.mxu3 %v2474_v48  ;;  %v2104_v11 = vpop.f32.mrf.mxu1  ;;  %v2665_v29 = vld [vmem:[#allocation6 + $0x5b0] sm:$0xff]  ;;  %v1865_v48 = vadd.f32 %v3388_v39, %v1845_v35  ;;  %v2614_v39 = vld [vmem:[#allocation6 + $0x418] sm:$0xff] }
 0x297   :  { %2903 = vmatpush.msra.mxu0 %v2626_v49  ;;  %2923 = vmatpush.msra.mxu1 %v2642_v50  ;;  %v1945_v49 = vadd.f32 %v3396_v56, %v1925_v40  ;;  %v2648_v50 = vld [vmem:[#allocation6 + $0x528] sm:$0xff]  ;;  %v2737_v35 = vld [vmem:[#allocation6 + $0x7f0] sm:$0xff] }
 0x298   :  { %2943 = vmatpush.msra.mxu2 %v2658_v27  ;;  %2963 = vmatpush.msra.mxu3 %v2674_v25  ;;  %v2664_v27 = vld [vmem:[#allocation6 + $0x5a8] sm:$0xff]  ;;  %v2025_v25 = vadd.f32 %v2024_v13, %v2005_v28  ;;  %v1885_v56 = vadd.f32 %v3390_v26, %v1865_v48  ;;  %v2702_v48 = vld [vmem:[#allocation6 + $0x6d8] sm:$0xff] }
 0x299   :  { %2904 = vmatpush.msra.mxu0 %v2625_v45  ;;  %2924 = vmatpush.msra.mxu1 %v2641_v52  ;;  %v2105_v45 = vadd.f32 %v2104_v11, %v2085_v38  ;;  %v2615_v52 = vld [vmem:[#allocation6 + $0x420] sm:$0xff]  ;;  %v2612_v26 = vld [vmem:[#allocation6 + $0x408] sm:$0xff] }
 0x29a   :  { %2944 = vmatpush.msra.mxu2 %v2657_v51  ;;  %2964 = vmatpush.msra.mxu3 %v2673_v57  ;;  %v2631_v51 = vld [vmem:[#allocation6 + $0x4a0] sm:$0xff]  ;;  %v2124_v57 = vpop.f32.mrf.mxu2  ;;  %v2045_v53 = vadd.f32 %v2044_v31, %v2025_v25  ;;  %v2644_v13 = vld [vmem:[#allocation6 + $0x508] sm:$0xff]  ;;  %v2706_v31 = vld [vmem:[#allocation6 + $0x6f8] sm:$0xff] }
 0x29b   :  { %2905 = vmatpush.msra.mxu0 %v2624_v58  ;;  %2925 = vmatpush.msra.mxu1 %v2640_v59  ;;  %v2647_v58 = vld [vmem:[#allocation6 + $0x520] sm:$0xff]  ;;  %v2704_v28 = vld [vmem:[#allocation6 + $0x6e8] sm:$0xff]  ;;  %v2701_v25 = vld [vmem:[#allocation6 + $0x6d0] sm:$0xff] }
 0x29c   :  { %2945 = vmatpush.msra.mxu2 %v2656_v60  ;;  %2965 = vmatpush.msra.mxu3 %v2672_v61  ;;  %v2663_v59 = vld [vmem:[#allocation6 + $0x5a0] sm:$0xff]  ;;  %v2630_v60 = vld [vmem:[#allocation6 + $0x498] sm:$0xff]  ;;  %v1965_v61 = vadd.f32 %v3398_v37, %v1945_v49  ;;  %v1905_v37 = vadd.f32 %v3394_v54, %v1885_v56  ;;  %v2720_v38 = vld [vmem:[#allocation6 + $0x768] sm:$0xff]  ;;  %v1168_v56 = vperm.slane %v3400_v6, 5 }
 0x29d   :  { %2906 = vmatpush.msra.mxu0 %v2623_v62  ;;  %2926 = vmatpush.msra.mxu1 %v2639_v63  ;;  %v2646_v62 = vld [vmem:[#allocation6 + $0x518] sm:$0xff]  ;;  %v2719_v11 = vld [vmem:[#allocation6 + $0x760] sm:$0xff] }
 0x29e   :  { %2946 = vmatpush.msra.mxu2 %v2655_v43  ;;  %2966 = vmatpush.msra.mxu3 %v2671_v1  ;;  %v2662_v63 = vld [vmem:[#allocation6 + $0x598] sm:$0xff]  ;;  %v2125_v43 = vadd.f32 %v2124_v57, %v2105_v45  ;;  %v2613_v1 = vld [vmem:[#allocation6 + $0x410] sm:$0xff]  ;;  %v2475_v54 = vmax.f32 %v1905_v37, 0.0  ;;  %v1167_v57 = vperm.slane %v3400_v6, 4 }
 0x29f   :  { %2907 = vmatpush.msra.mxu0 %v2622_v2  ;;  %2927 = vmatpush.msra.mxu1 %v2638_v3  ;;  %v2629_v2 = vld [vmem:[#allocation6 + $0x490] sm:$0xff]  ;;  %v2144_v3 = vpop.f32.mrf.mxu3  ;;  %v2718_v49 = vld [vmem:[#allocation6 + $0x758] sm:$0xff] }
 0x2a0   :  { %2947 = vmatpush.msra.mxu2 %v2654_v4  ;;  %2967 = vmatpush.msra.mxu3 %v2670_v5  ;;  %v2645_v4 = vld [vmem:[#allocation6 + $0x510] sm:$0xff] }
 0x2a1   :  { %2908 = vmatpush.msra.mxu0 %v2621_v7  ;;  %2928 = vmatpush.msra.mxu1 %v2637_v9  ;;  %v2661_v5 = vld [vmem:[#allocation6 + $0x590] sm:$0xff]  ;;  %v2628_v7 = vld [vmem:[#allocation6 + $0x488] sm:$0xff]  ;;  %v1985_v9 = vadd.f32 %v3402_v10, %v1965_v61 }
 0x2a2   :  { %2948 = vmatpush.msra.mxu2 %v2653_v14  ;;  %2968 = vmatpush.msra.mxu3 %v2669_v15  ;;  %v2660_v14 = vld [vmem:[#allocation6 + $0x588] sm:$0xff]  ;;  %v2065_v15 = vadd.f32 %v2064_v46, %v2045_v53  ;;  %v3420_v40 = vpop.f32.mrf.mxu2  ;;  %v2703_v46 = vld [vmem:[#allocation6 + $0x6e0] sm:$0xff]  ;;  %v2717_v45 = vld [vmem:[#allocation6 + $0x750] sm:$0xff] }
 0x2a3   :  { %2909 = vmatpush.msra.mxu0 %v2620_v55  ;;  %2929 = vmatpush.msra.mxu1 %v2636_v16  ;;  %v2145_v55 = vadd.f32 %v2144_v3, %v2125_v43  ;;  %v3416_v16 = vpop.f32.mrf.mxu0  ;;  %v2476_v10 = vmax.f32 %v1985_v9, 0.0  ;;  %v2716_v61 = vld [vmem:[#allocation6 + $0x748] sm:$0xff]  ;;  %v2699_v53 = vld [vmem:[#allocation6 + $0x6c0] sm:$0xff]  ;;  %v2714_v9 = vld [vmem:[#allocation6 + $0x738] sm:$0xff] }
 0x2a4   :  { %2949 = vmatpush.msra.mxu2 %v2652_v20  ;;  %2969 = vmatpush.msra.mxu3 %v2668_v21  ;;  %v2643_v20 = vld [vmem:[#allocation6 + $0x500] sm:$0xff]  ;;  %v2477_v8 = vmax.f32 %v2065_v15, 0.0  ;;  %v2165_v3 = vadd.f32 %v3416_v16, %v1167_v57  ;;  %v2697_v15 = vld [vmem:[#allocation6 + $0x6b0] sm:$0xff] }
 0x2a5   :  { %2910 = vmatpush.msra.mxu0 %v2619_v24  ;;  %2930 = vmatpush.msra.mxu1 %v2635_v30  ;;  %v2659_v21 = vld [vmem:[#allocation6 + $0x580] sm:$0xff]  ;;  %v2478_v23 = vmax.f32 %v2145_v55, 0.0  ;;  %v3418_v24 = vpop.f32.mrf.mxu1  ;;  %v2690_v30 = vld [vmem:[#allocation6 + $0x678] sm:$0xff]  ;;  %v2713_v55 = vld [vmem:[#allocation6 + $0x730] sm:$0xff] }
 0x2a6   :  { %2950 = vmatpush.msra.mxu2 %v2651_v33  ;;  %2970 = vmatpush.msra.mxu3 %v2667_v0  ;;  %v2738_v33 = vld [vmem:[#allocation6 + $0x7f8] sm:$0xff]  ;;  %v2689_v0 = vld [vmem:[#allocation6 + $0x670] sm:$0xff]  ;;  %v2715_v43 = vld [vmem:[#allocation6 + $0x740] sm:$0xff] }
 0x2a7   :  { %2911 = vmatpush.msra.mxu0 %v2618_v22  ;;  %2931 = vmatpush.msra.mxu1 %v2634_v34  ;;  %v2705_v22 = vld [vmem:[#allocation6 + $0x6f0] sm:$0xff] }
 0x2a8   :  { %2951 = vmatpush.msra.mxu2 %v2650_v41  ;;  %2971 = vmatpush.msra.mxu3 %v2666_v17  ;;  %v2721_v34 = vld [vmem:[#allocation6 + $0x770] sm:$0xff]  ;;  %v2688_v17 = vld [vmem:[#allocation6 + $0x668] sm:$0xff] }
 0x2a9   :  { %2912 = vmatpush.msra.mxu0 %v2617_v42  ;;  %2932 = vmatpush.msra.mxu1 %v2633_v44  ;;  %v2736_v42 = vld [vmem:[#allocation6 + $0x7e8] sm:$0xff]  ;;  %v2687_v44 = vld [vmem:[#allocation6 + $0x660] sm:$0xff] }
 0x2aa   :  { %2952 = vmatpush.msra.mxu2 %v2649_v36  ;;  %2972 = vmatpush.msra.mxu3 %v2665_v29  ;;  %v2735_v36 = vld [vmem:[#allocation6 + $0x7e0] sm:$0xff]  ;;  %v3424_v29 = vpop.f32.mrf.mxu3 }
 0x2ab   :  { %2913 = vmatpush.msra.mxu0 %v2616_v19  ;;  %2933 = vmatpush.msra.mxu1 %v2632_v47  ;;  %v3422_v41 = vpop.f32.mrf.mxu0  ;;  %v2686_v47 = vld [vmem:[#allocation6 + $0x658] sm:$0xff] }
 0x2ac   :  { %2953 = vmatpush.msra.mxu2 %v2648_v50  ;;  %2973 = vmatpush.msra.mxu3 %v2664_v27  ;;  %v2734_v50 = vld [vmem:[#allocation6 + $0x7d8] sm:$0xff]  ;;  %v2685_v27 = vld [vmem:[#allocation6 + $0x650] sm:$0xff]  ;;  %v2245_v37 = vadd.f32 %v3422_v41, %v1168_v56 }
 0x2ad   :  { %2914 = vmatpush.msra.mxu0 %v2615_v52  ;;  %2934 = vmatpush.msra.mxu1 %v2631_v51  ;;  %v3426_v19 = vpop.f32.mrf.mxu1  ;;  %v1169_v52 = vperm.slane %v3400_v6, 6  ;;  %v2733_v51 = vld [vmem:[#allocation6 + $0x7d0] sm:$0xff] }
 0x2ae   :  { %2954 = vmatpush.msra.mxu2 %v2647_v58  ;;  %2974 = vmatpush.msra.mxu3 %v2663_v59  ;;  %v2684_v59 = vld [vmem:[#allocation6 + $0x648] sm:$0xff] }
 0x2af   :  { %2915 = vmatpush.msra.mxu0 %v2614_v39  ;;  %2935 = vmatpush.msra.mxu1 %v2630_v60  ;;  %v2700_v39 = vld [vmem:[#allocation6 + $0x6c8] sm:$0xff] }
 0x2b0   :  { %2955 = vmatpush.msra.mxu2 %v2646_v62  ;;  %2975 = vmatpush.msra.mxu3 %v2662_v63  ;;  %v2732_v62 = vld [vmem:[#allocation6 + $0x7c8] sm:$0xff]  ;;  %v2683_v63 = vld [vmem:[#allocation6 + $0x640] sm:$0xff] }
 0x2b1   :  { %2916 = vmatpush.msra.mxu0 %v2613_v1  ;;  %2936 = vmatpush.msra.mxu1 %v2629_v2  ;;  %v3430_v58 = vpop.f32.mrf.mxu2  ;;  %v2731_v2 = vld [vmem:[#allocation6 + $0x7c0] sm:$0xff] }
 0x2b2   :  { %2956 = vmatpush.msra.mxu2 %v2645_v4  ;;  %2976 = vmatpush.msra.mxu3 %v2661_v5  ;;  %v3434_v4 = vpop.f32.mrf.mxu3  ;;  %v2682_v5 = vld [vmem:[#allocation6 + $0x638] sm:$0xff] }
 0x2b3   :  { %2917 = vmatpush.msra.mxu0 %v2612_v26  ;;  %2937 = vmatpush.msra.mxu1 %v2628_v7  ;;  %v2698_v26 = vld [vmem:[#allocation6 + $0x6b8] sm:$0xff] }
 0x2b4   :  { %2957 = vmatpush.msra.mxu2 %v2644_v13  ;;  %2977 = vmatpush.msra.mxu3 %v2660_v14  ;;  %v2730_v13 = vld [vmem:[#allocation6 + $0x7b8] sm:$0xff]  ;;  %v2681_v14 = vld [vmem:[#allocation6 + $0x630] sm:$0xff] }
 0x2b5   :  { %2918 = vmatpush.msra.mxu0 %v2611_v12  ;;  %2938 = vmatpush.msra.mxu1 %v2627_v18  ;;  %v2729_v12 = vld [vmem:[#allocation6 + $0x7b0] sm:$0xff]  ;;  %v2185_v18 = vadd.f32 %v3418_v24, %v2165_v3  ;;  %v1170_v24 = vperm.slane %v3400_v6, 7 }
 0x2b6   :  { %2958 = vmatpush.msra.mxu2 %v2643_v20  ;;  %2978 = vmatpush.msra.mxu3 %v2659_v21  ;;  %v2680_v20 = vld [vmem:[#allocation6 + $0x628] sm:$0xff] }
 0x2b7   :  { %2919 = vmatmul.f32.vlgmr.msra.gmra.mxu0 %v2475_v54  ;;  %2939 = vmatmul.f32.vlgmr.msra.gmra.mxu1 %v2476_v10  ;;  %v2696_v21 = vld [vmem:[#allocation6 + $0x6a8] sm:$0xff]  ;;  %v2265_v10 = vadd.f32 %v3426_v19, %v2245_v37 }
 0x2b8   :  { %2959 = vmatmul.f32.vlgmr.msra.gmra.mxu2 %v2477_v8  ;;  %2979 = vmatmul.f32.vlgmr.msra.gmra.mxu3 %v2478_v23  ;;  %v2712_v8 = vld [vmem:[#allocation6 + $0x728] sm:$0xff] }
 0x2b9   :  { %2983 = vmatpush.msrb.mxu0 %v2690_v30  ;;  %3003 = vmatpush.msrb.mxu1 %v2706_v31  ;;  %v2728_v23 = vld [vmem:[#allocation6 + $0x7a8] sm:$0xff]  ;;  %v2679_v30 = vld [vmem:[#allocation6 + $0x620] sm:$0xff] }
 0x2ba   :  { %3023 = vmatpush.msrb.mxu2 %v2722_v32  ;;  %3043 = vmatpush.msrb.mxu3 %v2738_v33  ;;  %v2695_v31 = vld [vmem:[#allocation6 + $0x6a0] sm:$0xff] }
 0x2bb   :  { %2984 = vmatpush.msrb.mxu0 %v2689_v0  ;;  %3004 = vmatpush.msrb.mxu1 %v2705_v22  ;;  %v2711_v32 = vld [vmem:[#allocation6 + $0x720] sm:$0xff]  ;;  %v2205_v22 = vadd.f32 %v3420_v40, %v2185_v18  ;;  %v2709_v40 = vld [vmem:[#allocation6 + $0x710] sm:$0xff] }
 0x2bc   :  { %3024 = vmatpush.msrb.mxu2 %v2721_v34  ;;  %3044 = vmatpush.msrb.mxu3 %v2737_v35  ;;  %v2727_v0 = vld [vmem:[#allocation6 + $0x7a0] sm:$0xff]  ;;  %v2678_v34 = vld [vmem:[#allocation6 + $0x618] sm:$0xff] }
 0x2bd   :  { %2985 = vmatpush.msrb.mxu0 %v2688_v17  ;;  %3005 = vmatpush.msrb.mxu1 %v2704_v28  ;;  %v2694_v35 = vld [vmem:[#allocation6 + $0x698] sm:$0xff]  ;;  %v2285_v17 = vadd.f32 %v3430_v58, %v2265_v10  ;;  %v2225_v19 = vadd.f32 %v3424_v29, %v2205_v22  ;;  %v2707_v29 = vld [vmem:[#allocation6 + $0x700] sm:$0xff] }
 0x2be   :  { %3025 = vmatpush.msrb.mxu2 %v2720_v38  ;;  %3045 = vmatpush.msrb.mxu3 %v2736_v42  ;;  %v2710_v28 = vld [vmem:[#allocation6 + $0x718] sm:$0xff]  ;;  %v2677_v42 = vld [vmem:[#allocation6 + $0x610] sm:$0xff] }
 0x2bf   :  { %2986 = vmatpush.msrb.mxu0 %v2687_v44  ;;  %3006 = vmatpush.msrb.mxu1 %v2703_v46  ;;  %v2726_v38 = vld [vmem:[#allocation6 + $0x798] sm:$0xff]  ;;  %v2693_v44 = vld [vmem:[#allocation6 + $0x690] sm:$0xff] }
 0x2c0   :  { %3026 = vmatpush.msrb.mxu2 %v2719_v11  ;;  %3046 = vmatpush.msrb.mxu3 %v2735_v36  ;;  %v2324_v60 = vpop.f32.mrf.mxu0  ;;  %v2725_v36 = vld [vmem:[#allocation6 + $0x790] sm:$0xff] }
 0x2c1   :  { %2987 = vmatpush.msrb.mxu0 %v2686_v47  ;;  %3007 = vmatpush.msrb.mxu1 %v2702_v48  ;;  %v2325_v1 = vadd.f32 %v2324_v60, %v1169_v52  ;;  %v2676_v47 = vld [vmem:[#allocation6 + $0x608] sm:$0xff]  ;;  %v2691_v52 = vld [vmem:[#allocation6 + $0x680] sm:$0xff] }
 0x2c2   :  { %3027 = vmatpush.msrb.mxu2 %v2718_v49  ;;  %3047 = vmatpush.msrb.mxu3 %v2734_v50  ;;  %v2692_v48 = vld [vmem:[#allocation6 + $0x688] sm:$0xff]  ;;  %v2305_v49 = vadd.f32 %v3434_v4, %v2285_v17 }
 0x2c3   :  { %2988 = vmatpush.msrb.mxu0 %v2685_v27  ;;  %3008 = vmatpush.msrb.mxu1 %v2701_v25  ;;  %v2344_v7 = vpop.f32.mrf.mxu1  ;;  %v2708_v50 = vld [vmem:[#allocation6 + $0x708] sm:$0xff] }
 0x2c4   :  { %3028 = vmatpush.msrb.mxu2 %v2717_v45  ;;  %3048 = vmatpush.msrb.mxu3 %v2733_v51  ;;  %v2345_v16 = vadd.f32 %v2344_v7, %v2325_v1  ;;  %v2364_v54 = vpop.f32.mrf.mxu2  ;;  %v2724_v25 = vld [vmem:[#allocation6 + $0x788] sm:$0xff]  ;;  %v2675_v45 = vld [vmem:[#allocation6 + $0x600] sm:$0xff]  ;;  %v2480_v60 = vmax.f32 %v2305_v49, 0.0 }
 0x2c5   :  { %2989 = vmatpush.msrb.mxu0 %v2684_v59  ;;  %3009 = vmatpush.msrb.mxu1 %v2700_v39  ;;  %v2479_v59 = vmax.f32 %v2225_v19, 0.0 }
 0x2c6   :  { %3029 = vmatpush.msrb.mxu2 %v2716_v61  ;;  %3049 = vmatpush.msrb.mxu3 %v2732_v62  ;;  %v2365_v33 = vadd.f32 %v2364_v54, %v2345_v16  ;;  %v2723_v61 = vld [vmem:[#allocation6 + $0x780] sm:$0xff] }
 0x2c7   :  { %2990 = vmatpush.msrb.mxu0 %v2683_v63  ;;  %3010 = vmatpush.msrb.mxu1 %v2699_v53  ;;  %v2384_v41 = vpop.f32.mrf.mxu3  ;;  %v3079_v53 = vld [vmem:[#allocation7] ss:$0 sm:$0xff] }
 0x2c8   :  { %3030 = vmatpush.msrb.mxu2 %v2715_v43  ;;  %3050 = vmatpush.msrb.mxu3 %v2731_v2  ;;  %v2385_v6 = vadd.f32 %v2384_v41, %v2365_v33 }
 0x2c9   :  { %2991 = vmatpush.msrb.mxu0 %v2682_v5  ;;  %3011 = vmatpush.msrb.mxu1 %v2698_v26 }
 0x2ca   :  { %3031 = vmatpush.msrb.mxu2 %v2714_v9  ;;  %3051 = vmatpush.msrb.mxu3 %v2730_v13  ;;  %v2481_v58 = vmax.f32 %v2385_v6, 0.0 }
 0x2cb   :  { %2992 = vmatpush.msrb.mxu0 %v2681_v14  ;;  %3012 = vmatpush.msrb.mxu1 %v2697_v15 }
 0x2cc   :  { %3032 = vmatpush.msrb.mxu2 %v2713_v55  ;;  %3052 = vmatpush.msrb.mxu3 %v2729_v12 }
 0x2cd   :  { %2993 = vmatpush.msrb.mxu0 %v2680_v20  ;;  %3013 = vmatpush.msrb.mxu1 %v2696_v21 }
 0x2ce   :  { %3033 = vmatpush.msrb.mxu2 %v2712_v8  ;;  %3053 = vmatpush.msrb.mxu3 %v2728_v23 }
 0x2cf   :  { %2994 = vmatpush.msrb.mxu0 %v2679_v30  ;;  %3014 = vmatpush.msrb.mxu1 %v2695_v31 }
 0x2d0   :  { %3034 = vmatpush.msrb.mxu2 %v2711_v32  ;;  %v2404_v46 = vpop.f32.mrf.mxu0  ;;  %3054 = vmatpush.msrb.mxu3 %v2727_v0 }
 0x2d1   :  { %2995 = vmatpush.msrb.mxu0 %v2678_v34  ;;  %3015 = vmatpush.msrb.mxu1 %v2694_v35  ;;  %v2405_v11 = vadd.f32 %v2404_v46, %v1170_v24 }
 0x2d2   :  { %3035 = vmatpush.msrb.mxu2 %v2710_v28  ;;  %3055 = vmatpush.msrb.mxu3 %v2726_v38 }
 0x2d3   :  { %2996 = vmatpush.msrb.mxu0 %v2677_v42  ;;  %3016 = vmatpush.msrb.mxu1 %v2693_v44  ;;  %v2424_v27 = vpop.f32.mrf.mxu1 }
 0x2d4   :  { %3036 = vmatpush.msrb.mxu2 %v2709_v40  ;;  %v2425_v51 = vadd.f32 %v2424_v27, %v2405_v11  ;;  %v2444_v57 = vpop.f32.mrf.mxu2  ;;  %3056 = vmatpush.msrb.mxu3 %v2725_v36 }
 0x2d5   :  { %2997 = vmatpush.msrb.mxu0 %v2676_v47  ;;  %3017 = vmatpush.msrb.mxu1 %v2692_v48 }
 0x2d6   :  { %3037 = vmatpush.msrb.mxu2 %v2708_v50  ;;  %v2445_v39 = vadd.f32 %v2444_v57, %v2425_v51  ;;  %3057 = vmatpush.msrb.mxu3 %v2724_v25 }
 0x2d7   :  { %2998 = vmatpush.msrb.mxu0 %v2675_v45  ;;  %3018 = vmatpush.msrb.mxu1 %v2691_v52  ;;  %v2464_v56 = vpop.f32.mrf.mxu3 }
 0x2d8   :  { %3038 = vmatpush.msrb.mxu2 %v2707_v29  ;;  %2999 = vmatmul.f32.vlgmr.msrb.gmra.mxu0 %v2479_v59  ;;  %v2465_v62 = vadd.f32 %v2464_v56, %v2445_v39 }
 0x2d9   :  { %3019 = vmatmul.f32.vlgmr.msrb.gmra.mxu1 %v2480_v60  ;;  %3039 = vmatmul.f32.vlgmr.msrb.gmra.mxu2 %v2481_v58 }
 0x2da   :  { %v2482_v63 = vmax.f32 %v2465_v62, 0.0  ;;  %3058 = vmatpush.msrb.mxu3 %v2723_v61 }
 0x2dc   :  { %3059 = vmatmul.f32.vlgmr.msrb.gmra.mxu3 %v2482_v63 }
 0x2f0   :  { %v2760_v43 = vpop.f32.mrf.mxu0  ;;  %v2780_v2 = vpop.f32.mrf.mxu1 }
 0x2f1   :  { %v2761_v1 = vadd.f32 %v3079_v53, %v2760_v43 }
 0x2f3   :  { %v2781_v4 = vadd.f32 %v2780_v2, %v2761_v1 }
 0x2f7   :  { %v2800_v3 = vpop.f32.mrf.mxu2  ;;  %v2820_v26 = vpop.f32.mrf.mxu3 }
 0x2f8   :  { %v2801_v5 = vadd.f32 %v2800_v3, %v2781_v4 }
 0x2fa   :  { %v2821_v37 = vadd.f32 %v2820_v26, %v2801_v5 }
 0x312   :  { %v2840_v7 = vpop.f32.mrf.mxu0  ;;  %v2860_v13 = vpop.f32.mrf.mxu1 }
 0x313   :  { %v2841_v9 = vadd.f32 %v2840_v7, %v2821_v37 }
 0x315   :  { %v2861_v15 = vadd.f32 %v2860_v13, %v2841_v9 }
 0x319   :  { %v2880_v14 = vpop.f32.mrf.mxu2  ;;  %v2900_v16 = vpop.f32.mrf.mxu3 }
 0x31a   :  { %v2881_v55 = vadd.f32 %v2880_v14, %v2861_v15 }
 0x31c   :  { %v2901_v18 = vadd.f32 %v2900_v16, %v2881_v55 }
 0x334   :  { %v2920_v12 = vpop.f32.mrf.mxu0  ;;  %v2940_v21 = vpop.f32.mrf.mxu1 }
 0x335   :  { %v2921_v20 = vadd.f32 %v2920_v12, %v2901_v18 }
 0x337   :  { %v2941_v10 = vadd.f32 %v2940_v21, %v2921_v20 }
 0x33b   :  { %v2960_v54 = vpop.f32.mrf.mxu2  ;;  %v2980_v23 = vpop.f32.mrf.mxu3 }
 0x33c   :  { %v2961_v8 = vadd.f32 %v2960_v54, %v2941_v10 }
 0x33e   :  { %v2981_v31 = vadd.f32 %v2980_v23, %v2961_v8 }
 0x355   :  { %v3000_v30 = vpop.f32.mrf.mxu0 }
 0x356   :  { %v3001_v32 = vadd.f32 %v3000_v30, %v2981_v31  ;;  %v3020_v33 = vpop.f32.mrf.mxu1 }
 0x358   :  { %v3021_v24 = vadd.f32 %v3020_v33, %v3001_v32 }
 0x35c   :  { %v3040_v0 = vpop.f32.mrf.mxu2 }
 0x35d   :  { %v3041_v22 = vadd.f32 %v3040_v0, %v3021_v24 }
 0x35f   :  { %v3060_v34 = vpop.f32.mrf.mxu3 }
 0x360   :  { %v3061_v35 = vadd.f32 %v3060_v34, %v3041_v22 }
 0x362   :  { %3063 = vst [vmem:[%s3453_s6] sm:$0xff] %v3061_v35 }
 0x363   :  { %3068 = vsyncpa [#allocation3], 1 }
 0x364   :  { %3069 = vsyncpa [#allocation5], 1 }
 0x365   :  { %3070 = vsyncpa [#allocation8], 1 }

</bundles_post_ra>
